<compile_context>
chip_gen: v5e
topology: v5e:2x2
jax: 0.10.0
libtpu: 0.0.40
codegen_flags: <defaults>
</compile_context>

<pallas_src>
import functools

import jax
import jax.numpy as jnp
from jax import lax
from jax.experimental import pallas as pl
from jax.experimental.pallas import tpu as pltpu

_BIG = 3.0e37  # penalty added to padded columns / the diagonal (never selected)


def _unwrapping_loss_kernel(a_ref, b_ref, o_ref, d2_ref, stack_ref, *,
                            eps: float, K: int, tm: int, tn: int, strip: int):
    i = pl.program_id(0)
    j = pl.program_id(1)
    n_chunks = tn // 128

    @pl.when(j == 0)
    def _init():
        stack_ref[...] = jnp.full(stack_ref.shape, jnp.inf, jnp.float32)

    # Augmented MXU matmul emits d2 = ||x||^2 + ||y||^2 - 2 x.y (+ padded-col
    # penalty) directly: A = [-2*q_rows | 1 | ||q_rows||^2],
    # B = [q_cols^T ; ||q_cols||^2 + pad ; 1].
    d2_ref[...] = lax.dot_general(a_ref[...], b_ref[...],
                                  (((1,), (0,)), ((), ())),
                                  preferred_element_type=jnp.float32)

    # Mask the true diagonal so the self-distance never participates in the
    # top-K, regardless of fp error in the Gram formulation.  Only runs on the
    # diagonal-overlapping tiles.
    row0 = i * tm
    col0 = j * tn

    @pl.when(jnp.logical_and(row0 < col0 + tn, col0 < row0 + tm))
    def _mask_diag():
        rg = row0 + lax.broadcasted_iota(jnp.int32, (tm, tn), 0)
        cg = col0 + lax.broadcasted_iota(jnp.int32, (tm, tn), 1)
        d2_ref[...] = jnp.where(rg == cg, jnp.float32(_BIG), d2_ref[...])

    # Streamed top-K selection on SQUARED distances.  Invariant: for each
    # sublane strip and lane residue p, stack[:, s*128+p] (s = 0..K-1) holds
    # the K smallest d2 seen so far among columns == p (mod 128), ascending.
    # The strip's K stack slices live in vregs for the whole chunk sweep and
    # are written back once per grid step.
    for r0 in range(0, tm, strip):
        stack = [stack_ref[r0:r0 + strip, s * 128:(s + 1) * 128]
                 for s in range(K)]
        for c in range(n_chunks):                       # static unroll
            x = d2_ref[r0:r0 + strip, c * 128:(c + 1) * 128]
            for s in range(K):                          # pure VPU min/max
                lo = jnp.minimum(stack[s], x)
                x = jnp.maximum(stack[s], x)
                stack[s] = lo
        for s in range(K):
            stack_ref[r0:r0 + strip, s * 128:(s + 1) * 128] = stack[s]

    @pl.when(j == pl.num_programs(1) - 1)
    def _finalize():
        # The global per-row top-K (with multiplicity) is contained in the
        # union of the 128 per-lane-residue top-K stacks: (tm, 128*K)
        # candidates, each corresponding to a distinct column.
        work = stack_ref[...]
        w = work.shape[-1]
        col = lax.broadcasted_iota(jnp.int32, (tm, w), 1)
        acc = jnp.zeros((tm, 1), jnp.float32)
        for k in range(K):
            m = jnp.min(work, axis=-1, keepdims=True)       # k-th smallest d2
            d = jnp.sqrt(jnp.maximum(m, 0.0))               # sqrt on winners only
            acc = acc + jnp.maximum(jnp.float32(eps) - d, 0.0)
            if k + 1 < K:
                # Remove exactly ONE occurrence of the minimum (ties are
                # genuinely distinct equidistant neighbors -> keep multiplicity).
                is_min = work == m
                first = jnp.min(jnp.where(is_min, col, w), axis=-1,
                                keepdims=True)
                work = jnp.where(col == first, jnp.float32(jnp.inf), work)
        # TODO(synk): a lane-dense (1, tm) output layout would save a few
        # masked stores on v5e; kept (tm, 1) since writeback is negligible here.
        o_ref[...] = acc


def unwrapping_loss(q: jax.Array, eps: float, K: int, *,
                    tm: int = 128, tn: int = 2048) -> jax.Array:
    q = jnp.asarray(q, jnp.float32)
    n, d = q.shape
    assert K >= 1 and n >= K + 1

    # Distances are translation-invariant; centering mitigates f32
    # cancellation in the Gram-matrix formulation for offset data.
    q = q - jnp.mean(q, axis=0, keepdims=True)

    # v7x: keep >= 2 row tiles so the "parallel" row axis shards across both
    # TensorCores (harmless on single-TC v5e/v6e).
    while tm > 8 and tm % 16 == 0 and pl.cdiv(n, tm) < 2:
        tm //= 2
    # Don't use a column tile wider than the 128-padded point count.
    tn = min(tn, pl.cdiv(n, 128) * 128)
    assert tm % 8 == 0 and tn % 128 == 0
    strip = 32 if tm % 32 == 0 else 8

    # Decoupled padding: rows to a multiple of tm, columns to a multiple of tn.
    n_rows = pl.cdiv(n, tm) * tm
    n_cols = pl.cdiv(n, tn) * tn
    d_aug = d + 2

    # Row operand  A = [-2*q | 1 | ||q||^2]            (n_rows, d+2)
    qa = jnp.pad(q, ((0, n_rows - n), (0, 0)))
    sq_rows = jnp.sum(qa * qa, axis=-1)
    a = jnp.concatenate([-2.0 * qa,
                         jnp.ones((n_rows, 1), jnp.float32),
                         sq_rows[:, None]], axis=1)

    # Column operand B = [q^T ; ||q||^2 + pad_penalty ; 1]   (d+2, n_cols)
    qb = jnp.pad(q, ((0, n_cols - n), (0, 0)))
    col_pen = jnp.where(jnp.arange(n_cols) >= n,
                        jnp.float32(_BIG), jnp.float32(0.0))
    sq_cols = jnp.sum(qb * qb, axis=-1) + col_pen
    b = jnp.concatenate([qb.T,
                         sq_cols[None, :],
                         jnp.ones((1, n_cols), jnp.float32)], axis=0)

    grid = (n_rows // tm, n_cols // tn)
    per_row = pl.pallas_call(
        functools.partial(_unwrapping_loss_kernel,
                          eps=float(eps), K=int(K), tm=tm, tn=tn, strip=strip),
        out_shape=jax.ShapeDtypeStruct((n_rows, 1), jnp.float32),
        grid_spec=pltpu.PrefetchScalarGridSpec(
            num_scalar_prefetch=0,
            grid=grid,
            in_specs=[
                pl.BlockSpec((tm, d_aug), lambda i, j: (i, 0)),  # rows (resident over j)
                pl.BlockSpec((d_aug, tn), lambda i, j: (0, j)),  # cols (streamed, lane-dense)
            ],
            out_specs=pl.BlockSpec((tm, 1), lambda i, j: (i, 0)),
            scratch_shapes=[
                pltpu.VMEM((tm, tn), jnp.float32),        # d2 tile
                pltpu.VMEM((tm, K * 128), jnp.float32),   # contiguous top-K stack
            ],
        ),
        compiler_params=pltpu.CompilerParams(
            dimension_semantics=("parallel", "arbitrary")),
    )(a, b)

    # Per-row partial losses; padded rows excluded from the mean.
    return jnp.sum(per_row[:n, 0]) / jnp.float32(n)


def unwrapping_loss_ref(q: jax.Array, eps: float, K: int) -> jax.Array:
    # Pure-JAX reference mirroring the PyTorch module.
    diff = q[:, None, :] - q[None, :, :]
    dists = jnp.sqrt(jnp.sum(diff * diff, axis=-1))
    knn = jnp.sort(dists, axis=-1)[:, 1:K + 1]
    return jnp.mean(jnp.sum(jnp.maximum(eps - knn, 0.0), axis=1))


if __name__ == "__main__":
    EPS = 2.0
    K = 4
    N, D = 200, 8   # deliberately not a multiple of the tiles (exercises padding)

    key = jax.random.PRNGKey(0)
    q = jax.random.normal(key, (N, D), dtype=jnp.float32)

    loss = jax.block_until_ready(unwrapping_loss(q, EPS, K))
    ref = jax.block_until_ready(unwrapping_loss_ref(q, EPS, K))

    assert jnp.allclose(loss, ref, atol=1e-4, rtol=1e-4), (loss, ref)
    print("KERNEL_OK")
</pallas_src>

<mosaic_0001>
module attributes {stable_mosaic.version = 11 : i64} {
  func.func @_unwrapping_loss_kernel(%arg0: i32, %arg1: i32, %arg2: memref<128x10xf32, #tpu.memory_space<vmem>>, %arg3: memref<10x256xf32, #tpu.memory_space<vmem>>, %arg4: memref<128x1xf32, #tpu.memory_space<vmem>>, %arg5: memref<128x256xf32, #tpu.memory_space<vmem>>, %arg6: memref<128x512xf32, #tpu.memory_space<vmem>>) attributes {dimension_semantics = [#tpu.dimension_semantics<parallel>, #tpu.dimension_semantics<arbitrary>], iteration_bounds = array<i64: 2, 1>, scalar_prefetch = 0 : i64, scratch_operands = 2 : i64, tpu.core_type = #tpu.core_type<tc>, window_params = [{transform_indices = @transform_0, window_bounds = array<i64: 128, 10>}, {transform_indices = @transform_1, window_bounds = array<i64: 10, 256>}, {transform_indices = @transform_2, window_bounds = array<i64: 128, 1>}]} {
    %c0_i32 = arith.constant 0 : i32
    %0 = arith.cmpi eq, %arg1, %c0_i32 : i32
    %1 = arith.extui %0 : i1 to i32
    %c0_i32_0 = arith.constant 0 : i32
    %2 = arith.cmpi ne, %1, %c0_i32_0 : i32
    scf.if %2 {
      %cst_85 = arith.constant 0x7F800000 : f32
      %115 = vector.broadcast %cst_85 : f32 to vector<128x512xf32>
      %c0_86 = arith.constant 0 : index
      %c0_87 = arith.constant 0 : index
      %116 = vector.load %arg6[%c0_86, %c0_87] : memref<128x512xf32, #tpu.memory_space<vmem>>, vector<128x512xf32>
      tpu.vector_store %arg6[%c0_86, %c0_87], %115 {strides = array<i32>} : memref<128x512xf32, #tpu.memory_space<vmem>>, vector<128x512xf32>,
    } else {
    }
    %c0 = arith.constant 0 : index
    %c0_1 = arith.constant 0 : index
    %3 = vector.load %arg2[%c0, %c0_1] : memref<128x10xf32, #tpu.memory_space<vmem>>, vector<128x10xf32>
    %c0_2 = arith.constant 0 : index
    %c0_3 = arith.constant 0 : index
    %4 = vector.load %arg3[%c0_2, %c0_3] : memref<10x256xf32, #tpu.memory_space<vmem>>, vector<10x256xf32>
    %cst = arith.constant dense<0.000000e+00> : vector<128x256xf32>
    %5 = tpu.matmul %3, %4, %cst {dimension_numbers = #tpu.dot_dimension_numbers<[1], [0], [0], [1], [0, 0, 1, 1], [], []>} : vector<128x10xf32>, vector<10x256xf32>, vector<128x256xf32> -> vector<128x256xf32>
    %c0_4 = arith.constant 0 : index
    %c0_5 = arith.constant 0 : index
    %6 = vector.load %arg5[%c0_4, %c0_5] : memref<128x256xf32, #tpu.memory_space<vmem>>, vector<128x256xf32>
    tpu.vector_store %arg5[%c0_4, %c0_5], %5 {strides = array<i32>} : memref<128x256xf32, #tpu.memory_space<vmem>>, vector<128x256xf32>,
    %c128_i32 = arith.constant 128 : i32
    %7 = arith.muli %arg0, %c128_i32 : i32
    %c256_i32 = arith.constant 256 : i32
    %8 = arith.muli %arg1, %c256_i32 : i32
    %c256_i32_6 = arith.constant 256 : i32
    %9 = arith.addi %8, %c256_i32_6 : i32
    %10 = arith.cmpi slt, %7, %9 : i32
    %c128_i32_7 = arith.constant 128 : i32
    %11 = arith.addi %7, %c128_i32_7 : i32
    %12 = arith.cmpi slt, %8, %11 : i32
    %13 = arith.andi %10, %12 : i1
    %14 = arith.extui %13 : i1 to i32
    %c0_i32_8 = arith.constant 0 : i32
    %15 = arith.cmpi ne, %14, %c0_i32_8 : i32
    scf.if %15 {
      %115 = tpu.iota {dimensions = array<i32: 0>} : vector<128x256xi32>
      %116 = vector.broadcast %7 : i32 to vector<128x256xi32>
      %117 = arith.addi %116, %115 : vector<128x256xi32>
      %118 = tpu.iota {dimensions = array<i32: 1>} : vector<128x256xi32>
      %119 = vector.broadcast %8 : i32 to vector<128x256xi32>
      %120 = arith.addi %119, %118 : vector<128x256xi32>
      %121 = arith.cmpi eq, %117, %120 : vector<128x256xi32>
      %c0_85 = arith.constant 0 : index
      %c0_86 = arith.constant 0 : index
      %122 = vector.load %arg5[%c0_85, %c0_86] : memref<128x256xf32, #tpu.memory_space<vmem>>, vector<128x256xf32>
      %cst_87 = arith.constant 3.000000e+37 : f32
      %123 = vector.broadcast %cst_87 : f32 to vector<128x256xf32>
      %124 = arith.select %121, %123, %122 : vector<128x256xi1>, vector<128x256xf32>
      %c0_88 = arith.constant 0 : index
      %c0_89 = arith.constant 0 : index
      %125 = vector.load %arg5[%c0_88, %c0_89] : memref<128x256xf32, #tpu.memory_space<vmem>>, vector<128x256xf32>
      tpu.vector_store %arg5[%c0_88, %c0_89], %124 {strides = array<i32>} : memref<128x256xf32, #tpu.memory_space<vmem>>, vector<128x256xf32>,
    } else {
    }
    %c0_9 = arith.constant 0 : index
    %c0_10 = arith.constant 0 : index
    %16 = vector.load %arg6[%c0_9, %c0_10] : memref<128x512xf32, #tpu.memory_space<vmem>>, vector<32x128xf32>
    %c0_11 = arith.constant 0 : index
    %c128 = arith.constant 128 : index
    %17 = vector.load %arg6[%c0_11, %c128] : memref<128x512xf32, #tpu.memory_space<vmem>>, vector<32x128xf32>
    %c0_12 = arith.constant 0 : index
    %c256 = arith.constant 256 : index
    %18 = vector.load %arg6[%c0_12, %c256] : memref<128x512xf32, #tpu.memory_space<vmem>>, vector<32x128xf32>
    %c0_13 = arith.constant 0 : index
    %c384 = arith.constant 384 : index
    %19 = vector.load %arg6[%c0_13, %c384] : memref<128x512xf32, #tpu.memory_space<vmem>>, vector<32x128xf32>
    %c0_14 = arith.constant 0 : index
    %c0_15 = arith.constant 0 : index
    %20 = vector.load %arg5[%c0_14, %c0_15] : memref<128x256xf32, #tpu.memory_space<vmem>>, vector<32x128xf32>
    %21 = arith.minimumf %16, %20 : vector<32x128xf32>
    %22 = arith.maximumf %16, %20 : vector<32x128xf32>
    %23 = arith.minimumf %17, %22 : vector<32x128xf32>
    %24 = arith.maximumf %17, %22 : vector<32x128xf32>
    %25 = arith.minimumf %18, %24 : vector<32x128xf32>
    %26 = arith.maximumf %18, %24 : vector<32x128xf32>
    %27 = arith.minimumf %19, %26 : vector<32x128xf32>
    %c0_16 = arith.constant 0 : index
    %c128_17 = arith.constant 128 : index
    %28 = vector.load %arg5[%c0_16, %c128_17] : memref<128x256xf32, #tpu.memory_space<vmem>>, vector<32x128xf32>
    %29 = arith.minimumf %21, %28 : vector<32x128xf32>
    %30 = arith.maximumf %21, %28 : vector<32x128xf32>
    %31 = arith.minimumf %23, %30 : vector<32x128xf32>
    %32 = arith.maximumf %23, %30 : vector<32x128xf32>
    %33 = arith.minimumf %25, %32 : vector<32x128xf32>
    %34 = arith.maximumf %25, %32 : vector<32x128xf32>
    %35 = arith.minimumf %27, %34 : vector<32x128xf32>
    %c0_18 = arith.constant 0 : index
    %c0_19 = arith.constant 0 : index
    %36 = vector.load %arg6[%c0_18, %c0_19] : memref<128x512xf32, #tpu.memory_space<vmem>>, vector<32x128xf32>
    tpu.vector_store %arg6[%c0_18, %c0_19], %29 {strides = array<i32>} : memref<128x512xf32, #tpu.memory_space<vmem>>, vector<32x128xf32>,
    %c0_20 = arith.constant 0 : index
    %c128_21 = arith.constant 128 : index
    %37 = vector.load %arg6[%c0_20, %c128_21] : memref<128x512xf32, #tpu.memory_space<vmem>>, vector<32x128xf32>
    tpu.vector_store %arg6[%c0_20, %c128_21], %31 {strides = array<i32>} : memref<128x512xf32, #tpu.memory_space<vmem>>, vector<32x128xf32>,
    %c0_22 = arith.constant 0 : index
    %c256_23 = arith.constant 256 : index
    %38 = vector.load %arg6[%c0_22, %c256_23] : memref<128x512xf32, #tpu.memory_space<vmem>>, vector<32x128xf32>
    tpu.vector_store %arg6[%c0_22, %c256_23], %33 {strides = array<i32>} : memref<128x512xf32, #tpu.memory_space<vmem>>, vector<32x128xf32>,
    %c0_24 = arith.constant 0 : index
    %c384_25 = arith.constant 384 : index
    %39 = vector.load %arg6[%c0_24, %c384_25] : memref<128x512xf32, #tpu.memory_space<vmem>>, vector<32x128xf32>
    tpu.vector_store %arg6[%c0_24, %c384_25], %35 {strides = array<i32>} : memref<128x512xf32, #tpu.memory_space<vmem>>, vector<32x128xf32>,
    %c32 = arith.constant 32 : index
    %c0_26 = arith.constant 0 : index
    %40 = vector.load %arg6[%c32, %c0_26] : memref<128x512xf32, #tpu.memory_space<vmem>>, vector<32x128xf32>
    %c32_27 = arith.constant 32 : index
    %c128_28 = arith.constant 128 : index
    %41 = vector.load %arg6[%c32_27, %c128_28] : memref<128x512xf32, #tpu.memory_space<vmem>>, vector<32x128xf32>
    %c32_29 = arith.constant 32 : index
    %c256_30 = arith.constant 256 : index
    %42 = vector.load %arg6[%c32_29, %c256_30] : memref<128x512xf32, #tpu.memory_space<vmem>>, vector<32x128xf32>
    %c32_31 = arith.constant 32 : index
    %c384_32 = arith.constant 384 : index
    %43 = vector.load %arg6[%c32_31, %c384_32] : memref<128x512xf32, #tpu.memory_space<vmem>>, vector<32x128xf32>
    %c32_33 = arith.constant 32 : index
    %c0_34 = arith.constant 0 : index
    %44 = vector.load %arg5[%c32_33, %c0_34] : memref<128x256xf32, #tpu.memory_space<vmem>>, vector<32x128xf32>
    %45 = arith.minimumf %40, %44 : vector<32x128xf32>
    %46 = arith.maximumf %40, %44 : vector<32x128xf32>
    %47 = arith.minimumf %41, %46 : vector<32x128xf32>
    %48 = arith.maximumf %41, %46 : vector<32x128xf32>
    %49 = arith.minimumf %42, %48 : vector<32x128xf32>
    %50 = arith.maximumf %42, %48 : vector<32x128xf32>
    %51 = arith.minimumf %43, %50 : vector<32x128xf32>
    %c32_35 = arith.constant 32 : index
    %c128_36 = arith.constant 128 : index
    %52 = vector.load %arg5[%c32_35, %c128_36] : memref<128x256xf32, #tpu.memory_space<vmem>>, vector<32x128xf32>
    %53 = arith.minimumf %45, %52 : vector<32x128xf32>
    %54 = arith.maximumf %45, %52 : vector<32x128xf32>
    %55 = arith.minimumf %47, %54 : vector<32x128xf32>
    %56 = arith.maximumf %47, %54 : vector<32x128xf32>
    %57 = arith.minimumf %49, %56 : vector<32x128xf32>
    %58 = arith.maximumf %49, %56 : vector<32x128xf32>
    %59 = arith.minimumf %51, %58 : vector<32x128xf32>
    %c32_37 = arith.constant 32 : index
    %c0_38 = arith.constant 0 : index
    %60 = vector.load %arg6[%c32_37, %c0_38] : memref<128x512xf32, #tpu.memory_space<vmem>>, vector<32x128xf32>
    tpu.vector_store %arg6[%c32_37, %c0_38], %53 {strides = array<i32>} : memref<128x512xf32, #tpu.memory_space<vmem>>, vector<32x128xf32>,
    %c32_39 = arith.constant 32 : index
    %c128_40 = arith.constant 128 : index
    %61 = vector.load %arg6[%c32_39, %c128_40] : memref<128x512xf32, #tpu.memory_space<vmem>>, vector<32x128xf32>
    tpu.vector_store %arg6[%c32_39, %c128_40], %55 {strides = array<i32>} : memref<128x512xf32, #tpu.memory_space<vmem>>, vector<32x128xf32>,
    %c32_41 = arith.constant 32 : index
    %c256_42 = arith.constant 256 : index
    %62 = vector.load %arg6[%c32_41, %c256_42] : memref<128x512xf32, #tpu.memory_space<vmem>>, vector<32x128xf32>
    tpu.vector_store %arg6[%c32_41, %c256_42], %57 {strides = array<i32>} : memref<128x512xf32, #tpu.memory_space<vmem>>, vector<32x128xf32>,
    %c32_43 = arith.constant 32 : index
    %c384_44 = arith.constant 384 : index
    %63 = vector.load %arg6[%c32_43, %c384_44] : memref<128x512xf32, #tpu.memory_space<vmem>>, vector<32x128xf32>
    tpu.vector_store %arg6[%c32_43, %c384_44], %59 {strides = array<i32>} : memref<128x512xf32, #tpu.memory_space<vmem>>, vector<32x128xf32>,
    %c64 = arith.constant 64 : index
    %c0_45 = arith.constant 0 : index
    %64 = vector.load %arg6[%c64, %c0_45] : memref<128x512xf32, #tpu.memory_space<vmem>>, vector<32x128xf32>
    %c64_46 = arith.constant 64 : index
    %c128_47 = arith.constant 128 : index
    %65 = vector.load %arg6[%c64_46, %c128_47] : memref<128x512xf32, #tpu.memory_space<vmem>>, vector<32x128xf32>
    %c64_48 = arith.constant 64 : index
    %c256_49 = arith.constant 256 : index
    %66 = vector.load %arg6[%c64_48, %c256_49] : memref<128x512xf32, #tpu.memory_space<vmem>>, vector<32x128xf32>
    %c64_50 = arith.constant 64 : index
    %c384_51 = arith.constant 384 : index
    %67 = vector.load %arg6[%c64_50, %c384_51] : memref<128x512xf32, #tpu.memory_space<vmem>>, vector<32x128xf32>
    %c64_52 = arith.constant 64 : index
    %c0_53 = arith.constant 0 : index
    %68 = vector.load %arg5[%c64_52, %c0_53] : memref<128x256xf32, #tpu.memory_space<vmem>>, vector<32x128xf32>
    %69 = arith.minimumf %64, %68 : vector<32x128xf32>
    %70 = arith.maximumf %64, %68 : vector<32x128xf32>
    %71 = arith.minimumf %65, %70 : vector<32x128xf32>
    %72 = arith.maximumf %65, %70 : vector<32x128xf32>
    %73 = arith.minimumf %66, %72 : vector<32x128xf32>
    %74 = arith.maximumf %66, %72 : vector<32x128xf32>
    %75 = arith.minimumf %67, %74 : vector<32x128xf32>
    %c64_54 = arith.constant 64 : index
    %c128_55 = arith.constant 128 : index
    %76 = vector.load %arg5[%c64_54, %c128_55] : memref<128x256xf32, #tpu.memory_space<vmem>>, vector<32x128xf32>
    %77 = arith.minimumf %69, %76 : vector<32x128xf32>
    %78 = arith.maximumf %69, %76 : vector<32x128xf32>
    %79 = arith.minimumf %71, %78 : vector<32x128xf32>
    %80 = arith.maximumf %71, %78 : vector<32x128xf32>
    %81 = arith.minimumf %73, %80 : vector<32x128xf32>
    %82 = arith.maximumf %73, %80 : vector<32x128xf32>
    %83 = arith.minimumf %75, %82 : vector<32x128xf32>
    %c64_56 = arith.constant 64 : index
    %c0_57 = arith.constant 0 : index
    %84 = vector.load %arg6[%c64_56, %c0_57] : memref<128x512xf32, #tpu.memory_space<vmem>>, vector<32x128xf32>
    tpu.vector_store %arg6[%c64_56, %c0_57], %77 {strides = array<i32>} : memref<128x512xf32, #tpu.memory_space<vmem>>, vector<32x128xf32>,
    %c64_58 = arith.constant 64 : index
    %c128_59 = arith.constant 128 : index
    %85 = vector.load %arg6[%c64_58, %c128_59] : memref<128x512xf32, #tpu.memory_space<vmem>>, vector<32x128xf32>
    tpu.vector_store %arg6[%c64_58, %c128_59], %79 {strides = array<i32>} : memref<128x512xf32, #tpu.memory_space<vmem>>, vector<32x128xf32>,
    %c64_60 = arith.constant 64 : index
    %c256_61 = arith.constant 256 : index
    %86 = vector.load %arg6[%c64_60, %c256_61] : memref<128x512xf32, #tpu.memory_space<vmem>>, vector<32x128xf32>
    tpu.vector_store %arg6[%c64_60, %c256_61], %81 {strides = array<i32>} : memref<128x512xf32, #tpu.memory_space<vmem>>, vector<32x128xf32>,
    %c64_62 = arith.constant 64 : index
    %c384_63 = arith.constant 384 : index
    %87 = vector.load %arg6[%c64_62, %c384_63] : memref<128x512xf32, #tpu.memory_space<vmem>>, vector<32x128xf32>
    tpu.vector_store %arg6[%c64_62, %c384_63], %83 {strides = array<i32>} : memref<128x512xf32, #tpu.memory_space<vmem>>, vector<32x128xf32>,
    %c96 = arith.constant 96 : index
    %c0_64 = arith.constant 0 : index
    %88 = vector.load %arg6[%c96, %c0_64] : memref<128x512xf32, #tpu.memory_space<vmem>>, vector<32x128xf32>
    %c96_65 = arith.constant 96 : index
    %c128_66 = arith.constant 128 : index
    %89 = vector.load %arg6[%c96_65, %c128_66] : memref<128x512xf32, #tpu.memory_space<vmem>>, vector<32x128xf32>
    %c96_67 = arith.constant 96 : index
    %c256_68 = arith.constant 256 : index
    %90 = vector.load %arg6[%c96_67, %c256_68] : memref<128x512xf32, #tpu.memory_space<vmem>>, vector<32x128xf32>
    %c96_69 = arith.constant 96 : index
    %c384_70 = arith.constant 384 : index
    %91 = vector.load %arg6[%c96_69, %c384_70] : memref<128x512xf32, #tpu.memory_space<vmem>>, vector<32x128xf32>
    %c96_71 = arith.constant 96 : index
    %c0_72 = arith.constant 0 : index
    %92 = vector.load %arg5[%c96_71, %c0_72] : memref<128x256xf32, #tpu.memory_space<vmem>>, vector<32x128xf32>
    %93 = arith.minimumf %88, %92 : vector<32x128xf32>
    %94 = arith.maximumf %88, %92 : vector<32x128xf32>
    %95 = arith.minimumf %89, %94 : vector<32x128xf32>
    %96 = arith.maximumf %89, %94 : vector<32x128xf32>
    %97 = arith.minimumf %90, %96 : vector<32x128xf32>
    %98 = arith.maximumf %90, %96 : vector<32x128xf32>
    %99 = arith.minimumf %91, %98 : vector<32x128xf32>
    %c96_73 = arith.constant 96 : index
    %c128_74 = arith.constant 128 : index
    %100 = vector.load %arg5[%c96_73, %c128_74] : memref<128x256xf32, #tpu.memory_space<vmem>>, vector<32x128xf32>
    %101 = arith.minimumf %93, %100 : vector<32x128xf32>
    %102 = arith.maximumf %93, %100 : vector<32x128xf32>
    %103 = arith.minimumf %95, %102 : vector<32x128xf32>
    %104 = arith.maximumf %95, %102 : vector<32x128xf32>
    %105 = arith.minimumf %97, %104 : vector<32x128xf32>
    %106 = arith.maximumf %97, %104 : vector<32x128xf32>
    %107 = arith.minimumf %99, %106 : vector<32x128xf32>
    %c96_75 = arith.constant 96 : index
    %c0_76 = arith.constant 0 : index
    %108 = vector.load %arg6[%c96_75, %c0_76] : memref<128x512xf32, #tpu.memory_space<vmem>>, vector<32x128xf32>
    tpu.vector_store %arg6[%c96_75, %c0_76], %101 {strides = array<i32>} : memref<128x512xf32, #tpu.memory_space<vmem>>, vector<32x128xf32>,
    %c96_77 = arith.constant 96 : index
    %c128_78 = arith.constant 128 : index
    %109 = vector.load %arg6[%c96_77, %c128_78] : memref<128x512xf32, #tpu.memory_space<vmem>>, vector<32x128xf32>
    tpu.vector_store %arg6[%c96_77, %c128_78], %103 {strides = array<i32>} : memref<128x512xf32, #tpu.memory_space<vmem>>, vector<32x128xf32>,
    %c96_79 = arith.constant 96 : index
    %c256_80 = arith.constant 256 : index
    %110 = vector.load %arg6[%c96_79, %c256_80] : memref<128x512xf32, #tpu.memory_space<vmem>>, vector<32x128xf32>
    tpu.vector_store %arg6[%c96_79, %c256_80], %105 {strides = array<i32>} : memref<128x512xf32, #tpu.memory_space<vmem>>, vector<32x128xf32>,
    %c96_81 = arith.constant 96 : index
    %c384_82 = arith.constant 384 : index
    %111 = vector.load %arg6[%c96_81, %c384_82] : memref<128x512xf32, #tpu.memory_space<vmem>>, vector<32x128xf32>
    tpu.vector_store %arg6[%c96_81, %c384_82], %107 {strides = array<i32>} : memref<128x512xf32, #tpu.memory_space<vmem>>, vector<32x128xf32>,
    %c0_i32_83 = arith.constant 0 : i32
    %112 = arith.cmpi eq, %arg1, %c0_i32_83 : i32
    %113 = arith.extui %112 : i1 to i32
    %c0_i32_84 = arith.constant 0 : i32
    %114 = arith.cmpi ne, %113, %c0_i32_84 : i32
    scf.if %114 {
      %c0_85 = arith.constant 0 : index
      %c0_86 = arith.constant 0 : index
      %115 = vector.load %arg6[%c0_85, %c0_86] : memref<128x512xf32, #tpu.memory_space<vmem>>, vector<128x512xf32>
      %116 = tpu.iota {dimensions = array<i32: 1>} : vector<128x512xi32>
      %cst_87 = arith.constant 0.000000e+00 : f32
      %117 = vector.broadcast %cst_87 : f32 to vector<128x1xf32>
      %cst_88 = arith.constant dense<0x7F800000> : vector<128xf32>
      %118 = vector.multi_reduction <minimumf>, %115, %cst_88 [1] : vector<128x512xf32> to vector<128xf32>
      %119 = vector.shape_cast %118 : vector<128xf32> to vector<128x1xf32>
      %cst_89 = arith.constant 0.000000e+00 : f32
      %120 = vector.broadcast %cst_89 : f32 to vector<128x1xf32>
      %121 = arith.maximumf %119, %120 : vector<128x1xf32>
      %122 = math.sqrt %121 : vector<128x1xf32>
      %cst_90 = arith.constant 2.000000e+00 : f32
      %123 = vector.broadcast %cst_90 : f32 to vector<128x1xf32>
      %124 = arith.subf %123, %122 : vector<128x1xf32>
      %cst_91 = arith.constant 0.000000e+00 : f32
      %125 = vector.broadcast %cst_91 : f32 to vector<128x1xf32>
      %126 = arith.maximumf %124, %125 : vector<128x1xf32>
      %127 = arith.addf %117, %126 : vector<128x1xf32>
      %128 = vector.broadcast %119 : vector<128x1xf32> to vector<128x512xf32>
      %129 = arith.cmpf oeq, %115, %128 : vector<128x512xf32>
      %c512_i32 = arith.constant 512 : i32
      %130 = vector.broadcast %c512_i32 : i32 to vector<128x512xi32>
      %131 = arith.select %129, %116, %130 : vector<128x512xi1>, vector<128x512xi32>
      %cst_92 = arith.constant dense<2147483647> : vector<128xi32>
      %132 = vector.multi_reduction <minsi>, %131, %cst_92 [1] : vector<128x512xi32> to vector<128xi32>
      %133 = vector.shape_cast %132 : vector<128xi32> to vector<128x1xi32>
      %134 = vector.broadcast %133 : vector<128x1xi32> to vector<128x512xi32>
      %135 = arith.cmpi eq, %116, %134 : vector<128x512xi32>
      %cst_93 = arith.constant 0x7F800000 : f32
      %136 = vector.broadcast %cst_93 : f32 to vector<128x512xf32>
      %137 = arith.select %135, %136, %115 : vector<128x512xi1>, vector<128x512xf32>
      %cst_94 = arith.constant dense<0x7F800000> : vector<128xf32>
      %138 = vector.multi_reduction <minimumf>, %137, %cst_94 [1] : vector<128x512xf32> to vector<128xf32>
      %139 = vector.shape_cast %138 : vector<128xf32> to vector<128x1xf32>
      %cst_95 = arith.constant 0.000000e+00 : f32
      %140 = vector.broadcast %cst_95 : f32 to vector<128x1xf32>
      %141 = arith.maximumf %139, %140 : vector<128x1xf32>
      %142 = math.sqrt %141 : vector<128x1xf32>
      %cst_96 = arith.constant 2.000000e+00 : f32
      %143 = vector.broadcast %cst_96 : f32 to vector<128x1xf32>
      %144 = arith.subf %143, %142 : vector<128x1xf32>
      %cst_97 = arith.constant 0.000000e+00 : f32
      %145 = vector.broadcast %cst_97 : f32 to vector<128x1xf32>
      %146 = arith.maximumf %144, %145 : vector<128x1xf32>
      %147 = arith.addf %127, %146 : vector<128x1xf32>
      %148 = vector.broadcast %139 : vector<128x1xf32> to vector<128x512xf32>
      %149 = arith.cmpf oeq, %137, %148 : vector<128x512xf32>
      %c512_i32_98 = arith.constant 512 : i32
      %150 = vector.broadcast %c512_i32_98 : i32 to vector<128x512xi32>
      %151 = arith.select %149, %116, %150 : vector<128x512xi1>, vector<128x512xi32>
      %cst_99 = arith.constant dense<2147483647> : vector<128xi32>
      %152 = vector.multi_reduction <minsi>, %151, %cst_99 [1] : vector<128x512xi32> to vector<128xi32>
      %153 = vector.shape_cast %152 : vector<128xi32> to vector<128x1xi32>
      %154 = vector.broadcast %153 : vector<128x1xi32> to vector<128x512xi32>
      %155 = arith.cmpi eq, %116, %154 : vector<128x512xi32>
      %cst_100 = arith.constant 0x7F800000 : f32
      %156 = vector.broadcast %cst_100 : f32 to vector<128x512xf32>
      %157 = arith.select %155, %156, %137 : vector<128x512xi1>, vector<128x512xf32>
      %cst_101 = arith.constant dense<0x7F800000> : vector<128xf32>
      %158 = vector.multi_reduction <minimumf>, %157, %cst_101 [1] : vector<128x512xf32> to vector<128xf32>
      %159 = vector.shape_cast %158 : vector<128xf32> to vector<128x1xf32>
      %cst_102 = arith.constant 0.000000e+00 : f32
      %160 = vector.broadcast %cst_102 : f32 to vector<128x1xf32>
      %161 = arith.maximumf %159, %160 : vector<128x1xf32>
      %162 = math.sqrt %161 : vector<128x1xf32>
      %cst_103 = arith.constant 2.000000e+00 : f32
      %163 = vector.broadcast %cst_103 : f32 to vector<128x1xf32>
      %164 = arith.subf %163, %162 : vector<128x1xf32>
      %cst_104 = arith.constant 0.000000e+00 : f32
      %165 = vector.broadcast %cst_104 : f32 to vector<128x1xf32>
      %166 = arith.maximumf %164, %165 : vector<128x1xf32>
      %167 = arith.addf %147, %166 : vector<128x1xf32>
      %168 = vector.broadcast %159 : vector<128x1xf32> to vector<128x512xf32>
      %169 = arith.cmpf oeq, %157, %168 : vector<128x512xf32>
      %c512_i32_105 = arith.constant 512 : i32
      %170 = vector.broadcast %c512_i32_105 : i32 to vector<128x512xi32>
      %171 = arith.select %169, %116, %170 : vector<128x512xi1>, vector<128x512xi32>
      %cst_106 = arith.constant dense<2147483647> : vector<128xi32>
      %172 = vector.multi_reduction <minsi>, %171, %cst_106 [1] : vector<128x512xi32> to vector<128xi32>
      %173 = vector.shape_cast %172 : vector<128xi32> to vector<128x1xi32>
      %174 = vector.broadcast %173 : vector<128x1xi32> to vector<128x512xi32>
      %175 = arith.cmpi eq, %116, %174 : vector<128x512xi32>
      %cst_107 = arith.constant 0x7F800000 : f32
      %176 = vector.broadcast %cst_107 : f32 to vector<128x512xf32>
      %177 = arith.select %175, %176, %157 : vector<128x512xi1>, vector<128x512xf32>
      %cst_108 = arith.constant dense<0x7F800000> : vector<128xf32>
      %178 = vector.multi_reduction <minimumf>, %177, %cst_108 [1] : vector<128x512xf32> to vector<128xf32>
      %179 = vector.shape_cast %178 : vector<128xf32> to vector<128x1xf32>
      %cst_109 = arith.constant 0.000000e+00 : f32
      %180 = vector.broadcast %cst_109 : f32 to vector<128x1xf32>
      %181 = arith.maximumf %179, %180 : vector<128x1xf32>
      %182 = math.sqrt %181 : vector<128x1xf32>
      %cst_110 = arith.constant 2.000000e+00 : f32
      %183 = vector.broadcast %cst_110 : f32 to vector<128x1xf32>
      %184 = arith.subf %183, %182 : vector<128x1xf32>
      %cst_111 = arith.constant 0.000000e+00 : f32
      %185 = vector.broadcast %cst_111 : f32 to vector<128x1xf32>
      %186 = arith.maximumf %184, %185 : vector<128x1xf32>
      %187 = arith.addf %167, %186 : vector<128x1xf32>
      %c0_112 = arith.constant 0 : index
      %c0_113 = arith.constant 0 : index
      %188 = vector.load %arg4[%c0_112, %c0_113] : memref<128x1xf32, #tpu.memory_space<vmem>>, vector<128x1xf32>
      tpu.vector_store %arg4[%c0_112, %c0_113], %187 {strides = array<i32>} : memref<128x1xf32, #tpu.memory_space<vmem>>, vector<128x1xf32>,
    } else {
    }
    return
  }
  func.func @transform_0(%arg0: i32, %arg1: i32) -> (i32, i32) {
    %c0_i32 = arith.constant 0 : i32
    %c0_i32_0 = arith.constant 0 : i32
    return %arg0, %c0_i32 : i32, i32
  }
  func.func @transform_1(%arg0: i32, %arg1: i32) -> (i32, i32) {
    %c0_i32 = arith.constant 0 : i32
    %c0_i32_0 = arith.constant 0 : i32
    return %c0_i32, %arg1 : i32, i32
  }
  func.func @transform_2(%arg0: i32, %arg1: i32) -> (i32, i32) {
    %c0_i32 = arith.constant 0 : i32
    %c0_i32_0 = arith.constant 0 : i32
    return %arg0, %c0_i32 : i32, i32
  }
}

</mosaic_0001>

<bundles_post_ra>
// kernel: tpu_custom_call.1
= control target key start
LH: loop header
LB: loop body
LE: loop exit
PB: predicated region body
PF: predicated region fallthrough
CT: control target
= control target key end

     0   :  { %s4599_s9 = smov 0   ;;  %s4601_s10 = smov 0   ;;  %s8436_s0 = inlined_call_operand.vmem [shape: f32[256,10], index: 0, kind: input, shape index: {}]   ;;  %s8437_s1 = inlined_call_operand.vmem [shape: f32[10,256], index: 1, kind: input, shape index: {}]   ;;  %s8438_s2 = inlined_call_operand.vmem [shape: f32[256,1], index: 2, kind: output, shape index: {}]  }
   0x1   :  { %s4603_s11 = smov 0  }
   0x2 LB: > { %s24_s12 = sadd.s32 1, %s4577_s10  ;;  %p4295_p0 = scmp.ge.s32.totalorder %s4581_s11, 1  ;;  %s4581_s11 = sphi %s4603_s11, %s12_s11   ;;  %s4577_s10 = sphi %s4601_s10, %s9220_s10   ;;  %s4573_s9 = sphi %s4599_s9, %s9219_s9  }
   0x3   : > { %p26_p1 = scmp.ge.s32.totalorder %s24_s12, 2  ;;  %p136_p2 = scmp.lt.s32.totalorder %s4581_s11, 3 }
   0x5   : > { %s9222_s12 = smov (%p26_p1, %s24_s12), 0  ;;  %p137_p3 = pnand %p4295_p0, %p136_p2 }
   0x7   : > { %140 = sbr.rel (%p137_p3) target bundleno = 1664 (0x680), region = 28 }
   0xc   : > { %v267_v0 = vld [vmem:[%s8437_s1 + $0x10] sm:$0x3]  ;;  %vm318_vm0 = vcmask 1041408   ;;  %v268_v1 = vld [vmem:[%s8437_s1 + $0x18] sm:$0x3]  ;;  %v265_v2 = vld [vmem:[%s8437_s1] sm:$0xff] }
   0xd   : > { %4338 = vmatpush.msk.msra.mxu2 %vm318_vm0, %v267_v0  ;;  %4340 = vmatpush.msk.msra.mxu3 %vm318_vm0, %v268_v1  ;;  %v266_v3 = vld [vmem:[%s8437_s1 + $0x8] sm:$0xff]  ;;  %s4296_s21 = sshll.u32 %s4573_s9, 4  ;;  %v4583_v4 = vmov inf   ;;  %vm269_vm1 = vcmask 80896   ;;  %s4755_s29 = sshll.u32 %s4573_s9, 7 }
   0xe   : > { %p164_p4 = scmp.lt.s32.totalorder %s4296_s21, 31  ;;  %185 = vst [vmem:[#allocation3 + $0x80] sm:$0xff] %v4583_v4  ;;  %4300 = vmatpush.msk.msra.mxu0 %vm318_vm0, %v267_v0  ;;  %4317 = vmatpush.msk.msra.mxu1 %vm318_vm0, %v268_v1  ;;  %s491_s30 = sadd.s32 128, %s4755_s29 }
   0xf   : > { %4339 = vmatpush.msra.mxu2 %v265_v2  ;;  %4341 = vmatpush.msra.mxu3 %v266_v3  ;;  %186 = vst [vmem:[#allocation3 + $0xc8] sm:$0xff] %v4583_v4  ;;  %p490_p5 = scmp.lt.s32.totalorder %s4755_s29, 256  ;;  %p4335_p6 = scmp.gt.s32.totalorder %s491_s30, 0 }
  0x10   : > { %s9224_s21 = smov (!%p164_p4, %s4296_s21), 31  ;;  %187 = vst [vmem:[#allocation3 + $0x1e8] sm:$0xff] %v4583_v4  ;;  %340 = vmatpush.msra.mxu0 %v265_v2  ;;  %405 = vmatpush.msra.mxu1 %v266_v3 }
  0x11   : > { %188 = vst [vmem:[#allocation3 + $0x178] sm:$0xff] %v4583_v4  ;;  %s4297_s22 = sshll.u32 %s9224_s21, 3  ;;  %p4759_p7 = pnand %p4335_p6, %p490_p5 }
  0x12   : > { %189 = vst [vmem:[#allocation3 + $0x8] sm:$0xff] %v4583_v4  ;;  %s4640_s25 = scalar_lea.vmem %s8436_s0, %s4297_s22  ;;  %s4645_s28 = scalar_lea.vmem %s8438_s2, %s4297_s22 }
  0x13   : > { %190 = vst [vmem:[#allocation3 + $0x190] sm:$0xff] %v4583_v4  ;;  %v257_v5 = vld [vmem:[%s4640_s25 + $0x40] sm:$0xff]  ;;  %v258_v7 = vld [vmem:[%s4640_s25 + $0x48] sm:$0xff]  ;;  %v259_v9 = vld [vmem:[%s4640_s25 + $0x50] sm:$0xff] }
  0x14   : > { %191 = vst [vmem:[#allocation3 + $0x158] sm:$0xff] %v4583_v4  ;;  %v249_v6 = vld [vmem:[%s4640_s25] sm:$0xff]  ;;  %4309 = vmatmul.msk.f32.vlgmr.msra.gmra.mxu2 %vm269_vm1, %v257_v5  ;;  %4326 = vmatmul.msk.f32.vlgmr.msra.gmra.mxu3 %vm269_vm1, %v257_v5  ;;  %v250_v8 = vld [vmem:[%s4640_s25 + $0x8] sm:$0xff]  ;;  %v251_v10 = vld [vmem:[%s4640_s25 + $0x10] sm:$0xff] }
  0x15   : > { %192 = vst [vmem:[#allocation3 + $0x1a8] sm:$0xff] %v4583_v4  ;;  %4301 = vmatmul.msk.f32.vlgmr.msra.gmra.mxu0 %vm269_vm1, %v249_v6  ;;  %4318 = vmatmul.msk.f32.vlgmr.msra.gmra.mxu1 %vm269_vm1, %v249_v6  ;;  %v260_v11 = vld [vmem:[%s4640_s25 + $0x58] sm:$0xff]  ;;  %v261_v13 = vld [vmem:[%s4640_s25 + $0x60] sm:$0xff]  ;;  %v262_v15 = vld [vmem:[%s4640_s25 + $0x68] sm:$0xff] }
  0x16   : > { %193 = vst [vmem:[#allocation3 + $0x1d0] sm:$0xff] %v4583_v4  ;;  %v252_v12 = vld [vmem:[%s4640_s25 + $0x18] sm:$0xff]  ;;  %v253_v14 = vld [vmem:[%s4640_s25 + $0x20] sm:$0xff]  ;;  %v254_v16 = vld [vmem:[%s4640_s25 + $0x28] sm:$0xff] }
  0x17   : > { %194 = vst [vmem:[#allocation3 + $0x1b0] sm:$0xff] %v4583_v4  ;;  %v263_v17 = vld [vmem:[%s4640_s25 + $0x70] sm:$0xff]  ;;  %v264_v19 = vld [vmem:[%s4640_s25 + $0x78] sm:$0xff] }
  0x18   : > { %195 = vst [vmem:[#allocation3 + $0xa8] sm:$0xff] %v4583_v4  ;;  %v255_v18 = vld [vmem:[%s4640_s25 + $0x30] sm:$0xff]  ;;  %v256_v20 = vld [vmem:[%s4640_s25 + $0x38] sm:$0xff] }
  0x19   : > { %196 = vst [vmem:[#allocation3 + $0xd0] sm:$0xff] %v4583_v4 }
  0x1a   : > { %197 = vst [vmem:[#allocation3 + $0xe0] sm:$0xff] %v4583_v4 }
  0x1b   : > { %198 = vst [vmem:[#allocation3 + $0x118] sm:$0xff] %v4583_v4 }
  0x1c   : > { %199 = vst [vmem:[#allocation3 + $0x128] sm:$0xff] %v4583_v4  ;;  %4310 = vmatmul.msk.f32.gmra.mxu2 %vm269_vm1, %v258_v7  ;;  %4327 = vmatmul.msk.f32.gmra.mxu3 %vm269_vm1, %v258_v7 }
  0x1d   : > { %200 = vst [vmem:[#allocation3 + $0xf0] sm:$0xff] %v4583_v4  ;;  %4302 = vmatmul.msk.f32.gmra.mxu0 %vm269_vm1, %v250_v8  ;;  %4319 = vmatmul.msk.f32.gmra.mxu1 %vm269_vm1, %v250_v8 }
  0x1e   : > { %201 = vst [vmem:[#allocation3 + $0x170] sm:$0xff] %v4583_v4 }
  0x1f   : > { %202 = vst [vmem:[#allocation3 + $0x90] sm:$0xff] %v4583_v4 }
  0x20   : > { %203 = vst [vmem:[#allocation3 + $0xf8] sm:$0xff] %v4583_v4 }
  0x21   : > { %204 = vst [vmem:[#allocation3 + $0x180] sm:$0xff] %v4583_v4 }
  0x22   : > { %205 = vst [vmem:[#allocation3 + $0x1b8] sm:$0xff] %v4583_v4 }
  0x23   : > { %206 = vst [vmem:[#allocation3 + $0x130] sm:$0xff] %v4583_v4 }
  0x24   : > { %207 = vst [vmem:[#allocation3 + $0x10] sm:$0xff] %v4583_v4  ;;  %4311 = vmatmul.msk.f32.gmra.mxu2 %vm269_vm1, %v259_v9  ;;  %4328 = vmatmul.msk.f32.gmra.mxu3 %vm269_vm1, %v259_v9 }
  0x25   : > { %208 = vst [vmem:[#allocation3 + $0x120] sm:$0xff] %v4583_v4  ;;  %4303 = vmatmul.msk.f32.gmra.mxu0 %vm269_vm1, %v251_v10  ;;  %4320 = vmatmul.msk.f32.gmra.mxu1 %vm269_vm1, %v251_v10 }
  0x26   : > { %209 = vst [vmem:[#allocation3 + $0x68] sm:$0xff] %v4583_v4 }
  0x27   : > { %210 = vst [vmem:[#allocation3 + $0x1f0] sm:$0xff] %v4583_v4 }
  0x28   : > { %211 = vst [vmem:[#allocation3] sm:$0xff] %v4583_v4 }
  0x29   : > { %212 = vst [vmem:[#allocation3 + $0x140] sm:$0xff] %v4583_v4 }
  0x2a   : > { %213 = vst [vmem:[#allocation3 + $0xd8] sm:$0xff] %v4583_v4 }
  0x2b   : > { %214 = vst [vmem:[#allocation3 + $0x198] sm:$0xff] %v4583_v4 }
  0x2c   : > { %215 = vst [vmem:[#allocation3 + $0x1a0] sm:$0xff] %v4583_v4  ;;  %4312 = vmatmul.msk.f32.gmra.mxu2 %vm269_vm1, %v260_v11  ;;  %4329 = vmatmul.msk.f32.gmra.mxu3 %vm269_vm1, %v260_v11 }
  0x2d   : > { %216 = vst [vmem:[#allocation3 + $0x100] sm:$0xff] %v4583_v4  ;;  %4304 = vmatmul.msk.f32.gmra.mxu0 %vm269_vm1, %v252_v12  ;;  %4321 = vmatmul.msk.f32.gmra.mxu1 %vm269_vm1, %v252_v12 }
  0x2e   : > { %217 = vst [vmem:[#allocation3 + $0x78] sm:$0xff] %v4583_v4 }
  0x2f   : > { %218 = vst [vmem:[#allocation3 + $0x1e0] sm:$0xff] %v4583_v4 }
  0x30   : > { %219 = vst [vmem:[#allocation3 + $0x1d8] sm:$0xff] %v4583_v4 }
  0x31   : > { %220 = vst [vmem:[#allocation3 + $0x148] sm:$0xff] %v4583_v4 }
  0x32   : > { %221 = vst [vmem:[#allocation3 + $0x138] sm:$0xff] %v4583_v4 }
  0x33   : > { %222 = vst [vmem:[#allocation3 + $0x28] sm:$0xff] %v4583_v4 }
  0x34   : > { %223 = vst [vmem:[#allocation3 + $0x70] sm:$0xff] %v4583_v4  ;;  %4313 = vmatmul.msk.f32.gmra.mxu2 %vm269_vm1, %v261_v13  ;;  %4330 = vmatmul.msk.f32.gmra.mxu3 %vm269_vm1, %v261_v13 }
  0x35   : > { %224 = vst [vmem:[#allocation3 + $0xb8] sm:$0xff] %v4583_v4  ;;  %4305 = vmatmul.msk.f32.gmra.mxu0 %vm269_vm1, %v253_v14  ;;  %4322 = vmatmul.msk.f32.gmra.mxu1 %vm269_vm1, %v253_v14 }
  0x36   : > { %225 = vst [vmem:[#allocation3 + $0x30] sm:$0xff] %v4583_v4 }
  0x37   : > { %226 = vst [vmem:[#allocation3 + $0x108] sm:$0xff] %v4583_v4 }
  0x38   : > { %227 = vst [vmem:[#allocation3 + $0x1c0] sm:$0xff] %v4583_v4 }
  0x39   : > { %228 = vst [vmem:[#allocation3 + $0x1c8] sm:$0xff] %v4583_v4 }
  0x3a   : > { %229 = vst [vmem:[#allocation3 + $0x168] sm:$0xff] %v4583_v4 }
  0x3b   : > { %230 = vst [vmem:[#allocation3 + $0x188] sm:$0xff] %v4583_v4 }
  0x3c   : > { %231 = vst [vmem:[#allocation3 + $0x38] sm:$0xff] %v4583_v4  ;;  %4314 = vmatmul.msk.f32.gmra.mxu2 %vm269_vm1, %v262_v15  ;;  %4331 = vmatmul.msk.f32.gmra.mxu3 %vm269_vm1, %v262_v15 }
  0x3d   : > { %232 = vst [vmem:[#allocation3 + $0xc0] sm:$0xff] %v4583_v4  ;;  %4306 = vmatmul.msk.f32.gmra.mxu0 %vm269_vm1, %v254_v16  ;;  %4323 = vmatmul.msk.f32.gmra.mxu1 %vm269_vm1, %v254_v16 }
  0x3e   : > { %233 = vst [vmem:[#allocation3 + $0x40] sm:$0xff] %v4583_v4 }
  0x3f   : > { %234 = vst [vmem:[#allocation3 + $0x18] sm:$0xff] %v4583_v4 }
  0x40   : > { %235 = vst [vmem:[#allocation3 + $0xa0] sm:$0xff] %v4583_v4 }
  0x41   : > { %236 = vst [vmem:[#allocation3 + $0x150] sm:$0xff] %v4583_v4 }
  0x42   : > { %237 = vst [vmem:[#allocation3 + $0x60] sm:$0xff] %v4583_v4 }
  0x43   : > { %238 = vst [vmem:[#allocation3 + $0x1f8] sm:$0xff] %v4583_v4 }
  0x44   : > { %239 = vst [vmem:[#allocation3 + $0x58] sm:$0xff] %v4583_v4  ;;  %4315 = vmatmul.msk.f32.gmra.mxu2 %vm269_vm1, %v263_v17  ;;  %4332 = vmatmul.msk.f32.gmra.mxu3 %vm269_vm1, %v263_v17 }
  0x45   : > { %240 = vst [vmem:[#allocation3 + $0x20] sm:$0xff] %v4583_v4  ;;  %4307 = vmatmul.msk.f32.gmra.mxu0 %vm269_vm1, %v255_v18  ;;  %4324 = vmatmul.msk.f32.gmra.mxu1 %vm269_vm1, %v255_v18 }
  0x46   : > { %241 = vst [vmem:[#allocation3 + $0xe8] sm:$0xff] %v4583_v4 }
  0x47   : > { %242 = vst [vmem:[#allocation3 + $0x110] sm:$0xff] %v4583_v4 }
  0x48   : > { %243 = vst [vmem:[#allocation3 + $0x50] sm:$0xff] %v4583_v4 }
  0x49   : > { %244 = vst [vmem:[#allocation3 + $0x98] sm:$0xff] %v4583_v4 }
  0x4a   : > { %245 = vst [vmem:[#allocation3 + $0x48] sm:$0xff] %v4583_v4 }
  0x4b   : > { %246 = vst [vmem:[#allocation3 + $0xb0] sm:$0xff] %v4583_v4 }
  0x4c   : > { %247 = vst [vmem:[#allocation3 + $0x88] sm:$0xff] %v4583_v4  ;;  %4316 = vmatmul.msk.f32.gmra.mxu2 %vm269_vm1, %v264_v19  ;;  %4333 = vmatmul.msk.f32.gmra.mxu3 %vm269_vm1, %v264_v19 }
  0x4d   : > { %248 = vst [vmem:[#allocation3 + $0x160] sm:$0xff] %v4583_v4  ;;  %4308 = vmatmul.msk.f32.gmra.mxu0 %vm269_vm1, %v256_v20  ;;  %4325 = vmatmul.msk.f32.gmra.mxu1 %vm269_vm1, %v256_v20 }
  0x92   : > { %v342_v21 = vpop.f32.mrf.mxu0  ;;  %v407_v22 = vpop.f32.mrf.mxu1 }
  0x93   : > { %455 = vst [vmem:[#allocation2 + $0xb0] sm:$0xff] %v342_v21 }
  0x94   : > { %456 = vst [vmem:[#allocation2] sm:$0xff] %v407_v22 }
  0x97   : > { %v366_v23 = vpop.f32.mrf.mxu2  ;;  %v431_v24 = vpop.f32.mrf.mxu3 }
  0x98   : > { %471 = vst [vmem:[#allocation2 + $0x38] sm:$0xff] %v366_v23 }
  0x99   : > { %472 = vst [vmem:[#allocation2 + $0x58] sm:$0xff] %v431_v24 }
  0x9a   : > { %v345_v25 = vpop.f32.mrf.mxu0  ;;  %v410_v26 = vpop.f32.mrf.mxu1 }
  0x9b   : > { %457 = vst [vmem:[#allocation2 + $0xd8] sm:$0xff] %v345_v25 }
  0x9c   : > { %458 = vst [vmem:[#allocation2 + $0x18] sm:$0xff] %v410_v26 }
  0x9f   : > { %v369_v27 = vpop.f32.mrf.mxu2  ;;  %v434_v28 = vpop.f32.mrf.mxu3 }
  0xa0   : > { %473 = vst [vmem:[#allocation2 + $0x40] sm:$0xff] %v369_v27 }
  0xa1   : > { %474 = vst [vmem:[#allocation2 + $0xc8] sm:$0xff] %v434_v28 }
  0xa2   : > { %v348_v29 = vpop.f32.mrf.mxu0  ;;  %v413_v30 = vpop.f32.mrf.mxu1 }
  0xa3   : > { %459 = vst [vmem:[#allocation2 + $0x50] sm:$0xff] %v348_v29 }
  0xa4   : > { %460 = vst [vmem:[#allocation2 + $0x68] sm:$0xff] %v413_v30 }
  0xa7   : > { %v372_v31 = vpop.f32.mrf.mxu2  ;;  %v437_v32 = vpop.f32.mrf.mxu3 }
  0xa8   : > { %475 = vst [vmem:[#allocation2 + $0xe0] sm:$0xff] %v372_v31 }
  0xa9   : > { %476 = vst [vmem:[#allocation2 + $0x90] sm:$0xff] %v437_v32 }
  0xaa   : > { %v351_v33 = vpop.f32.mrf.mxu0  ;;  %v416_v34 = vpop.f32.mrf.mxu1 }
  0xab   : > { %461 = vst [vmem:[#allocation2 + $0x30] sm:$0xff] %v351_v33 }
  0xac   : > { %462 = vst [vmem:[#allocation2 + $0x48] sm:$0xff] %v416_v34 }
  0xaf   : > { %v375_v35 = vpop.f32.mrf.mxu2  ;;  %v440_v36 = vpop.f32.mrf.mxu3 }
  0xb0   : > { %477 = vst [vmem:[#allocation2 + $0x70] sm:$0xff] %v375_v35 }
  0xb1   : > { %478 = vst [vmem:[#allocation2 + $0xc0] sm:$0xff] %v440_v36 }
  0xb2   : > { %v354_v37 = vpop.f32.mrf.mxu0  ;;  %v419_v38 = vpop.f32.mrf.mxu1 }
  0xb3   : > { %463 = vst [vmem:[#allocation2 + $0x80] sm:$0xff] %v354_v37 }
  0xb4   : > { %464 = vst [vmem:[#allocation2 + $0x88] sm:$0xff] %v419_v38 }
  0xb7   : > { %v378_v39 = vpop.f32.mrf.mxu2  ;;  %v443_v40 = vpop.f32.mrf.mxu3 }
  0xb8   : > { %479 = vst [vmem:[#allocation2 + $0xa8] sm:$0xff] %v378_v39 }
  0xb9   : > { %480 = vst [vmem:[#allocation2 + $0xd0] sm:$0xff] %v443_v40 }
  0xba   : > { %v357_v41 = vpop.f32.mrf.mxu0  ;;  %v422_v42 = vpop.f32.mrf.mxu1 }
  0xbb   : > { %465 = vst [vmem:[#allocation2 + $0xe8] sm:$0xff] %v357_v41 }
  0xbc   : > { %466 = vst [vmem:[#allocation2 + $0xb8] sm:$0xff] %v422_v42 }
  0xbf   : > { %v381_v43 = vpop.f32.mrf.mxu2  ;;  %v446_v44 = vpop.f32.mrf.mxu3 }
  0xc0   : > { %481 = vst [vmem:[#allocation2 + $0x10] sm:$0xff] %v381_v43 }
  0xc1   : > { %482 = vst [vmem:[#allocation2 + $0x28] sm:$0xff] %v446_v44 }
  0xc2   : > { %v360_v45 = vpop.f32.mrf.mxu0  ;;  %v425_v46 = vpop.f32.mrf.mxu1 }
  0xc3   : > { %467 = vst [vmem:[#allocation2 + $0x60] sm:$0xff] %v360_v45 }
  0xc4   : > { %468 = vst [vmem:[#allocation2 + $0xf0] sm:$0xff] %v425_v46 }
  0xc7   : > { %v384_v47 = vpop.f32.mrf.mxu2  ;;  %v449_v48 = vpop.f32.mrf.mxu3 }
  0xc8   : > { %483 = vst [vmem:[#allocation2 + $0xa0] sm:$0xff] %v384_v47 }
  0xc9   : > { %484 = vst [vmem:[#allocation2 + $0xf8] sm:$0xff] %v449_v48 }
  0xca   : > { %v363_v49 = vpop.f32.mrf.mxu0  ;;  %v428_v50 = vpop.f32.mrf.mxu1 }
  0xcb   : > { %469 = vst [vmem:[#allocation2 + $0x8] sm:$0xff] %v363_v49 }
  0xcc   : > { %470 = vst [vmem:[#allocation2 + $0x78] sm:$0xff] %v428_v50 }
  0xcd   : > { %496 = sbr.rel (%p4759_p7) target bundleno = 250 (0xfa), region = 36 }
  0xcf   : > { %v387_v51 = vpop.f32.mrf.mxu2  ;;  %v452_v52 = vpop.f32.mrf.mxu3 }
  0xd0   : > { %485 = vst [vmem:[#allocation2 + $0x20] sm:$0xff] %v387_v51 }
  0xd1   : > { %486 = vst [vmem:[#allocation2 + $0x98] sm:$0xff] %v452_v52 }
  0xd2   : > { %v497_v53 = vlaneseq  ;;  %v4766_v54 = vstv %s4755_s29  ;;  %v569_v58 = vld [vmem:[#allocation2 + $0xb0] sm:$0xff]  ;;  %v570_v60 = vld [vmem:[#allocation2] sm:$0xff]  ;;  %v571_v4 = vld [vmem:[#allocation2 + $0xd8] sm:$0xff] }
  0xd3   : > { %v572_v5 = vld [vmem:[#allocation2 + $0x18] sm:$0xff]  ;;  %v573_v9 = vld [vmem:[#allocation2 + $0x50] sm:$0xff]  ;;  %v574_v10 = vld [vmem:[#allocation2 + $0x68] sm:$0xff] }
  0xd4   : > { %v4768_v55 = vshrl.u32 %v497_v53, 7  ;;  %v4770_v56 = vand.u32 127, %v497_v53  ;;  %v575_v13 = vld [vmem:[#allocation2 + $0x30] sm:$0xff]  ;;  %v576_v16 = vld [vmem:[#allocation2 + $0x48] sm:$0xff]  ;;  %v577_v19 = vld [vmem:[#allocation2 + $0x80] sm:$0xff] }
  0xd5   : > { %v578_v21 = vld [vmem:[#allocation2 + $0x88] sm:$0xff]  ;;  %v580_v26 = vld [vmem:[#allocation2 + $0xb8] sm:$0xff]  ;;  %v581_v29 = vld [vmem:[#allocation2 + $0x60] sm:$0xff] }
  0xd6   : > { %v515_v57 = vadd.s32 %v4766_v54, %v4768_v55  ;;  %v4775_v59 = vadd.s32 128, %v4770_v56  ;;  %v499_v61 = vadd.s32 8, %v4768_v55  ;;  %v500_v62 = vadd.s32 16, %v4768_v55  ;;  %v579_v25 = vld [vmem:[#allocation2 + $0xe8] sm:$0xff]  ;;  %v582_v31 = vld [vmem:[#allocation2 + $0xf0] sm:$0xff]  ;;  %v584_v42 = vld [vmem:[#allocation2 + $0x78] sm:$0xff] }
  0xd7   : > { %v501_v63 = vadd.s32 24, %v4768_v55  ;;  %v502_v0 = vadd.s32 32, %v4768_v55  ;;  %v503_v1 = vadd.s32 40, %v4768_v55  ;;  %v504_v2 = vadd.s32 48, %v4768_v55  ;;  %v583_v38 = vld [vmem:[#allocation2 + $0x8] sm:$0xff]  ;;  %v585_v45 = vld [vmem:[#allocation2 + $0x38] sm:$0xff] }
  0xd8   : > { %vm537_vm2 = vcmp.eq.s32.totalorder %v515_v57, %v4770_v56  ;;  %vm538_vm3 = vcmp.eq.s32.totalorder %v515_v57, %v4775_v59  ;;  %v516_v3 = vadd.s32 %v4766_v54, %v499_v61  ;;  %v517_v6 = vadd.s32 %v4766_v54, %v500_v62  ;;  %v586_v46 = vld [vmem:[#allocation2 + $0x58] sm:$0xff]  ;;  %v587_v51 = vld [vmem:[#allocation2 + $0x40] sm:$0xff]  ;;  %v588_v57 = vld [vmem:[#allocation2 + $0xc8] sm:$0xff] }
  0xd9   : > { %v601_v7 = vsel %vm537_vm2, 3e+37, %v569_v58  ;;  %v602_v8 = vsel %vm538_vm3, 3e+37, %v570_v60  ;;  %v518_v11 = vadd.s32 %v4766_v54, %v501_v63  ;;  %v519_v12 = vadd.s32 %v4766_v54, %v502_v0  ;;  %v589_v60 = vld [vmem:[#allocation2 + $0xe0] sm:$0xff] }
  0xda   : > { %633 = vst [vmem:[#allocation2 + $0xb0] sm:$0xff] %v601_v7  ;;  %vm539_vm4 = vcmp.eq.s32.totalorder %v516_v3, %v4770_v56  ;;  %vm540_vm5 = vcmp.eq.s32.totalorder %v516_v3, %v4775_v59  ;;  %vm541_vm6 = vcmp.eq.s32.totalorder %v517_v6, %v4770_v56  ;;  %vm542_vm7 = vcmp.eq.s32.totalorder %v517_v6, %v4775_v59  ;;  %v591_v3 = vld [vmem:[#allocation2 + $0x70] sm:$0xff]  ;;  %v592_v7 = vld [vmem:[#allocation2 + $0xc0] sm:$0xff] }
  0xdb   : > { %634 = vst [vmem:[#allocation2] sm:$0xff] %v602_v8  ;;  %v603_v14 = vsel %vm539_vm4, 3e+37, %v571_v4  ;;  %v604_v15 = vsel %vm540_vm5, 3e+37, %v572_v5  ;;  %vm543_vm8 = vcmp.eq.s32.totalorder %v518_v11, %v4770_v56  ;;  %vm544_vm9 = vcmp.eq.s32.totalorder %v518_v11, %v4775_v59 }
  0xdc   : > { %635 = vst [vmem:[#allocation2 + $0xd8] sm:$0xff] %v603_v14  ;;  %v605_v17 = vsel %vm541_vm6, 3e+37, %v573_v9  ;;  %v606_v18 = vsel %vm542_vm7, 3e+37, %v574_v10  ;;  %vm545_vm10 = vcmp.eq.s32.totalorder %v519_v12, %v4770_v56  ;;  %vm546_vm11 = vcmp.eq.s32.totalorder %v519_v12, %v4775_v59  ;;  %v593_v9 = vld [vmem:[#allocation2 + $0xa8] sm:$0xff] }
  0xdd   : > { %636 = vst [vmem:[#allocation2 + $0x18] sm:$0xff] %v604_v15  ;;  %v607_v20 = vsel %vm543_vm8, 3e+37, %v575_v13  ;;  %v520_v22 = vadd.s32 %v4766_v54, %v503_v1  ;;  %v521_v23 = vadd.s32 %v4766_v54, %v504_v2  ;;  %v608_v24 = vsel %vm544_vm9, 3e+37, %v576_v16  ;;  %v590_v1 = vld [vmem:[#allocation2 + $0x90] sm:$0xff] }
  0xde   : > { %637 = vst [vmem:[#allocation2 + $0x50] sm:$0xff] %v605_v17  ;;  %v505_v27 = vadd.s32 56, %v4768_v55  ;;  %v609_v28 = vsel %vm545_vm10, 3e+37, %v577_v19  ;;  %v610_v30 = vsel %vm546_vm11, 3e+37, %v578_v21 }
  0xdf   : > { %638 = vst [vmem:[#allocation2 + $0x68] sm:$0xff] %v606_v18  ;;  %vm547_vm12 = vcmp.eq.s32.totalorder %v520_v22, %v4770_v56  ;;  %vm548_vm13 = vcmp.eq.s32.totalorder %v520_v22, %v4775_v59  ;;  %vm549_vm14 = vcmp.eq.s32.totalorder %v521_v23, %v4770_v56  ;;  %vm550_vm15 = vcmp.eq.s32.totalorder %v521_v23, %v4775_v59  ;;  %v594_v12 = vld [vmem:[#allocation2 + $0xd0] sm:$0xff]  ;;  %v596_v16 = vld [vmem:[#allocation2 + $0x28] sm:$0xff]  ;;  %v597_v18 = vld [vmem:[#allocation2 + $0xa0] sm:$0xff] }
  0xe0   : > { %639 = vst [vmem:[#allocation2 + $0x30] sm:$0xff] %v607_v20  ;;  %v522_v32 = vadd.s32 %v4766_v54, %v505_v27  ;;  %v506_v33 = vadd.s32 64, %v4768_v55  ;;  %v611_v34 = vsel %vm547_vm12, 3e+37, %v579_v25  ;;  %v612_v35 = vsel %vm548_vm13, 3e+37, %v580_v26 }
  0xe1   : > { %640 = vst [vmem:[#allocation2 + $0x48] sm:$0xff] %v608_v24  ;;  %v507_v36 = vadd.s32 72, %v4768_v55  ;;  %v613_v37 = vsel %vm549_vm14, 3e+37, %v581_v29  ;;  %v508_v40 = vadd.s32 80, %v4768_v55  ;;  %v509_v44 = vadd.s32 88, %v4768_v55 }
  0xe2   : > { %641 = vst [vmem:[#allocation2 + $0x80] sm:$0xff] %v609_v28  ;;  %vm551_vm0 = vcmp.eq.s32.totalorder %v522_v32, %v4770_v56  ;;  %v523_v39 = vadd.s32 %v4766_v54, %v506_v33  ;;  %v614_v41 = vsel %vm550_vm15, 3e+37, %v582_v31  ;;  %vm552_vm1 = vcmp.eq.s32.totalorder %v522_v32, %v4775_v59  ;;  %v595_v13 = vld [vmem:[#allocation2 + $0x10] sm:$0xff]  ;;  %v598_v20 = vld [vmem:[#allocation2 + $0xf8] sm:$0xff] }
  0xe3   : > { %642 = vst [vmem:[#allocation2 + $0x88] sm:$0xff] %v610_v30  ;;  %v524_v43 = vadd.s32 %v4766_v54, %v507_v36  ;;  %v525_v47 = vadd.s32 %v4766_v54, %v508_v40  ;;  %v510_v48 = vadd.s32 96, %v4768_v55  ;;  %v615_v49 = vsel %vm551_vm0, 3e+37, %v583_v38  ;;  %v600_v23 = vld [vmem:[#allocation2 + $0x98] sm:$0xff] }
  0xe4   : > { %643 = vst [vmem:[#allocation2 + $0xe8] sm:$0xff] %v611_v34  ;;  %vm553_vm2 = vcmp.eq.s32.totalorder %v523_v39, %v4770_v56  ;;  %vm554_vm3 = vcmp.eq.s32.totalorder %v523_v39, %v4775_v59  ;;  %v616_v50 = vsel %vm552_vm1, 3e+37, %v584_v42  ;;  %v526_v58 = vadd.s32 %v4766_v54, %v509_v44 }
  0xe5   : > { %644 = vst [vmem:[#allocation2 + $0xb8] sm:$0xff] %v612_v35  ;;  %vm555_vm4 = vcmp.eq.s32.totalorder %v524_v43, %v4770_v56  ;;  %v617_v52 = vsel %vm553_vm2, 3e+37, %v585_v45  ;;  %v618_v53 = vsel %vm554_vm3, 3e+37, %v586_v46  ;;  %vm556_vm5 = vcmp.eq.s32.totalorder %v524_v43, %v4775_v59 }
  0xe6   : > { %645 = vst [vmem:[#allocation2 + $0x60] sm:$0xff] %v613_v37  ;;  %vm557_vm6 = vcmp.eq.s32.totalorder %v525_v47, %v4770_v56  ;;  %v527_v61 = vadd.s32 %v4766_v54, %v510_v48  ;;  %v511_v62 = vadd.s32 104, %v4768_v55  ;;  %v512_v63 = vadd.s32 112, %v4768_v55 }
  0xe7   : > { %646 = vst [vmem:[#allocation2 + $0xf0] sm:$0xff] %v614_v41  ;;  %v619_v0 = vsel %vm555_vm4, 3e+37, %v587_v51  ;;  %vm558_vm7 = vcmp.eq.s32.totalorder %v525_v47, %v4775_v59  ;;  %v620_v2 = vsel %vm556_vm5, 3e+37, %v588_v57  ;;  %vm559_vm8 = vcmp.eq.s32.totalorder %v526_v58, %v4770_v56 }
  0xe8   : > { %647 = vst [vmem:[#allocation2 + $0x8] sm:$0xff] %v615_v49  ;;  %v528_v4 = vadd.s32 %v4766_v54, %v511_v62  ;;  %v513_v5 = vadd.s32 120, %v4768_v55  ;;  %v621_v6 = vsel %vm557_vm6, 3e+37, %v589_v60  ;;  %vm560_vm9 = vcmp.eq.s32.totalorder %v526_v58, %v4775_v59 }
  0xe9   : > { %648 = vst [vmem:[#allocation2 + $0x78] sm:$0xff] %v616_v50  ;;  %v622_v8 = vsel %vm558_vm7, 3e+37, %v590_v1  ;;  %vm561_vm10 = vcmp.eq.s32.totalorder %v527_v61, %v4770_v56  ;;  %v529_v10 = vadd.s32 %v4766_v54, %v512_v63  ;;  %v623_v11 = vsel %vm559_vm8, 3e+37, %v591_v3 }
  0xea   : > { %649 = vst [vmem:[#allocation2 + $0x38] sm:$0xff] %v617_v52  ;;  %vm562_vm11 = vcmp.eq.s32.totalorder %v527_v61, %v4775_v59  ;;  %v624_v55 = vsel %vm560_vm9, 3e+37, %v592_v7  ;;  %vm563_vm12 = vcmp.eq.s32.totalorder %v528_v4, %v4770_v56  ;;  %v530_v14 = vadd.s32 %v4766_v54, %v513_v5  ;;  %v599_v54 = vld [vmem:[#allocation2 + $0x20] sm:$0xff] }
  0xeb   : > { %650 = vst [vmem:[#allocation2 + $0x58] sm:$0xff] %v618_v53  ;;  %v625_v15 = vsel %vm561_vm10, 3e+37, %v593_v9  ;;  %vm564_vm13 = vcmp.eq.s32.totalorder %v528_v4, %v4775_v59  ;;  %v626_v17 = vsel %vm562_vm11, 3e+37, %v594_v12  ;;  %vm565_vm14 = vcmp.eq.s32.totalorder %v529_v10, %v4770_v56 }
  0xec   : > { %651 = vst [vmem:[#allocation2 + $0x40] sm:$0xff] %v619_v0  ;;  %v627_v19 = vsel %vm563_vm12, 3e+37, %v595_v13  ;;  %vm566_vm15 = vcmp.eq.s32.totalorder %v529_v10, %v4775_v59  ;;  %v628_v21 = vsel %vm564_vm13, 3e+37, %v596_v16  ;;  %vm567_vm0 = vcmp.eq.s32.totalorder %v530_v14, %v4770_v56 }
  0xed   : > { %652 = vst [vmem:[#allocation2 + $0xc8] sm:$0xff] %v620_v2  ;;  %v629_v22 = vsel %vm565_vm14, 3e+37, %v597_v18  ;;  %vm568_vm1 = vcmp.eq.s32.totalorder %v530_v14, %v4775_v59  ;;  %v630_v24 = vsel %vm566_vm15, 3e+37, %v598_v20 }
  0xee   : > { %653 = vst [vmem:[#allocation2 + $0xe0] sm:$0xff] %v621_v6  ;;  %v631_v25 = vsel %vm567_vm0, 3e+37, %v599_v54  ;;  %v632_v26 = vsel %vm568_vm1, 3e+37, %v600_v23 }
  0xef   : > { %654 = vst [vmem:[#allocation2 + $0x90] sm:$0xff] %v622_v8 }
  0xf0   : > { %655 = vst [vmem:[#allocation2 + $0x70] sm:$0xff] %v623_v11 }
  0xf1   : > { %656 = vst [vmem:[#allocation2 + $0xc0] sm:$0xff] %v624_v55 }
  0xf2   : > { %657 = vst [vmem:[#allocation2 + $0xa8] sm:$0xff] %v625_v15 }
  0xf3   : > { %658 = vst [vmem:[#allocation2 + $0xd0] sm:$0xff] %v626_v17 }
  0xf4   : > { %659 = vst [vmem:[#allocation2 + $0x10] sm:$0xff] %v627_v19 }
  0xf5   : > { %660 = vst [vmem:[#allocation2 + $0x28] sm:$0xff] %v628_v21 }
  0xf6   : > { %661 = vst [vmem:[#allocation2 + $0xa0] sm:$0xff] %v629_v22 }
  0xf7   : > { %662 = vst [vmem:[#allocation2 + $0xf8] sm:$0xff] %v630_v24 }
  0xf8   : > { %663 = vst [vmem:[#allocation2 + $0x20] sm:$0xff] %v631_v25 }
  0xf9   : > { %664 = vst [vmem:[#allocation2 + $0x98] sm:$0xff] %v632_v26 }
  0xfa PF: > { %v761_v27 = vld [vmem:[#allocation3 + $0x170] sm:$0xff]  ;;  %v777_v29 = vld [vmem:[#allocation2 + $0x80] sm:$0xff]  ;;  %v809_v56 = vld [vmem:[#allocation2 + $0x88] sm:$0xff] }
  0xfb   : > { %v765_v28 = vld [vmem:[#allocation3 + $0x90] sm:$0xff]  ;;  %v781_v30 = vmin.f32 %v761_v27, %v777_v29  ;;  %v785_v31 = vmax.f32 %v761_v27, %v777_v29  ;;  %v769_v33 = vld [vmem:[#allocation3 + $0xf8] sm:$0xff]  ;;  %v715_v39 = vld [vmem:[#allocation2 + $0x68] sm:$0xff] }
  0xfc   : > { %v667_v32 = vld [vmem:[#allocation3 + $0x1d0] sm:$0xff]  ;;  %v773_v40 = vld [vmem:[#allocation3 + $0x180] sm:$0xff]  ;;  %v675_v47 = vld [vmem:[#allocation3 + $0xa8] sm:$0xff] }
  0xfd   : > { %v683_v59 = vld [vmem:[#allocation2 + $0x50] sm:$0xff]  ;;  %v789_v34 = vmin.f32 %v765_v28, %v785_v31  ;;  %v793_v35 = vmax.f32 %v765_v28, %v785_v31  ;;  %v813_v36 = vmin.f32 %v781_v30, %v809_v56  ;;  %v817_v37 = vmax.f32 %v781_v30, %v809_v56  ;;  %v665_v52 = vld [vmem:[#allocation3 + $0x80] sm:$0xff]  ;;  %v669_v3 = vld [vmem:[#allocation3 + $0xc8] sm:$0xff] }
  0xfe   : > { %v671_v38 = vld [vmem:[#allocation3 + $0x1b0] sm:$0xff]  ;;  %v687_v41 = vmin.f32 %v667_v32, %v683_v59  ;;  %v691_v42 = vmax.f32 %v667_v32, %v683_v59  ;;  %v713_v8 = vld [vmem:[#allocation2] sm:$0xff]  ;;  %v762_v9 = vld [vmem:[#allocation3 + $0x1b8] sm:$0xff] }
  0xff   : > { %v797_v43 = vmin.f32 %v769_v33, %v793_v35  ;;  %v801_v44 = vmax.f32 %v769_v33, %v793_v35  ;;  %v821_v45 = vmin.f32 %v789_v34, %v817_v37  ;;  %v825_v46 = vmax.f32 %v789_v34, %v817_v37  ;;  %841 = vst [vmem:[#allocation3 + $0x170] sm:$0xff] %v813_v36  ;;  %v681_v53 = vld [vmem:[#allocation2 + $0xb0] sm:$0xff]  ;;  %v778_v10 = vld [vmem:[#allocation2 + $0xe8] sm:$0xff]  ;;  %v677_v21 = vld [vmem:[#allocation3 + $0x178] sm:$0xff] }
 0x100   : > { %v695_v48 = vmin.f32 %v671_v38, %v691_v42  ;;  %v699_v49 = vmax.f32 %v671_v38, %v691_v42  ;;  %v4845_v50 = vmin.f32 %v687_v41, %v715_v39  ;;  %v723_v51 = vmax.f32 %v687_v41, %v715_v39  ;;  %v679_v62 = vld [vmem:[#allocation3 + $0xd0] sm:$0xff]  ;;  %v673_v14 = vld [vmem:[#allocation3 + $0x1e8] sm:$0xff]  ;;  %v810_v24 = vld [vmem:[#allocation2 + $0xb8] sm:$0xff] }
 0x101   : > { %v805_v57 = vmin.f32 %v773_v40, %v801_v44  ;;  %v829_v58 = vmin.f32 %v797_v43, %v825_v46  ;;  %v833_v60 = vmax.f32 %v797_v43, %v825_v46  ;;  %845 = vst [vmem:[#allocation3 + $0x90] sm:$0xff] %v821_v45  ;;  %v1141_v61 = vmin.f32 %v813_v36, %v821_v45  ;;  %v766_v22 = vld [vmem:[#allocation3 + $0x130] sm:$0xff]  ;;  %v668_v35 = vld [vmem:[#allocation3 + $0xe0] sm:$0xff]  ;;  %v672_v45 = vld [vmem:[#allocation3 + $0x118] sm:$0xff] }
 0x102   : > { %v703_v63 = vmin.f32 %v675_v47, %v699_v49  ;;  %v707_v0 = vmax.f32 %v675_v47, %v699_v49  ;;  %v4847_v1 = vmin.f32 %v695_v48, %v723_v51  ;;  %v731_v2 = vmax.f32 %v695_v48, %v723_v51  ;;  %747 = vst [vmem:[#allocation3 + $0x1d0] sm:$0xff] %v4845_v50  ;;  %v770_v30 = vld [vmem:[#allocation3 + $0x10] sm:$0xff]  ;;  %v774_v40 = vld [vmem:[#allocation3 + $0x120] sm:$0xff]  ;;  %v716_v51 = vld [vmem:[#allocation2 + $0x48] sm:$0xff] }
 0x103   : > { %v4850_v4 = vmin.f32 %v805_v57, %v833_v60  ;;  %849 = vst [vmem:[#allocation3 + $0xf8] sm:$0xff] %v829_v58  ;;  %v1142_v5 = vmin.f32 %v1141_v61, %v829_v58  ;;  %v685_v6 = vmin.f32 %v665_v52, %v681_v53  ;;  %v689_v7 = vmax.f32 %v665_v52, %v681_v53  ;;  %v684_v36 = vld [vmem:[#allocation2 + $0x30] sm:$0xff]  ;;  %v666_v52 = vld [vmem:[#allocation3 + $0x8] sm:$0xff]  ;;  %v682_v53 = vld [vmem:[#allocation2 + $0xd8] sm:$0xff] }
 0x104   : > { %v711_v11 = vmin.f32 %v679_v62, %v707_v0  ;;  %v4852_v12 = vmin.f32 %v703_v63, %v731_v2  ;;  %v739_v55 = vmax.f32 %v703_v63, %v731_v2  ;;  %751 = vst [vmem:[#allocation3 + $0x1b0] sm:$0xff] %v4847_v1  ;;  %v1131_v13 = vmin.f32 %v4845_v50, %v4847_v1  ;;  %v676_v62 = vld [vmem:[#allocation3 + $0x128] sm:$0xff] }
 0x105   : > { %853 = vst [vmem:[#allocation3 + $0x180] sm:$0xff] %v4850_v4  ;;  %v1143_v15 = vmin.f32 %v1142_v5, %v4850_v4  ;;  %v693_v16 = vmin.f32 %v669_v3, %v689_v7  ;;  %v697_v17 = vmax.f32 %v669_v3, %v689_v7  ;;  %v4859_v18 = vmin.f32 %v685_v6, %v713_v8  ;;  %v680_v7 = vld [vmem:[#allocation3 + $0xf0] sm:$0xff] }
 0x106   : > { %v4861_v19 = vmin.f32 %v711_v11, %v739_v55  ;;  %755 = vst [vmem:[#allocation3 + $0xa8] sm:$0xff] %v4852_v12  ;;  %v1132_v20 = vmin.f32 %v1131_v13, %v4852_v12  ;;  %v721_v54 = vmax.f32 %v685_v6, %v713_v8  ;;  %v782_v23 = vmin.f32 %v762_v9, %v778_v10  ;;  %v714_v11 = vld [vmem:[#allocation2 + $0x18] sm:$0xff] }
 0x107   : > { %1144 = vmin.xlane.f32.xlu2 %v1143_v15  ;;  %v701_v25 = vmin.f32 %v673_v14, %v697_v17  ;;  %v705_v26 = vmax.f32 %v673_v14, %v697_v17  ;;  %745 = vst [vmem:[#allocation3 + $0x80] sm:$0xff] %v4859_v18  ;;  %v786_v27 = vmax.f32 %v762_v9, %v778_v10  ;;  %v670_v9 = vld [vmem:[#allocation3 + $0x190] sm:$0xff] }
 0x108   : > { %759 = vst [vmem:[#allocation3 + $0xd0] sm:$0xff] %v4861_v19  ;;  %v1133_v28 = vmin.f32 %v1132_v20, %v4861_v19  ;;  %v4868_v29 = vmin.f32 %v693_v16, %v721_v54  ;;  %v729_v56 = vmax.f32 %v693_v16, %v721_v54  ;;  %v4870_v31 = vmin.f32 %v782_v23, %v810_v24  ;;  %v674_v20 = vld [vmem:[#allocation3 + $0x158] sm:$0xff] }
 0x109   : > { %v709_v32 = vmin.f32 %v677_v21, %v705_v26  ;;  %v790_v33 = vmin.f32 %v766_v22, %v786_v27  ;;  %v794_v59 = vmax.f32 %v766_v22, %v786_v27  ;;  %v818_v34 = vmax.f32 %v782_v23, %v810_v24  ;;  %v873_v26 = vld [vmem:[#allocation2 + $0x38] sm:$0xff] }
 0x10a   : > { %1134 = vmin.xlane.f32.xlu1 %v1133_v28  ;;  %v4872_v37 = vmin.f32 %v701_v25, %v729_v56  ;;  %v737_v38 = vmax.f32 %v701_v25, %v729_v56  ;;  %749 = vst [vmem:[#allocation3 + $0xc8] sm:$0xff] %v4868_v29  ;;  %v1121_v39 = vmin.f32 %v4859_v18, %v4868_v29  ;;  %v857_v25 = vld [vmem:[#allocation3 + $0x78] sm:$0xff] }
 0x10b   : > { %v798_v41 = vmin.f32 %v770_v30, %v794_v59  ;;  %v802_v42 = vmax.f32 %v770_v30, %v794_v59  ;;  %v4877_v43 = vmin.f32 %v790_v33, %v818_v34  ;;  %v826_v44 = vmax.f32 %v790_v33, %v818_v34  ;;  %842 = vst [vmem:[#allocation3 + $0x1b8] sm:$0xff] %v4870_v31  ;;  %v678_v30 = vld [vmem:[#allocation3 + $0x1a8] sm:$0xff] }
 0x10c   : > { %v4880_v46 = vmin.f32 %v709_v32, %v737_v38  ;;  %753 = vst [vmem:[#allocation3 + $0x1e8] sm:$0xff] %v4872_v37  ;;  %v1122_v47 = vmin.f32 %v1121_v39, %v4872_v37  ;;  %v688_v48 = vmin.f32 %v668_v35, %v684_v36  ;;  %v692_v49 = vmax.f32 %v668_v35, %v684_v36  ;;  %v861_v35 = vld [vmem:[#allocation3 + $0x1e0] sm:$0xff] }
 0x10d   : > { %v806_v57 = vmin.f32 %v774_v40, %v802_v42  ;;  %v4884_v58 = vmin.f32 %v798_v41, %v826_v44  ;;  %v834_v60 = vmax.f32 %v798_v41, %v826_v44  ;;  %846 = vst [vmem:[#allocation3 + $0x130] sm:$0xff] %v4877_v43  ;;  %v1146_v61 = vmin.f32 %v4870_v31, %v4877_v43  ;;  %v905_v41 = vld [vmem:[#allocation2 + $0x58] sm:$0xff]  ;;  %v780_v44 = vld [vmem:[#allocation2 + $0x8] sm:$0xff] }
 0x10e   : > { %757 = vst [vmem:[#allocation3 + $0x178] sm:$0xff] %v4880_v46  ;;  %v1123_v63 = vmin.f32 %v1122_v47, %v4880_v46  ;;  %v696_v0 = vmin.f32 %v672_v45, %v692_v49  ;;  %v700_v2 = vmax.f32 %v672_v45, %v692_v49  ;;  %v4891_v3 = vmin.f32 %v688_v48, %v716_v51  ;;  %v764_v42 = vld [vmem:[#allocation3 + $0xd8] sm:$0xff] }
 0x10f   : > { %v4893_v5 = vmin.f32 %v806_v57, %v834_v60  ;;  %850 = vst [vmem:[#allocation3 + $0x10] sm:$0xff] %v4884_v58  ;;  %v1147_v6 = vmin.f32 %v1146_v61, %v4884_v58  ;;  %v724_v8 = vmax.f32 %v688_v48, %v716_v51  ;;  %v686_v10 = vmin.f32 %v666_v52, %v682_v53  ;;  %v865_v51 = vld [vmem:[#allocation3 + $0x1d8] sm:$0xff] }
 0x110   : > { %1124 = vmin.xlane.f32.xlu0 %v1123_v63  ;;  %v704_v55 = vmin.f32 %v676_v62, %v700_v2  ;;  %v708_v13 = vmax.f32 %v676_v62, %v700_v2  ;;  %748 = vst [vmem:[#allocation3 + $0xe0] sm:$0xff] %v4891_v3  ;;  %v690_v14 = vmax.f32 %v666_v52, %v682_v53  ;;  %v869_v63 = vld [vmem:[#allocation3 + $0x148] sm:$0xff]  ;;  %v768_v2 = vld [vmem:[#allocation3 + $0x198] sm:$0xff] }
 0x111   : > { %854 = vst [vmem:[#allocation3 + $0x120] sm:$0xff] %v4893_v5  ;;  %v1148_v15 = vmin.f32 %v1147_v6, %v4893_v5  ;;  %v4900_v16 = vmin.f32 %v696_v0, %v724_v8  ;;  %v732_v17 = vmax.f32 %v696_v0, %v724_v8  ;;  %v4902_v21 = vmin.f32 %v686_v10, %v714_v11 }
 0x112   : > { %v712_v54 = vmin.f32 %v680_v7, %v708_v13  ;;  %v694_v22 = vmin.f32 %v670_v9, %v690_v14  ;;  %v698_v23 = vmax.f32 %v670_v9, %v690_v14  ;;  %v722_v24 = vmax.f32 %v686_v10, %v714_v11  ;;  %v812_v7 = vld [vmem:[#allocation2 + $0x78] sm:$0xff]  ;;  %v772_v14 = vld [vmem:[#allocation3 + $0x1a0] sm:$0xff] }
 0x113   : > { %1149 = vmin.xlane.f32.xlu2 %v1148_v15  ;;  %v4904_v27 = vmin.f32 %v704_v55, %v732_v17  ;;  %v740_v28 = vmax.f32 %v704_v55, %v732_v17  ;;  %752 = vst [vmem:[#allocation3 + $0x118] sm:$0xff] %v4900_v16  ;;  %v1136_v56 = vmin.f32 %v4891_v3, %v4900_v16 }
 0x114   : > { %v702_v32 = vmin.f32 %v674_v20, %v698_v23  ;;  %v706_v33 = vmax.f32 %v674_v20, %v698_v23  ;;  %v4909_v59 = vmin.f32 %v694_v22, %v722_v24  ;;  %v730_v34 = vmax.f32 %v694_v22, %v722_v24  ;;  %746 = vst [vmem:[#allocation3 + $0x8] sm:$0xff] %v4902_v21  ;;  %v763_v23 = vld [vmem:[#allocation3 + $0x68] sm:$0xff]  ;;  %v779_v24 = vld [vmem:[#allocation2 + $0x60] sm:$0xff] }
 0x115   : > { %v4912_v36 = vmin.f32 %v712_v54, %v740_v28  ;;  %756 = vst [vmem:[#allocation3 + $0x128] sm:$0xff] %v4904_v27  ;;  %v1137_v38 = vmin.f32 %v1136_v56, %v4904_v27  ;;  %v877_v39 = vmin.f32 %v857_v25, %v873_v26  ;;  %v881_v40 = vmax.f32 %v857_v25, %v873_v26  ;;  %v776_v56 = vld [vmem:[#allocation3 + $0x100] sm:$0xff] }
 0x116   : > { %v710_v45 = vmin.f32 %v678_v30, %v706_v33  ;;  %v4916_v47 = vmin.f32 %v702_v32, %v730_v34  ;;  %v738_v48 = vmax.f32 %v702_v32, %v730_v34  ;;  %750 = vst [vmem:[#allocation3 + $0x190] sm:$0xff] %v4909_v59  ;;  %v1126_v49 = vmin.f32 %v4902_v21, %v4909_v59 }
 0x117   : > { %760 = vst [vmem:[#allocation3 + $0xf0] sm:$0xff] %v4912_v36  ;;  %v1138_v52 = vmin.f32 %v1137_v38, %v4912_v36  ;;  %v885_v53 = vmin.f32 %v861_v35, %v881_v40  ;;  %v889_v57 = vmax.f32 %v861_v35, %v881_v40  ;;  %v4923_v60 = vmin.f32 %v877_v39, %v905_v41  ;;  %v767_v35 = vld [vmem:[#allocation3 + $0x1f0] sm:$0xff] }
 0x118   : > { %v4925_v61 = vmin.f32 %v710_v45, %v738_v48  ;;  %754 = vst [vmem:[#allocation3 + $0x158] sm:$0xff] %v4916_v47  ;;  %v1127_v62 = vmin.f32 %v1126_v49, %v4916_v47  ;;  %v913_v0 = vmax.f32 %v877_v39, %v905_v41  ;;  %v784_v6 = vmin.f32 %v764_v42, %v780_v44  ;;  %v876_v45 = vld [vmem:[#allocation2 + $0x70] sm:$0xff] }
 0x119   : > { %1139 = vmin.xlane.f32.xlu1 %v1138_v52  ;;  %v893_v8 = vmin.f32 %v865_v51, %v889_v57  ;;  %v897_v9 = vmax.f32 %v865_v51, %v889_v57  ;;  %937 = vst [vmem:[#allocation3 + $0x78] sm:$0xff] %v4923_v60  ;;  %v788_v10 = vmax.f32 %v764_v42, %v780_v44  ;;  %v811_v42 = vld [vmem:[#allocation2 + $0xf0] sm:$0xff]  ;;  %v860_v44 = vld [vmem:[#allocation3 + $0x168] sm:$0xff] }
 0x11a   : > { %758 = vst [vmem:[#allocation3 + $0x1a8] sm:$0xff] %v4925_v61  ;;  %v1128_v11 = vmin.f32 %v1127_v62, %v4925_v61  ;;  %v4932_v55 = vmin.f32 %v885_v53, %v913_v0  ;;  %v921_v13 = vmax.f32 %v885_v53, %v913_v0  ;;  %v4934_v15 = vmin.f32 %v784_v6, %v812_v7  ;;  %v771_v53 = vld [vmem:[#allocation3] sm:$0xff] }
 0x11b   : > { %v901_v17 = vmin.f32 %v869_v63, %v897_v9  ;;  %v792_v20 = vmin.f32 %v768_v2, %v788_v10  ;;  %v796_v54 = vmax.f32 %v768_v2, %v788_v10  ;;  %v820_v22 = vmax.f32 %v784_v6, %v812_v7  ;;  %v775_v7 = vld [vmem:[#allocation3 + $0x140] sm:$0xff]  ;;  %v864_v9 = vld [vmem:[#allocation3 + $0x188] sm:$0xff] }
 0x11c   : > { %1129 = vmin.xlane.f32.xlu0 %v1128_v11  ;;  %v4936_v25 = vmin.f32 %v893_v8, %v921_v13  ;;  %v929_v26 = vmax.f32 %v893_v8, %v921_v13  ;;  %941 = vst [vmem:[#allocation3 + $0x1e0] sm:$0xff] %v4932_v55  ;;  %v1161_v28 = vmin.f32 %v4923_v60, %v4932_v55  ;;  %v908_v11 = vld [vmem:[#allocation2 + $0xc0] sm:$0xff] }
 0x11d   : > { %v800_v30 = vmin.f32 %v772_v14, %v796_v54  ;;  %v804_v32 = vmax.f32 %v772_v14, %v796_v54  ;;  %v4941_v33 = vmin.f32 %v792_v20, %v820_v22  ;;  %v828_v34 = vmax.f32 %v792_v20, %v820_v22  ;;  %844 = vst [vmem:[#allocation3 + $0xd8] sm:$0xff] %v4934_v15 }
 0x11e   : > { %v4944_v38 = vmin.f32 %v901_v17, %v929_v26  ;;  %945 = vst [vmem:[#allocation3 + $0x1d8] sm:$0xff] %v4936_v25  ;;  %v1162_v39 = vmin.f32 %v1161_v28, %v4936_v25  ;;  %v783_v40 = vmin.f32 %v763_v23, %v779_v24  ;;  %v787_v41 = vmax.f32 %v763_v23, %v779_v24  ;;  %v868_v23 = vld [vmem:[#allocation3 + $0x38] sm:$0xff] }
 0x11f   : > { %v808_v48 = vmin.f32 %v776_v56, %v804_v32  ;;  %v4948_v49 = vmin.f32 %v800_v30, %v828_v34  ;;  %v836_v51 = vmax.f32 %v800_v30, %v828_v34  ;;  %848 = vst [vmem:[#allocation3 + $0x198] sm:$0xff] %v4941_v33  ;;  %v1156_v52 = vmin.f32 %v4934_v15, %v4941_v33  ;;  %v859_v32 = vld [vmem:[#allocation3 + $0x30] sm:$0xff]  ;;  %v875_v34 = vld [vmem:[#allocation2 + $0xe0] sm:$0xff] }
 0x120   : > { %949 = vst [vmem:[#allocation3 + $0x148] sm:$0xff] %v4944_v38  ;;  %v1163_v57 = vmin.f32 %v1162_v39, %v4944_v38  ;;  %v791_v62 = vmin.f32 %v767_v35, %v787_v41  ;;  %v795_v63 = vmax.f32 %v767_v35, %v787_v41  ;;  %v4955_v0 = vmin.f32 %v783_v40, %v811_v42  ;;  %v872_v41 = vld [vmem:[#allocation3 + $0xc0] sm:$0xff] }
 0x121   : > { %v4957_v2 = vmin.f32 %v808_v48, %v836_v51  ;;  %852 = vst [vmem:[#allocation3 + $0x1a0] sm:$0xff] %v4948_v49  ;;  %v1157_v6 = vmin.f32 %v1156_v52, %v4948_v49  ;;  %v819_v8 = vmax.f32 %v783_v40, %v811_v42  ;;  %v880_v10 = vmin.f32 %v860_v44, %v876_v45  ;;  %v863_v51 = vld [vmem:[#allocation3 + $0x108] sm:$0xff] }
 0x122   : > { %1164 = vmin.xlane.f32.xlu2 %v1163_v57  ;;  %v799_v13 = vmin.f32 %v771_v53, %v795_v63  ;;  %v803_v14 = vmax.f32 %v771_v53, %v795_v63  ;;  %843 = vst [vmem:[#allocation3 + $0x68] sm:$0xff] %v4955_v0  ;;  %v884_v17 = vmax.f32 %v860_v44, %v876_v45  ;;  %v907_v63 = vld [vmem:[#allocation2 + $0x90] sm:$0xff] }
 0x123   : > { %856 = vst [vmem:[#allocation3 + $0x100] sm:$0xff] %v4957_v2  ;;  %v1158_v20 = vmin.f32 %v1157_v6, %v4957_v2  ;;  %v4964_v54 = vmin.f32 %v791_v62, %v819_v8  ;;  %v827_v22 = vmax.f32 %v791_v62, %v819_v8  ;;  %v4966_v24 = vmin.f32 %v880_v10, %v908_v11  ;;  %v858_v6 = vld [vmem:[#allocation3 + $0x138] sm:$0xff] }
 0x124   : > { %v807_v26 = vmin.f32 %v775_v7, %v803_v14  ;;  %v888_v28 = vmin.f32 %v864_v9, %v884_v17  ;;  %v892_v56 = vmax.f32 %v864_v9, %v884_v17  ;;  %v916_v30 = vmax.f32 %v880_v10, %v908_v11  ;;  %v874_v7 = vld [vmem:[#allocation2 + $0x40] sm:$0xff] }
 0x125   : > { %1159 = vmin.xlane.f32.xlu1 %v1158_v20  ;;  %v4968_v35 = vmin.f32 %v799_v13, %v827_v22  ;;  %v835_v39 = vmax.f32 %v799_v13, %v827_v22  ;;  %847 = vst [vmem:[#allocation3 + $0x1f0] sm:$0xff] %v4964_v54  ;;  %v1151_v40 = vmin.f32 %v4955_v0, %v4964_v54  ;;  %v867_v13 = vld [vmem:[#allocation3 + $0x1c0] sm:$0xff] }
 0x126   : > { %v896_v42 = vmin.f32 %v868_v23, %v892_v56  ;;  %v900_v44 = vmax.f32 %v868_v23, %v892_v56  ;;  %v4973_v45 = vmin.f32 %v888_v28, %v916_v30  ;;  %v924_v48 = vmax.f32 %v888_v28, %v916_v30  ;;  %940 = vst [vmem:[#allocation3 + $0x168] sm:$0xff] %v4966_v24  ;;  %v871_v28 = vld [vmem:[#allocation3 + $0x1c8] sm:$0xff] }
 0x127   : > { %v4976_v52 = vmin.f32 %v807_v26, %v835_v39  ;;  %851 = vst [vmem:[#allocation3] sm:$0xff] %v4968_v35  ;;  %v1152_v53 = vmin.f32 %v1151_v40, %v4968_v35  ;;  %v879_v57 = vmin.f32 %v859_v32, %v875_v34  ;;  %v883_v62 = vmax.f32 %v859_v32, %v875_v34  ;;  %v862_v30 = vld [vmem:[#allocation3 + $0x28] sm:$0xff] }
 0x128   : > { %v904_v8 = vmin.f32 %v872_v41, %v900_v44  ;;  %v4980_v9 = vmin.f32 %v896_v42, %v924_v48  ;;  %v932_v10 = vmax.f32 %v896_v42, %v924_v48  ;;  %944 = vst [vmem:[#allocation3 + $0x188] sm:$0xff] %v4973_v45  ;;  %v1176_v11 = vmin.f32 %v4966_v24, %v4973_v45  ;;  %v906_v34 = vld [vmem:[#allocation2 + $0xc8] sm:$0xff] }
 0x129   : > { %855 = vst [vmem:[#allocation3 + $0x140] sm:$0xff] %v4976_v52  ;;  %v1153_v14 = vmin.f32 %v1152_v53, %v4976_v52  ;;  %v887_v17 = vmin.f32 %v863_v51, %v883_v62  ;;  %v891_v20 = vmax.f32 %v863_v51, %v883_v62  ;;  %v4987_v22 = vmin.f32 %v879_v57, %v907_v63  ;;  %v866_v51 = vld [vmem:[#allocation3 + $0x70] sm:$0xff] }
 0x12a   : > { %v4989_v23 = vmin.f32 %v904_v8, %v932_v10  ;;  %948 = vst [vmem:[#allocation3 + $0x38] sm:$0xff] %v4980_v9  ;;  %v1177_v26 = vmin.f32 %v1176_v11, %v4980_v9  ;;  %v915_v56 = vmax.f32 %v879_v57, %v907_v63  ;;  %v878_v32 = vmin.f32 %v858_v6, %v874_v7  ;;  %v955_v10 = vld [vmem:[#allocation3 + $0xe8] sm:$0xff]  ;;  %v971_v11 = vld [vmem:[#allocation2 + $0xa0] sm:$0xff] }
 0x12b   : > { %8710 = vst [vmem:[#allocation4_spill] sm:$0xff] %v4987_v22  ;;  %1154 = vmin.xlane.f32.xlu0 %v1153_v14  ;;  %v895_v39 = vmin.f32 %v867_v13, %v891_v20  ;;  %v899_v40 = vmax.f32 %v867_v13, %v891_v20  ;;  %v882_v41 = vmax.f32 %v858_v6, %v874_v7  ;;  %v870_v14 = vld [vmem:[#allocation3 + $0xb8] sm:$0xff] }
 0x12c   : > { %939 = vst [vmem:[#allocation3 + $0x30] sm:$0xff] %v4987_v22  ;;  %v1178_v42 = vmin.f32 %v1177_v26, %v4989_v23  ;;  %v4996_v44 = vmin.f32 %v887_v17, %v915_v56  ;;  %v923_v48 = vmax.f32 %v887_v17, %v915_v56  ;;  %v4998_v53 = vmin.f32 %v878_v32, %v906_v34  ;;  %v959_v56 = vld [vmem:[#allocation3 + $0x110] sm:$0xff] }
 0x12d   : > { %952 = vst [vmem:[#allocation3 + $0xc0] sm:$0xff] %v4989_v23  ;;  %v903_v57 = vmin.f32 %v871_v28, %v899_v40  ;;  %v886_v62 = vmin.f32 %v862_v30, %v882_v41  ;;  %v890_v63 = vmax.f32 %v862_v30, %v882_v41  ;;  %v914_v8 = vmax.f32 %v878_v32, %v906_v34  ;;  %v1003_v40 = vld [vmem:[#allocation2 + $0xf8] sm:$0xff]  ;;  %v954_v41 = vld [vmem:[#allocation3 + $0x60] sm:$0xff] }
 0x12e   : > { %8711 = vst [vmem:[#allocation5_spill] sm:$0xff] %v4996_v44  ;;  %1179 = vmin.xlane.f32.xlu2 %v1178_v42  ;;  %v5000_v13 = vmin.f32 %v895_v39, %v923_v48  ;;  %v931_v6 = vmax.f32 %v895_v39, %v923_v48  ;;  %v1171_v7 = vmin.f32 %v4987_v22, %v4996_v44  ;;  %v970_v42 = vld [vmem:[#allocation2 + $0x10] sm:$0xff] }
 0x12f   : > { %8712 = vst [vmem:[#allocation6_spill] sm:$0xff] %v4998_v53  ;;  %v894_v17 = vmin.f32 %v866_v51, %v890_v63  ;;  %v898_v20 = vmax.f32 %v866_v51, %v890_v63  ;;  %v5005_v26 = vmin.f32 %v886_v62, %v914_v8  ;;  %v922_v28 = vmax.f32 %v886_v62, %v914_v8 }
 0x130   : > { %8713 = vst [vmem:[#allocation7_spill] sm:$0xff] %v5000_v13  ;;  %v5008_v30 = vmin.f32 %v903_v57, %v931_v6  ;;  %v1172_v32 = vmin.f32 %v1171_v7, %v5000_v13  ;;  %v975_v34 = vmin.f32 %v955_v10, %v971_v11  ;;  %v979_v39 = vmax.f32 %v955_v10, %v971_v11  ;;  %v963_v57 = vld [vmem:[#allocation3 + $0x50] sm:$0xff] }
 0x131   : > { %943 = vst [vmem:[#allocation3 + $0x108] sm:$0xff] %v4996_v44  ;;  %v902_v48 = vmin.f32 %v870_v14, %v898_v20  ;;  %v5012_v44 = vmin.f32 %v894_v17, %v922_v28  ;;  %v930_v51 = vmax.f32 %v894_v17, %v922_v28  ;;  %v1166_v62 = vmin.f32 %v4998_v53, %v5005_v26  ;;  %v967_v14 = vld [vmem:[#allocation3 + $0x98] sm:$0xff] }
 0x132   : > { %8714 = vst [vmem:[#allocation8_spill] sm:$0xff] %v5005_v26  ;;  %v1173_v63 = vmin.f32 %v1172_v32, %v5008_v30  ;;  %v983_v8 = vmin.f32 %v959_v56, %v979_v39  ;;  %v987_v6 = vmax.f32 %v959_v56, %v979_v39  ;;  %v5019_v10 = vmin.f32 %v975_v34, %v1003_v40  ;;  %v958_v20 = vld [vmem:[#allocation3 + $0x1f8] sm:$0xff] }
 0x133   : > { %938 = vst [vmem:[#allocation3 + $0x138] sm:$0xff] %v4998_v53  ;;  %v5021_v11 = vmin.f32 %v902_v48, %v930_v51  ;;  %v1167_v7 = vmin.f32 %v1166_v62, %v5012_v44  ;;  %v1011_v17 = vmax.f32 %v975_v34, %v1003_v40  ;;  %v974_v28 = vmin.f32 %v954_v41, %v970_v42  ;;  %v962_v51 = vld [vmem:[#allocation3 + $0x58] sm:$0xff]  ;;  %v969_v53 = vld [vmem:[#allocation2 + $0xa8] sm:$0xff] }
 0x134   : > { %8715 = vst [vmem:[#allocation9_spill] sm:$0xff] %v5008_v30  ;;  %1174 = vmin.xlane.f32.xlu1 %v1173_v63  ;;  %v991_v22 = vmin.f32 %v963_v57, %v987_v6  ;;  %v978_v32 = vmax.f32 %v954_v41, %v970_v42  ;;  %v953_v63 = vld [vmem:[#allocation3 + $0x40] sm:$0xff] }
 0x135   : > { %947 = vst [vmem:[#allocation3 + $0x1c0] sm:$0xff] %v5000_v13  ;;  %v1002_v13 = vld [vmem:[#allocation2 + $0x28] sm:$0xff]  ;;  %v1168_v56 = vmin.f32 %v1167_v7, %v5021_v11  ;;  %v5028_v39 = vmin.f32 %v983_v8, %v1011_v17  ;;  %v1019_v48 = vmax.f32 %v983_v8, %v1011_v17 }
 0x136   : > { %8716 = vst [vmem:[#allocation10_spill] sm:$0xff] %v5012_v44  ;;  %v5030_v62 = vmin.f32 %v974_v28, %v1002_v13  ;;  %v982_v40 = vmin.f32 %v958_v20, %v978_v32 }
 0x137   : > { %942 = vst [vmem:[#allocation3 + $0x28] sm:$0xff] %v5005_v26  ;;  %v995_v26 = vmax.f32 %v963_v57, %v987_v6  ;;  %1169 = vmin.xlane.f32.xlu0 %v1168_v56  ;;  %v5032_v57 = vmin.f32 %v991_v22, %v1019_v48  ;;  %v1027_v41 = vmax.f32 %v991_v22, %v1019_v48  ;;  %v966_v6 = vld [vmem:[#allocation3 + $0x20] sm:$0xff]  ;;  %v956_v56 = vld [vmem:[#allocation3 + $0x48] sm:$0xff] }
 0x138   : > { %951 = vst [vmem:[#allocation3 + $0x1c8] sm:$0xff] %v5008_v30  ;;  %v986_v30 = vmax.f32 %v958_v20, %v978_v32  ;;  %v1191_v42 = vmin.f32 %v5019_v10, %v5028_v39  ;;  %v973_v20 = vmin.f32 %v953_v63, %v969_v53  ;;  %v1001_v32 = vld [vmem:[#allocation2 + $0xd0] sm:$0xff]  ;;  %v972_v48 = vld [vmem:[#allocation2 + $0x20] sm:$0xff] }
 0x139   : > { %8717 = vst [vmem:[#allocation11_spill] sm:$0xff] %v5021_v11  ;;  %v999_v34 = vmin.f32 %v967_v14, %v995_v26 }
 0x13a   : > { %946 = vst [vmem:[#allocation3 + $0x70] sm:$0xff] %v5012_v44  ;;  %v1010_v44 = vmax.f32 %v974_v28, %v1002_v13  ;;  %v990_v8 = vmin.f32 %v962_v51, %v986_v30  ;;  %v994_v7 = vmax.f32 %v962_v51, %v986_v30  ;;  %v957_v13 = vld [vmem:[#allocation3 + $0x18] sm:$0xff]  ;;  %v1192_v22 = vmin.f32 %v1191_v42, %v5032_v57  ;;  %v961_v51 = vld [vmem:[#allocation3 + $0xa0] sm:$0xff] }
 0x13b   : > { %1035 = vst [vmem:[#allocation3 + $0xe8] sm:$0xff] %v5019_v10  ;;  %v5040_v14 = vmin.f32 %v999_v34, %v1027_v41  ;;  %v977_v28 = vmax.f32 %v953_v63, %v969_v53  ;;  %v5051_v53 = vmin.f32 %v973_v20, %v1001_v32 }
 0x13c   : > { %950 = vst [vmem:[#allocation3 + $0xb8] sm:$0xff] %v5021_v11  ;;  %v5037_v17 = vmin.f32 %v982_v40, %v1010_v44  ;;  %v1018_v26 = vmax.f32 %v982_v40, %v1010_v44  ;;  %v998_v11 = vmin.f32 %v966_v6, %v994_v7  ;;  %v965_v6 = vld [vmem:[#allocation3 + $0x150] sm:$0xff] }
 0x13d   : > { %8718 = vst [vmem:[#allocation12_spill] sm:$0xff] %v5028_v39  ;;  %v1193_v34 = vmin.f32 %v1192_v22, %v5040_v14  ;;  %v981_v40 = vmin.f32 %v957_v13, %v977_v28  ;;  %v985_v41 = vmax.f32 %v957_v13, %v977_v28  ;;  %v960_v7 = vld [vmem:[#allocation3 + $0xb0] sm:$0xff]  ;;  %v980_v22 = vmax.f32 %v956_v56, %v972_v48 }
 0x13e   : > { %8719 = vst [vmem:[#allocation13_spill] sm:$0xff] %v5030_v62  ;;  %v1026_v30 = vmax.f32 %v990_v8, %v1018_v26  ;;  %v1186_v44 = vmin.f32 %v5030_v62, %v5037_v17 }
 0x13f   : > { %8720 = vst [vmem:[#allocation14_spill] sm:$0xff] %v5032_v57  ;;  %1194 = vmin.xlane.f32.xlu2 %v1193_v34 }
 0x140   : > { %1039 = vst [vmem:[#allocation3 + $0x110] sm:$0xff] %v5028_v39  ;;  %v5044_v39 = vmin.f32 %v990_v8, %v1018_v26  ;;  %v5053_v63 = vmin.f32 %v998_v11, %v1026_v30  ;;  %v1009_v8 = vmax.f32 %v973_v20, %v1001_v32  ;;  %v976_v26 = vmin.f32 %v956_v56, %v972_v48  ;;  %v964_v30 = vld [vmem:[#allocation3 + $0x88] sm:$0xff]  ;;  %v968_v48 = vld [vmem:[#allocation3 + $0x160] sm:$0xff] }
 0x141   : > { %8721 = vst [vmem:[#allocation15_spill] sm:$0xff] %v5037_v17  ;;  %v984_v32 = vmin.f32 %v960_v7, %v980_v22 }
 0x142   : > { %1034 = vst [vmem:[#allocation3 + $0x60] sm:$0xff] %v5030_v62  ;;  %v1187_v42 = vmin.f32 %v1186_v44, %v5044_v39  ;;  %v993_v62 = vmax.f32 %v961_v51, %v985_v41  ;;  %v5060_v13 = vmin.f32 %v981_v40, %v1009_v8  ;;  %v1017_v28 = vmax.f32 %v981_v40, %v1009_v8 }
 0x143   : > { %8722 = vst [vmem:[#allocation16_spill] sm:$0xff] %v5040_v14 }
 0x144   : > { %1043 = vst [vmem:[#allocation3 + $0x50] sm:$0xff] %v5032_v57  ;;  %v1004_v57 = vld [vmem:[#allocation2 + $0x98] sm:$0xff]  ;;  %v1188_v11 = vmin.f32 %v1187_v42, %v5053_v63  ;;  %v997_v20 = vmin.f32 %v965_v6, %v993_v62  ;;  %v1181_v56 = vmin.f32 %v5051_v53, %v5060_v13 }
 0x145   : > { %8723 = vst [vmem:[#allocation17_spill] sm:$0xff] %v5044_v39  ;;  %v5062_v44 = vmin.f32 %v976_v26, %v1004_v57 }
 0x146   : > { %1038 = vst [vmem:[#allocation3 + $0x1f8] sm:$0xff] %v5037_v17  ;;  %v989_v17 = vmin.f32 %v961_v51, %v985_v41  ;;  %1189 = vmin.xlane.f32.xlu1 %v1188_v11 }
 0x147   : > { %1047 = vst [vmem:[#allocation3 + $0x98] sm:$0xff] %v5040_v14  ;;  %v1012_v14 = vmax.f32 %v976_v26, %v1004_v57 }
 0x148   : > { %1042 = vst [vmem:[#allocation3 + $0x58] sm:$0xff] %v5044_v39  ;;  %v988_v39 = vmax.f32 %v960_v7, %v980_v22  ;;  %v5064_v34 = vmin.f32 %v989_v17, %v1017_v28  ;;  %v1025_v51 = vmax.f32 %v989_v17, %v1017_v28  ;;  %v1116_v28 = vlaneseq }
 0x149   : > { %1033 = vst [vmem:[#allocation3 + $0x40] sm:$0xff] %v5051_v53  ;;  %v5069_v40 = vmin.f32 %v984_v32, %v1012_v14  ;;  %v1020_v8 = vmax.f32 %v984_v32, %v1012_v14 }
 0x14a   : > { %1046 = vst [vmem:[#allocation3 + $0x20] sm:$0xff] %v5053_v63  ;;  %v992_v41 = vmin.f32 %v964_v30, %v988_v39  ;;  %v996_v42 = vmax.f32 %v964_v30, %v988_v39  ;;  %v5072_v62 = vmin.f32 %v997_v20, %v1025_v51  ;;  %v1182_v57 = vmin.f32 %v1181_v56, %v5064_v34 }
 0x14b   : > { %1037 = vst [vmem:[#allocation3 + $0x18] sm:$0xff] %v5060_v13  ;;  %v1196_v39 = vmin.f32 %v5062_v44, %v5069_v40  ;;  %v5089_v30 = vand.u32 127, %v1116_v28 }
 0x14c   : > { %1036 = vst [vmem:[#allocation3 + $0x48] sm:$0xff] %v5062_v44  ;;  %v1000_v17 = vmin.f32 %v968_v48, %v996_v42  ;;  %v5076_v6 = vmin.f32 %v992_v41, %v1020_v8  ;;  %v1028_v7 = vmax.f32 %v992_v41, %v1020_v8  ;;  %v1183_v14 = vmin.f32 %v1182_v57, %v5072_v62 }
 0x14d   : > { %1041 = vst [vmem:[#allocation3 + $0xa0] sm:$0xff] %v5064_v34  ;;  %v5092_v20 = vadd.s32 128, %v5089_v30  ;;  %v5097_v51 = vadd.s32 256, %v5089_v30  ;;  %v5108_v41 = vadd.s32 384, %v5089_v30 }
 0x14e   : > { %1040 = vst [vmem:[#allocation3 + $0xb0] sm:$0xff] %v5069_v40  ;;  %v5083_v26 = vmin.f32 %v1000_v17, %v1028_v7  ;;  %1184 = vmin.xlane.f32.xlu0 %v1183_v14  ;;  %v1197_v22 = vmin.f32 %v1196_v39, %v5076_v6 }
 0x14f   : > { %1045 = vst [vmem:[#allocation3 + $0x150] sm:$0xff] %v5072_v62 }
 0x150   : > { %1044 = vst [vmem:[#allocation3 + $0x88] sm:$0xff] %v5076_v6  ;;  %v1198_v11 = vmin.f32 %v1197_v22, %v5083_v26 }
 0x151   : > { %1048 = vst [vmem:[#allocation3 + $0x160] sm:$0xff] %v5083_v26 }
 0x152   : > { %8724 = vst [vmem:[#allocation18_spill] sm:$0xff] %v5089_v30 }
 0x156   : > { %1199 = vmin.xlane.f32.xlu0 %v1198_v11 }
 0x17a   : > { %v5112_v42 = vpop.xlane.xlu2 %1144 }
 0x17b   : > { %8726 = vst [vmem:[#allocation20_spill] sm:$0xff] %v5112_v42 }
 0x17d   : > { %v5094_v32 = vpop.xlane.xlu1 %1134 }
 0x17e   : > { %8725 = vst [vmem:[#allocation19_spill] sm:$0xff] %v5094_v32  ;;  %vm1465_vm2 = vcmp.eq.f32.partialorder %v4845_v50, %v5094_v32  ;;  %vm1466_vm3 = vcmp.eq.f32.partialorder %v4847_v1, %v5094_v32  ;;  %vm1467_vm4 = vcmp.eq.f32.partialorder %v4852_v12, %v5094_v32  ;;  %vm1468_vm5 = vcmp.eq.f32.partialorder %v4861_v19, %v5094_v32 }
 0x17f   : > { %v1529_v56 = vsel %vm1465_vm2, %v5089_v30, 512  ;;  %v1530_v48 = vsel %vm1466_vm3, %v5092_v20, 512  ;;  %v1531_v50 = vsel %vm1467_vm4, %v5097_v51, 512  ;;  %v1532_v12 = vsel %vm1468_vm5, %v5108_v41, 512 }
 0x180   : > { %vm1625_vm6 = vcmp.lt.s32.totalorder %v1529_v56, %v1530_v48 }
 0x181   : > { %v1626_v8 = vsel %vm1625_vm6, %v1529_v56, %v1530_v48 }
 0x182   : > { %vm1627_vm7 = vcmp.lt.s32.totalorder %v1626_v8, %v1531_v50 }
 0x183   : > { %v5115_v1 = vpop.xlane.xlu0 %1124  ;;  %v1628_v57 = vsel %vm1627_vm7, %v1626_v8, %v1531_v50 }
 0x184   : > { %8727 = vst [vmem:[#allocation21_spill] sm:$0xff] %v5115_v1  ;;  %vm1629_vm8 = vcmp.lt.s32.totalorder %v1628_v57, %v1532_v12  ;;  %vm1457_vm9 = vcmp.eq.f32.partialorder %v4859_v18, %v5115_v1  ;;  %vm1458_vm10 = vcmp.eq.f32.partialorder %v4868_v29, %v5115_v1  ;;  %vm1459_vm11 = vcmp.eq.f32.partialorder %v4872_v37, %v5115_v1 }
 0x185   : > { %v5122_v19 = vsel %vm1629_vm8, %v1628_v57, %v1532_v12  ;;  %v1521_v7 = vsel %vm1457_vm9, %v5089_v30, 512  ;;  %v1522_v39 = vsel %vm1458_vm10, %v5092_v20, 512  ;;  %v1523_v18 = vsel %vm1459_vm11, %v5097_v51, 512 }
 0x186   : > { %v1632_v17 = vshra.s32 %v5122_v19, 16  ;;  %vm1585_vm12 = vcmp.lt.s32.totalorder %v1521_v7, %v1522_v39  ;;  %v5131_v22 = vpop.xlane.xlu2 %1149  ;;  %vm1460_vm13 = vcmp.eq.f32.partialorder %v4880_v46, %v5115_v1 }
 0x187   : > { %8728 = vst [vmem:[#allocation22_spill] sm:$0xff] %v5131_v22  ;;  %v1586_v29 = vsel %vm1585_vm12, %v1521_v7, %v1522_v39  ;;  %vm1477_vm15 = vcmp.eq.f32.partialorder %v4870_v31, %v5131_v22  ;;  %vm1478_vm0 = vcmp.eq.f32.partialorder %v4877_v43, %v5131_v22  ;;  %v1524_v37 = vsel %vm1460_vm13, %v5108_v41, 512 }
 0x188   : > { %v5129_v14 = vcvt.s32.f32 %v1632_v17  ;;  %vm1587_vm14 = vcmp.lt.s32.totalorder %v1586_v29, %v1523_v18  ;;  %v1541_v56 = vsel %vm1477_vm15, %v5089_v30, 512  ;;  %v1542_v48 = vsel %vm1478_vm0, %v5092_v20, 512 }
 0x189   : > { %v1588_v11 = vsel %vm1587_vm14, %v1586_v29, %v1523_v18  ;;  %vm1479_vm2 = vcmp.eq.f32.partialorder %v4884_v58, %v5131_v22  ;;  %vm1685_vm3 = vcmp.lt.s32.totalorder %v1541_v56, %v1542_v48  ;;  %vm1480_vm4 = vcmp.eq.f32.partialorder %v4893_v5, %v5131_v22  ;;  %v4534_v22 = vld [vmem:[#allocation3 + $0x100] sm:$0xff] }
 0x18a   : > { %1635 = vmin.xlane.f32.xlu0 %v5129_v14  ;;  %vm1589_vm1 = vcmp.lt.s32.totalorder %v1588_v11, %v1524_v37  ;;  %v1543_v43 = vsel %vm1479_vm2, %v5097_v51, 512  ;;  %v1686_v8 = vsel %vm1685_vm3, %v1541_v56, %v1542_v48  ;;  %v1544_v12 = vsel %vm1480_vm4, %v5108_v41, 512 }
 0x18b   : > { %v5142_v28 = vsel %vm1589_vm1, %v1588_v11, %v1524_v37  ;;  %vm1687_vm5 = vcmp.lt.s32.totalorder %v1686_v8, %v1543_v43 }
 0x18c   : > { %v1592_v50 = vshra.s32 %v5142_v28, 16  ;;  %v5151_v31 = vpop.xlane.xlu1 %1139  ;;  %v1688_v58 = vsel %vm1687_vm5, %v1686_v8, %v1543_v43 }
 0x18d   : > { %8729 = vst [vmem:[#allocation23_spill] sm:$0xff] %v5151_v31  ;;  %vm1469_vm6 = vcmp.eq.f32.partialorder %v4891_v3, %v5151_v31  ;;  %vm1470_vm7 = vcmp.eq.f32.partialorder %v4900_v16, %v5151_v31  ;;  %vm1689_vm8 = vcmp.lt.s32.totalorder %v1688_v58, %v1544_v12  ;;  %vm1471_vm9 = vcmp.eq.f32.partialorder %v4904_v27, %v5151_v31 }
 0x18e   : > { %v5149_v46 = vcvt.s32.f32 %v1592_v50  ;;  %v1533_v57 = vsel %vm1469_vm6, %v5089_v30, 512  ;;  %v1534_v5 = vsel %vm1470_vm7, %v5092_v20, 512  ;;  %v5164_v17 = vsel %vm1689_vm8, %v1688_v58, %v1544_v12 }
 0x18f   : > { %v5166_v7 = vpop.xlane.xlu0 %1129  ;;  %v1692_v39 = vshra.s32 %v5164_v17, 16  ;;  %vm1645_vm10 = vcmp.lt.s32.totalorder %v1533_v57, %v1534_v5  ;;  %vm1472_vm11 = vcmp.eq.f32.partialorder %v4912_v36, %v5151_v31  ;;  %v1535_v16 = vsel %vm1471_vm9, %v5097_v51, 512 }
 0x190   : > { %1595 = vmin.xlane.f32.xlu1 %v5149_v46  ;;  %8730 = vst [vmem:[#allocation24_spill] sm:$0xff] %v5166_v7  ;;  %vm1461_vm12 = vcmp.eq.f32.partialorder %v4902_v21, %v5166_v7  ;;  %v1646_v18 = vsel %vm1645_vm10, %v1533_v57, %v1534_v5  ;;  %vm1462_vm13 = vcmp.eq.f32.partialorder %v4909_v59, %v5166_v7  ;;  %v1536_v27 = vsel %vm1472_vm11, %v5108_v41, 512 }
 0x191   : > { %v5175_v3 = vcvt.s32.f32 %v1692_v39  ;;  %vm1647_vm14 = vcmp.lt.s32.totalorder %v1646_v18, %v1535_v16  ;;  %v1525_v11 = vsel %vm1461_vm12, %v5089_v30, 512  ;;  %vm1463_vm0 = vcmp.eq.f32.partialorder %v4916_v47, %v5166_v7  ;;  %v5220_v39 = vld [vmem:[#allocation3 + $0x90] sm:$0xff] }
 0x192   : > { %v1648_v29 = vsel %vm1647_vm14, %v1646_v18, %v1535_v16  ;;  %v1526_v21 = vsel %vm1462_vm13, %v5092_v20, 512  ;;  %vm1464_vm1 = vcmp.eq.f32.partialorder %v4925_v61, %v5166_v7  ;;  %v1527_v59 = vsel %vm1463_vm0, %v5097_v51, 512 }
 0x193   : > { %1695 = vmin.xlane.f32.xlu0 %v5175_v3  ;;  %vm1649_vm15 = vcmp.lt.s32.totalorder %v1648_v29, %v1536_v27  ;;  %vm1605_vm2 = vcmp.lt.s32.totalorder %v1525_v11, %v1526_v21  ;;  %v1528_v50 = vsel %vm1464_vm1, %v5108_v41, 512  ;;  %vm1474_vm12 = vcmp.eq.f32.partialorder %v5220_v39, %v5112_v42 }
 0x194   : > { %v5186_v36 = vsel %vm1649_vm15, %v1648_v29, %v1536_v27  ;;  %v1606_v56 = vsel %vm1605_vm2, %v1525_v11, %v1526_v21  ;;  %vm1476_vm15 = vcmp.eq.f32.partialorder %v4850_v4, %v5112_v42  ;;  %v1538_v29 = vsel %vm1474_vm12, %v5092_v20, 512 }
 0x195   : > { %v1652_v37 = vshra.s32 %v5186_v36, 16  ;;  %vm1607_vm3 = vcmp.lt.s32.totalorder %v1606_v56, %v1527_v59  ;;  %v5195_v47 = vpop.xlane.xlu2 %1164 }
 0x196   : > { %v1608_v43 = vsel %vm1607_vm3, %v1606_v56, %v1527_v59  ;;  %8731 = vst [vmem:[#allocation25_spill] sm:$0xff] %v5195_v47  ;;  %vm1489_vm5 = vcmp.eq.f32.partialorder %v4923_v60, %v5195_v47  ;;  %vm1490_vm6 = vcmp.eq.f32.partialorder %v4932_v55, %v5195_v47  ;;  %vm1491_vm7 = vcmp.eq.f32.partialorder %v4936_v25, %v5195_v47  ;;  %v5215_v60 = vld [vmem:[#allocation3 + $0x170] sm:$0xff] }
 0x197   : > { %v5192_v48 = vcvt.s32.f32 %v1652_v37  ;;  %vm1609_vm4 = vcmp.lt.s32.totalorder %v1608_v43, %v1528_v50  ;;  %vm1492_vm8 = vcmp.eq.f32.partialorder %v4944_v38, %v5195_v47  ;;  %v1553_v58 = vsel %vm1489_vm5, %v5089_v30, 512  ;;  %v5224_v38 = vld [vmem:[#allocation3 + $0xf8] sm:$0xff] }
 0x198   : > { %v5198_v8 = vsel %vm1609_vm4, %v1608_v43, %v1528_v50  ;;  %v1554_v57 = vsel %vm1490_vm6, %v5092_v20, 512  ;;  %v1555_v5 = vsel %vm1491_vm7, %v5097_v51, 512  ;;  %vm1473_vm10 = vcmp.eq.f32.partialorder %v5215_v60, %v5112_v42 }
 0x199   : > { %1655 = vmin.xlane.f32.xlu1 %v5192_v48  ;;  %v1612_v12 = vshra.s32 %v5198_v8, 16  ;;  %vm1745_vm9 = vcmp.lt.s32.totalorder %v1553_v58, %v1554_v57  ;;  %v1556_v55 = vsel %vm1492_vm8, %v5108_v41, 512  ;;  %vm1475_vm13 = vcmp.eq.f32.partialorder %v5224_v38, %v5112_v42 }
 0x19a   : > { %v1746_v25 = vsel %vm1745_vm9, %v1553_v58, %v1554_v57  ;;  %v1537_v18 = vsel %vm1473_vm10, %v5089_v30, 512  ;;  %v1539_v21 = vsel %vm1475_vm13, %v5097_v51, 512  ;;  %v1540_v59 = vsel %vm1476_vm15, %v5108_v41, 512 }
 0x19b   : > { %v5205_v61 = vcvt.s32.f32 %v1612_v12  ;;  %vm1747_vm11 = vcmp.lt.s32.totalorder %v1746_v25, %v1555_v5  ;;  %vm1665_vm0 = vcmp.lt.s32.totalorder %v1537_v18, %v1538_v29 }
 0x19c   : > { %v1748_v16 = vsel %vm1747_vm11, %v1746_v25, %v1555_v5  ;;  %v1666_v56 = vsel %vm1665_vm0, %v1537_v18, %v1538_v29 }
 0x19d   : > { %1615 = vmin.xlane.f32.xlu2 %v5205_v61  ;;  %vm1749_vm14 = vcmp.lt.s32.totalorder %v1748_v16, %v1556_v55  ;;  %vm1667_vm3 = vcmp.lt.s32.totalorder %v1666_v56, %v1539_v21 }
 0x19e   : > { %v5229_v27 = vpop.xlane.xlu0 %1154  ;;  %v5234_v11 = vsel %vm1749_vm14, %v1748_v16, %v1556_v55  ;;  %v1668_v4 = vsel %vm1667_vm3, %v1666_v56, %v1539_v21 }
 0x19f   : > { %8732 = vst [vmem:[#allocation26_spill] sm:$0xff] %v5229_v27  ;;  %v1752_v37 = vshra.s32 %v5234_v11, 16  ;;  %vm1481_vm1 = vcmp.eq.f32.partialorder %v4955_v0, %v5229_v27  ;;  %vm1482_vm2 = vcmp.eq.f32.partialorder %v4964_v54, %v5229_v27  ;;  %vm1669_vm4 = vcmp.lt.s32.totalorder %v1668_v4, %v1540_v59 }
 0x1a0   : > { %vm1483_vm5 = vcmp.eq.f32.partialorder %v4968_v35, %v5229_v27  ;;  %v1545_v43 = vsel %vm1481_vm1, %v5089_v30, 512  ;;  %v1546_v12 = vsel %vm1482_vm2, %v5092_v20, 512  ;;  %v5250_v58 = vsel %vm1669_vm4, %v1668_v4, %v1540_v59 }
 0x1a1   : > { %v5243_v50 = vcvt.s32.f32 %v1752_v37  ;;  %v1672_v0 = vshra.s32 %v5250_v58, 16  ;;  %vm1484_vm6 = vcmp.eq.f32.partialorder %v4976_v52, %v5229_v27  ;;  %vm1705_vm7 = vcmp.lt.s32.totalorder %v1545_v43, %v1546_v12  ;;  %v5260_v25 = vpop.xlane.xlu2 %1179  ;;  %v5265_v52 = vpop.xlane.xlu1 %1159 }
 0x1a2   : > { %v1547_v54 = vsel %vm1483_vm5, %v5097_v51, 512  ;;  %v1706_v57 = vsel %vm1705_vm7, %v1545_v43, %v1546_v12  ;;  %v1548_v35 = vsel %vm1484_vm6, %v5108_v41, 512  ;;  %8733 = vst [vmem:[#allocation27_spill] sm:$0xff] %v5260_v25  ;;  %vm1501_vm10 = vcmp.eq.f32.partialorder %v4966_v24, %v5260_v25 }
 0x1a3   : > { %1755 = vmin.xlane.f32.xlu0 %v5243_v50  ;;  %v5256_v5 = vcvt.s32.f32 %v1672_v0  ;;  %vm1707_vm8 = vcmp.lt.s32.totalorder %v1706_v57, %v1547_v54  ;;  %8734 = vst [vmem:[#allocation28_spill] sm:$0xff] %v5265_v52  ;;  %vm1502_vm11 = vcmp.eq.f32.partialorder %v4973_v45, %v5260_v25  ;;  %vm1503_vm12 = vcmp.eq.f32.partialorder %v4980_v9, %v5260_v25 }
 0x1a4   : > { %v1708_v55 = vsel %vm1707_vm8, %v1706_v57, %v1547_v54  ;;  %vm1504_vm13 = vcmp.eq.f32.partialorder %v4989_v23, %v5260_v25  ;;  %v1565_v21 = vsel %vm1501_vm10, %v5089_v30, 512  ;;  %v1566_v59 = vsel %vm1502_vm11, %v5092_v20, 512  ;;  %v8738_v57 = vld [vmem:[#allocation8_spill] sm:$0xff] }
 0x1a5   : > { %1675 = vmin.xlane.f32.xlu2 %v5256_v5  ;;  %vm1709_vm9 = vcmp.lt.s32.totalorder %v1708_v55, %v1548_v35  ;;  %v1567_v56 = vsel %vm1503_vm12, %v5097_v51, 512  ;;  %vm1805_vm14 = vcmp.lt.s32.totalorder %v1565_v21, %v1566_v59  ;;  %vm1485_vm15 = vcmp.eq.f32.partialorder %v4934_v15, %v5265_v52  ;;  %v8750_v25 = vld [vmem:[#allocation4_spill] sm:$0xff] }
 0x1a6   : > { %v5262_v16 = vsel %vm1709_vm9, %v1708_v55, %v1548_v35  ;;  %vm1486_vm0 = vcmp.eq.f32.partialorder %v4941_v33, %v5265_v52  ;;  %vm1487_vm1 = vcmp.eq.f32.partialorder %v4948_v49, %v5265_v52  ;;  %v1568_v24 = vsel %vm1504_vm13, %v5108_v41, 512 }
 0x1a7   : > { %v1712_v18 = vshra.s32 %v5262_v16, 16  ;;  %v1806_v45 = vsel %vm1805_vm14, %v1565_v21, %v1566_v59  ;;  %vm1488_vm3 = vcmp.eq.f32.partialorder %v4957_v2, %v5265_v52  ;;  %v1549_v9 = vsel %vm1485_vm15, %v5089_v30, 512  ;;  %v8737_v2 = vld [vmem:[#allocation6_spill] sm:$0xff] }
 0x1a8   : > { %vm1807_vm2 = vcmp.lt.s32.totalorder %v1806_v45, %v1567_v56  ;;  %v1550_v23 = vsel %vm1486_vm0, %v5092_v20, 512  ;;  %v1551_v15 = vsel %vm1487_vm1, %v5097_v51, 512  ;;  %v1552_v49 = vsel %vm1488_vm3, %v5108_v41, 512 }
 0x1a9   : > { %v5267_v29 = vcvt.s32.f32 %v1712_v18  ;;  %v1808_v4 = vsel %vm1807_vm2, %v1806_v45, %v1567_v56  ;;  %vm1725_vm5 = vcmp.lt.s32.totalorder %v1549_v9, %v1550_v23  ;;  %v5295_v33 = vpop.xlane.xlu1 %1174 }
 0x1aa   : > { %v5279_v37 = vpop.xlane.xlu0 %1169  ;;  %vm1809_vm4 = vcmp.lt.s32.totalorder %v1808_v4, %v1568_v24  ;;  %8736 = vst [vmem:[#allocation30_spill] sm:$0xff] %v5295_v33  ;;  %v1726_v12 = vsel %vm1725_vm5, %v1549_v9, %v1550_v23  ;;  %v8742_v9 = vld [vmem:[#allocation12_spill] sm:$0xff] }
 0x1ab   : > { %1715 = vmin.xlane.f32.xlu1 %v5267_v29  ;;  %8735 = vst [vmem:[#allocation29_spill] sm:$0xff] %v5279_v37  ;;  %v5297_v43 = vsel %vm1809_vm4, %v1808_v4, %v1568_v24  ;;  %vm1727_vm6 = vcmp.lt.s32.totalorder %v1726_v12, %v1551_v15  ;;  %vm1493_vm7 = vcmp.eq.f32.partialorder %v8737_v2, %v5279_v37  ;;  %v8741_v24 = vld [vmem:[#allocation10_spill] sm:$0xff]  ;;  %v8743_v4 = vld [vmem:[#allocation11_spill] sm:$0xff] }
 0x1ac   : > { %v1812_v0 = vshra.s32 %v5297_v43, 16  ;;  %v1728_v54 = vsel %vm1727_vm6, %v1726_v12, %v1551_v15  ;;  %vm1494_vm8 = vcmp.eq.f32.partialorder %v8738_v57, %v5279_v37  ;;  %v1557_v59 = vsel %vm1493_vm7, %v5089_v30, 512  ;;  %v8745_v57 = vld [vmem:[#allocation13_spill] sm:$0xff] }
 0x1ad   : > { %vm1729_vm9 = vcmp.lt.s32.totalorder %v1728_v54, %v1552_v49  ;;  %vm1495_vm10 = vcmp.eq.f32.partialorder %v8741_v24, %v5279_v37  ;;  %v1558_v45 = vsel %vm1494_vm8, %v5092_v20, 512  ;;  %vm1496_vm13 = vcmp.eq.f32.partialorder %v8743_v4, %v5279_v37  ;;  %v8747_v24 = vld [vmem:[#allocation14_spill] sm:$0xff] }
 0x1ae   : > { %v5307_v55 = vcvt.s32.f32 %v1812_v0  ;;  %v5311_v21 = vsel %vm1729_vm9, %v1728_v54, %v1552_v49  ;;  %vm1765_vm14 = vcmp.lt.s32.totalorder %v1557_v59, %v1558_v45  ;;  %v1559_v15 = vsel %vm1495_vm10, %v5097_v51, 512 }
 0x1af   : > { %v1732_v56 = vshra.s32 %v5311_v21, 16  ;;  %v1766_v49 = vsel %vm1765_vm14, %v1557_v59, %v1558_v45  ;;  %v1560_v2 = vsel %vm1496_vm13, %v5108_v41, 512  ;;  %v8748_v45 = vld [vmem:[#allocation16_spill] sm:$0xff]  ;;  %vm1497_vm6 = vcmp.eq.f32.partialorder %v8750_v25, %v5295_v33 }
 0x1b0   : > { %1815 = vmin.xlane.f32.xlu0 %v5307_v55  ;;  %vm1767_vm15 = vcmp.lt.s32.totalorder %v1766_v49, %v1559_v15 }
 0x1b1   : > { %v5323_v23 = vcvt.s32.f32 %v1732_v56  ;;  %v1768_v54 = vsel %vm1767_vm15, %v1766_v49, %v1559_v15  ;;  %v8746_v56 = vld [vmem:[#allocation15_spill] sm:$0xff] }
 0x1b2   : > { %v5305_v35 = vpop.xlane.xlu2 %1194  ;;  %vm1769_vm1 = vcmp.lt.s32.totalorder %v1768_v54, %v1560_v2 }
 0x1b3   : > { %8739 = vst [vmem:[#allocation6_spill] sm:$0xff] %v5305_v35  ;;  %vm1513_vm11 = vcmp.eq.f32.partialorder %v5019_v10, %v5305_v35  ;;  %vm1514_vm12 = vcmp.eq.f32.partialorder %v8742_v9, %v5305_v35  ;;  %1735 = vmin.xlane.f32.xlu2 %v5323_v23  ;;  %v5338_v59 = vsel %vm1769_vm1, %v1768_v54, %v1560_v2  ;;  %v8751_v2 = vld [vmem:[#allocation5_spill] sm:$0xff]  ;;  %v8752_v54 = vld [vmem:[#allocation7_spill] sm:$0xff] }
 0x1b4   : > { %v1577_v12 = vsel %vm1513_vm11, %v5089_v30, 512  ;;  %v1578_v0 = vsel %vm1514_vm12, %v5092_v20, 512  ;;  %vm1515_vm3 = vcmp.eq.f32.partialorder %v8747_v24, %v5305_v35  ;;  %vm1516_vm4 = vcmp.eq.f32.partialorder %v8748_v45, %v5305_v35  ;;  %v8753_v45 = vld [vmem:[#allocation9_spill] sm:$0xff] }
 0x1b5   : > { %v1772_v9 = vshra.s32 %v5338_v59, 16  ;;  %v1579_v4 = vsel %vm1515_vm3, %v5097_v51, 512  ;;  %v1580_v15 = vsel %vm1516_vm4, %v5108_v41, 512  ;;  %vm1865_vm5 = vcmp.lt.s32.totalorder %v1577_v12, %v1578_v0 }
 0x1b6   : > { %v1866_v37 = vsel %vm1865_vm5, %v1577_v12, %v1578_v0  ;;  %vm1498_vm7 = vcmp.eq.f32.partialorder %v8751_v2, %v5295_v33  ;;  %vm1499_vm8 = vcmp.eq.f32.partialorder %v8752_v54, %v5295_v33  ;;  %vm1500_vm10 = vcmp.eq.f32.partialorder %v8753_v45, %v5295_v33 }
 0x1b7   : > { %v5355_v24 = vcvt.s32.f32 %v1772_v9  ;;  %vm1867_vm9 = vcmp.lt.s32.totalorder %v1866_v37, %v1579_v4  ;;  %v1561_v35 = vsel %vm1497_vm6, %v5089_v30, 512  ;;  %v1562_v0 = vsel %vm1498_vm7, %v5092_v20, 512 }
 0x1b8   : > { %v1868_v25 = vsel %vm1867_vm9, %v1866_v37, %v1579_v4  ;;  %v1563_v2 = vsel %vm1499_vm8, %v5097_v51, 512  ;;  %vm1785_vm13 = vcmp.lt.s32.totalorder %v1561_v35, %v1562_v0 }
 0x1b9   : > { %v5331_v10 = vpop.xlane.xlu1 %1189  ;;  %1775 = vmin.xlane.f32.xlu1 %v5355_v24  ;;  %vm1869_vm12 = vcmp.lt.s32.totalorder %v1868_v25, %v1580_v15  ;;  %v1786_v54 = vsel %vm1785_vm13, %v1561_v35, %v1562_v0 }
 0x1ba   : > { %8744 = vst [vmem:[#allocation10_spill] sm:$0xff] %v5331_v10  ;;  %vm1509_vm0 = vcmp.eq.f32.partialorder %v8745_v57, %v5331_v10  ;;  %vm1510_vm2 = vcmp.eq.f32.partialorder %v8746_v56, %v5331_v10  ;;  %v5371_v9 = vsel %vm1869_vm12, %v1868_v25, %v1580_v15  ;;  %v1564_v57 = vsel %vm1500_vm10, %v5108_v41, 512  ;;  %v8754_v25 = vld [vmem:[#allocation17_spill] sm:$0xff] }
 0x1bb   : > { %v1573_v12 = vsel %vm1509_vm0, %v5089_v30, 512  ;;  %v1574_v37 = vsel %vm1510_vm2, %v5092_v20, 512  ;;  %v1872_v4 = vshra.s32 %v5371_v9, 16  ;;  %vm1787_vm0 = vcmp.lt.s32.totalorder %v1786_v54, %v1563_v2 }
 0x1bc   : > { %vm1511_vm6 = vcmp.eq.f32.partialorder %v8754_v25, %v5331_v10  ;;  %vm1512_vm7 = vcmp.eq.f32.partialorder %v5053_v63, %v5331_v10  ;;  %vm1845_vm9 = vcmp.lt.s32.totalorder %v1573_v12, %v1574_v37 }
 0x1bd   : > { %v5391_v56 = vcvt.s32.f32 %v1872_v4 }
 0x1bf   : > { %1875 = vmin.xlane.f32.xlu0 %v5391_v56 }
 0x1c1   : > { %v5309_v18 = vpop.xlane.xlu0 %1184 }
 0x1c2   : > { %8740 = vst [vmem:[#allocation8_spill] sm:$0xff] %v5309_v18  ;;  %vm1505_vm14 = vcmp.eq.f32.partialorder %v5051_v53, %v5309_v18  ;;  %vm1506_vm15 = vcmp.eq.f32.partialorder %v5060_v13, %v5309_v18  ;;  %vm1507_vm1 = vcmp.eq.f32.partialorder %v5064_v34, %v5309_v18  ;;  %v1788_v53 = vsel %vm1787_vm0, %v1786_v54, %v1563_v2 }
 0x1c3   : > { %v1569_v35 = vsel %vm1505_vm14, %v5089_v30, 512  ;;  %v1570_v15 = vsel %vm1506_vm15, %v5092_v20, 512  ;;  %vm1789_vm2 = vcmp.lt.s32.totalorder %v1788_v53, %v1564_v57  ;;  %vm1508_vm4 = vcmp.eq.f32.partialorder %v5072_v62, %v5309_v18 }
 0x1c4   : > { %v5395_v34 = vsel %vm1789_vm2, %v1788_v53, %v1564_v57  ;;  %v1571_v45 = vsel %vm1507_vm1, %v5097_v51, 512  ;;  %vm1825_vm5 = vcmp.lt.s32.totalorder %v1569_v35, %v1570_v15  ;;  %v1575_v2 = vsel %vm1511_vm6, %v5097_v51, 512 }
 0x1c5   : > { %v1792_v0 = vshra.s32 %v5395_v34, 16  ;;  %v1572_v57 = vsel %vm1508_vm4, %v5108_v41, 512  ;;  %v1576_v53 = vsel %vm1512_vm7, %v5108_v41, 512 }
 0x1c7   : > { %v5410_v54 = vcvt.s32.f32 %v1792_v0 }
 0x1c9   : > { %v5347_v49 = vpop.xlane.xlu0 %1199  ;;  %1795 = vmin.xlane.f32.xlu2 %v5410_v54 }
 0x1ca   : > { %8749 = vst [vmem:[#allocation12_spill] sm:$0xff] %v5347_v49  ;;  %vm1517_vm11 = vcmp.eq.f32.partialorder %v5062_v44, %v5347_v49  ;;  %vm1518_vm3 = vcmp.eq.f32.partialorder %v5069_v40, %v5347_v49  ;;  %v1826_v44 = vsel %vm1825_vm5, %v1569_v35, %v1570_v15  ;;  %v1846_v35 = vsel %vm1845_vm9, %v1573_v12, %v1574_v37 }
 0x1cb   : > { %v1581_v13 = vsel %vm1517_vm11, %v5089_v30, 512  ;;  %v1582_v62 = vsel %vm1518_vm3, %v5092_v20, 512  ;;  %vm1827_vm8 = vcmp.lt.s32.totalorder %v1826_v44, %v1571_v45  ;;  %vm1847_vm11 = vcmp.lt.s32.totalorder %v1846_v35, %v1575_v2 }
 0x1cc   : > { %v1828_v4 = vsel %vm1827_vm8, %v1826_v44, %v1571_v45  ;;  %vm1519_vm12 = vcmp.eq.f32.partialorder %v5076_v6, %v5347_v49  ;;  %v1848_v40 = vsel %vm1847_vm11, %v1846_v35, %v1575_v2  ;;  %vm1520_vm14 = vcmp.eq.f32.partialorder %v5083_v26, %v5347_v49 }
 0x1cd   : > { %vm1829_vm10 = vcmp.lt.s32.totalorder %v1828_v4, %v1572_v57  ;;  %vm1849_vm13 = vcmp.lt.s32.totalorder %v1848_v40, %v1576_v53  ;;  %vm1885_vm15 = vcmp.lt.s32.totalorder %v1581_v13, %v1582_v62  ;;  %v1583_v12 = vsel %vm1519_vm12, %v5097_v51, 512 }
 0x1ce   : > { %v5416_v63 = vsel %vm1829_vm10, %v1828_v4, %v1572_v57  ;;  %v5421_v45 = vsel %vm1849_vm13, %v1848_v40, %v1576_v53  ;;  %v1886_v37 = vsel %vm1885_vm15, %v1581_v13, %v1582_v62  ;;  %v1584_v0 = vsel %vm1520_vm14, %v5108_v41, 512 }
 0x1cf   : > { %v1832_v15 = vshra.s32 %v5416_v63, 16  ;;  %v1852_v6 = vshra.s32 %v5421_v45, 16  ;;  %vm1887_vm0 = vcmp.lt.s32.totalorder %v1886_v37, %v1583_v12  ;;  %v1631_v62 = vand.u32 65535, %v5122_v19 }
 0x1d0   : > { %v1888_v44 = vsel %vm1887_vm0, %v1886_v37, %v1583_v12  ;;  %v1591_v40 = vand.u32 65535, %v5142_v28  ;;  %v1691_v19 = vand.u32 65535, %v5164_v17 }
 0x1d1   : > { %v5424_v25 = vcvt.s32.f32 %v1832_v15  ;;  %vm1889_vm1 = vcmp.lt.s32.totalorder %v1888_v44, %v1584_v0  ;;  %v5429_v2 = vcvt.s32.f32 %v1852_v6  ;;  %v1633_v53 = vcvt.s32.f32 %v1631_v62 }
 0x1d2   : > { %v5431_v26 = vsel %vm1889_vm1, %v1888_v44, %v1584_v0  ;;  %v1593_v12 = vcvt.s32.f32 %v1591_v40  ;;  %v1693_v0 = vcvt.s32.f32 %v1691_v19  ;;  %v1651_v44 = vand.u32 65535, %v5186_v36 }
 0x1d3   : > { %1835 = vmin.xlane.f32.xlu1 %v5424_v25  ;;  %v1892_v57 = vshra.s32 %v5431_v26, 16  ;;  %1855 = vmin.xlane.f32.xlu2 %v5429_v2  ;;  %v1611_v62 = vand.u32 65535, %v5198_v8  ;;  %v1751_v36 = vand.u32 65535, %v5234_v11  ;;  %v1711_v19 = vand.u32 65535, %v5262_v16 }
 0x1d5   : > { %v5435_v13 = vcvt.s32.f32 %v1892_v57  ;;  %v1653_v57 = vcvt.s32.f32 %v1651_v44  ;;  %v1753_v40 = vcvt.s32.f32 %v1751_v36  ;;  %v1731_v44 = vand.u32 65535, %v5311_v21 }
 0x1d6   : > { %v1791_v36 = vand.u32 65535, %v5395_v34 }
 0x1db   : > { %1895 = vmin.xlane.f32.xlu1 %v5435_v13 }
 0x1fd   : > { %v5439_v4 = vpop.xlane.xlu0 %1635 }
 0x1fe   : > { %vm1637_vm3 = vcmp.eq.f32.partialorder %v5129_v14, %v5439_v4 }
 0x1ff   : > { %v1638_v35 = vsel %vm1637_vm3, %v1633_v53, inf  ;;  %v1613_v53 = vcvt.s32.f32 %v1611_v62 }
 0x200   : > { %1639 = vmin.xlane.f32.xlu1 %v1638_v35 }
 0x203   : > { %v5444_v15 = vpop.xlane.xlu1 %1595 }
 0x204   : > { %vm1597_vm2 = vcmp.eq.f32.partialorder %v5149_v46, %v5444_v15 }
 0x205   : > { %v1598_v37 = vsel %vm1597_vm2, %v1593_v12, inf }
 0x206   : > { %1599 = vmin.xlane.f32.xlu2 %v1598_v37  ;;  %v5449_v6 = vpop.xlane.xlu0 %1695 }
 0x207   : > { %vm1697_vm4 = vcmp.eq.f32.partialorder %v5175_v3, %v5449_v6 }
 0x208   : > { %v1698_v14 = vsel %vm1697_vm4, %v1693_v0, inf  ;;  %v1713_v0 = vcvt.s32.f32 %v1711_v19 }
 0x209   : > { %1699 = vmin.xlane.f32.xlu1 %v1698_v14 }
 0x20c   : > { %v5454_v28 = vpop.xlane.xlu1 %1655 }
 0x20d   : > { %vm1657_vm5 = vcmp.eq.f32.partialorder %v5192_v48, %v5454_v28  ;;  %v1671_v48 = vand.u32 65535, %v5250_v58  ;;  %v1811_v58 = vand.u32 65535, %v5297_v43  ;;  %v1771_v43 = vand.u32 65535, %v5338_v59 }
 0x20e   : > { %v1658_v46 = vsel %vm1657_vm5, %v1653_v57, inf }
 0x20f   : > { %1659 = vmin.xlane.f32.xlu2 %v1658_v46  ;;  %v1673_v37 = vcvt.s32.f32 %v1671_v48  ;;  %v1813_v57 = vcvt.s32.f32 %v1811_v58  ;;  %v1733_v46 = vcvt.s32.f32 %v1731_v44  ;;  %v1793_v48 = vcvt.s32.f32 %v1791_v36 }
 0x210   : > { %v5459_v17 = vpop.xlane.xlu2 %1615 }
 0x211   : > { %vm1617_vm6 = vcmp.eq.f32.partialorder %v5205_v61, %v5459_v17 }
 0x212   : > { %v1618_v3 = vsel %vm1617_vm6, %v1613_v53, inf  ;;  %v1773_v53 = vcvt.s32.f32 %v1771_v43 }
 0x213   : > { %1619 = vmin.xlane.f32.xlu0 %v1618_v3 }
 0x216   : > { %v5464_v35 = vpop.xlane.xlu0 %1755 }
 0x217   : > { %vm1757_vm7 = vcmp.eq.f32.partialorder %v5243_v50, %v5464_v35 }
 0x218   : > { %v1758_v8 = vsel %vm1757_vm7, %v1753_v40, inf  ;;  %v5469_v12 = vpop.xlane.xlu2 %1675 }
 0x219   : > { %1759 = vmin.xlane.f32.xlu1 %v1758_v8  ;;  %vm1677_vm8 = vcmp.eq.f32.partialorder %v5256_v5, %v5469_v12  ;;  %v1851_v8 = vand.u32 65535, %v5421_v45 }
 0x21a   : > { %v1678_v61 = vsel %vm1677_vm8, %v1673_v37, inf }
 0x21b   : > { %1679 = vmin.xlane.f32.xlu0 %v1678_v61  ;;  %v1853_v19 = vcvt.s32.f32 %v1851_v8 }
 0x21e   : > { %v5474_v11 = vpop.xlane.xlu1 %1715 }
 0x21f   : > { %vm1717_vm9 = vcmp.eq.f32.partialorder %v5267_v29, %v5474_v11 }
 0x220   : > { %v1718_v50 = vsel %vm1717_vm9, %v1713_v0, inf }
 0x221   : > { %1719 = vmin.xlane.f32.xlu2 %v1718_v50 }
 0x223   : > { %v5479_v14 = vpop.xlane.xlu0 %1815 }
 0x224   : > { %vm1817_vm10 = vcmp.eq.f32.partialorder %v5307_v55, %v5479_v14  ;;  %v1871_v55 = vand.u32 65535, %v5371_v9 }
 0x225   : > { %v1818_v5 = vsel %vm1817_vm10, %v1813_v57, inf }
 0x226   : > { %1819 = vmin.xlane.f32.xlu1 %v1818_v5  ;;  %v5484_v16 = vpop.xlane.xlu2 %1735  ;;  %v1873_v40 = vcvt.s32.f32 %v1871_v55 }
 0x227   : > { %vm1737_vm11 = vcmp.eq.f32.partialorder %v5323_v23, %v5484_v16 }
 0x228   : > { %v1738_v29 = vsel %vm1737_vm11, %v1733_v46, inf }
 0x229   : > { %1739 = vmin.xlane.f32.xlu0 %v1738_v29 }
 0x22c   : > { %v5489_v62 = vpop.xlane.xlu1 %1775 }
 0x22d   : > { %vm1777_vm12 = vcmp.eq.f32.partialorder %v5355_v24, %v5489_v62  ;;  %v1831_v24 = vand.u32 65535, %v5416_v63 }
 0x22e   : > { %v1778_v21 = vsel %vm1777_vm12, %v1773_v53, inf  ;;  %v4500_v53 = vld [vmem:[#allocation3 + $0xa8] sm:$0xff] }
 0x22f   : > { %1779 = vmin.xlane.f32.xlu2 %v1778_v21  ;;  %v1833_v34 = vcvt.s32.f32 %v1831_v24 }
 0x232   : > { %v5494_v3 = vpop.xlane.xlu0 %1875 }
 0x233   : > { %vm1877_vm13 = vcmp.eq.f32.partialorder %v5391_v56, %v5494_v3 }
 0x234   : > { %v1878_v23 = vsel %vm1877_vm13, %v1873_v40, inf  ;;  %v4501_v40 = vld [vmem:[#allocation3 + $0xd0] sm:$0xff] }
 0x235   : > { %1879 = vmin.xlane.f32.xlu1 %v1878_v23 }
 0x23c   : > { %v5499_v59 = vpop.xlane.xlu2 %1795 }
 0x23d   : > { %vm1797_vm14 = vcmp.eq.f32.partialorder %v5410_v54, %v5499_v59  ;;  %v1891_v54 = vand.u32 65535, %v5431_v26  ;;  %v4498_v26 = vld [vmem:[#allocation3 + $0x1d0] sm:$0xff] }
 0x23e   : > { %v1798_v9 = vsel %vm1797_vm14, %v1793_v48, inf }
 0x23f   : > { %1799 = vmin.xlane.f32.xlu0 %v1798_v9  ;;  %v1893_v45 = vcvt.s32.f32 %v1891_v54  ;;  %v4502_v9 = vld [vmem:[#allocation3 + $0x80] sm:$0xff]  ;;  %v4504_v54 = vld [vmem:[#allocation3 + $0x1e8] sm:$0xff] }
 0x246   : > { %v5505_v37 = vpop.xlane.xlu1 %1835  ;;  %v5509_v61 = vpop.xlane.xlu2 %1855 }
 0x247   : > { %vm1837_vm15 = vcmp.eq.f32.partialorder %v5424_v25, %v5505_v37  ;;  %vm1857_vm0 = vcmp.eq.f32.partialorder %v5429_v2, %v5509_v61  ;;  %v1642_v25 = vcvt.f32.s32 %v5439_v4  ;;  %v1602_v2 = vcvt.f32.s32 %v5444_v15 }
 0x248   : > { %v1838_v56 = vsel %vm1837_vm15, %v1833_v34, inf  ;;  %v1858_v63 = vsel %vm1857_vm0, %v1853_v19, inf  ;;  %v4503_v34 = vld [vmem:[#allocation3 + $0xc8] sm:$0xff] }
 0x249   : > { %1839 = vmin.xlane.f32.xlu2 %v1838_v56  ;;  %1859 = vmin.xlane.f32.xlu0 %v1858_v63  ;;  %v1643_v57 = vshll.u32 %v1642_v25, 16  ;;  %v1603_v21 = vshll.u32 %v1602_v2, 16  ;;  %v4505_v25 = vld [vmem:[#allocation3 + $0x178] sm:$0xff] }
 0x24e   : > { %v5514_v0 = vpop.xlane.xlu1 %1895 }
 0x24f   : > { %vm1897_vm1 = vcmp.eq.f32.partialorder %v5435_v13, %v5514_v0  ;;  %v4499_v13 = vld [vmem:[#allocation3 + $0x1b0] sm:$0xff] }
 0x250   : > { %v1898_v50 = vsel %vm1897_vm1, %v1893_v45, inf }
 0x251   : > { %1899 = vmin.xlane.f32.xlu2 %v1898_v50  ;;  %v1702_v50 = vcvt.f32.s32 %v5449_v6 }
 0x273   : > { %v1640_v58 = vpop.xlane.xlu1 %1639 }
 0x274   : > { %v1641_v44 = vcvt.f32.s32 %v1640_v58 }
 0x276   : > { %v1644_v5 = vadd.s32 %v1643_v57, %v1641_v44 }
 0x278   : > { %vm1913_vm3 = vcmp.eq.s32.totalorder %v5089_v30, %v1644_v5  ;;  %vm1914_vm2 = vcmp.eq.s32.totalorder %v5092_v20, %v1644_v5  ;;  %vm1915_vm4 = vcmp.eq.s32.totalorder %v5097_v51, %v1644_v5  ;;  %vm1916_vm5 = vcmp.eq.s32.totalorder %v5108_v41, %v1644_v5 }
 0x279   : > { %v5523_v46 = vsel %vm1913_vm3, inf, %v4498_v26  ;;  %v5525_v29 = vsel %vm1914_vm2, inf, %v4499_v13  ;;  %v1600_v43 = vpop.xlane.xlu2 %1599  ;;  %v5530_v15 = vsel %vm1915_vm4, inf, %v4500_v53  ;;  %v5533_v23 = vsel %vm1916_vm5, inf, %v4501_v40  ;;  %v4506_v53 = vld [vmem:[#allocation3 + $0x1b8] sm:$0xff] }
 0x27a   : > { %8755 = vst [vmem:[#allocation11_spill] sm:$0xff] %v5525_v29  ;;  %v2043_v4 = vmin.f32 %v5523_v46, %v5525_v29  ;;  %v1601_v55 = vcvt.f32.s32 %v1600_v43  ;;  %v1703_v5 = vshll.u32 %v1702_v50, 16  ;;  %v1662_v13 = vcvt.f32.s32 %v5454_v28  ;;  %v4510_v50 = vld [vmem:[#allocation3 + $0x118] sm:$0xff] }
 0x27b   : > { %8756 = vst [vmem:[#allocation13_spill] sm:$0xff] %v5530_v15  ;;  %v1622_v40 = vcvt.f32.s32 %v5459_v17  ;;  %v4509_v17 = vld [vmem:[#allocation3 + $0xe0] sm:$0xff] }
 0x27c   : > { %v2044_v36 = vmin.f32 %v2043_v4, %v5530_v15  ;;  %v1604_v48 = vadd.s32 %v1603_v21, %v1601_v55  ;;  %v1700_v57 = vpop.xlane.xlu1 %1699  ;;  %v1663_v6 = vshll.u32 %v1662_v13, 16  ;;  %v4507_v55 = vld [vmem:[#allocation3 + $0x130] sm:$0xff]  ;;  %v4512_v13 = vld [vmem:[#allocation3 + $0x128] sm:$0xff] }
 0x27d   : > { %v1701_v2 = vcvt.f32.s32 %v1700_v57 }
 0x27e   : > { %v2045_v24 = vmin.f32 %v2044_v36, %v5533_v23  ;;  %vm1905_vm6 = vcmp.eq.s32.totalorder %v5089_v30, %v1604_v48  ;;  %vm1906_vm7 = vcmp.eq.s32.totalorder %v5092_v20, %v1604_v48  ;;  %vm1907_vm8 = vcmp.eq.s32.totalorder %v5097_v51, %v1604_v48 }
 0x27f   : > { %v5539_v8 = vsel %vm1905_vm6, inf, %v4502_v9  ;;  %v5541_v56 = vsel %vm1906_vm7, inf, %v4503_v34  ;;  %vm1908_vm9 = vcmp.eq.s32.totalorder %v5108_v41, %v1604_v48  ;;  %v5546_v63 = vsel %vm1907_vm8, inf, %v4504_v54 }
 0x280   : > { %2046 = vmin.xlane.f32.xlu2 %v2045_v24  ;;  %8757 = vst [vmem:[#allocation15_spill] sm:$0xff] %v5539_v8  ;;  %v2033_v19 = vmin.f32 %v5539_v8, %v5541_v56  ;;  %v5550_v58 = vsel %vm1908_vm9, inf, %v4505_v25  ;;  %v1704_v26 = vadd.s32 %v1703_v5, %v1701_v2  ;;  %v4508_v24 = vld [vmem:[#allocation3 + $0x10] sm:$0xff] }
 0x281   : > { %8758 = vst [vmem:[#allocation14_spill] sm:$0xff] %v5541_v56 }
 0x282   : > { %v2034_v45 = vmin.f32 %v2033_v19, %v5546_v63  ;;  %v1660_v4 = vpop.xlane.xlu2 %1659  ;;  %vm1925_vm10 = vcmp.eq.s32.totalorder %v5089_v30, %v1704_v26  ;;  %vm1926_vm11 = vcmp.eq.s32.totalorder %v5092_v20, %v1704_v26  ;;  %vm1927_vm12 = vcmp.eq.s32.totalorder %v5097_v51, %v1704_v26 }
 0x283   : > { %v1661_v43 = vcvt.f32.s32 %v1660_v4  ;;  %v5557_v21 = vsel %vm1925_vm10, inf, %v4506_v53  ;;  %v5559_v36 = vsel %vm1926_vm11, inf, %v4507_v55  ;;  %vm1928_vm13 = vcmp.eq.s32.totalorder %v5108_v41, %v1704_v26  ;;  %v4513_v53 = vld [vmem:[#allocation3 + $0xf0] sm:$0xff] }
 0x284   : > { %v2035_v44 = vmin.f32 %v2034_v45, %v5550_v58  ;;  %v2058_v28 = vmin.f32 %v5557_v21, %v5559_v36  ;;  %v5565_v9 = vsel %vm1927_vm12, inf, %v4508_v24  ;;  %v1623_v19 = vshll.u32 %v1622_v40, 16  ;;  %v4515_v24 = vld [vmem:[#allocation3 + $0x190] sm:$0xff] }
 0x285   : > { %v1664_v48 = vadd.s32 %v1663_v6, %v1661_v43 }
 0x286   : > { %2036 = vmin.xlane.f32.xlu0 %v2035_v44  ;;  %v2059_v34 = vmin.f32 %v2058_v28, %v5565_v9  ;;  %v1620_v54 = vpop.xlane.xlu0 %1619  ;;  %v4511_v44 = vld [vmem:[#allocation3 + $0x120] sm:$0xff]  ;;  %v4514_v28 = vld [vmem:[#allocation3 + $0x8] sm:$0xff] }
 0x287   : > { %vm1917_vm14 = vcmp.eq.s32.totalorder %v5089_v30, %v1664_v48  ;;  %vm1918_vm15 = vcmp.eq.s32.totalorder %v5092_v20, %v1664_v48  ;;  %vm1919_vm0 = vcmp.eq.s32.totalorder %v5097_v51, %v1664_v48  ;;  %v5575_v57 = vsel %vm1928_vm13, inf, %v4511_v44 }
 0x288   : > { %v5571_v45 = vsel %vm1917_vm14, inf, %v4509_v17  ;;  %v5573_v25 = vsel %vm1918_vm15, inf, %v4510_v50  ;;  %8761 = vst [vmem:[#allocation5_spill] sm:$0xff] %v5575_v57  ;;  %v1621_v5 = vcvt.f32.s32 %v1620_v54  ;;  %vm1920_vm1 = vcmp.eq.s32.totalorder %v5108_v41, %v1664_v48  ;;  %v4516_v17 = vld [vmem:[#allocation3 + $0x158] sm:$0xff] }
 0x289   : > { %8759 = vst [vmem:[#allocation16_spill] sm:$0xff] %v5571_v45  ;;  %v2048_v2 = vmin.f32 %v5571_v45, %v5573_v25  ;;  %v2060_v26 = vmin.f32 %v2059_v34, %v5575_v57  ;;  %v5581_v4 = vsel %vm1919_vm0, inf, %v4512_v13  ;;  %v5584_v55 = vsel %vm1920_vm1, inf, %v4513_v53 }
 0x28a   : > { %8760 = vst [vmem:[#allocation4_spill] sm:$0xff] %v5573_v25  ;;  %v1624_v6 = vadd.s32 %v1623_v19, %v1621_v5  ;;  %v1762_v54 = vcvt.f32.s32 %v5464_v35  ;;  %v4517_v5 = vld [vmem:[#allocation3 + $0x1a8] sm:$0xff] }
 0x28b   : > { %v2049_v43 = vmin.f32 %v2048_v2, %v5581_v4  ;;  %2061 = vmin.xlane.f32.xlu2 %v2060_v26  ;;  %8762 = vst [vmem:[#allocation7_spill] sm:$0xff] %v5584_v55 }
 0x28c   : > { %vm1909_vm3 = vcmp.eq.s32.totalorder %v5089_v30, %v1624_v6  ;;  %vm1910_vm2 = vcmp.eq.s32.totalorder %v5092_v20, %v1624_v6  ;;  %vm1911_vm4 = vcmp.eq.s32.totalorder %v5097_v51, %v1624_v6  ;;  %vm1912_vm5 = vcmp.eq.s32.totalorder %v5108_v41, %v1624_v6  ;;  %v1760_v26 = vpop.xlane.xlu1 %1759 }
 0x28d   : > { %v2050_v40 = vmin.f32 %v2049_v43, %v5584_v55  ;;  %v5590_v48 = vsel %vm1909_vm3, inf, %v4514_v28  ;;  %v5592_v34 = vsel %vm1910_vm2, inf, %v4515_v24  ;;  %v5598_v50 = vsel %vm1911_vm4, inf, %v4516_v17 }
 0x28e   : > { %8763 = vst [vmem:[#allocation9_spill] sm:$0xff] %v5590_v48  ;;  %v2038_v19 = vmin.f32 %v5590_v48, %v5592_v34  ;;  %v5601_v2 = vsel %vm1912_vm5, inf, %v4517_v5  ;;  %v1763_v43 = vshll.u32 %v1762_v54, 16  ;;  %v1761_v53 = vcvt.f32.s32 %v1760_v26  ;;  %v1680_v24 = vpop.xlane.xlu0 %1679  ;;  %v4519_v5 = vld [vmem:[#allocation3 + $0x1e0] sm:$0xff] }
 0x28f   : > { %8764 = vst [vmem:[#allocation17_spill] sm:$0xff] %v5592_v34  ;;  %2051 = vmin.xlane.f32.xlu0 %v2050_v40  ;;  %v1682_v6 = vcvt.f32.s32 %v5469_v12  ;;  %v1681_v35 = vcvt.f32.s32 %v1680_v24  ;;  %v1722_v54 = vcvt.f32.s32 %v5474_v11  ;;  %v4521_v24 = vld [vmem:[#allocation3 + $0x148] sm:$0xff] }
 0x290   : > { %8765 = vst [vmem:[#allocation31_spill] sm:$0xff] %v5598_v50  ;;  %v2039_v44 = vmin.f32 %v2038_v19, %v5598_v50  ;;  %v1764_v40 = vadd.s32 %v1763_v43, %v1761_v53  ;;  %v4518_v19 = vld [vmem:[#allocation3 + $0x78] sm:$0xff] }
 0x291   : > { %v1683_v28 = vshll.u32 %v1682_v6, 16 }
 0x292   : > { %v2040_v13 = vmin.f32 %v2039_v44, %v5601_v2  ;;  %vm1937_vm6 = vcmp.eq.s32.totalorder %v5089_v30, %v1764_v40  ;;  %vm1938_vm7 = vcmp.eq.s32.totalorder %v5092_v20, %v1764_v40  ;;  %vm1939_vm8 = vcmp.eq.s32.totalorder %v5097_v51, %v1764_v40 }
 0x293   : > { %v5608_v17 = vsel %vm1937_vm6, inf, %v4518_v19  ;;  %v5610_v44 = vsel %vm1938_vm7, inf, %v4519_v5  ;;  %v1684_v12 = vadd.s32 %v1683_v28, %v1681_v35  ;;  %vm1940_vm9 = vcmp.eq.s32.totalorder %v5108_v41, %v1764_v40 }
 0x294   : > { %2041 = vmin.xlane.f32.xlu1 %v2040_v13  ;;  %8766 = vst [vmem:[#allocation32_spill] sm:$0xff] %v5608_v17  ;;  %v2073_v26 = vmin.f32 %v5608_v17, %v5610_v44  ;;  %v4520_v13 = vld [vmem:[#allocation3 + $0x1d8] sm:$0xff]  ;;  %v1720_v6 = vpop.xlane.xlu2 %1719  ;;  %v5622_v11 = vsel %vm1940_vm9, inf, %v4521_v24  ;;  %v1723_v35 = vshll.u32 %v1722_v54, 16 }
 0x295   : > { %8767 = vst [vmem:[#allocation33_spill] sm:$0xff] %v5610_v44  ;;  %v5616_v43 = vsel %vm1939_vm8, inf, %v4520_v13  ;;  %vm1921_vm10 = vcmp.eq.s32.totalorder %v5089_v30, %v1684_v12  ;;  %vm1922_vm11 = vcmp.eq.s32.totalorder %v5092_v20, %v1684_v12  ;;  %vm1923_vm12 = vcmp.eq.s32.totalorder %v5097_v51, %v1684_v12 }
 0x296   : > { %8768 = vst [vmem:[#allocation34_spill] sm:$0xff] %v5616_v43  ;;  %v2074_v53 = vmin.f32 %v2073_v26, %v5616_v43  ;;  %v5625_v40 = vsel %vm1921_vm10, inf, %v5215_v60  ;;  %v5628_v28 = vsel %vm1922_vm11, inf, %v5220_v39  ;;  %v1721_v19 = vcvt.f32.s32 %v1720_v6  ;;  %v4522_v39 = vld [vmem:[#allocation3 + $0x68] sm:$0xff] }
 0x297   : > { %8769 = vst [vmem:[#allocation35_spill] sm:$0xff] %v5622_v11  ;;  %v2053_v26 = vmin.f32 %v5625_v40, %v5628_v28  ;;  %v5634_v13 = vsel %vm1923_vm12, inf, %v5224_v38  ;;  %vm1924_vm13 = vcmp.eq.s32.totalorder %v5108_v41, %v1684_v12  ;;  %v4524_v38 = vld [vmem:[#allocation3 + $0x180] sm:$0xff] }
 0x298   : > { %8770 = vst [vmem:[#allocation36_spill] sm:$0xff] %v5625_v40  ;;  %v2075_v5 = vmin.f32 %v2074_v53, %v5622_v11  ;;  %v1724_v18 = vadd.s32 %v1723_v35, %v1721_v19  ;;  %v4523_v53 = vld [vmem:[#allocation3 + $0x1f0] sm:$0xff]  ;;  %v5645_v24 = vsel %vm1924_vm13, inf, %v4524_v38  ;;  %v4525_v19 = vld [vmem:[#allocation3] sm:$0xff] }
 0x299   : > { %8771 = vst [vmem:[#allocation37_spill] sm:$0xff] %v5628_v28  ;;  %v2054_v60 = vmin.f32 %v2053_v26, %v5634_v13  ;;  %v1822_v26 = vcvt.f32.s32 %v5479_v14  ;;  %v1820_v33 = vpop.xlane.xlu1 %1819  ;;  %v4527_v14 = vld [vmem:[#allocation3 + $0x168] sm:$0xff] }
 0x29a   : > { %8772 = vst [vmem:[#allocation38_spill] sm:$0xff] %v5634_v13  ;;  %2076 = vmin.xlane.f32.xlu2 %v2075_v5  ;;  %vm1929_vm14 = vcmp.eq.s32.totalorder %v5089_v30, %v1724_v18  ;;  %vm1930_vm15 = vcmp.eq.s32.totalorder %v5092_v20, %v1724_v18  ;;  %vm1931_vm0 = vcmp.eq.s32.totalorder %v5097_v51, %v1724_v18  ;;  %v1821_v52 = vcvt.f32.s32 %v1820_v33  ;;  %v4529_v33 = vld [vmem:[#allocation3 + $0x38] sm:$0xff] }
 0x29b   : > { %v5641_v54 = vsel %vm1929_vm14, inf, %v4522_v39  ;;  %v5643_v6 = vsel %vm1930_vm15, inf, %v4523_v53  ;;  %8775 = vst [vmem:[#allocation41_spill] sm:$0xff] %v5645_v24  ;;  %vm1932_vm1 = vcmp.eq.s32.totalorder %v5108_v41, %v1724_v18  ;;  %v2055_v35 = vmin.f32 %v2054_v60, %v5645_v24  ;;  %v4526_v53 = vld [vmem:[#allocation3 + $0x140] sm:$0xff] }
 0x29c   : > { %8773 = vst [vmem:[#allocation39_spill] sm:$0xff] %v5641_v54  ;;  %v2063_v12 = vmin.f32 %v5641_v54, %v5643_v6  ;;  %v5651_v5 = vsel %vm1931_vm0, inf, %v4525_v19  ;;  %v5655_v10 = vsel %vm1932_vm1, inf, %v4526_v53  ;;  %v1742_v18 = vcvt.f32.s32 %v5484_v16  ;;  %v1740_v19 = vpop.xlane.xlu0 %1739 }
 0x29d   : > { %8774 = vst [vmem:[#allocation40_spill] sm:$0xff] %v5643_v6  ;;  %2056 = vmin.xlane.f32.xlu1 %v2055_v35  ;;  %v1823_v27 = vshll.u32 %v1822_v26, 16  ;;  %v1741_v7 = vcvt.f32.s32 %v1740_v19  ;;  %v4528_v35 = vld [vmem:[#allocation3 + $0x188] sm:$0xff] }
 0x29e   : > { %8776 = vst [vmem:[#allocation42_spill] sm:$0xff] %v5651_v5  ;;  %v2064_v39 = vmin.f32 %v2063_v12, %v5651_v5  ;;  %v1743_v47 = vshll.u32 %v1742_v18, 16 }
 0x29f   : > { %8777 = vst [vmem:[#allocation43_spill] sm:$0xff] %v5655_v10  ;;  %v1824_v60 = vadd.s32 %v1823_v27, %v1821_v52  ;;  %v1782_v52 = vcvt.f32.s32 %v5489_v62 }
 0x2a0   : > { %v2065_v38 = vmin.f32 %v2064_v39, %v5655_v10  ;;  %v1744_v16 = vadd.s32 %v1743_v47, %v1741_v7  ;;  %v4531_v47 = vld [vmem:[#allocation3 + $0xd8] sm:$0xff] }
 0x2a1   : > { %vm1949_vm3 = vcmp.eq.s32.totalorder %v5089_v30, %v1824_v60  ;;  %vm1950_vm2 = vcmp.eq.s32.totalorder %v5092_v20, %v1824_v60  ;;  %vm1951_vm4 = vcmp.eq.s32.totalorder %v5097_v51, %v1824_v60  ;;  %vm1952_vm5 = vcmp.eq.s32.totalorder %v5108_v41, %v1824_v60  ;;  %v4532_v60 = vld [vmem:[#allocation3 + $0x198] sm:$0xff] }
 0x2a2   : > { %2066 = vmin.xlane.f32.xlu0 %v2065_v38  ;;  %v5662_v12 = vsel %vm1949_vm3, inf, %v4527_v14  ;;  %v5664_v39 = vsel %vm1950_vm2, inf, %v4528_v35  ;;  %v5670_v26 = vsel %vm1951_vm4, inf, %v4529_v33  ;;  %vm1933_vm6 = vcmp.eq.s32.totalorder %v5089_v30, %v1744_v16  ;;  %v4530_v38 = vld [vmem:[#allocation3 + $0xc0] sm:$0xff]  ;;  %v1780_v35 = vpop.xlane.xlu2 %1779 }
 0x2a3   : > { %8778 = vst [vmem:[#allocation44_spill] sm:$0xff] %v5662_v12  ;;  %v2088_v27 = vmin.f32 %v5662_v12, %v5664_v39  ;;  %vm1934_vm7 = vcmp.eq.s32.totalorder %v5092_v20, %v1744_v16  ;;  %vm1935_vm8 = vcmp.eq.s32.totalorder %v5097_v51, %v1744_v16  ;;  %v5676_v7 = vsel %vm1952_vm5, inf, %v4530_v38 }
 0x2a4   : > { %8779 = vst [vmem:[#allocation45_spill] sm:$0xff] %v5664_v39  ;;  %v5678_v18 = vsel %vm1933_vm6, inf, %v4531_v47  ;;  %v5680_v19 = vsel %vm1934_vm7, inf, %v4532_v60  ;;  %vm1936_vm9 = vcmp.eq.s32.totalorder %v5108_v41, %v1744_v16  ;;  %v1783_v31 = vshll.u32 %v1782_v52, 16 }
 0x2a5   : > { %8780 = vst [vmem:[#allocation46_spill] sm:$0xff] %v5670_v26  ;;  %v2089_v53 = vmin.f32 %v2088_v27, %v5670_v26  ;;  %v2068_v14 = vmin.f32 %v5678_v18, %v5680_v19  ;;  %v4533_v27 = vld [vmem:[#allocation3 + $0x1a0] sm:$0xff]  ;;  %v1781_v38 = vcvt.f32.s32 %v1780_v35  ;;  %v5689_v1 = vsel %vm1936_vm9, inf, %v4534_v22  ;;  %v4535_v35 = vld [vmem:[#allocation3 + $0x138] sm:$0xff]  ;;  %v4536_v22 = vld [vmem:[#allocation3 + $0x28] sm:$0xff] }
 0x2a6   : > { %8781 = vst [vmem:[#allocation47_spill] sm:$0xff] %v5676_v7  ;;  %v5686_v33 = vsel %vm1935_vm8, inf, %v4533_v27  ;;  %v1882_v60 = vcvt.f32.s32 %v5494_v3  ;;  %v1802_v52 = vcvt.f32.s32 %v5499_v59 }
 0x2a7   : > { %8782 = vst [vmem:[#allocation48_spill] sm:$0xff] %v5678_v18  ;;  %v2090_v62 = vmin.f32 %v2089_v53, %v5676_v7  ;;  %v2069_v47 = vmin.f32 %v2068_v14, %v5686_v33  ;;  %v1784_v53 = vadd.s32 %v1783_v31, %v1781_v38 }
 0x2a8   : > { %8783 = vst [vmem:[#allocation49_spill] sm:$0xff] %v5680_v19  ;;  %v1883_v3 = vshll.u32 %v1882_v60, 16  ;;  %v1803_v42 = vshll.u32 %v1802_v52, 16 }
 0x2a9   : > { %8784 = vst [vmem:[#allocation50_spill] sm:$0xff] %v5686_v33  ;;  %2091 = vmin.xlane.f32.xlu2 %v2090_v62  ;;  %v2070_v16 = vmin.f32 %v2069_v47, %v5689_v1  ;;  %vm1941_vm10 = vcmp.eq.s32.totalorder %v5089_v30, %v1784_v53  ;;  %vm1942_vm11 = vcmp.eq.s32.totalorder %v5092_v20, %v1784_v53  ;;  %v1880_v62 = vpop.xlane.xlu1 %1879  ;;  %v4537_v47 = vld [vmem:[#allocation3 + $0x70] sm:$0xff] }
 0x2aa   : > { %8785 = vst [vmem:[#allocation51_spill] sm:$0xff] %v5689_v1  ;;  %vm1943_vm12 = vcmp.eq.s32.totalorder %v5097_v51, %v1784_v53  ;;  %v5697_v14 = vsel %vm1941_vm10, inf, %v4535_v35  ;;  %v5699_v27 = vsel %vm1942_vm11, inf, %v4536_v22  ;;  %v1881_v31 = vcvt.f32.s32 %v1880_v62  ;;  %v4538_v1 = vld [vmem:[#allocation3 + $0xb8] sm:$0xff] }
 0x2ab   : > { %2071 = vmin.xlane.f32.xlu1 %v2070_v16  ;;  %8786 = vst [vmem:[#allocation52_spill] sm:$0xff] %v5697_v14  ;;  %vm1944_vm13 = vcmp.eq.s32.totalorder %v5108_v41, %v1784_v53  ;;  %v2078_v38 = vmin.f32 %v5697_v14, %v5699_v27  ;;  %v5704_v32 = vsel %vm1943_vm12, inf, %v4537_v47  ;;  %v1842_v35 = vcvt.f32.s32 %v5505_v37  ;;  %v4539_v53 = vld [vmem:[#allocation3 + $0xe8] sm:$0xff]  ;;  %v4541_v47 = vld [vmem:[#allocation3 + $0x50] sm:$0xff] }
 0x2ac   : > { %8787 = vst [vmem:[#allocation53_spill] sm:$0xff] %v5699_v27  ;;  %v1884_v16 = vadd.s32 %v1883_v3, %v1881_v31  ;;  %v5708_v22 = vsel %vm1944_vm13, inf, %v4538_v1  ;;  %v4540_v31 = vld [vmem:[#allocation3 + $0x110] sm:$0xff] }
 0x2ad   : > { %8788 = vst [vmem:[#allocation54_spill] sm:$0xff] %v5704_v32  ;;  %v2079_v59 = vmin.f32 %v2078_v38, %v5704_v32  ;;  %v1862_v38 = vcvt.f32.s32 %v5509_v61  ;;  %v4544_v61 = vld [vmem:[#allocation3 + $0x108] sm:$0xff] }
 0x2ae   : > { %8789 = vst [vmem:[#allocation55_spill] sm:$0xff] %v5708_v22  ;;  %vm1961_vm14 = vcmp.eq.s32.totalorder %v5089_v30, %v1884_v16  ;;  %vm1962_vm15 = vcmp.eq.s32.totalorder %v5092_v20, %v1884_v16  ;;  %vm1963_vm0 = vcmp.eq.s32.totalorder %v5097_v51, %v1884_v16  ;;  %vm1964_vm1 = vcmp.eq.s32.totalorder %v5108_v41, %v1884_v16  ;;  %v4542_v16 = vld [vmem:[#allocation3 + $0x98] sm:$0xff] }
 0x2af   : > { %v2080_v62 = vmin.f32 %v2079_v59, %v5708_v22  ;;  %v5714_v3 = vsel %vm1961_vm14, inf, %v4539_v53  ;;  %v5716_v52 = vsel %vm1962_vm15, inf, %v4540_v31  ;;  %v5722_v59 = vsel %vm1963_vm0, inf, %v4541_v47 }
 0x2b0   : > { %8790 = vst [vmem:[#allocation56_spill] sm:$0xff] %v5714_v3  ;;  %v2103_v1 = vmin.f32 %v5714_v3, %v5716_v52  ;;  %v1863_v32 = vshll.u32 %v1862_v38, 16 }
 0x2b1   : > { %8791 = vst [vmem:[#allocation57_spill] sm:$0xff] %v5716_v52  ;;  %2081 = vmin.xlane.f32.xlu0 %v2080_v62  ;;  %v4543_v62 = vld [vmem:[#allocation3 + $0x30] sm:$0xff] }
 0x2b2   : > { %v1800_v49 = vpop.xlane.xlu0 %1799  ;;  %8792 = vst [vmem:[#allocation58_spill] sm:$0xff] %v5722_v59  ;;  %v2104_v53 = vmin.f32 %v2103_v1, %v5722_v59  ;;  %v1902_v59 = vcvt.f32.s32 %v5514_v0  ;;  %v4546_v0 = vld [vmem:[#allocation3 + $0x40] sm:$0xff] }
 0x2b3   : > { %v1801_v60 = vcvt.f32.s32 %v1800_v49  ;;  %v1843_v49 = vshll.u32 %v1842_v35, 16 }
 0x2b4   : > { %v1903_v38 = vshll.u32 %v1902_v59, 16 }
 0x2b5   : > { %v1804_v37 = vadd.s32 %v1803_v42, %v1801_v60  ;;  %v5728_v60 = vsel %vm1964_vm1, inf, %v4542_v16 }
 0x2b6   : > { %8793 = vst [vmem:[#allocation59_spill] sm:$0xff] %v5728_v60  ;;  %v2105_v47 = vmin.f32 %v2104_v53, %v5728_v60 }
 0x2b7   : > { %vm1945_vm3 = vcmp.eq.s32.totalorder %v5089_v30, %v1804_v37  ;;  %vm1946_vm2 = vcmp.eq.s32.totalorder %v5092_v20, %v1804_v37  ;;  %vm1947_vm4 = vcmp.eq.s32.totalorder %v5097_v51, %v1804_v37  ;;  %vm1948_vm5 = vcmp.eq.s32.totalorder %v5108_v41, %v1804_v37 }
 0x2b8   : > { %v5730_v35 = vsel %vm1945_vm3, inf, %v4543_v62  ;;  %v5732_v31 = vsel %vm1946_vm2, inf, %v4544_v61  ;;  %2106 = vmin.xlane.f32.xlu2 %v2105_v47 }
 0x2b9   : > { %8794 = vst [vmem:[#allocation60_spill] sm:$0xff] %v5730_v35  ;;  %v2083_v1 = vmin.f32 %v5730_v35, %v5732_v31 }
 0x2ba   : > { %8795 = vst [vmem:[#allocation61_spill] sm:$0xff] %v5732_v31 }
 0x2bc   : > { %v1840_v22 = vpop.xlane.xlu2 %1839  ;;  %v1860_v3 = vpop.xlane.xlu0 %1859 }
 0x2bd   : > { %v1841_v42 = vcvt.f32.s32 %v1840_v22  ;;  %v4545_v22 = vld [vmem:[#allocation3 + $0x1c0] sm:$0xff]  ;;  %v1861_v62 = vcvt.f32.s32 %v1860_v3 }
 0x2be   : > { %v5739_v16 = vsel %vm1947_vm4, inf, %v4545_v22  ;;  %v4548_v22 = vld [vmem:[#allocation3 + $0x1c8] sm:$0xff] }
 0x2bf   : > { %v1844_v52 = vadd.s32 %v1843_v49, %v1841_v42  ;;  %8796 = vst [vmem:[#allocation62_spill] sm:$0xff] %v5739_v16  ;;  %v2084_v61 = vmin.f32 %v2083_v1, %v5739_v16  ;;  %v1864_v53 = vadd.s32 %v1863_v32, %v1861_v62  ;;  %v4547_v42 = vld [vmem:[#allocation3 + $0x18] sm:$0xff]  ;;  %v5751_v3 = vsel %vm1948_vm5, inf, %v4548_v22  ;;  %v4549_v62 = vld [vmem:[#allocation3 + $0xa0] sm:$0xff] }
 0x2c0   : > { %8799 = vst [vmem:[#allocation65_spill] sm:$0xff] %v5751_v3  ;;  %v4551_v16 = vld [vmem:[#allocation3 + $0x1f8] sm:$0xff] }
 0x2c1   : > { %vm1953_vm6 = vcmp.eq.s32.totalorder %v5089_v30, %v1844_v52  ;;  %vm1954_vm7 = vcmp.eq.s32.totalorder %v5092_v20, %v1844_v52  ;;  %vm1955_vm8 = vcmp.eq.s32.totalorder %v5097_v51, %v1844_v52  ;;  %vm1956_vm9 = vcmp.eq.s32.totalorder %v5108_v41, %v1844_v52  ;;  %v4554_v52 = vld [vmem:[#allocation3 + $0x48] sm:$0xff] }
 0x2c2   : > { %v5745_v49 = vsel %vm1953_vm6, inf, %v4546_v0  ;;  %v5747_v60 = vsel %vm1954_vm7, inf, %v4547_v42  ;;  %v2085_v1 = vmin.f32 %v2084_v61, %v5751_v3  ;;  %v5757_v0 = vsel %vm1955_vm8, inf, %v4549_v62  ;;  %v4550_v42 = vld [vmem:[#allocation3 + $0x60] sm:$0xff]  ;;  %v4552_v61 = vld [vmem:[#allocation3 + $0x150] sm:$0xff] }
 0x2c3   : > { %8797 = vst [vmem:[#allocation63_spill] sm:$0xff] %v5745_v49  ;;  %v2093_v47 = vmin.f32 %v5745_v49, %v5747_v60  ;;  %vm1957_vm10 = vcmp.eq.s32.totalorder %v5089_v30, %v1864_v53  ;;  %vm1958_vm11 = vcmp.eq.s32.totalorder %v5092_v20, %v1864_v53  ;;  %vm1959_vm12 = vcmp.eq.s32.totalorder %v5097_v51, %v1864_v53 }
 0x2c4   : > { %8798 = vst [vmem:[#allocation64_spill] sm:$0xff] %v5747_v60  ;;  %v1900_v32 = vpop.xlane.xlu2 %1899  ;;  %2086 = vmin.xlane.f32.xlu1 %v2085_v1  ;;  %v5763_v22 = vsel %vm1957_vm10, inf, %v4550_v42  ;;  %v5765_v60 = vsel %vm1958_vm11, inf, %v4551_v16  ;;  %v5769_v62 = vsel %vm1956_vm9, inf, %v4552_v61  ;;  %vm1960_vm13 = vcmp.eq.s32.totalorder %v5108_v41, %v1864_v53 }
 0x2c5   : > { %8800 = vst [vmem:[#allocation66_spill] sm:$0xff] %v5757_v0  ;;  %v1901_v37 = vcvt.f32.s32 %v1900_v32  ;;  %v2094_v59 = vmin.f32 %v2093_v47, %v5757_v0  ;;  %v2098_v3 = vmin.f32 %v5763_v22, %v5765_v60  ;;  %v4553_v47 = vld [vmem:[#allocation3 + $0x58] sm:$0xff] }
 0x2c6   : > { %8801 = vst [vmem:[#allocation67_spill] sm:$0xff] %v5763_v22  ;;  %v5775_v1 = vsel %vm1959_vm12, inf, %v4553_v47 }
 0x2c7   : > { %8802 = vst [vmem:[#allocation68_spill] sm:$0xff] %v5765_v60  ;;  %v1904_v49 = vadd.s32 %v1903_v38, %v1901_v37  ;;  %v2095_v32 = vmin.f32 %v2094_v59, %v5769_v62  ;;  %v2099_v42 = vmin.f32 %v2098_v3, %v5775_v1  ;;  %v4555_v38 = vld [vmem:[#allocation3 + $0xb0] sm:$0xff]  ;;  %v4556_v59 = vld [vmem:[#allocation3 + $0x20] sm:$0xff] }
 0x2c8   : > { %8803 = vst [vmem:[#allocation69_spill] sm:$0xff] %v5769_v62  ;;  %v5785_v53 = vsel %vm1960_vm13, inf, %v4556_v59 }
 0x2c9   : > { %8804 = vst [vmem:[#allocation70_spill] sm:$0xff] %v5775_v1  ;;  %2096 = vmin.xlane.f32.xlu0 %v2095_v32  ;;  %vm1965_vm14 = vcmp.eq.s32.totalorder %v5089_v30, %v1904_v49  ;;  %vm1966_vm15 = vcmp.eq.s32.totalorder %v5092_v20, %v1904_v49  ;;  %vm1967_vm0 = vcmp.eq.s32.totalorder %v5097_v51, %v1904_v49  ;;  %v4557_v32 = vld [vmem:[#allocation3 + $0x88] sm:$0xff] }
 0x2ca   : > { %v5781_v16 = vsel %vm1965_vm14, inf, %v4554_v52  ;;  %v5783_v37 = vsel %vm1966_vm15, inf, %v4555_v38  ;;  %8807 = vst [vmem:[#allocation73_spill] sm:$0xff] %v5785_v53  ;;  %vm1968_vm1 = vcmp.eq.s32.totalorder %v5108_v41, %v1904_v49  ;;  %v2100_v61 = vmin.f32 %v2099_v42, %v5785_v53  ;;  %v4558_v52 = vld [vmem:[#allocation3 + $0x160] sm:$0xff] }
 0x2cb   : > { %8805 = vst [vmem:[#allocation71_spill] sm:$0xff] %v5781_v16  ;;  %v2108_v3 = vmin.f32 %v5781_v16, %v5783_v37  ;;  %v5791_v47 = vsel %vm1967_vm0, inf, %v4557_v32  ;;  %v5794_v62 = vsel %vm1968_vm1, inf, %v4558_v52 }
 0x2cc   : > { %8806 = vst [vmem:[#allocation72_spill] sm:$0xff] %v5783_v37  ;;  %2101 = vmin.xlane.f32.xlu1 %v2100_v61 }
 0x2cd   : > { %8808 = vst [vmem:[#allocation74_spill] sm:$0xff] %v5791_v47  ;;  %v2109_v1 = vmin.f32 %v2108_v3, %v5791_v47 }
 0x2ce   : > { %8809 = vst [vmem:[#allocation75_spill] sm:$0xff] %v5794_v62 }
 0x2cf   : > { %v2110_v38 = vmin.f32 %v2109_v1, %v5794_v62 }
 0x2d1   : > { %2111 = vmin.xlane.f32.xlu0 %v2110_v38 }
 0x2f3   : > { %v5797_v59 = vpop.xlane.xlu2 %2046 }
 0x2f4   : > { %8810 = vst [vmem:[#allocation76_spill] sm:$0xff] %v5797_v59  ;;  %vm2377_vm3 = vcmp.eq.f32.partialorder %v5523_v46, %v5797_v59  ;;  %vm2378_vm2 = vcmp.eq.f32.partialorder %v5525_v29, %v5797_v59  ;;  %vm2379_vm6 = vcmp.eq.f32.partialorder %v5530_v15, %v5797_v59  ;;  %vm2380_vm8 = vcmp.eq.f32.partialorder %v5533_v23, %v5797_v59 }
 0x2f5   : > { %v2441_v42 = vsel %vm2377_vm3, %v5089_v30, 512  ;;  %v2442_v3 = vsel %vm2378_vm2, %v5092_v20, 512  ;;  %v2443_v52 = vsel %vm2379_vm6, %v5097_v51, 512  ;;  %v2444_v38 = vsel %vm2380_vm8, %v5108_v41, 512 }
 0x2f6   : > { %vm2537_vm7 = vcmp.lt.s32.totalorder %v2441_v42, %v2442_v3 }
 0x2f7   : > { %v2538_v32 = vsel %vm2537_vm7, %v2441_v42, %v2442_v3 }
 0x2f8   : > { %vm2539_vm9 = vcmp.lt.s32.totalorder %v2538_v32, %v2443_v52 }
 0x2f9   : > { %v5803_v49 = vpop.xlane.xlu0 %2036 }
 0x2fa   : > { %8811 = vst [vmem:[#allocation77_spill] sm:$0xff] %v5803_v49  ;;  %vm2369_vm4 = vcmp.eq.f32.partialorder %v5539_v8, %v5803_v49  ;;  %vm2370_vm5 = vcmp.eq.f32.partialorder %v5541_v56, %v5803_v49  ;;  %v2540_v8 = vsel %vm2539_vm9, %v2538_v32, %v2443_v52  ;;  %vm2371_vm12 = vcmp.eq.f32.partialorder %v5546_v63, %v5803_v49 }
 0x2fb   : > { %v2433_v1 = vsel %vm2369_vm4, %v5089_v30, 512  ;;  %v2434_v61 = vsel %vm2370_vm5, %v5092_v20, 512  ;;  %vm2541_vm11 = vcmp.lt.s32.totalorder %v2540_v8, %v2444_v38  ;;  %vm2372_vm13 = vcmp.eq.f32.partialorder %v5550_v58, %v5803_v49 }
 0x2fc   : > { %vm2497_vm10 = vcmp.lt.s32.totalorder %v2433_v1, %v2434_v61  ;;  %v5821_v15 = vsel %vm2541_vm11, %v2540_v8, %v2444_v38  ;;  %v2435_v42 = vsel %vm2371_vm12, %v5097_v51, 512  ;;  %v2436_v32 = vsel %vm2372_vm13, %v5108_v41, 512 }
 0x2fd   : > { %v2498_v56 = vsel %vm2497_vm10, %v2433_v1, %v2434_v61  ;;  %v2544_v29 = vshra.s32 %v5821_v15, 16 }
 0x2fe   : > { %vm2499_vm14 = vcmp.lt.s32.totalorder %v2498_v56, %v2435_v42  ;;  %v5834_v1 = vpop.xlane.xlu2 %2061 }
 0x2ff   : > { %v5827_v3 = vcvt.s32.f32 %v2544_v29  ;;  %v2500_v52 = vsel %vm2499_vm14, %v2498_v56, %v2435_v42  ;;  %8812 = vst [vmem:[#allocation78_spill] sm:$0xff] %v5834_v1  ;;  %vm2389_vm0 = vcmp.eq.f32.partialorder %v5557_v21, %v5834_v1  ;;  %vm2390_vm1 = vcmp.eq.f32.partialorder %v5559_v36, %v5834_v1 }
 0x300   : > { %vm2501_vm15 = vcmp.lt.s32.totalorder %v2500_v52, %v2436_v32  ;;  %v2453_v29 = vsel %vm2389_vm0, %v5089_v30, 512  ;;  %v2454_v56 = vsel %vm2390_vm1, %v5092_v20, 512  ;;  %vm2391_vm3 = vcmp.eq.f32.partialorder %v5565_v9, %v5834_v1 }
 0x301   : > { %2547 = vmin.xlane.f32.xlu0 %v5827_v3  ;;  %v5831_v59 = vsel %vm2501_vm15, %v2500_v52, %v2436_v32  ;;  %vm2597_vm2 = vcmp.lt.s32.totalorder %v2453_v29, %v2454_v56  ;;  %v2455_v52 = vsel %vm2391_vm3, %v5097_v51, 512  ;;  %vm2392_vm7 = vcmp.eq.f32.partialorder %v5575_v57, %v5834_v1 }
 0x302   : > { %v2504_v8 = vshra.s32 %v5831_v59, 16  ;;  %v5849_v42 = vpop.xlane.xlu0 %2051  ;;  %v2598_v32 = vsel %vm2597_vm2, %v2453_v29, %v2454_v56  ;;  %v2456_v56 = vsel %vm2392_vm7, %v5108_v41, 512 }
 0x303   : > { %8814 = vst [vmem:[#allocation80_spill] sm:$0xff] %v5849_v42  ;;  %vm2381_vm6 = vcmp.eq.f32.partialorder %v5571_v45, %v5849_v42  ;;  %vm2599_vm8 = vcmp.lt.s32.totalorder %v2598_v32, %v2455_v52  ;;  %vm2382_vm9 = vcmp.eq.f32.partialorder %v5573_v25, %v5849_v42  ;;  %vm2383_vm15 = vcmp.eq.f32.partialorder %v5581_v4, %v5849_v42 }
 0x304   : > { %v5836_v61 = vcvt.s32.f32 %v2504_v8  ;;  %v2445_v29 = vsel %vm2381_vm6, %v5089_v30, 512  ;;  %v2446_v45 = vsel %vm2382_vm9, %v5092_v20, 512  ;;  %vm2384_vm3 = vcmp.eq.f32.partialorder %v5584_v55, %v5849_v42 }
 0x305   : > { %vm2557_vm0 = vcmp.lt.s32.totalorder %v2445_v29, %v2446_v45 }
 0x306   : > { %2507 = vmin.xlane.f32.xlu1 %v5836_v61 }
 0x307   : > { %v5845_v38 = vpop.xlane.xlu1 %2041 }
 0x308   : > { %8813 = vst [vmem:[#allocation79_spill] sm:$0xff] %v5845_v38  ;;  %vm2373_vm4 = vcmp.eq.f32.partialorder %v5590_v48, %v5845_v38  ;;  %vm2374_vm5 = vcmp.eq.f32.partialorder %v5592_v34, %v5845_v38  ;;  %v2600_v48 = vsel %vm2599_vm8, %v2598_v32, %v2455_v52  ;;  %vm2375_vm10 = vcmp.eq.f32.partialorder %v5598_v50, %v5845_v38 }
 0x309   : > { %v2437_v8 = vsel %vm2373_vm4, %v5089_v30, 512  ;;  %v2438_v49 = vsel %vm2374_vm5, %v5092_v20, 512  ;;  %vm2601_vm11 = vcmp.lt.s32.totalorder %v2600_v48, %v2456_v56  ;;  %vm2376_vm12 = vcmp.eq.f32.partialorder %v5601_v2, %v5845_v38 }
 0x30a   : > { %vm2517_vm13 = vcmp.lt.s32.totalorder %v2437_v8, %v2438_v49  ;;  %v5871_v1 = vsel %vm2601_vm11, %v2600_v48, %v2456_v56  ;;  %v2439_v34 = vsel %vm2375_vm10, %v5097_v51, 512  ;;  %v2440_v52 = vsel %vm2376_vm12, %v5108_v41, 512 }
 0x30b   : > { %v2518_v25 = vsel %vm2517_vm13, %v2437_v8, %v2438_v49  ;;  %v2604_v32 = vshra.s32 %v5871_v1, 16  ;;  %v2558_v48 = vsel %vm2557_vm0, %v2445_v29, %v2446_v45  ;;  %v2447_v8 = vsel %vm2383_vm15, %v5097_v51, 512 }
 0x30c   : > { %vm2519_vm14 = vcmp.lt.s32.totalorder %v2518_v25, %v2439_v34  ;;  %vm2559_vm2 = vcmp.lt.s32.totalorder %v2558_v48, %v2447_v8 }
 0x30d   : > { %v2520_v50 = vsel %vm2519_vm14, %v2518_v25, %v2439_v34  ;;  %v5878_v57 = vcvt.s32.f32 %v2604_v32  ;;  %v2448_v34 = vsel %vm2384_vm3, %v5108_v41, 512  ;;  %v2560_v56 = vsel %vm2559_vm2, %v2558_v48, %v2447_v8  ;;  %v5890_v32 = vpop.xlane.xlu2 %2076 }
 0x30e   : > { %vm2521_vm1 = vcmp.lt.s32.totalorder %v2520_v50, %v2440_v52  ;;  %8815 = vst [vmem:[#allocation81_spill] sm:$0xff] %v5890_v32  ;;  %vm2561_vm4 = vcmp.lt.s32.totalorder %v2560_v56, %v2448_v34  ;;  %vm2401_vm5 = vcmp.eq.f32.partialorder %v5608_v17, %v5890_v32  ;;  %vm2402_vm6 = vcmp.eq.f32.partialorder %v5610_v44, %v5890_v32 }
 0x30f   : > { %v5880_v38 = vsel %vm2521_vm1, %v2520_v50, %v2440_v52  ;;  %2607 = vmin.xlane.f32.xlu0 %v5878_v57  ;;  %v5893_v45 = vsel %vm2561_vm4, %v2560_v56, %v2448_v34  ;;  %v2465_v52 = vsel %vm2401_vm5, %v5089_v30, 512  ;;  %v2466_v48 = vsel %vm2402_vm6, %v5092_v20, 512 }
 0x310   : > { %v2524_v49 = vshra.s32 %v5880_v38, 16  ;;  %v2564_v50 = vshra.s32 %v5893_v45, 16  ;;  %vm2403_vm7 = vcmp.eq.f32.partialorder %v5616_v43, %v5890_v32  ;;  %vm2657_vm10 = vcmp.lt.s32.totalorder %v2465_v52, %v2466_v48 }
 0x311   : > { %v2467_v34 = vsel %vm2403_vm7, %v5097_v51, 512  ;;  %v2658_v56 = vsel %vm2657_vm10, %v2465_v52, %v2466_v48  ;;  %vm2404_vm12 = vcmp.eq.f32.partialorder %v5622_v11, %v5890_v32 }
 0x312   : > { %v5887_v25 = vcvt.s32.f32 %v2524_v49  ;;  %v5900_v29 = vcvt.s32.f32 %v2564_v50  ;;  %v5904_v49 = vpop.xlane.xlu1 %2056  ;;  %vm2659_vm13 = vcmp.lt.s32.totalorder %v2658_v56, %v2467_v34  ;;  %v2468_v52 = vsel %vm2404_vm12, %v5108_v41, 512 }
 0x313   : > { %8816 = vst [vmem:[#allocation82_spill] sm:$0xff] %v5904_v49  ;;  %vm2385_vm8 = vcmp.eq.f32.partialorder %v5625_v40, %v5904_v49  ;;  %vm2386_vm9 = vcmp.eq.f32.partialorder %v5628_v28, %v5904_v49  ;;  %vm2387_vm15 = vcmp.eq.f32.partialorder %v5634_v13, %v5904_v49  ;;  %v2660_v48 = vsel %vm2659_vm13, %v2658_v56, %v2467_v34 }
 0x314   : > { %2527 = vmin.xlane.f32.xlu2 %v5887_v25  ;;  %2567 = vmin.xlane.f32.xlu1 %v5900_v29  ;;  %v2449_v50 = vsel %vm2385_vm8, %v5089_v30, 512  ;;  %v2450_v42 = vsel %vm2386_vm9, %v5092_v20, 512  ;;  %vm2661_vm0 = vcmp.lt.s32.totalorder %v2660_v48, %v2468_v52  ;;  %vm2388_vm1 = vcmp.eq.f32.partialorder %v5645_v24, %v5904_v49 }
 0x315   : > { %v5909_v8 = vpop.xlane.xlu0 %2066  ;;  %vm2577_vm3 = vcmp.lt.s32.totalorder %v2449_v50, %v2450_v42  ;;  %v5931_v32 = vsel %vm2661_vm0, %v2660_v48, %v2468_v52  ;;  %v2451_v40 = vsel %vm2387_vm15, %v5097_v51, 512  ;;  %v2452_v34 = vsel %vm2388_vm1, %v5108_v41, 512 }
 0x316   : > { %8817 = vst [vmem:[#allocation83_spill] sm:$0xff] %v5909_v8  ;;  %vm2393_vm11 = vcmp.eq.f32.partialorder %v5641_v54, %v5909_v8  ;;  %vm2394_vm14 = vcmp.eq.f32.partialorder %v5643_v6, %v5909_v8  ;;  %v2578_v6 = vsel %vm2577_vm3, %v2449_v50, %v2450_v42  ;;  %v2664_v11 = vshra.s32 %v5931_v32, 16 }
 0x317   : > { %v2457_v28 = vsel %vm2393_vm11, %v5089_v30, 512  ;;  %v2458_v54 = vsel %vm2394_vm14, %v5092_v20, 512  ;;  %vm2579_vm2 = vcmp.lt.s32.totalorder %v2578_v6, %v2451_v40  ;;  %vm2395_vm4 = vcmp.eq.f32.partialorder %v5651_v5, %v5909_v8 }
 0x318   : > { %v2580_v56 = vsel %vm2579_vm2, %v2578_v6, %v2451_v40  ;;  %vm2617_vm5 = vcmp.lt.s32.totalorder %v2457_v28, %v2458_v54  ;;  %v5938_v13 = vcvt.s32.f32 %v2664_v11  ;;  %vm2396_vm7 = vcmp.eq.f32.partialorder %v5655_v10, %v5909_v8  ;;  %v8835_v10 = vld [vmem:[#allocation65_spill] sm:$0xff] }
 0x319   : > { %vm2581_vm6 = vcmp.lt.s32.totalorder %v2580_v56, %v2452_v34  ;;  %v2618_v52 = vsel %vm2617_vm5, %v2457_v28, %v2458_v54  ;;  %v2459_v42 = vsel %vm2395_vm4, %v5097_v51, 512  ;;  %v2460_v49 = vsel %vm2396_vm7, %v5108_v41, 512 }
 0x31a   : > { %v5942_v48 = vsel %vm2581_vm6, %v2580_v56, %v2452_v34  ;;  %2667 = vmin.xlane.f32.xlu0 %v5938_v13  ;;  %vm2619_vm8 = vcmp.lt.s32.totalorder %v2618_v52, %v2459_v42 }
 0x31b   : > { %v2584_v50 = vshra.s32 %v5942_v48, 16  ;;  %v2620_v40 = vsel %vm2619_vm8, %v2618_v52, %v2459_v42 }
 0x31c   : > { %vm2621_vm9 = vcmp.lt.s32.totalorder %v2620_v40, %v2460_v49  ;;  %v5954_v54 = vpop.xlane.xlu2 %2091 }
 0x31d   : > { %v5948_v6 = vcvt.s32.f32 %v2584_v50  ;;  %v5950_v11 = vsel %vm2621_vm9, %v2620_v40, %v2460_v49  ;;  %8818 = vst [vmem:[#allocation84_spill] sm:$0xff] %v5954_v54  ;;  %vm2413_vm10 = vcmp.eq.f32.partialorder %v5662_v12, %v5954_v54  ;;  %vm2414_vm11 = vcmp.eq.f32.partialorder %v5664_v39, %v5954_v54 }
 0x31e   : > { %v2624_v28 = vshra.s32 %v5950_v11, 16  ;;  %v5956_v34 = vpop.xlane.xlu1 %2071  ;;  %v2477_v49 = vsel %vm2413_vm10, %v5089_v30, 512  ;;  %v2478_v52 = vsel %vm2414_vm11, %v5092_v20, 512  ;;  %vm2415_vm14 = vcmp.eq.f32.partialorder %v5670_v26, %v5954_v54 }
 0x31f   : > { %2587 = vmin.xlane.f32.xlu2 %v5948_v6  ;;  %8819 = vst [vmem:[#allocation85_spill] sm:$0xff] %v5956_v34  ;;  %vm2397_vm12 = vcmp.eq.f32.partialorder %v5678_v18, %v5956_v34  ;;  %vm2398_vm13 = vcmp.eq.f32.partialorder %v5680_v19, %v5956_v34  ;;  %vm2416_vm15 = vcmp.eq.f32.partialorder %v5676_v7, %v5954_v54  ;;  %v8821_v19 = vld [vmem:[#allocation51_spill] sm:$0xff] }
 0x320   : > { %v5958_v56 = vcvt.s32.f32 %v2624_v28  ;;  %v2461_v42 = vsel %vm2397_vm12, %v5089_v30, 512  ;;  %v2462_v50 = vsel %vm2398_vm13, %v5092_v20, 512  ;;  %vm2717_vm0 = vcmp.lt.s32.totalorder %v2477_v49, %v2478_v52 }
 0x321   : > { %vm2399_vm1 = vcmp.eq.f32.partialorder %v5686_v33, %v5956_v34  ;;  %vm2637_vm3 = vcmp.lt.s32.totalorder %v2461_v42, %v2462_v50  ;;  %v2479_v28 = vsel %vm2415_vm14, %v5097_v51, 512  ;;  %v2718_v8 = vsel %vm2717_vm0, %v2477_v49, %v2478_v52 }
 0x322   : > { %2627 = vmin.xlane.f32.xlu1 %v5958_v56  ;;  %vm2400_vm4 = vcmp.eq.f32.partialorder %v8821_v19, %v5956_v34  ;;  %vm2719_vm6 = vcmp.lt.s32.totalorder %v2718_v8, %v2479_v28  ;;  %v2463_v54 = vsel %vm2399_vm1, %v5097_v51, 512  ;;  %v2638_v7 = vsel %vm2637_vm3, %v2461_v42, %v2462_v50  ;;  %v8822_v42 = vld [vmem:[#allocation54_spill] sm:$0xff] }
 0x323   : > { %v2480_v18 = vsel %vm2416_vm15, %v5108_v41, 512  ;;  %v2720_v33 = vsel %vm2719_vm6, %v2718_v8, %v2479_v28  ;;  %vm2639_vm7 = vcmp.lt.s32.totalorder %v2638_v7, %v2463_v54 }
 0x324   : > { %v5973_v40 = vpop.xlane.xlu0 %2081  ;;  %vm2721_vm8 = vcmp.lt.s32.totalorder %v2720_v33, %v2480_v18  ;;  %v2640_v26 = vsel %vm2639_vm7, %v2638_v7, %v2463_v54  ;;  %v8824_v7 = vld [vmem:[#allocation55_spill] sm:$0xff] }
 0x325   : > { %8820 = vst [vmem:[#allocation86_spill] sm:$0xff] %v5973_v40  ;;  %vm2405_vm2 = vcmp.eq.f32.partialorder %v5697_v14, %v5973_v40  ;;  %vm2406_vm5 = vcmp.eq.f32.partialorder %v5699_v27, %v5973_v40  ;;  %v2464_v14 = vsel %vm2400_vm4, %v5108_v41, 512  ;;  %v5993_v34 = vsel %vm2721_vm8, %v2720_v33, %v2480_v18 }
 0x326   : > { %v2469_v49 = vsel %vm2405_vm2, %v5089_v30, 512  ;;  %v2470_v52 = vsel %vm2406_vm5, %v5092_v20, 512  ;;  %vm2641_vm9 = vcmp.lt.s32.totalorder %v2640_v26, %v2464_v14  ;;  %v2724_v19 = vshra.s32 %v5993_v34, 16 }
 0x327   : > { %v5996_v27 = vsel %vm2641_vm9, %v2640_v26, %v2464_v14  ;;  %vm2407_vm10 = vcmp.eq.f32.partialorder %v8822_v42, %v5973_v40  ;;  %vm2408_vm11 = vcmp.eq.f32.partialorder %v8824_v7, %v5973_v40  ;;  %vm2677_vm12 = vcmp.lt.s32.totalorder %v2469_v49, %v2470_v52  ;;  %v8826_v42 = vld [vmem:[#allocation56_spill] sm:$0xff] }
 0x328   : > { %v2644_v8 = vshra.s32 %v5996_v27, 16  ;;  %v6003_v28 = vcvt.s32.f32 %v2724_v19  ;;  %v2471_v33 = vsel %vm2407_vm10, %v5097_v51, 512  ;;  %v2678_v54 = vsel %vm2677_vm12, %v2469_v49, %v2470_v52 }
 0x329   : > { %vm2679_vm13 = vcmp.lt.s32.totalorder %v2678_v54, %v2471_v33  ;;  %v2472_v14 = vsel %vm2408_vm11, %v5108_v41, 512 }
 0x32a   : > { %v6007_v18 = vcvt.s32.f32 %v2644_v8  ;;  %2727 = vmin.xlane.f32.xlu0 %v6003_v28  ;;  %v2680_v19 = vsel %vm2679_vm13, %v2678_v54, %v2471_v33  ;;  %v8827_v8 = vld [vmem:[#allocation57_spill] sm:$0xff] }
 0x32b   : > { %v6010_v26 = vpop.xlane.xlu2 %2106  ;;  %vm2681_vm14 = vcmp.lt.s32.totalorder %v2680_v19, %v2472_v14 }
 0x32c   : > { %8825 = vst [vmem:[#allocation88_spill] sm:$0xff] %v6010_v26  ;;  %2647 = vmin.xlane.f32.xlu2 %v6007_v18  ;;  %vm2425_vm15 = vcmp.eq.f32.partialorder %v8826_v42, %v6010_v26  ;;  %vm2426_vm0 = vcmp.eq.f32.partialorder %v8827_v8, %v6010_v26  ;;  %v6019_v40 = vsel %vm2681_vm14, %v2680_v19, %v2472_v14  ;;  %v8829_v8 = vld [vmem:[#allocation63_spill] sm:$0xff]  ;;  %v8830_v14 = vld [vmem:[#allocation64_spill] sm:$0xff]  ;;  %v8831_v19 = vld [vmem:[#allocation58_spill] sm:$0xff] }
 0x32d   : > { %v2684_v52 = vshra.s32 %v6019_v40, 16  ;;  %v2489_v33 = vsel %vm2425_vm15, %v5089_v30, 512  ;;  %v2490_v54 = vsel %vm2426_vm0, %v5092_v20, 512  ;;  %vm2427_vm5 = vcmp.eq.f32.partialorder %v8831_v19, %v6010_v26 }
 0x32e   : > { %vm2777_vm7 = vcmp.lt.s32.totalorder %v2489_v33, %v2490_v54  ;;  %v2491_v19 = vsel %vm2427_vm5, %v5097_v51, 512 }
 0x32f   : > { %v6030_v42 = vcvt.s32.f32 %v2684_v52  ;;  %v8833_v52 = vld [vmem:[#allocation59_spill] sm:$0xff]  ;;  %v2778_v12 = vsel %vm2777_vm7, %v2489_v33, %v2490_v54 }
 0x330   : > { %vm2428_vm6 = vcmp.eq.f32.partialorder %v8833_v52, %v6010_v26  ;;  %vm2779_vm10 = vcmp.lt.s32.totalorder %v2778_v12, %v2491_v19 }
 0x331   : > { %2687 = vmin.xlane.f32.xlu1 %v6030_v42  ;;  %v2492_v26 = vsel %vm2428_vm6, %v5108_v41, 512  ;;  %v2780_v52 = vsel %vm2779_vm10, %v2778_v12, %v2491_v19 }
 0x332   : > { %vm2781_vm14 = vcmp.lt.s32.totalorder %v2780_v52, %v2492_v26 }
 0x337   : > { %v6001_v50 = vpop.xlane.xlu1 %2086 }
 0x338   : > { %8823 = vst [vmem:[#allocation87_spill] sm:$0xff] %v6001_v50  ;;  %vm2409_vm1 = vcmp.eq.f32.partialorder %v5730_v35, %v6001_v50  ;;  %vm2410_vm3 = vcmp.eq.f32.partialorder %v5732_v31, %v6001_v50  ;;  %vm2412_vm11 = vcmp.eq.f32.partialorder %v8835_v10, %v6001_v50 }
 0x339   : > { %v2473_v35 = vsel %vm2409_vm1, %v5089_v30, 512  ;;  %v2474_v7 = vsel %vm2410_vm3, %v5092_v20, 512 }
 0x33a   : > { %vm2697_vm12 = vcmp.lt.s32.totalorder %v2473_v35, %v2474_v7 }
 0x33b   : > { %v2698_v24 = vsel %vm2697_vm12, %v2473_v35, %v2474_v7  ;;  %v8836_v35 = vld [vmem:[#allocation69_spill] sm:$0xff] }
 0x33c   : > { %v6021_v49 = vpop.xlane.xlu0 %2096 }
 0x33d   : > { %8828 = vst [vmem:[#allocation89_spill] sm:$0xff] %v6021_v49  ;;  %vm2417_vm2 = vcmp.eq.f32.partialorder %v8829_v8, %v6021_v49  ;;  %vm2418_vm4 = vcmp.eq.f32.partialorder %v8830_v14, %v6021_v49  ;;  %v8834_v8 = vld [vmem:[#allocation62_spill] sm:$0xff]  ;;  %vm2419_vm0 = vcmp.eq.f32.partialorder %v5757_v0, %v6021_v49  ;;  %vm2420_vm3 = vcmp.eq.f32.partialorder %v8836_v35, %v6021_v49 }
 0x33e   : > { %vm2411_vm8 = vcmp.eq.f32.partialorder %v8834_v8, %v6001_v50  ;;  %v2481_v14 = vsel %vm2417_vm2, %v5089_v30, 512  ;;  %v2482_v39 = vsel %vm2418_vm4, %v5092_v20, 512  ;;  %v2476_v50 = vsel %vm2412_vm11, %v5108_v41, 512  ;;  %v8837_v49 = vld [vmem:[#allocation70_spill] sm:$0xff] }
 0x33f   : > { %v6041_v31 = vpop.xlane.xlu1 %2101  ;;  %v2475_v8 = vsel %vm2411_vm8, %v5097_v51, 512  ;;  %vm2737_vm2 = vcmp.lt.s32.totalorder %v2481_v14, %v2482_v39 }
 0x340   : > { %8832 = vst [vmem:[#allocation90_spill] sm:$0xff] %v6041_v31  ;;  %vm2421_vm9 = vcmp.eq.f32.partialorder %v5763_v22, %v6041_v31  ;;  %vm2422_vm13 = vcmp.eq.f32.partialorder %v5765_v60, %v6041_v31  ;;  %vm2699_vm15 = vcmp.lt.s32.totalorder %v2698_v24, %v2475_v8  ;;  %v6061_v22 = vsel %vm2781_vm14, %v2780_v52, %v2492_v26 }
 0x341   : > { %v2485_v33 = vsel %vm2421_vm9, %v5089_v30, 512  ;;  %v2700_v10 = vsel %vm2699_vm15, %v2698_v24, %v2475_v8  ;;  %v2784_v12 = vshra.s32 %v6061_v22, 16  ;;  %v2486_v7 = vsel %vm2422_vm13, %v5092_v20, 512 }
 0x342   : > { %vm2701_vm1 = vcmp.lt.s32.totalorder %v2700_v10, %v2476_v50  ;;  %v2483_v60 = vsel %vm2419_vm0, %v5097_v51, 512  ;;  %v2738_v0 = vsel %vm2737_vm2, %v2481_v14, %v2482_v39  ;;  %v2484_v8 = vsel %vm2420_vm3, %v5108_v41, 512 }
 0x343   : > { %v6068_v19 = vsel %vm2701_vm1, %v2700_v10, %v2476_v50  ;;  %v6072_v26 = vcvt.s32.f32 %v2784_v12  ;;  %vm2739_vm5 = vcmp.lt.s32.totalorder %v2738_v0, %v2483_v60  ;;  %vm2423_vm7 = vcmp.eq.f32.partialorder %v8837_v49, %v6041_v31 }
 0x344   : > { %v2112_v54 = vpop.xlane.xlu0 %2111  ;;  %v2704_v24 = vshra.s32 %v6068_v19, 16  ;;  %v2740_v52 = vsel %vm2739_vm5, %v2738_v0, %v2483_v60  ;;  %vm2424_vm9 = vcmp.eq.f32.partialorder %v5785_v53, %v6041_v31  ;;  %vm2757_vm10 = vcmp.lt.s32.totalorder %v2485_v33, %v2486_v7 }
 0x345   : > { %vm2429_vm4 = vcmp.eq.f32.partialorder %v5781_v16, %v2112_v54  ;;  %vm2430_vm6 = vcmp.eq.f32.partialorder %v5783_v37, %v2112_v54  ;;  %2787 = vmin.xlane.f32.xlu0 %v6072_v26  ;;  %vm2741_vm8 = vcmp.lt.s32.totalorder %v2740_v52, %v2484_v8  ;;  %v2487_v0 = vsel %vm2423_vm7, %v5097_v51, 512 }
 0x346   : > { %v6080_v10 = vcvt.s32.f32 %v2704_v24  ;;  %v2493_v39 = vsel %vm2429_vm4, %v5089_v30, 512  ;;  %v6083_v50 = vsel %vm2741_vm8, %v2740_v52, %v2484_v8  ;;  %v2494_v14 = vsel %vm2430_vm6, %v5092_v20, 512 }
 0x347   : > { %v2744_v60 = vshra.s32 %v6083_v50, 16  ;;  %v2758_v12 = vsel %vm2757_vm10, %v2485_v33, %v2486_v7  ;;  %vm2431_vm12 = vcmp.eq.f32.partialorder %v5791_v47, %v2112_v54  ;;  %v2488_v8 = vsel %vm2424_vm9, %v5108_v41, 512  ;;  %v8838_v47 = vld [vmem:[#allocation12_spill] sm:$0xff] }
 0x348   : > { %2707 = vmin.xlane.f32.xlu2 %v6080_v10  ;;  %vm2759_vm11 = vcmp.lt.s32.totalorder %v2758_v12, %v2487_v0  ;;  %vm2432_vm14 = vcmp.eq.f32.partialorder %v5794_v62, %v2112_v54  ;;  %vm2797_vm15 = vcmp.lt.s32.totalorder %v2493_v39, %v2494_v14  ;;  %v2495_v53 = vsel %vm2431_vm12, %v5097_v51, 512 }
 0x349   : > { %v6092_v24 = vcvt.s32.f32 %v2744_v60  ;;  %v2760_v52 = vsel %vm2759_vm11, %v2758_v12, %v2487_v0  ;;  %v2798_v49 = vsel %vm2797_vm15, %v2493_v39, %v2494_v14  ;;  %v2496_v7 = vsel %vm2432_vm14, %v5108_v41, 512 }
 0x34a   : > { %vm2761_vm13 = vcmp.lt.s32.totalorder %v2760_v52, %v2488_v8  ;;  %vm2799_vm0 = vcmp.lt.s32.totalorder %v2798_v49, %v2495_v53  ;;  %v1216_v37 = vmax.f32 %v8838_v47, 0.0  ;;  %v2128_v12 = vmax.f32 %v2112_v54, 0.0 }
 0x34b   : > { %2747 = vmin.xlane.f32.xlu1 %v6092_v24  ;;  %v6097_v31 = vsel %vm2761_vm13, %v2760_v52, %v2488_v8  ;;  %v2800_v60 = vsel %vm2799_vm0, %v2798_v49, %v2495_v53  ;;  %v2543_v53 = vand.u32 65535, %v5821_v15  ;;  %v2503_v54 = vand.u32 65535, %v5831_v59 }
 0x34c   : > { %v2764_v33 = vshra.s32 %v6097_v31, 16  ;;  %vm2801_vm1 = vcmp.lt.s32.totalorder %v2800_v60, %v2496_v7  ;;  %4367 = vrsqrt.f32 %v1216_v37  ;;  %vm1404_vm4 = vcmp.eq.f32.partialorder %v1216_v37, inf }
 0x34d   : > { %v6105_v62 = vsel %vm2801_vm1, %v2800_v60, %v2496_v7  ;;  %4369 = vrsqrt.f32 %v2128_v12  ;;  %v2545_v52 = vcvt.s32.f32 %v2543_v53  ;;  %v2505_v16 = vcvt.s32.f32 %v2503_v54 }
 0x34e   : > { %v6103_v0 = vcvt.s32.f32 %v2764_v33  ;;  %v2804_v8 = vshra.s32 %v6105_v62, 16  ;;  %vm2316_vm5 = vcmp.eq.f32.partialorder %v2128_v12, inf  ;;  %vm1406_vm7 = vcmp.eq.f32.partialorder %v1216_v37, 0.0 }
 0x34f   : > { %vm2318_vm8 = vcmp.eq.f32.partialorder %v2128_v12, 0.0 }
 0x350   : > { %2767 = vmin.xlane.f32.xlu2 %v6103_v0  ;;  %v6109_v39 = vcvt.s32.f32 %v2804_v8 }
 0x352   : > { %v4368_v49 = vpop.eup %4367 }
 0x353   : > { %2807 = vmin.xlane.f32.xlu1 %v6109_v39  ;;  %v4370_v47 = vpop.eup %4369  ;;  %v1398_v7 = vmul.f32 %v4368_v49, %v1216_v37 }
 0x354   : > { %v2310_v60 = vmul.f32 %v4370_v47, %v2128_v12 }
 0x355   : > { %v1399_v35 = vmul.f32 %v4368_v49, %v1398_v7 }
 0x356   : > { %v2311_v5 = vmul.f32 %v4370_v47, %v2310_v60 }
 0x357   : > { %v1400_v53 = vmul.f32 0.5, %v1399_v35  ;;  %v2319_v35 = vand.u32 2147483648, %v2128_v12 }
 0x358   : > { %v2312_v43 = vmul.f32 0.5, %v2311_v5 }
 0x359   : > { %v1401_v44 = vsub.f32 1.5, %v1400_v53 }
 0x35b   : > { %v1402_v17 = vmul.f32 %v4368_v49, %v1401_v44 }
 0x374   : > { %v6113_v14 = vpop.xlane.xlu0 %2547 }
 0x375   : > { %vm2549_vm3 = vcmp.eq.f32.partialorder %v5827_v3, %v6113_v14  ;;  %v2313_v3 = vsub.f32 1.5, %v2312_v43 }
 0x376   : > { %v2550_v33 = vsel %vm2549_vm3, %v2545_v52, inf  ;;  %v1403_v52 = vmul.f32 %v1402_v17, %v1216_v37 }
 0x377   : > { %2551 = vmin.xlane.f32.xlu1 %v2550_v33  ;;  %v2314_v59 = vmul.f32 %v4370_v47, %v2313_v3  ;;  %v2603_v33 = vand.u32 65535, %v5871_v1  ;;  %v2563_v47 = vand.u32 65535, %v5893_v45 }
 0x378   : > { %v1405_v54 = vsel %vm1404_vm4, %v1216_v37, %v1403_v52 }
 0x379   : > { %v6118_v8 = vpop.xlane.xlu1 %2507  ;;  %v2315_v55 = vmul.f32 %v2314_v59, %v2128_v12 }
 0x37a   : > { %vm2509_vm2 = vcmp.eq.f32.partialorder %v5836_v61, %v6118_v8  ;;  %v2523_v61 = vand.u32 65535, %v5880_v38 }
 0x37b   : > { %v2510_v15 = vsel %vm2509_vm2, %v2505_v16, inf  ;;  %v2317_v7 = vsel %vm2316_vm5, %v2128_v12, %v2315_v55  ;;  %v2605_v16 = vcvt.s32.f32 %v2603_v33  ;;  %v2583_v33 = vand.u32 65535, %v5942_v48 }
 0x37c   : > { %2511 = vmin.xlane.f32.xlu2 %v2510_v15  ;;  %v1407_v15 = vand.u32 2147483648, %v1216_v37  ;;  %v2320_v43 = vsel %vm2318_vm8, %v2319_v35, %v2317_v7  ;;  %v2525_v1 = vcvt.s32.f32 %v2523_v61  ;;  %v2643_v35 = vand.u32 65535, %v5996_v27 }
 0x37d   : > { %v2336_v38 = vsub.f32 2.0, %v2320_v43  ;;  %v2585_v61 = vcvt.s32.f32 %v2583_v33 }
 0x37e   : > { %v1408_v44 = vsel %vm1406_vm7, %v1407_v15, %v1405_v54 }
 0x37f   : > { %v1424_v55 = vsub.f32 2.0, %v1408_v44  ;;  %v2352_v12 = vmax.f32 %v2336_v38, 0.0  ;;  %v2783_v38 = vand.u32 65535, %v6061_v22 }
 0x381   : > { %v1440_v37 = vmax.f32 %v1424_v55, 0.0 }
 0x382   : > { %v6123_v60 = vpop.xlane.xlu0 %2607 }
 0x383   : > { %vm2609_vm6 = vcmp.eq.f32.partialorder %v5878_v57, %v6123_v60  ;;  %v2565_v57 = vcvt.s32.f32 %v2563_v47  ;;  %v6137_v59 = vadd.f32 %v2352_v12, %v1440_v37 }
 0x384   : > { %v2610_v17 = vsel %vm2609_vm6, %v2605_v16, inf }
 0x385   : > { %2611 = vmin.xlane.f32.xlu1 %v2610_v17  ;;  %8839 = vst [vmem:[#allocation12_spill] sm:$0xff] %v6137_v59 }
 0x387   : > { %v6128_v5 = vpop.xlane.xlu2 %2527  ;;  %v6133_v53 = vpop.xlane.xlu1 %2567 }
 0x388   : > { %vm2529_vm9 = vcmp.eq.f32.partialorder %v5887_v25, %v6128_v5  ;;  %vm2569_vm10 = vcmp.eq.f32.partialorder %v5900_v29, %v6133_v53  ;;  %v2663_v25 = vand.u32 65535, %v5931_v32  ;;  %v2623_v29 = vand.u32 65535, %v5950_v11 }
 0x389   : > { %v2530_v49 = vsel %vm2529_vm9, %v2525_v1, inf  ;;  %v2570_v3 = vsel %vm2569_vm10, %v2565_v57, inf  ;;  %v2743_v57 = vand.u32 65535, %v6083_v50 }
 0x38a   : > { %2531 = vmin.xlane.f32.xlu0 %v2530_v49  ;;  %2571 = vmin.xlane.f32.xlu2 %v2570_v3  ;;  %v2665_v45 = vcvt.s32.f32 %v2663_v25  ;;  %v2625_v15 = vcvt.s32.f32 %v2623_v29  ;;  %v2803_v25 = vand.u32 65535, %v6105_v62  ;;  %v2554_v62 = vcvt.f32.s32 %v6113_v14 }
 0x38d   : > { %v6140_v52 = vpop.xlane.xlu0 %2667 }
 0x38e   : > { %vm2669_vm11 = vcmp.eq.f32.partialorder %v5938_v13, %v6140_v52  ;;  %v2723_v13 = vand.u32 65535, %v5993_v34  ;;  %v2683_v34 = vand.u32 65535, %v6019_v40 }
 0x38f   : > { %v2670_v54 = vsel %vm2669_vm11, %v2665_v45, inf  ;;  %v2805_v45 = vcvt.s32.f32 %v2803_v25 }
 0x390   : > { %2671 = vmin.xlane.f32.xlu1 %v2670_v54  ;;  %v2725_v11 = vcvt.s32.f32 %v2723_v13  ;;  %v2685_v27 = vcvt.s32.f32 %v2683_v34 }
 0x392   : > { %v6145_v7 = vpop.xlane.xlu2 %2587 }
 0x393   : > { %vm2589_vm12 = vcmp.eq.f32.partialorder %v5948_v6, %v6145_v7  ;;  %v2645_v6 = vcvt.s32.f32 %v2643_v35 }
 0x394   : > { %v2590_v16 = vsel %vm2589_vm12, %v2585_v61, inf  ;;  %v8841_v61 = vld [vmem:[#allocation19_spill] sm:$0xff] }
 0x395   : > { %2591 = vmin.xlane.f32.xlu0 %v2590_v16  ;;  %v6150_v32 = vpop.xlane.xlu1 %2627  ;;  %v6198_v29 = vmax.f32 %v8841_v61, 0.0 }
 0x396   : > { %vm2629_vm13 = vcmp.eq.f32.partialorder %v5958_v56, %v6150_v32 }
 0x397   : > { %v2630_v48 = vsel %vm2629_vm13, %v2625_v15, inf  ;;  %v2555_v15 = vshll.u32 %v2554_v62, 16 }
 0x398   : > { %2631 = vmin.xlane.f32.xlu2 %v2630_v48  ;;  %v2514_v48 = vcvt.f32.s32 %v6118_v8  ;;  %v8844_v8 = vld [vmem:[#allocation11_spill] sm:$0xff] }
 0x39d   : > { %v6156_v17 = vpop.xlane.xlu0 %2727 }
 0x39e   : > { %vm2729_vm14 = vcmp.eq.f32.partialorder %v6003_v28, %v6156_v17  ;;  %v2703_v28 = vand.u32 65535, %v6068_v19  ;;  %v2745_v19 = vcvt.s32.f32 %v2743_v57  ;;  %v8848_v57 = vld [vmem:[#allocation14_spill] sm:$0xff] }
 0x39f   : > { %v6158_v44 = vpop.xlane.xlu2 %2647  ;;  %v2730_v43 = vsel %vm2729_vm14, %v2725_v11, inf }
 0x3a0   : > { %vm2649_vm15 = vcmp.eq.f32.partialorder %v6007_v18, %v6158_v44  ;;  %2731 = vmin.xlane.f32.xlu1 %v2730_v43  ;;  %v2785_v18 = vcvt.s32.f32 %v2783_v38  ;;  %v2705_v40 = vcvt.s32.f32 %v2703_v28 }
 0x3a1   : > { %v2650_v56 = vsel %vm2649_vm15, %v2645_v6, inf  ;;  %v2515_v6 = vshll.u32 %v2514_v48, 16 }
 0x3a2   : > { %2651 = vmin.xlane.f32.xlu0 %v2650_v56  ;;  %v8842_v56 = vld [vmem:[#allocation21_spill] sm:$0xff] }
 0x3a3   : > { %v6205_v34 = vmax.f32 %v8842_v56, 0.0 }
 0x3a4   : > { %v6165_v1 = vpop.xlane.xlu1 %2687 }
 0x3a5   : > { %vm2689_vm0 = vcmp.eq.f32.partialorder %v6030_v42, %v6165_v1 }
 0x3a6   : > { %v2690_v55 = vsel %vm2689_vm0, %v2685_v27, inf }
 0x3a7   : > { %2691 = vmin.xlane.f32.xlu2 %v2690_v55 }
 0x3b8   : > { %v6171_v49 = vpop.xlane.xlu0 %2787 }
 0x3b9   : > { %vm2789_vm1 = vcmp.eq.f32.partialorder %v6072_v26, %v6171_v49  ;;  %v2763_v26 = vand.u32 65535, %v6097_v31  ;;  %v8840_v31 = vld [vmem:[#allocation20_spill] sm:$0xff] }
 0x3ba   : > { %v2790_v37 = vsel %vm2789_vm1, %v2785_v18, inf  ;;  %v6195_v54 = vmax.f32 %v8840_v31, 0.0 }
 0x3bb   : > { %v6175_v47 = vpop.xlane.xlu2 %2707  ;;  %2791 = vmin.xlane.f32.xlu1 %v2790_v37  ;;  %v2765_v50 = vcvt.s32.f32 %v2763_v26  ;;  %v8852_v26 = vld [vmem:[#allocation22_spill] sm:$0xff] }
 0x3bc   : > { %vm2709_vm3 = vcmp.eq.f32.partialorder %v6080_v10, %v6175_v47  ;;  %4371 = vrsqrt.f32 %v6195_v54 }
 0x3bd   : > { %v2710_v42 = vsel %vm2709_vm3, %v2705_v40, inf  ;;  %4373 = vrsqrt.f32 %v6198_v29 }
 0x3be   : > { %2711 = vmin.xlane.f32.xlu0 %v2710_v42  ;;  %v6180_v22 = vpop.xlane.xlu1 %2747  ;;  %4375 = vrsqrt.f32 %v6205_v34  ;;  %v8850_v42 = vld [vmem:[#allocation13_spill] sm:$0xff] }
 0x3bf   : > { %vm2749_vm2 = vcmp.eq.f32.partialorder %v6092_v24, %v6180_v22 }
 0x3c0   : > { %v2750_v12 = vsel %vm2749_vm2, %v2745_v19, inf }
 0x3c1   : > { %2751 = vmin.xlane.f32.xlu2 %v2750_v12  ;;  %v6235_v12 = vmax.f32 %v8852_v26, 0.0 }
 0x3c2   : > { %v4372_v13 = vpop.eup %4371 }
 0x3c3   : > { %v6185_v3 = vpop.xlane.xlu2 %2767  ;;  %v4374_v11 = vpop.eup %4373  ;;  %v1266_v38 = vmul.f32 %v4372_v13, %v6195_v54  ;;  %4377 = vrsqrt.f32 %v6235_v12 }
 0x3c4   : > { %vm2769_vm4 = vcmp.eq.f32.partialorder %v6103_v0, %v6185_v3  ;;  %v1242_v28 = vmul.f32 %v4374_v11, %v6198_v29 }
 0x3c5   : > { %v2770_v10 = vsel %vm2769_vm4, %v2765_v50, inf }
 0x3c6   : > { %2771 = vmin.xlane.f32.xlu0 %v2770_v10  ;;  %v6190_v33 = vpop.xlane.xlu1 %2807  ;;  %v1267_v10 = vmul.f32 %v4372_v13, %v1266_v38 }
 0x3c7   : > { %vm2809_vm5 = vcmp.eq.f32.partialorder %v6109_v39, %v6190_v33 }
 0x3c8   : > { %v2810_v24 = vsel %vm2809_vm5, %v2805_v45, inf  ;;  %v1243_v45 = vmul.f32 %v4374_v11, %v1242_v28  ;;  %v2614_v28 = vcvt.f32.s32 %v6123_v60  ;;  %vm1272_vm5 = vcmp.eq.f32.partialorder %v6195_v54, inf }
 0x3c9   : > { %2811 = vmin.xlane.f32.xlu2 %v2810_v24 }
 0x3ca   : > { %v2615_v60 = vshll.u32 %v2614_v28, 16 }
 0x3ea   : > { %v2552_v0 = vpop.xlane.xlu1 %2551 }
 0x3eb   : > { %v2553_v16 = vcvt.f32.s32 %v2552_v0 }
 0x3ed   : > { %v2556_v39 = vadd.s32 %v2555_v15, %v2553_v16  ;;  %v8856_v16 = vld [vmem:[#allocation23_spill] sm:$0xff] }
 0x3ee   : > { %v6254_v15 = vmax.f32 %v8856_v16, 0.0 }
 0x3ef   : > { %v2512_v35 = vpop.xlane.xlu2 %2511  ;;  %vm2825_vm6 = vcmp.eq.s32.totalorder %v5089_v30, %v2556_v39  ;;  %vm2826_vm7 = vcmp.eq.s32.totalorder %v5092_v20, %v2556_v39  ;;  %vm2827_vm8 = vcmp.eq.s32.totalorder %v5097_v51, %v2556_v39  ;;  %vm2828_vm12 = vcmp.eq.s32.totalorder %v5108_v41, %v2556_v39 }
 0x3f0   : > { %v2513_v43 = vcvt.f32.s32 %v2512_v35  ;;  %v6211_v27 = vsel %vm2825_vm6, inf, %v5523_v46  ;;  %v6214_v55 = vsel %vm2826_vm7, inf, %v8844_v8  ;;  %v8846_v46 = vld [vmem:[#allocation15_spill] sm:$0xff]  ;;  %v6232_v19 = vsel %vm2827_vm8, inf, %v8850_v42  ;;  %v8857_v35 = vld [vmem:[#allocation24_spill] sm:$0xff] }
 0x3f1   : > { %8843 = vst [vmem:[#allocation20_spill] sm:$0xff] %v6211_v27  ;;  %v2955_v18 = vmin.f32 %v6211_v27, %v6214_v55  ;;  %v6245_v31 = vsel %vm2828_vm12, inf, %v5533_v23  ;;  %v1268_v39 = vmul.f32 0.5, %v1267_v10  ;;  %v1244_v23 = vmul.f32 0.5, %v1243_v45 }
 0x3f2   : > { %v2516_v14 = vadd.s32 %v2515_v6, %v2513_v43  ;;  %8845 = vst [vmem:[#allocation19_spill] sm:$0xff] %v6214_v55  ;;  %v6260_v6 = vmax.f32 %v8857_v35, 0.0  ;;  %4379 = vrsqrt.f32 %v6254_v15  ;;  %v2534_v10 = vcvt.f32.s32 %v6128_v5 }
 0x3f3   : > { %8851 = vst [vmem:[#allocation15_spill] sm:$0xff] %v6232_v19  ;;  %v2956_v25 = vmin.f32 %v2955_v18, %v6232_v19  ;;  %v1269_v43 = vsub.f32 1.5, %v1268_v39  ;;  %v1245_v56 = vsub.f32 1.5, %v1244_v23  ;;  %vm1248_vm6 = vcmp.eq.f32.partialorder %v6198_v29, inf }
 0x3f4   : > { %vm2817_vm9 = vcmp.eq.s32.totalorder %v5089_v30, %v2516_v14  ;;  %vm2818_vm10 = vcmp.eq.s32.totalorder %v5092_v20, %v2516_v14  ;;  %vm2819_vm11 = vcmp.eq.s32.totalorder %v5097_v51, %v2516_v14  ;;  %vm2820_vm13 = vcmp.eq.s32.totalorder %v5108_v41, %v2516_v14  ;;  %8854 = vst [vmem:[#allocation13_spill] sm:$0xff] %v6245_v31  ;;  %v8858_v14 = vld [vmem:[#allocation25_spill] sm:$0xff] }
 0x3f5   : > { %v6226_v40 = vsel %vm2817_vm9, inf, %v8846_v46  ;;  %v6229_v37 = vsel %vm2818_vm10, inf, %v8848_v57  ;;  %v6242_v24 = vsel %vm2819_vm11, inf, %v5546_v63  ;;  %v2957_v62 = vmin.f32 %v2956_v25, %v6245_v31  ;;  %v6257_v63 = vpop.eup %4375  ;;  %v8889_v31 = vld [vmem:[#allocation34_spill] sm:$0xff] }
 0x3f6   : > { %8847 = vst [vmem:[#allocation21_spill] sm:$0xff] %v6226_v40  ;;  %v2945_v50 = vmin.f32 %v6226_v40, %v6229_v37  ;;  %v6250_v0 = vsel %vm2820_vm13, inf, %v5550_v58  ;;  %v1218_v58 = vmul.f32 %v6257_v63, %v6205_v34  ;;  %4381 = vrsqrt.f32 %v6260_v6  ;;  %v6269_v38 = vpop.eup %4377 }
 0x3f7   : > { %8849 = vst [vmem:[#allocation11_spill] sm:$0xff] %v6229_v37  ;;  %2958 = vmin.xlane.f32.xlu2 %v2957_v62  ;;  %v6267_v8 = vmax.f32 %v8858_v14, 0.0  ;;  %v1270_v46 = vmul.f32 %v4372_v13, %v1269_v43  ;;  %v1246_v57 = vmul.f32 %v4374_v11, %v1245_v56  ;;  %v1278_v42 = vmul.f32 %v6269_v38, %v6235_v12 }
 0x3f8   : > { %8853 = vst [vmem:[#allocation14_spill] sm:$0xff] %v6242_v24  ;;  %v2946_v61 = vmin.f32 %v2945_v50, %v6242_v24  ;;  %v1219_v18 = vmul.f32 %v6257_v63, %v1218_v58  ;;  %v6276_v26 = vpop.eup %4379  ;;  %v8859_v50 = vld [vmem:[#allocation28_spill] sm:$0xff]  ;;  %v2612_v45 = vpop.xlane.xlu1 %2611  ;;  %v2535_v56 = vshll.u32 %v2534_v10, 16  ;;  %v2574_v10 = vcvt.f32.s32 %v6133_v53 }
 0x3f9   : > { %8855 = vst [vmem:[#allocation22_spill] sm:$0xff] %v6250_v0  ;;  %4383 = vrsqrt.f32 %v6267_v8  ;;  %v6279_v25 = vmax.f32 %v8859_v50, 0.0  ;;  %v2613_v62 = vcvt.f32.s32 %v2612_v45  ;;  %v6288_v39 = vmul.f32 %v1270_v46, %v6195_v54 }
 0x3fa   : > { %v2947_v48 = vmin.f32 %v2946_v61, %v6250_v0  ;;  %v1220_v16 = vmul.f32 0.5, %v1219_v18  ;;  %v6291_v23 = vmul.f32 %v1246_v57, %v6198_v29  ;;  %v1279_v5 = vmul.f32 %v6269_v38, %v1278_v42  ;;  %v8860_v57 = vld [vmem:[#allocation26_spill] sm:$0xff] }
 0x3fb   : > { %v2616_v35 = vadd.s32 %v2615_v60, %v2613_v62  ;;  %v1254_v58 = vmul.f32 %v6276_v26, %v6254_v15  ;;  %4385 = vrsqrt.f32 %v6279_v25  ;;  %v6305_v42 = vmax.f32 %v8860_v57, 0.0 }
 0x3fc   : > { %2948 = vmin.xlane.f32.xlu0 %v2947_v48  ;;  %v6282_v61 = vpop.eup %4381  ;;  %v1221_v46 = vsub.f32 1.5, %v1220_v16  ;;  %vm1224_vm8 = vcmp.eq.f32.partialorder %v6205_v34, inf }
 0x3fd   : > { %v1230_v43 = vmul.f32 %v6282_v61, %v6260_v6  ;;  %v2532_v14 = vpop.xlane.xlu0 %2531  ;;  %vm2837_vm14 = vcmp.eq.s32.totalorder %v5089_v30, %v2616_v35  ;;  %vm2838_vm15 = vcmp.eq.s32.totalorder %v5092_v20, %v2616_v35  ;;  %vm2839_vm0 = vcmp.eq.s32.totalorder %v5097_v51, %v2616_v35 }
 0x3fe   : > { %v2533_v18 = vcvt.f32.s32 %v2532_v14  ;;  %v6308_v50 = vsel %vm2837_vm14, inf, %v5557_v21  ;;  %v6311_v45 = vsel %vm2838_vm15, inf, %v5559_v36  ;;  %vm2840_vm1 = vcmp.eq.s32.totalorder %v5108_v41, %v2616_v35  ;;  %v2572_v35 = vpop.xlane.xlu2 %2571 }
 0x3ff   : > { %v6299_v28 = vpop.eup %4383  ;;  %8861 = vst [vmem:[#allocation23_spill] sm:$0xff] %v6308_v50  ;;  %v2970_v62 = vmin.f32 %v6308_v50, %v6311_v45  ;;  %v1255_v14 = vmul.f32 %v6276_v26, %v1254_v58  ;;  %v1231_v16 = vmul.f32 %v6282_v61, %v1230_v43  ;;  %v6322_v21 = vsel %vm2839_vm0, inf, %v5565_v9  ;;  %v8864_v58 = vld [vmem:[#allocation5_spill] sm:$0xff] }
 0x400   : > { %8862 = vst [vmem:[#allocation24_spill] sm:$0xff] %v6311_v45  ;;  %v2536_v60 = vadd.s32 %v2535_v56, %v2533_v18  ;;  %v1314_v57 = vmul.f32 %v6299_v28, %v6267_v8  ;;  %4387 = vrsqrt.f32 %v6305_v42  ;;  %v6332_v43 = vsel %vm2840_vm1, inf, %v8864_v58  ;;  %v8866_v56 = vld [vmem:[#allocation9_spill] sm:$0xff]  ;;  %v8870_v58 = vld [vmem:[#allocation27_spill] sm:$0xff] }
 0x401   : > { %8863 = vst [vmem:[#allocation25_spill] sm:$0xff] %v6322_v21  ;;  %v2971_v36 = vmin.f32 %v2970_v62, %v6322_v21  ;;  %v6328_v53 = vpop.eup %4385  ;;  %v8868_v9 = vld [vmem:[#allocation17_spill] sm:$0xff]  ;;  %v2575_v62 = vshll.u32 %v2574_v10, 16  ;;  %v2573_v48 = vcvt.f32.s32 %v2572_v35  ;;  %v1222_v21 = vmul.f32 %v6257_v63, %v1221_v46  ;;  %v8873_v46 = vld [vmem:[#allocation30_spill] sm:$0xff] }
 0x402   : > { %vm2821_vm3 = vcmp.eq.s32.totalorder %v5089_v30, %v2536_v60  ;;  %vm2822_vm2 = vcmp.eq.s32.totalorder %v5092_v20, %v2536_v60  ;;  %vm2823_vm4 = vcmp.eq.s32.totalorder %v5097_v51, %v2536_v60  ;;  %8865 = vst [vmem:[#allocation28_spill] sm:$0xff] %v6332_v43  ;;  %v1280_v45 = vmul.f32 0.5, %v1279_v5 }
 0x403   : > { %v6335_v18 = vsel %vm2821_vm3, inf, %v8866_v56  ;;  %v6338_v13 = vsel %vm2822_vm2, inf, %v8868_v9  ;;  %v2972_v11 = vmin.f32 %v2971_v36, %v6332_v43  ;;  %v6346_v50 = vmax.f32 %v8870_v58, 0.0  ;;  %v8871_v56 = vld [vmem:[#allocation31_spill] sm:$0xff] }
 0x404   : > { %8867 = vst [vmem:[#allocation26_spill] sm:$0xff] %v6335_v18  ;;  %v2950_v59 = vmin.f32 %v6335_v18, %v6338_v13  ;;  %v6349_v0 = vsel %vm2823_vm4, inf, %v8871_v56  ;;  %v1302_v10 = vmul.f32 %v6328_v53, %v6279_v25  ;;  %v2576_v36 = vadd.s32 %v2575_v62, %v2573_v48  ;;  %v8874_v56 = vld [vmem:[#allocation29_spill] sm:$0xff] }
 0x405   : > { %8869 = vst [vmem:[#allocation5_spill] sm:$0xff] %v6338_v13  ;;  %2973 = vmin.xlane.f32.xlu2 %v2972_v11  ;;  %vm2824_vm7 = vcmp.eq.s32.totalorder %v5108_v41, %v2536_v60  ;;  %v1256_v9 = vmul.f32 0.5, %v1255_v14  ;;  %v1232_v63 = vmul.f32 0.5, %v1231_v16  ;;  %v1315_v5 = vmul.f32 %v6299_v28, %v1314_v57  ;;  %v8877_v60 = vld [vmem:[#allocation4_spill] sm:$0xff] }
 0x406   : > { %8872 = vst [vmem:[#allocation9_spill] sm:$0xff] %v6349_v0  ;;  %v2951_v35 = vmin.f32 %v2950_v59, %v6349_v0  ;;  %v6358_v58 = vmax.f32 %v8873_v46, 0.0  ;;  %v6362_v43 = vmax.f32 %v8874_v56, 0.0  ;;  %vm2829_vm9 = vcmp.eq.s32.totalorder %v5089_v30, %v2576_v36  ;;  %v6367_v11 = vpop.eup %4387  ;;  %v8875_v59 = vld [vmem:[#allocation16_spill] sm:$0xff] }
 0x407   : > { %vm2830_vm10 = vcmp.eq.s32.totalorder %v5092_v20, %v2576_v36  ;;  %vm2831_vm11 = vcmp.eq.s32.totalorder %v5097_v51, %v2576_v36  ;;  %4389 = vrsqrt.f32 %v6346_v50  ;;  %v6371_v48 = vsel %vm2829_vm9, inf, %v8875_v59 }
 0x408   : > { %8876 = vst [vmem:[#allocation17_spill] sm:$0xff] %v6371_v48  ;;  %v6374_v14 = vsel %vm2830_vm10, inf, %v8877_v60  ;;  %v6377_v16 = vsel %vm2824_vm7, inf, %v5601_v2  ;;  %v1303_v57 = vmul.f32 %v6328_v53, %v1302_v10  ;;  %vm2832_vm12 = vcmp.eq.s32.totalorder %v5108_v41, %v2576_v36 }
 0x409   : > { %8878 = vst [vmem:[#allocation27_spill] sm:$0xff] %v6374_v14  ;;  %v2960_v62 = vmin.f32 %v6371_v48, %v6374_v14  ;;  %v2952_v46 = vmin.f32 %v2951_v35, %v6377_v16  ;;  %v1281_v56 = vsub.f32 1.5, %v1280_v45  ;;  %v1257_v0 = vsub.f32 1.5, %v1256_v9  ;;  %v8881_v35 = vld [vmem:[#allocation10_spill] sm:$0xff]  ;;  %v8882_v9 = vld [vmem:[#allocation7_spill] sm:$0xff] }
 0x40a   : > { %8879 = vst [vmem:[#allocation31_spill] sm:$0xff] %v6377_v16  ;;  %4391 = vrsqrt.f32 %v6358_v58  ;;  %v6386_v59 = vsel %vm2831_vm11, inf, %v5581_v4  ;;  %v1233_v60 = vsub.f32 1.5, %v1232_v63  ;;  %v1290_v2 = vmul.f32 %v6367_v11, %v6305_v42 }
 0x40b   : > { %8880 = vst [vmem:[#allocation30_spill] sm:$0xff] %v6386_v59  ;;  %4393 = vrsqrt.f32 %v6362_v43  ;;  %v2961_v10 = vmin.f32 %v2960_v62, %v6386_v59  ;;  %2953 = vmin.xlane.f32.xlu1 %v2952_v46  ;;  %v1223_v36 = vmul.f32 %v1222_v21, %v6205_v34  ;;  %v1316_v14 = vmul.f32 0.5, %v1315_v5 }
 0x40c   : > { %v6394_v45 = vmax.f32 %v8881_v35, 0.0  ;;  %v6397_v16 = vsel %vm2832_vm12, inf, %v8882_v9  ;;  %v6403_v4 = vsel %vm1272_vm5, %v6195_v54, %v6288_v39  ;;  %v1304_v48 = vmul.f32 0.5, %v1303_v57 }
 0x40d   : > { %8883 = vst [vmem:[#allocation29_spill] sm:$0xff] %v6397_v16  ;;  %v2962_v62 = vmin.f32 %v2961_v10, %v6397_v16  ;;  %v6407_v46 = vpop.eup %4389  ;;  %v6413_v21 = vsel %vm1248_vm6, %v6198_v29, %v6291_v23  ;;  %v1282_v5 = vmul.f32 %v6269_v38, %v1281_v56  ;;  %v2674_v39 = vcvt.f32.s32 %v6140_v52  ;;  %v8884_v52 = vld [vmem:[#allocation8_spill] sm:$0xff] }
 0x40e   : > { %v1258_v9 = vmul.f32 %v6276_v26, %v1257_v0  ;;  %v1234_v57 = vmul.f32 %v6282_v61, %v1233_v60  ;;  %v1291_v63 = vmul.f32 %v6367_v11, %v1290_v2  ;;  %v6427_v23 = vsel %vm1224_vm8, %v6205_v34, %v1223_v36 }
 0x40f   : > { %2963 = vmin.xlane.f32.xlu0 %v2962_v62  ;;  %v1317_v38 = vsub.f32 1.5, %v1316_v14  ;;  %4395 = vrsqrt.f32 %v6394_v45  ;;  %v6431_v56 = vmax.f32 %v8884_v52, 0.0  ;;  %v1305_v61 = vsub.f32 1.5, %v1304_v48  ;;  %v2672_v62 = vpop.xlane.xlu1 %2671  ;;  %v2592_v14 = vpop.xlane.xlu0 %2591 }
 0x410   : > { %v6422_v16 = vpop.eup %4391  ;;  %v1350_v60 = vmul.f32 %v6407_v46, %v6346_v50  ;;  %v2594_v2 = vcvt.f32.s32 %v6145_v7  ;;  %v6440_v36 = vmul.f32 %v1282_v5, %v6235_v12  ;;  %v2675_v35 = vshll.u32 %v2674_v39, 16 }
 0x411   : > { %v6433_v0 = vpop.eup %4393  ;;  %v2673_v10 = vcvt.f32.s32 %v2672_v62  ;;  %v6444_v52 = vmul.f32 %v1258_v9, %v6254_v15  ;;  %v6447_v59 = vmul.f32 %v1234_v57, %v6260_v6  ;;  %v6449_v48 = vmul.f32 0.5, %v1291_v63 }
 0x412   : > { %v1338_v26 = vmul.f32 %v6422_v16, %v6358_v58  ;;  %v6454_v7 = vmul.f32 %v6299_v28, %v1317_v38  ;;  %v1326_v5 = vmul.f32 %v6433_v0, %v6362_v43  ;;  %4397 = vrsqrt.f32 %v6431_v56  ;;  %v8887_v38 = vld [vmem:[#allocation33_spill] sm:$0xff] }
 0x413   : > { %v2676_v39 = vadd.s32 %v2675_v35, %v2673_v10  ;;  %v6460_v9 = vmul.f32 %v6328_v53, %v1305_v61  ;;  %v1351_v57 = vmul.f32 %v6407_v46, %v1350_v60  ;;  %v2595_v62 = vshll.u32 %v2594_v2, 16  ;;  %v8885_v35 = vld [vmem:[#allocation32_spill] sm:$0xff] }
 0x414   : > { %v2634_v63 = vcvt.f32.s32 %v6150_v32  ;;  %v2593_v18 = vcvt.f32.s32 %v2592_v14  ;;  %v1293_v28 = vsub.f32 1.5, %v6449_v48  ;;  %v1339_v53 = vmul.f32 %v6422_v16, %v1338_v26  ;;  %v2632_v26 = vpop.xlane.xlu2 %2631 }
 0x415   : > { %v6464_v13 = vpop.eup %4395  ;;  %vm2849_vm13 = vcmp.eq.s32.totalorder %v5089_v30, %v2676_v39  ;;  %vm2850_vm14 = vcmp.eq.s32.totalorder %v5092_v20, %v2676_v39  ;;  %vm2851_vm15 = vcmp.eq.s32.totalorder %v5097_v51, %v2676_v39  ;;  %v1327_v32 = vmul.f32 %v6433_v0, %v1326_v5 }
 0x416   : > { %v6472_v10 = vsel %vm2849_vm13, inf, %v8885_v35  ;;  %v6475_v61 = vsel %vm2850_vm14, inf, %v8887_v38  ;;  %v2596_v60 = vadd.s32 %v2595_v62, %v2593_v18  ;;  %vm2852_vm0 = vcmp.eq.s32.totalorder %v5108_v41, %v2676_v39 }
 0x417   : > { %8886 = vst [vmem:[#allocation16_spill] sm:$0xff] %v6472_v10  ;;  %v2985_v2 = vmin.f32 %v6472_v10, %v6475_v61  ;;  %v1352_v14 = vmul.f32 0.5, %v1351_v57  ;;  %v1374_v48 = vmul.f32 %v6464_v13, %v6394_v45  ;;  %v2635_v24 = vshll.u32 %v2634_v63, 16  ;;  %v8891_v57 = vld [vmem:[#allocation35_spill] sm:$0xff]  ;;  %v8893_v63 = vld [vmem:[#allocation36_spill] sm:$0xff] }
 0x418   : > { %8888 = vst [vmem:[#allocation4_spill] sm:$0xff] %v6475_v61  ;;  %v6484_v35 = vsel %vm2851_vm15, inf, %v8889_v31  ;;  %v6486_v19 = vpop.eup %4397  ;;  %vm1284_vm1 = vcmp.eq.f32.partialorder %v6235_v12, inf  ;;  %v2633_v5 = vcvt.f32.s32 %v2632_v26  ;;  %vm2833_vm3 = vcmp.eq.s32.totalorder %v5089_v30, %v2596_v60  ;;  %v8895_v31 = vld [vmem:[#allocation37_spill] sm:$0xff] }
 0x419   : > { %8890 = vst [vmem:[#allocation10_spill] sm:$0xff] %v6484_v35  ;;  %v2986_v18 = vmin.f32 %v2985_v2, %v6484_v35  ;;  %vm2834_vm2 = vcmp.eq.s32.totalorder %v5092_v20, %v2596_v60  ;;  %v1340_v39 = vmul.f32 0.5, %v1339_v53  ;;  %v6493_v62 = vsel %vm2852_vm0, inf, %v8891_v57  ;;  %v8903_v35 = vld [vmem:[#allocation42_spill] sm:$0xff] }
 0x41a   : > { %8892 = vst [vmem:[#allocation7_spill] sm:$0xff] %v6493_v62  ;;  %v6496_v38 = vsel %vm2833_vm3, inf, %v8893_v63  ;;  %v6499_v61 = vsel %vm2834_vm2, inf, %v8895_v31  ;;  %vm1260_vm4 = vcmp.eq.f32.partialorder %v6254_v15, inf  ;;  %v1328_v10 = vmul.f32 0.5, %v1327_v32  ;;  %v8897_v32 = vld [vmem:[#allocation39_spill] sm:$0xff] }
 0x41b   : > { %8894 = vst [vmem:[#allocation8_spill] sm:$0xff] %v6496_v38  ;;  %v2636_v26 = vadd.s32 %v2635_v24, %v2633_v5  ;;  %v2987_v2 = vmin.f32 %v2986_v18, %v6493_v62  ;;  %vm2835_vm5 = vcmp.eq.s32.totalorder %v5097_v51, %v2596_v60  ;;  %vm1236_vm6 = vcmp.eq.f32.partialorder %v6260_v6, inf  ;;  %v8901_v18 = vld [vmem:[#allocation38_spill] sm:$0xff] }
 0x41c   : > { %8896 = vst [vmem:[#allocation32_spill] sm:$0xff] %v6499_v61  ;;  %vm1320_vm7 = vcmp.eq.f32.partialorder %v6267_v8, inf  ;;  %v1353_v53 = vsub.f32 1.5, %v1352_v14  ;;  %v1375_v57 = vmul.f32 %v6464_v13, %v1374_v48  ;;  %v1362_v63 = vmul.f32 %v6486_v19, %v6431_v56  ;;  %v8899_v48 = vld [vmem:[#allocation40_spill] sm:$0xff] }
 0x41d   : > { %v2965_v31 = vmin.f32 %v6496_v38, %v6499_v61  ;;  %vm2841_vm8 = vcmp.eq.s32.totalorder %v5089_v30, %v2636_v26  ;;  %vm2842_vm9 = vcmp.eq.s32.totalorder %v5092_v20, %v2636_v26  ;;  %vm2843_vm10 = vcmp.eq.s32.totalorder %v5097_v51, %v2636_v26  ;;  %2988 = vmin.xlane.f32.xlu2 %v2987_v2 }
 0x41e   : > { %vm2836_vm11 = vcmp.eq.s32.totalorder %v5108_v41, %v2596_v60  ;;  %vm1308_vm12 = vcmp.eq.f32.partialorder %v6279_v25, inf  ;;  %v1341_v24 = vsub.f32 1.5, %v1340_v39  ;;  %v6517_v14 = vsel %vm2841_vm8, inf, %v8897_v32 }
 0x41f   : > { %8898 = vst [vmem:[#allocation33_spill] sm:$0xff] %v6517_v14  ;;  %v6520_v5 = vsel %vm2842_vm9, inf, %v8899_v48  ;;  %v6525_v62 = vsel %vm2835_vm5, inf, %v8901_v18  ;;  %v1329_v61 = vsub.f32 1.5, %v1328_v10  ;;  %vm2844_vm13 = vcmp.eq.s32.totalorder %v5108_v41, %v2636_v26  ;;  %v8905_v48 = vld [vmem:[#allocation41_spill] sm:$0xff] }
 0x420   : > { %8900 = vst [vmem:[#allocation34_spill] sm:$0xff] %v6520_v5  ;;  %v2975_v2 = vmin.f32 %v6517_v14, %v6520_v5  ;;  %v2966_v38 = vmin.f32 %v2965_v31, %v6525_v62  ;;  %v1376_v39 = vmul.f32 0.5, %v1375_v57  ;;  %v1363_v32 = vmul.f32 %v6486_v19, %v1362_v63  ;;  %v8907_v31 = vld [vmem:[#allocation43_spill] sm:$0xff] }
 0x421   : > { %8902 = vst [vmem:[#allocation35_spill] sm:$0xff] %v6525_v62  ;;  %v6533_v37 = vsel %vm2843_vm10, inf, %v8903_v35  ;;  %v6536_v40 = vsel %vm2836_vm11, inf, %v8905_v48  ;;  %v1319_v60 = vmul.f32 %v6454_v7, %v6267_v8  ;;  %v1294_v10 = vmul.f32 %v6367_v11, %v1293_v28 }
 0x422   : > { %8904 = vst [vmem:[#allocation36_spill] sm:$0xff] %v6533_v37  ;;  %v2976_v26 = vmin.f32 %v2975_v2, %v6533_v37  ;;  %v2967_v18 = vmin.f32 %v2966_v38, %v6536_v40  ;;  %v6547_v57 = vsel %vm1284_vm1, %v6235_v12, %v6440_v36  ;;  %v1354_v35 = vmul.f32 %v6407_v46, %v1353_v53 }
 0x423   : > { %8906 = vst [vmem:[#allocation37_spill] sm:$0xff] %v6536_v40  ;;  %v1342_v63 = vmul.f32 %v6422_v16, %v1341_v24  ;;  %v6552_v48 = vsel %vm2844_vm13, inf, %v8907_v31  ;;  %v1307_v11 = vmul.f32 %v6460_v9, %v6279_v25  ;;  %vm1296_vm14 = vcmp.eq.f32.partialorder %v6305_v42, inf  ;;  %v2652_v31 = vpop.xlane.xlu0 %2651 }
 0x424   : > { %8908 = vst [vmem:[#allocation39_spill] sm:$0xff] %v6552_v48  ;;  %v1330_v7 = vmul.f32 %v6433_v0, %v1329_v61  ;;  %v2977_v28 = vmin.f32 %v2976_v26, %v6552_v48  ;;  %2968 = vmin.xlane.f32.xlu1 %v2967_v18  ;;  %v6563_v46 = vsel %vm1260_vm4, %v6254_v15, %v6444_v52  ;;  %v1377_v36 = vsub.f32 1.5, %v1376_v39  ;;  %v2732_v26 = vpop.xlane.xlu1 %2731 }
 0x425   : > { %v1364_v38 = vmul.f32 0.5, %v1363_v32  ;;  %v6570_v9 = vsel %vm1236_vm6, %v6260_v6, %v6447_v59  ;;  %v6575_v0 = vsel %vm1320_vm7, %v6267_v8, %v1319_v60  ;;  %v1295_v61 = vmul.f32 %v1294_v10, %v6305_v42 }
 0x426   : > { %v2734_v52 = vcvt.f32.s32 %v6156_v17  ;;  %2978 = vmin.xlane.f32.xlu0 %v2977_v28  ;;  %v1355_v53 = vmul.f32 %v1354_v35, %v6346_v50  ;;  %vm1356_vm15 = vcmp.eq.f32.partialorder %v6346_v50, inf  ;;  %v1343_v24 = vmul.f32 %v1342_v63, %v6358_v58 }
 0x427   : > { %v2654_v2 = vcvt.f32.s32 %v6158_v44  ;;  %v6586_v59 = vsel %vm1308_vm12, %v6279_v25, %v1307_v11  ;;  %vm1344_vm0 = vcmp.eq.f32.partialorder %v6358_v58, inf  ;;  %v1331_v17 = vmul.f32 %v1330_v7, %v6362_v43 }
 0x428   : > { %vm1332_vm1 = vcmp.eq.f32.partialorder %v6362_v43, inf  ;;  %v1378_v60 = vmul.f32 %v6464_v13, %v1377_v36  ;;  %v1365_v10 = vsub.f32 1.5, %v1364_v38  ;;  %v6597_v44 = vsel %vm1296_vm14, %v6305_v42, %v1295_v61 }
 0x429   : > { %v2735_v35 = vshll.u32 %v2734_v52, 16  ;;  %v2733_v63 = vcvt.f32.s32 %v2732_v26  ;;  %v6603_v11 = vsel %vm1356_vm15, %v6346_v50, %v1355_v53  ;;  %v6606_v7 = vsel %vm1344_vm0, %v6358_v58, %v1343_v24 }
 0x42a   : > { %v2655_v13 = vshll.u32 %v2654_v2, 16  ;;  %v2653_v28 = vcvt.f32.s32 %v2652_v31  ;;  %vm1250_vm3 = vcmp.eq.f32.partialorder %v6198_v29, 0.0  ;;  %vm1226_vm2 = vcmp.eq.f32.partialorder %v6205_v34, 0.0 }
 0x42b   : > { %v6611_v36 = vsel %vm1332_vm1, %v6362_v43, %v1331_v17  ;;  %vm1380_vm4 = vcmp.eq.f32.partialorder %v6394_v45, inf  ;;  %vm1382_vm5 = vcmp.eq.f32.partialorder %v6394_v45, 0.0  ;;  %v2736_v38 = vadd.s32 %v2735_v35, %v2733_v63  ;;  %v8909_v17 = vld [vmem:[#allocation76_spill] sm:$0xff]  ;;  %v8912_v63 = vld [vmem:[#allocation45_spill] sm:$0xff] }
 0x42c   : > { %vm1274_vm6 = vcmp.eq.f32.partialorder %v6195_v54, 0.0  ;;  %v1379_v61 = vmul.f32 %v1378_v60, %v6394_v45  ;;  %v1383_v52 = vand.u32 2147483648, %v6394_v45  ;;  %v1366_v53 = vmul.f32 %v6486_v19, %v1365_v10  ;;  %v8910_v35 = vld [vmem:[#allocation44_spill] sm:$0xff]  ;;  %v2692_v10 = vpop.xlane.xlu2 %2691 }
 0x42d   : > { %v2656_v24 = vadd.s32 %v2655_v13, %v2653_v28  ;;  %v2694_v2 = vcvt.f32.s32 %v6165_v1  ;;  %vm2861_vm7 = vcmp.eq.s32.totalorder %v5089_v30, %v2736_v38  ;;  %vm2862_vm8 = vcmp.eq.s32.totalorder %v5092_v20, %v2736_v38  ;;  %v8914_v13 = vld [vmem:[#allocation46_spill] sm:$0xff] }
 0x42e   : > { %vm2863_vm9 = vcmp.eq.s32.totalorder %v5097_v51, %v2736_v38  ;;  %v6624_v26 = vmax.f32 %v8909_v17, 0.0  ;;  %vm2864_vm10 = vcmp.eq.s32.totalorder %v5108_v41, %v2736_v38  ;;  %v6628_v60 = vsel %vm2861_vm7, inf, %v8910_v35  ;;  %v8916_v17 = vld [vmem:[#allocation48_spill] sm:$0xff] }
 0x42f   : > { %8911 = vst [vmem:[#allocation40_spill] sm:$0xff] %v6628_v60  ;;  %v6631_v31 = vsel %vm2862_vm8, inf, %v8912_v63  ;;  %vm2845_vm11 = vcmp.eq.s32.totalorder %v5089_v30, %v2656_v24  ;;  %vm2846_vm12 = vcmp.eq.s32.totalorder %v5092_v20, %v2656_v24  ;;  %vm2847_vm13 = vcmp.eq.s32.totalorder %v5097_v51, %v2656_v24  ;;  %v8918_v63 = vld [vmem:[#allocation49_spill] sm:$0xff] }
 0x430   : > { %8913 = vst [vmem:[#allocation38_spill] sm:$0xff] %v6631_v31  ;;  %v3000_v1 = vmin.f32 %v6628_v60, %v6631_v31  ;;  %v1381_v19 = vsel %vm1380_vm4, %v6394_v45, %v1379_v61  ;;  %v6642_v28 = vsel %vm2863_vm9, inf, %v8914_v13  ;;  %v6645_v35 = vsel %vm2845_vm11, inf, %v8916_v17  ;;  %v8920_v13 = vld [vmem:[#allocation77_spill] sm:$0xff]  ;;  %v8921_v17 = vld [vmem:[#allocation47_spill] sm:$0xff]  ;;  %v8923_v31 = vld [vmem:[#allocation50_spill] sm:$0xff] }
 0x431   : > { %8915 = vst [vmem:[#allocation42_spill] sm:$0xff] %v6642_v28  ;;  %v6648_v32 = vsel %vm2846_vm12, inf, %v8918_v63  ;;  %vm1286_vm14 = vcmp.eq.f32.partialorder %v6235_v12, 0.0  ;;  %vm1238_vm15 = vcmp.eq.f32.partialorder %v6260_v6, 0.0  ;;  %v2695_v18 = vshll.u32 %v2694_v2, 16 }
 0x432   : > { %8917 = vst [vmem:[#allocation41_spill] sm:$0xff] %v6645_v35  ;;  %v2693_v39 = vcvt.f32.s32 %v2692_v10  ;;  %v3001_v16 = vmin.f32 %v3000_v1, %v6642_v28  ;;  %v2980_v61 = vmin.f32 %v6645_v35, %v6648_v32  ;;  %4399 = vrsqrt.f32 %v6624_v26  ;;  %v8966_v35 = vld [vmem:[#allocation81_spill] sm:$0xff] }
 0x433   : > { %8919 = vst [vmem:[#allocation43_spill] sm:$0xff] %v6648_v32  ;;  %v6657_v48 = vmax.f32 %v8920_v13, 0.0  ;;  %v6662_v63 = vsel %vm2864_vm10, inf, %v8921_v17  ;;  %v6665_v37 = vsel %vm2847_vm13, inf, %v8923_v31  ;;  %vm2848_vm0 = vcmp.eq.s32.totalorder %v5108_v41, %v2656_v24  ;;  %v8934_v17 = vld [vmem:[#allocation54_spill] sm:$0xff] }
 0x434   : > { %8922 = vst [vmem:[#allocation76_spill] sm:$0xff] %v6662_v63  ;;  %v2696_v2 = vadd.s32 %v2695_v18, %v2693_v39  ;;  %v3002_v10 = vmin.f32 %v3001_v16, %v6662_v63  ;;  %v2981_v1 = vmin.f32 %v2980_v61, %v6665_v37  ;;  %v6672_v32 = vsel %vm1382_vm5, %v1383_v52, %v1381_v19  ;;  %v8932_v52 = vld [vmem:[#allocation51_spill] sm:$0xff] }
 0x435   : > { %8924 = vst [vmem:[#allocation44_spill] sm:$0xff] %v6665_v37  ;;  %vm1368_vm1 = vcmp.eq.f32.partialorder %v6431_v56, inf  ;;  %v8925_v38 = vand.u32 2147483648, %v6198_v29  ;;  %v8926_v39 = vand.u32 2147483648, %v6205_v34  ;;  %vm1262_vm4 = vcmp.eq.f32.partialorder %v6254_v15, 0.0 }
 0x436   : > { %vm2853_vm7 = vcmp.eq.s32.totalorder %v5089_v30, %v2696_v2  ;;  %vm2854_vm5 = vcmp.eq.s32.totalorder %v5092_v20, %v2696_v2  ;;  %vm2855_vm8 = vcmp.eq.s32.totalorder %v5097_v51, %v2696_v2  ;;  %3003 = vmin.xlane.f32.xlu2 %v3002_v10  ;;  %v8927_v45 = vand.u32 2147483648, %v6195_v54 }
 0x437   : > { %v1252_v31 = vsel %vm1250_vm3, %v8925_v38, %v6413_v21  ;;  %v1228_v16 = vsel %vm1226_vm2, %v8926_v39, %v6427_v23  ;;  %4401 = vrsqrt.f32 %v6657_v48  ;;  %v8928_v21 = vld [vmem:[#allocation52_spill] sm:$0xff]  ;;  %v8930_v23 = vld [vmem:[#allocation53_spill] sm:$0xff]  ;;  %v6702_v24 = vsel %vm2848_vm0, inf, %v8932_v52 }
 0x438   : > { %v1276_v29 = vsel %vm1274_vm6, %v8927_v45, %v6403_v4  ;;  %v6696_v34 = vsel %vm2853_vm7, inf, %v8928_v21  ;;  %v6699_v18 = vsel %vm2854_vm5, inf, %v8930_v23  ;;  %8933 = vst [vmem:[#allocation48_spill] sm:$0xff] %v6702_v24  ;;  %v1367_v19 = vmul.f32 %v1366_v53, %v6431_v56  ;;  %v6709_v4 = vpop.eup %4399  ;;  %v2712_v45 = vpop.xlane.xlu0 %2711 }
 0x439   : > { %8929 = vst [vmem:[#allocation45_spill] sm:$0xff] %v6696_v34  ;;  %vm2856_vm3 = vcmp.eq.s32.totalorder %v5108_v41, %v2696_v2  ;;  %v2990_v61 = vmin.f32 %v6696_v34, %v6699_v18  ;;  %v2982_v54 = vmin.f32 %v2981_v1, %v6702_v24  ;;  %v2794_v13 = vcvt.f32.s32 %v6171_v49  ;;  %v8936_v1 = vld [vmem:[#allocation55_spill] sm:$0xff] }
 0x43a   : > { %8931 = vst [vmem:[#allocation46_spill] sm:$0xff] %v6699_v18  ;;  %v6713_v10 = vsel %vm2855_vm8, inf, %v8934_v17  ;;  %v1411_v38 = vsub.f32 2.0, %v1252_v31  ;;  %v1409_v39 = vsub.f32 2.0, %v1228_v16  ;;  %v1413_v21 = vsub.f32 2.0, %v1276_v29 }
 0x43b   : > { %8935 = vst [vmem:[#allocation49_spill] sm:$0xff] %v6713_v10  ;;  %v2991_v2 = vmin.f32 %v2990_v61, %v6713_v10  ;;  %2983 = vmin.xlane.f32.xlu1 %v2982_v54  ;;  %v2714_v23 = vcvt.f32.s32 %v6175_v47  ;;  %v6720_v52 = vsel %vm2856_vm3, inf, %v8936_v1  ;;  %v8938_v49 = vand.u32 2147483648, %v6235_v12  ;;  %v8940_v54 = vld [vmem:[#allocation78_spill] sm:$0xff]  ;;  %v2792_v12 = vpop.xlane.xlu1 %2791 }
 0x43c   : > { %8937 = vst [vmem:[#allocation77_spill] sm:$0xff] %v6720_v52  ;;  %v8939_v16 = vand.u32 2147483648, %v6260_v6  ;;  %v6739_v47 = vsel %vm1368_vm1, %v6431_v56, %v1367_v19  ;;  %v2154_v29 = vmul.f32 %v6709_v4, %v6624_v26  ;;  %v6744_v17 = vmax.f32 %v8940_v54, 0.0 }
 0x43d   : > { %v6727_v31 = vsel %vm1286_vm14, %v8938_v49, %v6547_v57  ;;  %v2992_v57 = vmin.f32 %v2991_v2, %v6720_v52  ;;  %v6747_v1 = vpop.eup %4401  ;;  %v2795_v49 = vshll.u32 %v2794_v13, 16  ;;  %v2793_v6 = vcvt.f32.s32 %v2792_v12 }
 0x43e   : > { %v6734_v61 = vsel %vm1238_vm15, %v8939_v16, %v6570_v9  ;;  %v6749_v9 = vmax.f32 %v1411_v38, 0.0  ;;  %v6751_v16 = vmax.f32 %v1409_v39, 0.0  ;;  %v2754_v19 = vcvt.f32.s32 %v6180_v22 }
 0x43f   : > { %2993 = vmin.xlane.f32.xlu0 %v2992_v57  ;;  %v6756_v10 = vmax.f32 %v1413_v21, 0.0  ;;  %v2715_v24 = vshll.u32 %v2714_v23, 16  ;;  %v2796_v2 = vadd.s32 %v2795_v49, %v2793_v6  ;;  %v2713_v52 = vcvt.f32.s32 %v2712_v45  ;;  %v8942_v21 = vld [vmem:[#allocation80_spill] sm:$0xff]  ;;  %v2752_v45 = vpop.xlane.xlu2 %2751  ;;  %v8945_v49 = vld [vmem:[#allocation57_spill] sm:$0xff] }
 0x440   : > { %v8941_v13 = vand.u32 2147483648, %v6254_v15  ;;  %v6766_v22 = vmul.f32 %v6709_v4, %v2154_v29  ;;  %v2130_v39 = vmul.f32 %v6747_v1, %v6657_v48  ;;  %4403 = vrsqrt.f32 %v6744_v17  ;;  %v8943_v29 = vld [vmem:[#allocation56_spill] sm:$0xff]  ;;  %v2772_v37 = vpop.xlane.xlu0 %2771 }
 0x441   : > { %v6772_v12 = vmax.f32 %v8942_v21, 0.0  ;;  %v2716_v23 = vadd.s32 %v2715_v24, %v2713_v52  ;;  %vm2873_vm2 = vcmp.eq.s32.totalorder %v5089_v30, %v2796_v2  ;;  %vm2874_vm6 = vcmp.eq.s32.totalorder %v5092_v20, %v2796_v2  ;;  %v8947_v52 = vld [vmem:[#allocation58_spill] sm:$0xff] }
 0x442   : > { %v6763_v38 = vsel %vm1262_vm4, %v8941_v13, %v6563_v46  ;;  %vm2875_vm9 = vcmp.eq.s32.totalorder %v5097_v51, %v2796_v2  ;;  %v2755_v15 = vshll.u32 %v2754_v19, 16  ;;  %v2774_v46 = vcvt.f32.s32 %v6185_v3  ;;  %v8949_v3 = vld [vmem:[#allocation60_spill] sm:$0xff] }
 0x443   : > { %v6779_v57 = vsel %vm2873_vm2, inf, %v8943_v29  ;;  %v6782_v6 = vsel %vm2874_vm6, inf, %v8945_v49  ;;  %v2753_v13 = vcvt.f32.s32 %v2752_v45  ;;  %vm2876_vm10 = vcmp.eq.s32.totalorder %v5108_v41, %v2796_v2  ;;  %v8951_v2 = vld [vmem:[#allocation61_spill] sm:$0xff] }
 0x444   : > { %8944 = vst [vmem:[#allocation47_spill] sm:$0xff] %v6779_v57  ;;  %v3015_v24 = vmin.f32 %v6779_v57, %v6782_v6  ;;  %vm2857_vm11 = vcmp.eq.s32.totalorder %v5089_v30, %v2716_v23  ;;  %4405 = vrsqrt.f32 %v6772_v12  ;;  %v6790_v19 = vsel %vm2875_vm9, inf, %v8947_v52  ;;  %v8953_v52 = vld [vmem:[#allocation59_spill] sm:$0xff] }
 0x445   : > { %8946 = vst [vmem:[#allocation50_spill] sm:$0xff] %v6782_v6  ;;  %vm2858_vm12 = vcmp.eq.s32.totalorder %v5092_v20, %v2716_v23  ;;  %v6794_v21 = vsel %vm2857_vm11, inf, %v8949_v3  ;;  %v2756_v29 = vadd.s32 %v2755_v15, %v2753_v13  ;;  %vm2859_vm13 = vcmp.eq.s32.totalorder %v5097_v51, %v2716_v23  ;;  %v8955_v13 = vld [vmem:[#allocation63_spill] sm:$0xff] }
 0x446   : > { %8948 = vst [vmem:[#allocation52_spill] sm:$0xff] %v6790_v19  ;;  %v3016_v45 = vmin.f32 %v3015_v24, %v6790_v19  ;;  %v6799_v49 = vsel %vm2858_vm12, inf, %v8951_v2  ;;  %v6801_v54 = vpop.eup %4403  ;;  %v2775_v53 = vshll.u32 %v2774_v46, 16  ;;  %v2814_v6 = vcvt.f32.s32 %v6190_v33  ;;  %v8957_v33 = vld [vmem:[#allocation64_spill] sm:$0xff]  ;;  %v8959_v2 = vld [vmem:[#allocation62_spill] sm:$0xff] }
 0x447   : > { %8950 = vst [vmem:[#allocation53_spill] sm:$0xff] %v6794_v21  ;;  %v6805_v57 = vsel %vm2876_vm10, inf, %v8953_v52  ;;  %v2995_v3 = vmin.f32 %v6794_v21, %v6799_v49  ;;  %vm2865_vm14 = vcmp.eq.s32.totalorder %v5089_v30, %v2756_v29  ;;  %vm2866_vm15 = vcmp.eq.s32.totalorder %v5092_v20, %v2756_v29 }
 0x448   : > { %8952 = vst [vmem:[#allocation51_spill] sm:$0xff] %v6799_v49  ;;  %vm2867_vm0 = vcmp.eq.s32.totalorder %v5097_v51, %v2756_v29  ;;  %vm2860_vm1 = vcmp.eq.s32.totalorder %v5108_v41, %v2716_v23  ;;  %v2773_v15 = vcvt.f32.s32 %v2772_v37  ;;  %v6814_v46 = vsel %vm2865_vm14, inf, %v8955_v13  ;;  %v8961_v37 = vld [vmem:[#allocation79_spill] sm:$0xff] }
 0x449   : > { %8954 = vst [vmem:[#allocation54_spill] sm:$0xff] %v6805_v57  ;;  %v6817_v24 = vsel %vm2866_vm15, inf, %v8957_v33  ;;  %v6820_v52 = vsel %vm2859_vm13, inf, %v8959_v2  ;;  %vm2868_vm4 = vcmp.eq.s32.totalorder %v5108_v41, %v2756_v29  ;;  %v3017_v49 = vmin.f32 %v3016_v45, %v6805_v57  ;;  %v8962_v33 = vld [vmem:[#allocation66_spill] sm:$0xff]  ;;  %v8964_v2 = vld [vmem:[#allocation65_spill] sm:$0xff] }
 0x44a   : > { %8956 = vst [vmem:[#allocation55_spill] sm:$0xff] %v6814_v46  ;;  %v3005_v19 = vmin.f32 %v6814_v46, %v6817_v24  ;;  %v2996_v21 = vmin.f32 %v2995_v3, %v6820_v52  ;;  %v6827_v23 = vpop.eup %4405  ;;  %v6830_v13 = vmax.f32 %v8961_v37, 0.0  ;;  %v2776_v18 = vadd.s32 %v2775_v53, %v2773_v15  ;;  %v2812_v46 = vpop.xlane.xlu2 %2811  ;;  %v8967_v15 = vld [vmem:[#allocation69_spill] sm:$0xff] }
 0x44b   : > { %8958 = vst [vmem:[#allocation78_spill] sm:$0xff] %v6817_v24  ;;  %v6833_v63 = vsel %vm2867_vm0, inf, %v8962_v33  ;;  %v6836_v34 = vsel %vm2860_vm1, inf, %v8964_v2  ;;  %v6839_v28 = vmax.f32 %v8966_v35, 0.0  ;;  %v2815_v24 = vshll.u32 %v2814_v6, 16  ;;  %3018 = vmin.xlane.f32.xlu2 %v3017_v49  ;;  %v8971_v49 = vld [vmem:[#allocation68_spill] sm:$0xff] }
 0x44c   : > { %8960 = vst [vmem:[#allocation80_spill] sm:$0xff] %v6820_v52  ;;  %v3006_v45 = vmin.f32 %v3005_v19, %v6833_v63  ;;  %v2997_v3 = vmin.f32 %v2996_v21, %v6836_v34  ;;  %vm1322_vm7 = vcmp.eq.f32.partialorder %v6267_v8, 0.0  ;;  %vm1310_vm5 = vcmp.eq.f32.partialorder %v6279_v25, 0.0  ;;  %v8969_v19 = vld [vmem:[#allocation67_spill] sm:$0xff] }
 0x44d   : > { %8963 = vst [vmem:[#allocation56_spill] sm:$0xff] %v6833_v63  ;;  %vm1298_vm8 = vcmp.eq.f32.partialorder %v6305_v42, 0.0  ;;  %v2813_v53 = vcvt.f32.s32 %v2812_v46  ;;  %v6849_v37 = vsel %vm2868_vm4, inf, %v8967_v15  ;;  %vm2869_vm3 = vcmp.eq.s32.totalorder %v5089_v30, %v2776_v18 }
 0x44e   : > { %8965 = vst [vmem:[#allocation57_spill] sm:$0xff] %v6836_v34  ;;  %vm2870_vm2 = vcmp.eq.s32.totalorder %v5092_v20, %v2776_v18  ;;  %vm1358_vm6 = vcmp.eq.f32.partialorder %v6346_v50, 0.0  ;;  %vm1334_vm9 = vcmp.eq.f32.partialorder %v6362_v43, 0.0  ;;  %v2131_v35 = vmul.f32 %v6747_v1, %v2130_v39  ;;  %2998 = vmin.xlane.f32.xlu1 %v2997_v3 }
 0x44f   : > { %8968 = vst [vmem:[#allocation58_spill] sm:$0xff] %v6849_v37  ;;  %v3007_v6 = vmin.f32 %v3006_v45, %v6849_v37  ;;  %v6858_v21 = vsel %vm2869_vm3, inf, %v8969_v19  ;;  %v6861_v29 = vsel %vm2870_vm2, inf, %v8971_v49  ;;  %vm1346_vm10 = vcmp.eq.f32.partialorder %v6358_v58, 0.0 }
 0x450   : > { %8970 = vst [vmem:[#allocation60_spill] sm:$0xff] %v6858_v21  ;;  %4407 = vrsqrt.f32 %v6830_v13  ;;  %v2816_v46 = vadd.s32 %v2815_v24, %v2813_v53  ;;  %vm2871_vm11 = vcmp.eq.s32.totalorder %v5097_v51, %v2776_v18  ;;  %v3010_v33 = vmin.f32 %v6858_v21, %v6861_v29  ;;  %v8974_v53 = vld [vmem:[#allocation71_spill] sm:$0xff] }
 0x451   : > { %8972 = vst [vmem:[#allocation61_spill] sm:$0xff] %v6861_v29  ;;  %v2190_v39 = vmul.f32 %v6801_v54, %v6744_v17  ;;  %4409 = vrsqrt.f32 %v6839_v28  ;;  %3008 = vmin.xlane.f32.xlu0 %v3007_v6  ;;  %v8973_v2 = vsub.f32 2.0, %v6727_v31  ;;  %v1412_v3 = vsub.f32 2.0, %v6763_v38  ;;  %v8976_v6 = vld [vmem:[#allocation72_spill] sm:$0xff]  ;;  %v8978_v31 = vld [vmem:[#allocation70_spill] sm:$0xff] }
 0x452   : > { %vm2877_vm12 = vcmp.eq.s32.totalorder %v5089_v30, %v2816_v46  ;;  %vm2878_vm13 = vcmp.eq.s32.totalorder %v5092_v20, %v2816_v46  ;;  %vm2879_vm14 = vcmp.eq.s32.totalorder %v5097_v51, %v2816_v46  ;;  %vm2872_vm15 = vcmp.eq.s32.totalorder %v5108_v41, %v2776_v18 }
 0x453   : > { %v6873_v45 = vmax.f32 %v8973_v2, 0.0  ;;  %v2156_v24 = vmul.f32 0.5, %v6766_v22  ;;  %v6882_v15 = vsel %vm2877_vm12, inf, %v8974_v53  ;;  %v6885_v19 = vsel %vm2878_vm13, inf, %v8976_v6  ;;  %v8980_v53 = vld [vmem:[#allocation74_spill] sm:$0xff]  ;;  %v8982_v6 = vld [vmem:[#allocation73_spill] sm:$0xff] }
 0x454   : > { %8975 = vst [vmem:[#allocation59_spill] sm:$0xff] %v6882_v15  ;;  %v6888_v49 = vsel %vm2871_vm11, inf, %v8978_v31  ;;  %v2132_v38 = vmul.f32 0.5, %v2131_v35  ;;  %vm2880_vm0 = vcmp.eq.s32.totalorder %v5108_v41, %v2816_v46  ;;  %v3020_v2 = vmin.f32 %v6882_v15, %v6885_v19  ;;  %v8984_v35 = vld [vmem:[#allocation82_spill] sm:$0xff] }
 0x455   : > { %8977 = vst [vmem:[#allocation63_spill] sm:$0xff] %v6885_v19  ;;  %v3011_v37 = vmin.f32 %v3010_v33, %v6888_v49  ;;  %v2191_v18 = vmul.f32 %v6801_v54, %v2190_v39  ;;  %v2166_v22 = vmul.f32 %v6827_v23, %v6772_v12  ;;  %v6898_v63 = vsel %vm2879_vm14, inf, %v8980_v53  ;;  %v8986_v53 = vld [vmem:[#allocation75_spill] sm:$0xff] }
 0x456   : > { %8979 = vst [vmem:[#allocation64_spill] sm:$0xff] %v6888_v49  ;;  %v6901_v34 = vsel %vm2872_vm15, inf, %v8982_v6  ;;  %v6903_v31 = vpop.eup %4407  ;;  %v6906_v46 = vmax.f32 %v8984_v35, 0.0  ;;  %v3021_v19 = vmin.f32 %v3020_v2, %v6898_v63  ;;  %v8985_v39 = vsub.f32 2.0, %v6734_v61 }
 0x457   : > { %8981 = vst [vmem:[#allocation62_spill] sm:$0xff] %v6898_v63  ;;  %v3012_v33 = vmin.f32 %v3011_v37, %v6901_v34  ;;  %v6914_v15 = vpop.eup %4409  ;;  %vm1370_vm1 = vcmp.eq.f32.partialorder %v6431_v56, 0.0  ;;  %v6918_v6 = vsel %vm2880_vm0, inf, %v8986_v53  ;;  %v8988_v29 = vand.u32 2147483648, %v6267_v8 }
 0x458   : > { %8983 = vst [vmem:[#allocation79_spill] sm:$0xff] %v6901_v34  ;;  %v6912_v49 = vmax.f32 %v8985_v39, 0.0  ;;  %v8989_v37 = vand.u32 2147483648, %v6305_v42  ;;  %v8990_v2 = vand.u32 2147483648, %v6279_v25  ;;  %v2157_v53 = vsub.f32 1.5, %v2156_v24 }
 0x459   : > { %8987 = vst [vmem:[#allocation66_spill] sm:$0xff] %v6918_v6  ;;  %v1324_v35 = vsel %vm1322_vm7, %v8988_v29, %v6575_v0  ;;  %v3022_v63 = vmin.f32 %v3021_v19, %v6918_v6  ;;  %3013 = vmin.xlane.f32.xlu1 %v3012_v33  ;;  %v8991_v8 = vand.u32 2147483648, %v6346_v50  ;;  %v8992_v42 = vand.u32 2147483648, %v6362_v43  ;;  %v8994_v43 = vld [vmem:[#allocation83_spill] sm:$0xff]  ;;  %v8995_v6 = vld [vmem:[#allocation84_spill] sm:$0xff] }
 0x45a   : > { %v1300_v61 = vsel %vm1298_vm8, %v8989_v37, %v6597_v44  ;;  %v1312_v39 = vsel %vm1310_vm5, %v8990_v2, %v6586_v59  ;;  %v2133_v29 = vsub.f32 1.5, %v2132_v38  ;;  %v2192_v37 = vmul.f32 0.5, %v2191_v18 }
 0x45b   : > { %v1360_v0 = vsel %vm1358_vm6, %v8991_v8, %v6603_v11  ;;  %v1336_v44 = vsel %vm1334_vm9, %v8992_v42, %v6611_v36  ;;  %v2167_v25 = vmul.f32 %v6827_v23, %v2166_v22  ;;  %v8993_v59 = vand.u32 2147483648, %v6358_v58  ;;  %3023 = vmin.xlane.f32.xlu0 %v3022_v63 }
 0x45c   : > { %v2142_v50 = vmul.f32 %v6903_v31, %v6830_v13  ;;  %v2226_v11 = vmul.f32 %v6914_v15, %v6839_v28  ;;  %4411 = vrsqrt.f32 %v6906_v46  ;;  %v6958_v36 = vmax.f32 %v8994_v43, 0.0 }
 0x45d   : > { %v1348_v24 = vsel %vm1346_vm10, %v8993_v59, %v6606_v7  ;;  %v1417_v19 = vsub.f32 2.0, %v1324_v35  ;;  %v1415_v38 = vsub.f32 2.0, %v1300_v61  ;;  %v1420_v18 = vsub.f32 2.0, %v1360_v0  ;;  %v8996_v35 = vld [vmem:[#allocation85_spill] sm:$0xff] }
 0x45e   : > { %v1416_v22 = vsub.f32 2.0, %v1312_v39  ;;  %v2158_v33 = vmul.f32 %v6709_v4, %v2157_v53  ;;  %v6961_v58 = vmax.f32 %v1412_v3, 0.0  ;;  %v1418_v7 = vsub.f32 2.0, %v1336_v44 }
 0x45f   : > { %v1419_v2 = vsub.f32 2.0, %v1348_v24  ;;  %v2134_v8 = vmul.f32 %v6747_v1, %v2133_v29  ;;  %v2193_v42 = vsub.f32 1.5, %v2192_v37  ;;  %v2168_v59 = vmul.f32 0.5, %v2167_v25 }
 0x460   : > { %v6965_v34 = vmax.f32 %v8995_v6, 0.0  ;;  %v2143_v43 = vmul.f32 %v6903_v31, %v2142_v50  ;;  %v2227_v63 = vmul.f32 %v6914_v15, %v2226_v11  ;;  %4413 = vrsqrt.f32 %v6958_v36 }
 0x461   : > { %v6971_v61 = vmax.f32 %v8996_v35, 0.0  ;;  %v6973_v4 = vmax.f32 %v1417_v19, 0.0  ;;  %v6975_v3 = vmax.f32 %v1415_v38, 0.0  ;;  %v6977_v39 = vmax.f32 %v1420_v18, 0.0  ;;  %v8999_v38 = vld [vmem:[#allocation86_spill] sm:$0xff] }
 0x462   : > { %v6979_v1 = vmax.f32 %v1416_v22, 0.0  ;;  %v6981_v53 = vpop.eup %4411  ;;  %v2159_v6 = vmul.f32 %v2158_v33, %v6624_v26  ;;  %v6984_v0 = vmax.f32 %v1418_v7, 0.0  ;;  %v6986_v44 = vmax.f32 %v1419_v2, 0.0  ;;  %v9001_v2 = vld [vmem:[#allocation89_spill] sm:$0xff] }
 0x463   : > { %v8998_v29 = vand.u32 2147483648, %v6431_v56  ;;  %v2135_v25 = vmul.f32 %v2134_v8, %v6657_v48  ;;  %v2194_v24 = vmul.f32 %v6801_v54, %v2193_v42  ;;  %v2169_v50 = vsub.f32 1.5, %v2168_v59 }
 0x464   : > { %8997 = vst [vmem:[#allocation65_spill] sm:$0xff] %v6986_v44  ;;  %4415 = vrsqrt.f32 %v6965_v34  ;;  %v2144_v11 = vmul.f32 0.5, %v2143_v43  ;;  %v2228_v19 = vmul.f32 0.5, %v2227_v63  ;;  %v6998_v18 = vmax.f32 %v8999_v38, 0.0  ;;  %v9002_v63 = vld [vmem:[#allocation90_spill] sm:$0xff] }
 0x465   : > { %v1372_v37 = vsel %vm1370_vm1, %v8998_v29, %v6739_v47  ;;  %4417 = vrsqrt.f32 %v6971_v61  ;;  %vm2160_vm4 = vcmp.eq.f32.partialorder %v6624_v26, inf  ;;  %v2178_v56 = vmul.f32 %v6981_v53, %v6906_v46  ;;  %v9000_v47 = vld [vmem:[#allocation87_spill] sm:$0xff] }
 0x466   : > { %v7004_v22 = vmax.f32 %v9000_v47, 0.0  ;;  %v1421_v33 = vsub.f32 2.0, %v1372_v37  ;;  %v7006_v54 = vpop.eup %4413  ;;  %vm2162_vm7 = vcmp.eq.f32.partialorder %v6624_v26, 0.0  ;;  %v2163_v7 = vand.u32 2147483648, %v6624_v26 }
 0x467   : > { %vm2136_vm5 = vcmp.eq.f32.partialorder %v6657_v48, inf  ;;  %v7012_v8 = vmax.f32 %v9001_v2, 0.0  ;;  %v2161_v42 = vsel %vm2160_vm4, %v6624_v26, %v2159_v6  ;;  %v2195_v43 = vmul.f32 %v2194_v24, %v6744_v17 }
 0x468   : > { %v2137_v59 = vsel %vm2136_vm5, %v6657_v48, %v2135_v25  ;;  %v7018_v35 = vmax.f32 %v9002_v63, 0.0  ;;  %v2145_v29 = vsub.f32 1.5, %v2144_v11  ;;  %v2170_v37 = vmul.f32 %v6827_v23, %v2169_v50 }
 0x469   : > { %v2229_v38 = vsub.f32 1.5, %v2228_v19  ;;  %4419 = vrsqrt.f32 %v6998_v18  ;;  %v2139_v2 = vand.u32 2147483648, %v6657_v48  ;;  %v2179_v44 = vmul.f32 %v6981_v53, %v2178_v56 }
 0x46a   : > { %v7022_v47 = vpop.eup %4415  ;;  %v2202_v6 = vmul.f32 %v7006_v54, %v6958_v36  ;;  %4421 = vrsqrt.f32 %v7004_v22  ;;  %v7033_v24 = vsel %vm2162_vm7, %v2163_v7, %v2161_v42  ;;  %vm2138_vm8 = vcmp.eq.f32.partialorder %v6657_v48, 0.0 }
 0x46b   : > { %v7029_v25 = vpop.eup %4417  ;;  %4423 = vrsqrt.f32 %v7012_v8  ;;  %v7037_v23 = vmax.f32 %v1421_v33, 0.0  ;;  %v7039_v50 = vsel %vm2138_vm8, %v2139_v2, %v2137_v59  ;;  %vm2196_vm3 = vcmp.eq.f32.partialorder %v6744_v17, inf }
 0x46c   : > { %v2199_v11 = vand.u32 2147483648, %v6744_v17  ;;  %4425 = vrsqrt.f32 %v7018_v35  ;;  %v2197_v19 = vsel %vm2196_vm3, %v6744_v17, %v2195_v43  ;;  %v2146_v26 = vmul.f32 %v6903_v31, %v2145_v29 }
 0x46d   : > { %9003 = vst [vmem:[#allocation81_spill] sm:$0xff] %v7037_v23  ;;  %v2171_v56 = vmul.f32 %v2170_v37, %v6772_v12  ;;  %v2230_v48 = vmul.f32 %v6914_v15, %v2229_v38  ;;  %v2180_v7 = vmul.f32 0.5, %v2179_v44  ;;  %v2203_v33 = vmul.f32 %v7006_v54, %v2202_v6 }
 0x46e   : > { %v2262_v42 = vmul.f32 %v7022_v47, %v6965_v34  ;;  %v2214_v59 = vmul.f32 %v7029_v25, %v6971_v61  ;;  %vm2198_vm2 = vcmp.eq.f32.partialorder %v6744_v17, 0.0  ;;  %vm2172_vm6 = vcmp.eq.f32.partialorder %v6772_v12, inf }
 0x46f   : > { %v7053_v63 = vpop.eup %4419  ;;  %v9004_v31 = vsub.f32 2.0, %v6672_v32  ;;  %v7065_v29 = vsel %vm2198_vm2, %v2199_v11, %v2197_v19  ;;  %vm2174_vm9 = vcmp.eq.f32.partialorder %v6772_v12, 0.0  ;;  %v2175_v37 = vand.u32 2147483648, %v6772_v12 }
 0x470   : > { %v7062_v44 = vpop.eup %4421  ;;  %v2147_v17 = vmul.f32 %v2146_v26, %v6830_v13  ;;  %vm2148_vm10 = vcmp.eq.f32.partialorder %v6830_v13, inf  ;;  %v2173_v32 = vsel %vm2172_vm6, %v6772_v12, %v2171_v56  ;;  %v2231_v6 = vmul.f32 %v2230_v48, %v6839_v28 }
 0x471   : > { %v7060_v15 = vmax.f32 %v9004_v31, 0.0  ;;  %v7069_v38 = vpop.eup %4423  ;;  %v2181_v2 = vsub.f32 1.5, %v2180_v7  ;;  %v2204_v43 = vmul.f32 0.5, %v2203_v33  ;;  %v2263_v11 = vmul.f32 %v7022_v47, %v2262_v42 }
 0x472   : > { %v7075_v31 = vpop.eup %4425  ;;  %v2215_v19 = vmul.f32 %v7029_v25, %v2214_v59  ;;  %vm2150_vm11 = vcmp.eq.f32.partialorder %v6830_v13, 0.0  ;;  %v2151_v26 = vand.u32 2147483648, %v6830_v13  ;;  %v2238_v23 = vmul.f32 %v7053_v63, %v6998_v18  ;;  %v7100_v59 = vpop.xlane.xlu2 %2958 }
 0x473   : > { %9005 = vst [vmem:[#allocation69_spill] sm:$0xff] %v7060_v15  ;;  %v7086_v56 = vsel %vm2174_vm9, %v2175_v37, %v2173_v32  ;;  %vm2232_vm12 = vcmp.eq.f32.partialorder %v6839_v28, inf  ;;  %v2250_v48 = vmul.f32 %v7062_v44, %v7004_v22  ;;  %v2274_v7 = vmul.f32 %v7069_v38, %v7012_v8 }
 0x474   : > { %v2149_v33 = vsel %vm2148_vm10, %v6830_v13, %v2147_v17  ;;  %v2233_v42 = vsel %vm2232_vm12, %v6839_v28, %v2231_v6  ;;  %vm2234_vm13 = vcmp.eq.f32.partialorder %v6839_v28, 0.0  ;;  %v2286_v12 = vmul.f32 %v7075_v31, %v7018_v35 }
 0x475   : > { %v2182_v37 = vmul.f32 %v6981_v53, %v2181_v2  ;;  %v2205_v32 = vsub.f32 1.5, %v2204_v43  ;;  %v2264_v15 = vmul.f32 0.5, %v2263_v11  ;;  %v2216_v52 = vmul.f32 0.5, %v2215_v19  ;;  %v7113_v53 = vpop.xlane.xlu0 %2948 }
 0x476   : > { %v2235_v21 = vand.u32 2147483648, %v6839_v28  ;;  %vm2184_vm14 = vcmp.eq.f32.partialorder %v6906_v46, inf  ;;  %v2239_v17 = vmul.f32 %v7053_v63, %v2238_v23  ;;  %v2251_v6 = vmul.f32 %v7062_v44, %v2250_v48  ;;  %v9006_v28 = vld [vmem:[#allocation21_spill] sm:$0xff] }
 0x477   : > { %v2275_v60 = vmul.f32 %v7069_v38, %v2274_v7  ;;  %vm3289_vm15 = vcmp.eq.f32.partialorder %v6211_v27, %v7100_v59  ;;  %vm3290_vm0 = vcmp.eq.f32.partialorder %v6214_v55, %v7100_v59  ;;  %v7117_v2 = vsel %vm2150_vm11, %v2151_v26, %v2149_v33  ;;  %v9009_v27 = vld [vmem:[#allocation13_spill] sm:$0xff] }
 0x478   : > { %v7121_v43 = vsel %vm2234_vm13, %v2235_v21, %v2233_v42  ;;  %v2187_v23 = vand.u32 2147483648, %v6906_v46  ;;  %v2287_v11 = vmul.f32 %v7075_v31, %v2286_v12  ;;  %v2183_v19 = vmul.f32 %v2182_v37, %v6906_v46  ;;  %v9007_v21 = vld [vmem:[#allocation11_spill] sm:$0xff] }
 0x479   : > { %v2206_v48 = vmul.f32 %v7006_v54, %v2205_v32  ;;  %v2265_v7 = vsub.f32 1.5, %v2264_v15  ;;  %v2217_v57 = vsub.f32 1.5, %v2216_v52  ;;  %vm2186_vm1 = vcmp.eq.f32.partialorder %v6906_v46, 0.0 }
 0x47a   : > { %v3353_v13 = vsel %vm3289_vm15, %v5089_v30, 512  ;;  %v3354_v26 = vsel %vm3290_vm0, %v5092_v20, 512  ;;  %vm3281_vm4 = vcmp.eq.f32.partialorder %v9006_v28, %v7113_v53  ;;  %vm3282_vm7 = vcmp.eq.f32.partialorder %v9007_v21, %v7113_v53  ;;  %v9008_v28 = vld [vmem:[#allocation15_spill] sm:$0xff] }
 0x47b   : > { %v2240_v42 = vmul.f32 0.5, %v2239_v17  ;;  %v2252_v12 = vmul.f32 0.5, %v2251_v6  ;;  %v2276_v37 = vmul.f32 0.5, %v2275_v60  ;;  %vm2208_vm5 = vcmp.eq.f32.partialorder %v6958_v36, inf }
 0x47c   : > { %v2211_v52 = vand.u32 2147483648, %v6958_v36  ;;  %v2288_v15 = vmul.f32 0.5, %v2287_v11  ;;  %v3345_v32 = vsel %vm3281_vm4, %v5089_v30, 512  ;;  %v3346_v55 = vsel %vm3282_vm7, %v5092_v20, 512 }
 0x47d   : > { %vm3291_vm8 = vcmp.eq.f32.partialorder %v9008_v28, %v7100_v59  ;;  %vm3449_vm3 = vcmp.lt.s32.totalorder %v3353_v13, %v3354_v26  ;;  %v2185_v17 = vsel %vm2184_vm14, %v6906_v46, %v2183_v19  ;;  %v2207_v60 = vmul.f32 %v2206_v48, %v6958_v36  ;;  %v9010_v19 = vld [vmem:[#allocation14_spill] sm:$0xff] }
 0x47e   : > { %v2266_v6 = vmul.f32 %v7022_v47, %v2265_v7  ;;  %v2218_v54 = vmul.f32 %v7029_v25, %v2217_v57  ;;  %vm2210_vm2 = vcmp.eq.f32.partialorder %v6958_v36, 0.0  ;;  %v2241_v11 = vsub.f32 1.5, %v2240_v42  ;;  %v9011_v42 = vld [vmem:[#allocation22_spill] sm:$0xff] }
 0x47f   : > { %v2253_v33 = vsub.f32 1.5, %v2252_v12  ;;  %v2277_v21 = vsub.f32 1.5, %v2276_v37  ;;  %vm3292_vm6 = vcmp.eq.f32.partialorder %v9009_v27, %v7100_v59  ;;  %vm2268_vm9 = vcmp.eq.f32.partialorder %v6965_v34, inf }
 0x480   : > { %v3355_v28 = vsel %vm3291_vm8, %v5097_v51, 512  ;;  %v3450_v40 = vsel %vm3449_vm3, %v3353_v13, %v3354_v26  ;;  %vm3283_vm10 = vcmp.eq.f32.partialorder %v9010_v19, %v7113_v53  ;;  %vm3409_vm11 = vcmp.lt.s32.totalorder %v3345_v32, %v3346_v55 }
 0x481   : > { %v2289_v47 = vsub.f32 1.5, %v2288_v15  ;;  %vm3451_vm12 = vcmp.lt.s32.totalorder %v3450_v40, %v3355_v28  ;;  %v3347_v57 = vsel %vm3283_vm10, %v5097_v51, 512  ;;  %v3410_v25 = vsel %vm3409_vm11, %v3345_v32, %v3346_v55 }
 0x482   : > { %v3356_v48 = vsel %vm3292_vm6, %v5108_v41, 512  ;;  %v3452_v7 = vsel %vm3451_vm12, %v3450_v40, %v3355_v28  ;;  %vm3284_vm13 = vcmp.eq.f32.partialorder %v9011_v42, %v7113_v53  ;;  %vm3411_vm14 = vcmp.lt.s32.totalorder %v3410_v25, %v3347_v57 }
 0x483   : > { %v7161_v12 = vsel %vm2186_vm1, %v2187_v23, %v2185_v17  ;;  %v2209_v13 = vsel %vm2208_vm5, %v6958_v36, %v2207_v60  ;;  %vm2270_vm15 = vcmp.eq.f32.partialorder %v6965_v34, 0.0  ;;  %vm3453_vm0 = vcmp.lt.s32.totalorder %v3452_v7, %v3356_v48 }
 0x484   : > { %v2267_v55 = vmul.f32 %v2266_v6, %v6965_v34  ;;  %v2219_v26 = vmul.f32 %v2218_v54, %v6971_v61  ;;  %v7169_v40 = vsel %vm3453_vm0, %v3452_v7, %v3356_v48  ;;  %v3412_v28 = vsel %vm3411_vm14, %v3410_v25, %v3347_v57 }
 0x485   : > { %v2242_v37 = vmul.f32 %v7053_v63, %v2241_v11  ;;  %v2254_v46 = vmul.f32 %v7062_v44, %v2253_v33  ;;  %v2278_v23 = vmul.f32 %v7069_v38, %v2277_v21  ;;  %v3348_v15 = vsel %vm3284_vm13, %v5108_v41, 512 }
 0x486   : > { %v2290_v32 = vmul.f32 %v7075_v31, %v2289_v47  ;;  %v7177_v17 = vmax.f32 %v7100_v59, 0.0  ;;  %v3456_v60 = vshra.s32 %v7169_v40, 16  ;;  %vm3413_vm1 = vcmp.lt.s32.totalorder %v3412_v28, %v3348_v15 }
 0x487   : > { %v2271_v54 = vand.u32 2147483648, %v6965_v34  ;;  %vm2220_vm4 = vcmp.eq.f32.partialorder %v6971_v61, inf  ;;  %vm2222_vm7 = vcmp.eq.f32.partialorder %v6971_v61, 0.0  ;;  %v7183_v63 = vsel %vm3413_vm1, %v3412_v28, %v3348_v15 }
 0x488   : > { %v7188_v38 = vsel %vm2210_vm2, %v2211_v52, %v2209_v13  ;;  %v2223_v31 = vand.u32 2147483648, %v6971_v61  ;;  %v7191_v59 = vcvt.s32.f32 %v3456_v60  ;;  %v2269_v21 = vsel %vm2268_vm9, %v6965_v34, %v2267_v55  ;;  %v2974_v13 = vpop.xlane.xlu2 %2973  ;;  %v9015_v60 = vld [vmem:[#allocation24_spill] sm:$0xff] }
 0x489   : > { %v2221_v33 = vsel %vm2220_vm4, %v6971_v61, %v2219_v26  ;;  %v2243_v6 = vmul.f32 %v2242_v37, %v6998_v18  ;;  %v2255_v11 = vmul.f32 %v2254_v46, %v7004_v22  ;;  %v2279_v47 = vmul.f32 %v2278_v23, %v7012_v8 }
 0x48a   : > { %9012 = vst [vmem:[#allocation67_spill] sm:$0xff] %v7191_v59  ;;  %v2291_v36 = vmul.f32 %v2290_v32, %v7018_v35  ;;  %4427 = vrsqrt.f32 %v7177_v17  ;;  %3459 = vmin.xlane.f32.xlu0 %v7191_v59  ;;  %v3416_v52 = vshra.s32 %v7183_v63, 16  ;;  %vm2244_vm5 = vcmp.eq.f32.partialorder %v6998_v18, inf  ;;  %v9014_v32 = vld [vmem:[#allocation23_spill] sm:$0xff] }
 0x48b   : > { %vm2246_vm8 = vcmp.eq.f32.partialorder %v6998_v18, 0.0  ;;  %v2247_v25 = vand.u32 2147483648, %v6998_v18  ;;  %v7210_v48 = vsel %vm2270_vm15, %v2271_v54, %v2269_v21  ;;  %v7214_v7 = vsel %vm2222_vm7, %v2223_v31, %v2221_v33 }
 0x48c   : > { %vm2256_vm3 = vcmp.eq.f32.partialorder %v7004_v22, inf  ;;  %v7217_v55 = vcvt.s32.f32 %v3416_v52  ;;  %v2245_v26 = vsel %vm2244_vm5, %v6998_v18, %v2243_v6  ;;  %vm2280_vm2 = vcmp.eq.f32.partialorder %v7012_v8, inf }
 0x48d   : > { %vm2292_vm6 = vcmp.eq.f32.partialorder %v7018_v35, inf  ;;  %v7223_v28 = vmax.f32 %v7113_v53, 0.0  ;;  %v2257_v34 = vsel %vm2256_vm3, %v7004_v22, %v2255_v11  ;;  %v2259_v61 = vand.u32 2147483648, %v7004_v22  ;;  %v7252_v11 = vpop.xlane.xlu1 %2953 }
 0x48e   : > { %9013 = vst [vmem:[#allocation68_spill] sm:$0xff] %v7217_v55  ;;  %v2281_v37 = vsel %vm2280_vm2, %v7012_v8, %v2279_v47  ;;  %v2293_v46 = vsel %vm2292_vm6, %v7018_v35, %v2291_v36  ;;  %3419 = vmin.xlane.f32.xlu1 %v7217_v55  ;;  %v2283_v23 = vand.u32 2147483648, %v7012_v8  ;;  %v2295_v15 = vand.u32 2147483648, %v7018_v35 }
 0x48f   : > { %vm3301_vm9 = vcmp.eq.f32.partialorder %v9014_v32, %v2974_v13  ;;  %vm3302_vm10 = vcmp.eq.f32.partialorder %v9015_v60, %v2974_v13  ;;  %v7238_v54 = vsel %vm2246_vm8, %v2247_v25, %v2245_v26  ;;  %vm2258_vm11 = vcmp.eq.f32.partialorder %v7004_v22, 0.0 }
 0x490   : > { %v7234_v53 = vpop.eup %4427  ;;  %vm2282_vm12 = vcmp.eq.f32.partialorder %v7012_v8, 0.0  ;;  %vm2294_vm13 = vcmp.eq.f32.partialorder %v7018_v35, 0.0  ;;  %v7243_v31 = vsel %vm2258_vm11, %v2259_v61, %v2257_v34  ;;  %4429 = vrsqrt.f32 %v7223_v28  ;;  %v9023_v34 = vld [vmem:[#allocation28_spill] sm:$0xff] }
 0x491   : > { %v7245_v21 = vsel %vm2282_vm12, %v2283_v23, %v2281_v37  ;;  %v7247_v33 = vsel %vm2294_vm13, %v2295_v15, %v2293_v46  ;;  %v3365_v6 = vsel %vm3301_vm9, %v5089_v30, 512  ;;  %v3366_v18 = vsel %vm3302_vm10, %v5092_v20, 512  ;;  %v9021_v23 = vld [vmem:[#allocation25_spill] sm:$0xff] }
 0x492   : > { %v9016_v22 = vsub.f32 2.0, %v7033_v24  ;;  %v9017_v8 = vsub.f32 2.0, %v7039_v50  ;;  %v2332_v36 = vsub.f32 2.0, %v7210_v48  ;;  %v2328_v52 = vsub.f32 2.0, %v7214_v7  ;;  %v9019_v50 = vld [vmem:[#allocation26_spill] sm:$0xff]  ;;  %v9020_v48 = vld [vmem:[#allocation5_spill] sm:$0xff]  ;;  %v7272_v7 = vpop.xlane.xlu0 %2963 }
 0x493   : > { %v2330_v25 = vsub.f32 2.0, %v7238_v54  ;;  %v3066_v26 = vmul.f32 %v7234_v53, %v7177_v17  ;;  %v9018_v24 = vsub.f32 2.0, %v7065_v29  ;;  %vm3285_vm14 = vcmp.eq.f32.partialorder %v9019_v50, %v7252_v11 }
 0x494   : > { %v2339_v47 = vmax.f32 %v9016_v22, 0.0  ;;  %v2337_v35 = vmax.f32 %v9017_v8, 0.0  ;;  %vm3286_vm15 = vcmp.eq.f32.partialorder %v9020_v48, %v7252_v11  ;;  %vm3303_vm0 = vcmp.eq.f32.partialorder %v9021_v23, %v2974_v13 }
 0x495   : > { %v2342_v46 = vmax.f32 %v9018_v24, 0.0  ;;  %vm3509_vm1 = vcmp.lt.s32.totalorder %v3365_v6, %v3366_v18  ;;  %v7275_v15 = vmax.f32 %v2974_v13, 0.0  ;;  %v9022_v29 = vsub.f32 2.0, %v7117_v2 }
 0x496   : > { %v7278_v54 = vadd.f32 %v2339_v47, %v6749_v9  ;;  %v7281_v22 = vadd.f32 %v2337_v35, %v6751_v16  ;;  %v7285_v24 = vpop.eup %4429  ;;  %v3067_v37 = vmul.f32 %v7234_v53, %v3066_v26  ;;  %v7289_v61 = vmax.f32 %v7252_v11, 0.0 }
 0x497   : > { %v2338_v8 = vmax.f32 %v9022_v29, 0.0  ;;  %vm3304_vm4 = vcmp.eq.f32.partialorder %v9023_v34, %v2974_v13  ;;  %v3510_v57 = vsel %vm3509_vm1, %v3365_v6, %v3366_v18  ;;  %v3349_v44 = vsel %vm3285_vm14, %v5089_v30, 512 }
 0x498   : > { %v3350_v9 = vsel %vm3286_vm15, %v5092_v20, 512  ;;  %v7295_v16 = vmax.f32 %v7272_v7, 0.0  ;;  %v3367_v2 = vsel %vm3303_vm0, %v5097_v51, 512  ;;  %v7299_v47 = vadd.f32 %v2342_v46, %v6873_v45 }
 0x499   : > { %vm3511_vm7 = vcmp.lt.s32.totalorder %v3510_v57, %v3367_v2  ;;  %v9024_v35 = vsub.f32 2.0, %v7086_v56  ;;  %v9025_v29 = vsub.f32 2.0, %v7121_v43  ;;  %v3042_v6 = vmul.f32 %v7285_v24, %v7223_v28  ;;  %v9027_v43 = vld [vmem:[#allocation9_spill] sm:$0xff] }
 0x49a   : > { %4431 = vrsqrt.f32 %v7275_v15  ;;  %v3368_v18 = vsel %vm3304_vm4, %v5108_v41, 512  ;;  %v3512_v48 = vsel %vm3511_vm7, %v3510_v57, %v3367_v2  ;;  %vm3429_vm8 = vcmp.lt.s32.totalorder %v3349_v44, %v3350_v9  ;;  %v9029_v57 = vld [vmem:[#allocation27_spill] sm:$0xff] }
 0x49b   : > { %v2340_v26 = vmax.f32 %v9024_v35, 0.0  ;;  %v2345_v13 = vmax.f32 %v9025_v29, 0.0  ;;  %4433 = vrsqrt.f32 %v7289_v61  ;;  %vm3513_vm5 = vcmp.lt.s32.totalorder %v3512_v48, %v3368_v18  ;;  %v9028_v29 = vld [vmem:[#allocation17_spill] sm:$0xff] }
 0x49c   : > { %v9026_v45 = vsub.f32 2.0, %v7161_v12  ;;  %v7312_v56 = vmul.f32 0.5, %v3067_v37  ;;  %4435 = vrsqrt.f32 %v7295_v16  ;;  %vm3287_vm3 = vcmp.eq.f32.partialorder %v9027_v43, %v7252_v11  ;;  %v9033_v43 = vld [vmem:[#allocation31_spill] sm:$0xff] }
 0x49d   : > { %v7318_v35 = vadd.f32 %v2338_v8, %v6912_v49  ;;  %vm3293_vm2 = vcmp.eq.f32.partialorder %v9028_v29, %v7272_v7  ;;  %vm3294_vm6 = vcmp.eq.f32.partialorder %v9029_v57, %v7272_v7  ;;  %v7324_v2 = vsel %vm3513_vm5, %v3512_v48, %v3368_v18  ;;  %v9035_v18 = vld [vmem:[#allocation30_spill] sm:$0xff] }
 0x49e   : > { %v2341_v46 = vmax.f32 %v9026_v45, 0.0  ;;  %9030 = vst [vmem:[#allocation71_spill] sm:$0xff] %v7324_v2  ;;  %v3430_v12 = vsel %vm3429_vm8, %v3349_v44, %v3350_v9  ;;  %v3043_v37 = vmul.f32 %v7285_v24, %v3042_v6  ;;  %v7328_v45 = vadd.f32 %v2340_v26, %v6961_v58 }
 0x49f   : > { %v7331_v50 = vadd.f32 %v2345_v13, %v6973_v4  ;;  %v9032_v49 = vsub.f32 2.0, %v7188_v38  ;;  %vm3288_vm9 = vcmp.eq.f32.partialorder %v9033_v43, %v7252_v11  ;;  %v3351_v29 = vsel %vm3287_vm3, %v5097_v51, 512  ;;  %v7345_v4 = vpop.xlane.xlu2 %2988  ;;  %v9039_v43 = vld [vmem:[#allocation16_spill] sm:$0xff] }
 0x4a0   : > { %v7339_v48 = vadd.f32 %v2341_v46, %v6756_v10  ;;  %v2348_v44 = vmax.f32 %v2332_v36, 0.0  ;;  %v7341_v9 = vpop.eup %4431  ;;  %v3357_v58 = vsel %vm3293_vm2, %v5089_v30, 512  ;;  %v3358_v26 = vsel %vm3294_vm6, %v5092_v20, 512 }
 0x4a1   : > { %9031 = vst [vmem:[#allocation72_spill] sm:$0xff] %v7331_v50  ;;  %v2343_v8 = vmax.f32 %v9032_v49, 0.0  ;;  %v3516_v38 = vshra.s32 %v7324_v2, 16  ;;  %vm3431_vm10 = vcmp.lt.s32.totalorder %v3430_v12, %v3351_v29  ;;  %v7348_v13 = vpop.eup %4433  ;;  %v3069_v6 = vsub.f32 1.5, %v7312_v56  ;;  %v9037_v56 = vld [vmem:[#allocation29_spill] sm:$0xff] }
 0x4a2   : > { %9034 = vst [vmem:[#allocation70_spill] sm:$0xff] %v7339_v48  ;;  %vm3295_vm11 = vcmp.eq.f32.partialorder %v9035_v18, %v7272_v7  ;;  %v2344_v10 = vmax.f32 %v2328_v52, 0.0  ;;  %v2346_v36 = vmax.f32 %v2330_v25, 0.0  ;;  %v7353_v46 = vpop.eup %4435  ;;  %v3044_v49 = vmul.f32 0.5, %v3043_v37  ;;  %v7368_v25 = vpop.xlane.xlu1 %2968  ;;  %v9096_v48 = vld [vmem:[#allocation61_spill] sm:$0xff] }
 0x4a3   : > { %v7355_v57 = vcvt.s32.f32 %v3516_v38  ;;  %v3352_v34 = vsel %vm3288_vm9, %v5108_v41, 512  ;;  %v3432_v23 = vsel %vm3431_vm10, %v3430_v12, %v3351_v29  ;;  %v7362_v60 = vmax.f32 %v7345_v4, 0.0 }
 0x4a4   : > { %vm3433_vm12 = vcmp.lt.s32.totalorder %v3432_v23, %v3352_v34  ;;  %vm3296_vm13 = vcmp.eq.f32.partialorder %v9037_v56, %v7272_v7  ;;  %vm3469_vm14 = vcmp.lt.s32.totalorder %v3357_v58, %v3358_v26  ;;  %v3102_v52 = vmul.f32 %v7341_v9, %v7275_v15 }
 0x4a5   : > { %9036 = vst [vmem:[#allocation74_spill] sm:$0xff] %v7355_v57  ;;  %3519 = vmin.xlane.f32.xlu0 %v7355_v57  ;;  %v7371_v37 = vsel %vm3433_vm12, %v3432_v23, %v3352_v34  ;;  %v3359_v11 = vsel %vm3295_vm11, %v5097_v51, 512  ;;  %v3470_v29 = vsel %vm3469_vm14, %v3357_v58, %v3358_v26  ;;  %v3054_v12 = vmul.f32 %v7348_v13, %v7289_v61  ;;  %v9040_v34 = vld [vmem:[#allocation4_spill] sm:$0xff] }
 0x4a6   : > { %9038 = vst [vmem:[#allocation73_spill] sm:$0xff] %v7371_v37  ;;  %v3078_v38 = vmul.f32 %v7353_v46, %v7295_v16  ;;  %v3436_v56 = vshra.s32 %v7371_v37, 16  ;;  %vm3471_vm15 = vcmp.lt.s32.totalorder %v3470_v29, %v3359_v11  ;;  %vm3313_vm0 = vcmp.eq.f32.partialorder %v9039_v43, %v7345_v4  ;;  %v9077_v37 = vld [vmem:[#allocation48_spill] sm:$0xff] }
 0x4a7   : > { %vm3314_vm1 = vcmp.eq.f32.partialorder %v9040_v34, %v7345_v4  ;;  %v3360_v23 = vsel %vm3296_vm13, %v5108_v41, 512  ;;  %v3472_v7 = vsel %vm3471_vm15, %v3470_v29, %v3359_v11  ;;  %4437 = vrsqrt.f32 %v7362_v60 }
 0x4a8   : > { %v7389_v58 = vmax.f32 %v7368_v25, 0.0  ;;  %v7391_v26 = vcvt.s32.f32 %v3436_v56  ;;  %vm3473_vm4 = vcmp.lt.s32.totalorder %v3472_v7, %v3360_v23  ;;  %v3045_v18 = vsub.f32 1.5, %v3044_v49 }
 0x4a9   : > { %v3103_v32 = vmul.f32 %v7341_v9, %v3102_v52  ;;  %v7394_v42 = vsel %vm3473_vm4, %v3472_v7, %v3360_v23  ;;  %v7397_v43 = vadd.f32 %v2343_v8, %v6975_v3  ;;  %v3055_v34 = vmul.f32 %v7348_v13, %v3054_v12  ;;  %v7413_v8 = vpop.xlane.xlu0 %2978  ;;  %v9047_v23 = vld [vmem:[#allocation10_spill] sm:$0xff] }
 0x4aa   : > { %9041 = vst [vmem:[#allocation82_spill] sm:$0xff] %v7391_v26  ;;  %v3377_v11 = vsel %vm3313_vm0, %v5089_v30, 512  ;;  %v3378_v29 = vsel %vm3314_vm1, %v5092_v20, 512  ;;  %3439 = vmin.xlane.f32.xlu2 %v7391_v26  ;;  %v3476_v56 = vshra.s32 %v7394_v42, 16  ;;  %v3070_v27 = vmul.f32 %v7234_v53, %v3069_v6 }
 0x4ab   : > { %9042 = vst [vmem:[#allocation75_spill] sm:$0xff] %v7394_v42  ;;  %v3079_v49 = vmul.f32 %v7353_v46, %v3078_v38  ;;  %v7407_v52 = vadd.f32 %v2348_v44, %v6977_v39  ;;  %v7410_v3 = vadd.f32 %v2344_v10, %v6979_v1  ;;  %4439 = vrsqrt.f32 %v7389_v58 }
 0x4ac   : > { %9043 = vst [vmem:[#allocation83_spill] sm:$0xff] %v7397_v43  ;;  %v7415_v12 = vcvt.s32.f32 %v3476_v56  ;;  %vm3315_vm7 = vcmp.eq.f32.partialorder %v9047_v23, %v7345_v4  ;;  %v7420_v7 = vadd.f32 %v2346_v36, %v6984_v0  ;;  %vm3569_vm5 = vcmp.lt.s32.totalorder %v3377_v11, %v3378_v29  ;;  %v9095_v43 = vld [vmem:[#allocation80_spill] sm:$0xff] }
 0x4ad   : > { %9044 = vst [vmem:[#allocation84_spill] sm:$0xff] %v7407_v52  ;;  %v9049_v53 = vsub.f32 2.0, %v7243_v31  ;;  %v9051_v1 = vsub.f32 2.0, %v7245_v21  ;;  %v9053_v6 = vsub.f32 2.0, %v7247_v33  ;;  %v7434_v38 = vpop.eup %4437  ;;  %v3046_v56 = vmul.f32 %v7285_v24, %v3045_v18  ;;  %v9055_v33 = vld [vmem:[#allocation8_spill] sm:$0xff] }
 0x4ae   : > { %9045 = vst [vmem:[#allocation85_spill] sm:$0xff] %v7410_v3  ;;  %v3104_v23 = vmul.f32 0.5, %v3103_v32  ;;  %v3056_v0 = vmul.f32 0.5, %v3055_v34  ;;  %3479 = vmin.xlane.f32.xlu1 %v7415_v12  ;;  %v3570_v36 = vsel %vm3569_vm5, %v3377_v11, %v3378_v29  ;;  %v3071_v31 = vmul.f32 %v3070_v27, %v7177_v17  ;;  %v9057_v32 = vld [vmem:[#allocation7_spill] sm:$0xff] }
 0x4af   : > { %9046 = vst [vmem:[#allocation86_spill] sm:$0xff] %v7415_v12  ;;  %v7424_v39 = vmax.f32 %v9049_v53, 0.0  ;;  %v7428_v44 = vmax.f32 %v9051_v1, 0.0  ;;  %v7432_v10 = vmax.f32 %v9053_v6, 0.0  ;;  %v3080_v53 = vmul.f32 0.5, %v3079_v49  ;;  %v9056_v6 = vld [vmem:[#allocation32_spill] sm:$0xff] }
 0x4b0   : > { %9048 = vst [vmem:[#allocation87_spill] sm:$0xff] %v7420_v7  ;;  %v7440_v21 = vmax.f32 %v7413_v8, 0.0  ;;  %v3379_v1 = vsel %vm3315_vm7, %v5097_v51, 512  ;;  %vm3297_vm8 = vcmp.eq.f32.partialorder %v9055_v33, %v7368_v25  ;;  %vm3298_vm3 = vcmp.eq.f32.partialorder %v9056_v6, %v7368_v25 }
 0x4b1   : > { %9050 = vst [vmem:[#allocation89_spill] sm:$0xff] %v7424_v39  ;;  %vm3316_vm2 = vcmp.eq.f32.partialorder %v9057_v32, %v7345_v4  ;;  %vm3571_vm6 = vcmp.lt.s32.totalorder %v3570_v36, %v3379_v1  ;;  %vm3072_vm9 = vcmp.eq.f32.partialorder %v7177_v17, inf  ;;  %vm3048_vm10 = vcmp.eq.f32.partialorder %v7223_v28, inf  ;;  %v7454_v18 = vpop.eup %4439 }
 0x4b2   : > { %9052 = vst [vmem:[#allocation90_spill] sm:$0xff] %v7428_v44  ;;  %v3138_v24 = vmul.f32 %v7434_v38, %v7362_v60  ;;  %v3047_v34 = vmul.f32 %v3046_v56, %v7223_v28  ;;  %v3105_v11 = vsub.f32 1.5, %v3104_v23  ;;  %v3057_v29 = vsub.f32 1.5, %v3056_v0 }
 0x4b3   : > { %9054 = vst [vmem:[#allocation91_spill] sm:$0xff] %v7432_v10  ;;  %v3572_v49 = vsel %vm3571_vm6, %v3570_v36, %v3379_v1  ;;  %v3361_v6 = vsel %vm3297_vm8, %v5089_v30, 512  ;;  %v3362_v4 = vsel %vm3298_vm3, %v5092_v20, 512  ;;  %4441 = vrsqrt.f32 %v7440_v21  ;;  %v9078_v10 = vld [vmem:[#allocation49_spill] sm:$0xff] }
 0x4b4   : > { %v3380_v27 = vsel %vm3316_vm2, %v5108_v41, 512  ;;  %v7462_v33 = vsel %vm3072_vm9, %v7177_v17, %v3071_v31  ;;  %v3081_v19 = vsub.f32 1.5, %v3080_v53  ;;  %v3139_v56 = vmul.f32 %v7434_v38, %v3138_v24  ;;  %v7484_v24 = vpop.xlane.xlu2 %3003 }
 0x4b5   : > { %vm3573_vm11 = vcmp.lt.s32.totalorder %v3572_v49, %v3380_v27  ;;  %v3090_v23 = vmul.f32 %v7454_v18, %v7389_v58  ;;  %vm3305_vm12 = vcmp.eq.f32.partialorder %v6517_v14, %v7413_v8  ;;  %vm3306_vm13 = vcmp.eq.f32.partialorder %v6520_v5, %v7413_v8 }
 0x4b6   : > { %v7475_v0 = vsel %vm3048_vm10, %v7223_v28, %v3047_v34  ;;  %v7477_v36 = vsel %vm3573_vm11, %v3572_v49, %v3380_v27  ;;  %vm3299_vm14 = vcmp.eq.f32.partialorder %v6525_v62, %v7368_v25  ;;  %vm3489_vm15 = vcmp.lt.s32.totalorder %v3361_v6, %v3362_v4  ;;  %v9059_v27 = vld [vmem:[#allocation37_spill] sm:$0xff] }
 0x4b7   : > { %9058 = vst [vmem:[#allocation92_spill] sm:$0xff] %v7477_v36  ;;  %v3106_v31 = vmul.f32 %v7341_v9, %v3105_v11  ;;  %v3058_v1 = vmul.f32 %v7348_v13, %v3057_v29  ;;  %v3576_v32 = vshra.s32 %v7477_v36, 16  ;;  %v3369_v5 = vsel %vm3305_vm12, %v5089_v30, 512  ;;  %v7497_v29 = vpop.xlane.xlu1 %2983  ;;  %v9060_v36 = vld [vmem:[#allocation40_spill] sm:$0xff] }
 0x4b8   : > { %v3370_v34 = vsel %vm3306_vm13, %v5092_v20, 512  ;;  %vm3300_vm0 = vcmp.eq.f32.partialorder %v9059_v27, %v7368_v25  ;;  %v3490_v49 = vsel %vm3489_vm15, %v3361_v6, %v3362_v4  ;;  %v3082_v9 = vmul.f32 %v7353_v46, %v3081_v19  ;;  %v9062_v6 = vld [vmem:[#allocation36_spill] sm:$0xff]  ;;  %v9063_v19 = vld [vmem:[#allocation38_spill] sm:$0xff] }
 0x4b9   : > { %v7491_v14 = vpop.eup %4441  ;;  %v7494_v11 = vmul.f32 0.5, %v3139_v56  ;;  %v3091_v13 = vmul.f32 %v7454_v18, %v3090_v23  ;;  %v3363_v53 = vsel %vm3299_vm14, %v5097_v51, 512  ;;  %vm3325_vm1 = vcmp.eq.f32.partialorder %v9060_v36, %v7484_v24  ;;  %v7522_v23 = vpop.xlane.xlu0 %2993 }
 0x4ba   : > { %v7505_v27 = vcvt.s32.f32 %v3576_v32  ;;  %vm3491_vm4 = vcmp.lt.s32.totalorder %v3490_v49, %v3363_v53  ;;  %vm3307_vm7 = vcmp.eq.f32.partialorder %v9062_v6, %v7413_v8  ;;  %vm3326_vm5 = vcmp.eq.f32.partialorder %v9063_v19, %v7484_v24 }
 0x4bb   : > { %v3364_v46 = vsel %vm3300_vm0, %v5108_v41, 512  ;;  %v3492_v4 = vsel %vm3491_vm4, %v3490_v49, %v3363_v53  ;;  %vm3529_vm8 = vcmp.lt.s32.totalorder %v3369_v5, %v3370_v34  ;;  %vm3108_vm3 = vcmp.eq.f32.partialorder %v7275_v15, inf  ;;  %v9065_v53 = vld [vmem:[#allocation39_spill] sm:$0xff] }
 0x4bc   : > { %9061 = vst [vmem:[#allocation93_spill] sm:$0xff] %v7505_v27  ;;  %v3114_v25 = vmul.f32 %v7491_v14, %v7440_v21  ;;  %v7516_v56 = vmax.f32 %v7484_v24, 0.0  ;;  %v7519_v32 = vmax.f32 %v7497_v29, 0.0  ;;  %3579 = vmin.xlane.f32.xlu0 %v7505_v27  ;;  %vm3493_vm2 = vcmp.lt.s32.totalorder %v3492_v4, %v3364_v46 }
 0x4bd   : > { %v7524_v6 = vsel %vm3493_vm2, %v3492_v4, %v3364_v46  ;;  %vm3308_vm6 = vcmp.eq.f32.partialorder %v9065_v53, %v7413_v8  ;;  %v3371_v49 = vsel %vm3307_vm7, %v5097_v51, 512  ;;  %v3530_v62 = vsel %vm3529_vm8, %v3369_v5, %v3370_v34 }
 0x4be   : > { %9064 = vst [vmem:[#allocation94_spill] sm:$0xff] %v7524_v6  ;;  %v3389_v12 = vsel %vm3325_vm1, %v5089_v30, 512  ;;  %v3390_v27 = vsel %vm3326_vm5, %v5092_v20, 512  ;;  %v3496_v26 = vshra.s32 %v7524_v6, 16  ;;  %vm3531_vm9 = vcmp.lt.s32.totalorder %v3530_v62, %v3371_v49 }
 0x4bf   : > { %v3107_v46 = vmul.f32 %v3106_v31, %v7275_v15  ;;  %vm3060_vm10 = vcmp.eq.f32.partialorder %v7289_v61, inf  ;;  %v3092_v8 = vmul.f32 0.5, %v3091_v13  ;;  %v3532_v4 = vsel %vm3531_vm9, %v3530_v62, %v3371_v49  ;;  %v9068_v49 = vld [vmem:[#allocation42_spill] sm:$0xff] }
 0x4c0   : > { %v3115_v5 = vmul.f32 %v7491_v14, %v3114_v25  ;;  %4443 = vrsqrt.f32 %v7516_v56  ;;  %v7542_v34 = vcvt.s32.f32 %v3496_v26  ;;  %v3372_v36 = vsel %vm3308_vm6, %v5108_v41, 512 }
 0x4c1   : > { %v3059_v19 = vmul.f32 %v3058_v1, %v7289_v61  ;;  %4445 = vrsqrt.f32 %v7519_v32  ;;  %vm3533_vm11 = vcmp.lt.s32.totalorder %v3532_v4, %v3372_v36  ;;  %vm3629_vm12 = vcmp.lt.s32.totalorder %v3389_v12, %v3390_v27 }
 0x4c2   : > { %9066 = vst [vmem:[#allocation95_spill] sm:$0xff] %v7542_v34  ;;  %v3083_v53 = vmul.f32 %v3082_v9, %v7295_v16  ;;  %v3141_v62 = vsub.f32 1.5, %v7494_v11  ;;  %3499 = vmin.xlane.f32.xlu2 %v7542_v34  ;;  %v7551_v13 = vsel %vm3533_vm11, %v3532_v4, %v3372_v36  ;;  %v3093_v26 = vsub.f32 1.5, %v3092_v8 }
 0x4c3   : > { %9067 = vst [vmem:[#allocation96_spill] sm:$0xff] %v7551_v13  ;;  %v7554_v25 = vmax.f32 %v7522_v23, 0.0  ;;  %v3536_v1 = vshra.s32 %v7551_v13, 16  ;;  %vm3327_vm13 = vcmp.eq.f32.partialorder %v9068_v49, %v7484_v24  ;;  %vm3084_vm14 = vcmp.eq.f32.partialorder %v7295_v16, inf  ;;  %v7574_v49 = vpop.xlane.xlu1 %2998 }
 0x4c4   : > { %v3116_v9 = vmul.f32 0.5, %v3115_v5  ;;  %v3630_v6 = vsel %vm3629_vm12, %v3389_v12, %v3390_v27  ;;  %v7564_v36 = vsel %vm3108_vm3, %v7275_v15, %v3107_v46  ;;  %v7569_v11 = vsel %vm3060_vm10, %v7289_v61, %v3059_v19  ;;  %v7590_v8 = vpop.xlane.xlu0 %3008  ;;  %v9070_v27 = vld [vmem:[#allocation41_spill] sm:$0xff]  ;;  %v9071_v46 = vld [vmem:[#allocation43_spill] sm:$0xff] }
 0x4c5   : > { %v7572_v4 = vcvt.s32.f32 %v3536_v1  ;;  %v7579_v12 = vsel %vm3084_vm14, %v7295_v16, %v3083_v53  ;;  %v3391_v5 = vsel %vm3327_vm13, %v5097_v51, 512  ;;  %v3142_v19 = vmul.f32 %v7434_v38, %v3141_v62 }
 0x4c6   : > { %v7576_v13 = vpop.eup %4443  ;;  %v3094_v1 = vmul.f32 %v7454_v18, %v3093_v26  ;;  %4447 = vrsqrt.f32 %v7554_v25  ;;  %vm3631_vm15 = vcmp.lt.s32.totalorder %v3630_v6, %v3391_v5  ;;  %v3117_v53 = vsub.f32 1.5, %v3116_v9  ;;  %v9072_v18 = vld [vmem:[#allocation45_spill] sm:$0xff]  ;;  %v9073_v26 = vld [vmem:[#allocation76_spill] sm:$0xff] }
 0x4c7   : > { %9069 = vst [vmem:[#allocation97_spill] sm:$0xff] %v7572_v4  ;;  %v7584_v31 = vpop.eup %4445  ;;  %3539 = vmin.xlane.f32.xlu1 %v7572_v4  ;;  %vm3309_vm0 = vcmp.eq.f32.partialorder %v9070_v27, %v7497_v29  ;;  %vm3310_vm1 = vcmp.eq.f32.partialorder %v9071_v46, %v7497_v29  ;;  %v7597_v34 = vmax.f32 %v7574_v49, 0.0  ;;  %v3174_v38 = vmul.f32 %v7576_v13, %v7516_v56  ;;  %v9074_v46 = vld [vmem:[#allocation46_spill] sm:$0xff] }
 0x4c8   : > { %vm3317_vm4 = vcmp.eq.f32.partialorder %v9072_v18, %v7522_v23  ;;  %v7604_v62 = vmax.f32 %v7590_v8, 0.0  ;;  %vm3328_vm7 = vcmp.eq.f32.partialorder %v9073_v26, %v7484_v24  ;;  %v3126_v9 = vmul.f32 %v7584_v31, %v7519_v32 }
 0x4c9   : > { %vm3318_vm5 = vcmp.eq.f32.partialorder %v9074_v46, %v7522_v23  ;;  %4449 = vrsqrt.f32 %v7597_v34  ;;  %v3632_v27 = vsel %vm3631_vm15, %v3630_v6, %v3391_v5  ;;  %v3143_v4 = vmul.f32 %v3142_v19, %v7362_v60  ;;  %v9075_v6 = vld [vmem:[#allocation44_spill] sm:$0xff] }
 0x4ca   : > { %v3095_v42 = vmul.f32 %v3094_v1, %v7389_v58  ;;  %v3373_v18 = vsel %vm3309_vm0, %v5089_v30, 512  ;;  %v3374_v57 = vsel %vm3310_vm1, %v5092_v20, 512  ;;  %vm3144_vm8 = vcmp.eq.f32.partialorder %v7362_v60, inf }
 0x4cb   : > { %vm3096_vm3 = vcmp.eq.f32.partialorder %v7389_v58, inf  ;;  %v3118_v24 = vmul.f32 %v7491_v14, %v3117_v53  ;;  %v3381_v26 = vsel %vm3317_vm4, %v5089_v30, 512  ;;  %v3392_v46 = vsel %vm3328_vm7, %v5108_v41, 512 }
 0x4cc   : > { %vm3311_vm2 = vcmp.eq.f32.partialorder %v9075_v6, %v7497_v29  ;;  %v7624_v5 = vpop.eup %4447  ;;  %v3175_v19 = vmul.f32 %v7576_v13, %v3174_v38  ;;  %v3382_v1 = vsel %vm3318_vm5, %v5092_v20, 512  ;;  %4451 = vrsqrt.f32 %v7604_v62 }
 0x4cd   : > { %vm3633_vm6 = vcmp.lt.s32.totalorder %v3632_v27, %v3392_v46  ;;  %vm3120_vm9 = vcmp.eq.f32.partialorder %v7440_v21, inf  ;;  %v3127_v14 = vmul.f32 %v7584_v31, %v3126_v9  ;;  %vm3312_vm10 = vcmp.eq.f32.partialorder %v9077_v37, %v7497_v29  ;;  %v9080_v37 = vld [vmem:[#allocation77_spill] sm:$0xff] }
 0x4ce   : > { %v7631_v53 = vsel %vm3633_vm6, %v3632_v27, %v3392_v46  ;;  %vm3549_vm11 = vcmp.lt.s32.totalorder %v3373_v18, %v3374_v57  ;;  %v3375_v2 = vsel %vm3311_vm2, %v5097_v51, 512  ;;  %vm3319_vm12 = vcmp.eq.f32.partialorder %v9078_v10, %v7522_v23 }
 0x4cf   : > { %9076 = vst [vmem:[#allocation98_spill] sm:$0xff] %v7631_v53  ;;  %v3636_v6 = vshra.s32 %v7631_v53, 16  ;;  %v3550_v38 = vsel %vm3549_vm11, %v3373_v18, %v3374_v57  ;;  %v7639_v44 = vpop.eup %4449  ;;  %v3119_v39 = vmul.f32 %v3118_v24, %v7440_v21  ;;  %v3150_v27 = vmul.f32 %v7624_v5, %v7554_v25  ;;  %v7650_v53 = vpop.xlane.xlu1 %3013 }
 0x4d0   : > { %vm3551_vm13 = vcmp.lt.s32.totalorder %v3550_v38, %v3375_v2  ;;  %vm3589_vm14 = vcmp.lt.s32.totalorder %v3381_v26, %v3382_v1  ;;  %v3376_v29 = vsel %vm3312_vm10, %v5108_v41, 512  ;;  %vm3320_vm15 = vcmp.eq.f32.partialorder %v9080_v37, %v7522_v23 }
 0x4d1   : > { %v7644_v46 = vcvt.s32.f32 %v3636_v6  ;;  %v3552_v9 = vsel %vm3551_vm13, %v3550_v38, %v3375_v2  ;;  %v3176_v57 = vmul.f32 0.5, %v3175_v19  ;;  %v3383_v18 = vsel %vm3319_vm12, %v5097_v51, 512  ;;  %v7672_v38 = vpop.xlane.xlu2 %3018 }
 0x4d2   : > { %vm3553_vm0 = vcmp.lt.s32.totalorder %v3552_v9, %v3376_v29  ;;  %v3590_v10 = vsel %vm3589_vm14, %v3381_v26, %v3382_v1  ;;  %v7652_v24 = vpop.eup %4451  ;;  %v3128_v7 = vmul.f32 0.5, %v3127_v14  ;;  %v3162_v6 = vmul.f32 %v7639_v44, %v7597_v34  ;;  %9082 = vst [vmem:[#allocation101_spill] sm:$0xff] %v7672_v38 }
 0x4d3   : > { %9079 = vst [vmem:[#allocation99_spill] sm:$0xff] %v7644_v46  ;;  %3639 = vmin.xlane.f32.xlu0 %v7644_v46  ;;  %v7657_v3 = vsel %vm3553_vm0, %v3552_v9, %v3376_v29  ;;  %vm3591_vm1 = vcmp.lt.s32.totalorder %v3590_v10, %v3383_v18  ;;  %v3151_v2 = vmul.f32 %v7624_v5, %v3150_v27  ;;  %v3384_v19 = vsel %vm3320_vm15, %v5108_v41, 512 }
 0x4d4   : > { %9081 = vst [vmem:[#allocation100_spill] sm:$0xff] %v7657_v3  ;;  %v3556_v23 = vshra.s32 %v7657_v3, 16  ;;  %v3592_v26 = vsel %vm3591_vm1, %v3590_v10, %v3383_v18  ;;  %v7665_v1 = vsel %vm3144_vm8, %v7362_v60, %v3143_v4  ;;  %v7670_v14 = vsel %vm3096_vm3, %v7389_v58, %v3095_v42  ;;  %v7691_v3 = vpop.xlane.xlu0 %3023 }
 0x4d5   : > { %vm3593_vm4 = vcmp.lt.s32.totalorder %v3592_v26, %v3384_v19  ;;  %v7675_v27 = vmax.f32 %v7650_v53, 0.0  ;;  %v3186_v10 = vmul.f32 %v7652_v24, %v7604_v62  ;;  %v7687_v42 = vsel %vm3120_vm9, %v7440_v21, %v3119_v39  ;;  %v9087_v39 = vld [vmem:[#allocation53_spill] sm:$0xff] }
 0x4d6   : > { %v7680_v9 = vcvt.s32.f32 %v3556_v23  ;;  %v7682_v4 = vsel %vm3593_vm4, %v3592_v26, %v3384_v19  ;;  %v3177_v18 = vsub.f32 1.5, %v3176_v57  ;;  %v3163_v37 = vmul.f32 %v7639_v44, %v3162_v6  ;;  %v9085_v23 = vld [vmem:[#allocation47_spill] sm:$0xff]  ;;  %v9086_v19 = vld [vmem:[#allocation50_spill] sm:$0xff] }
 0x4d7   : > { %9084 = vst [vmem:[#allocation103_spill] sm:$0xff] %v7682_v4  ;;  %v3596_v46 = vshra.s32 %v7682_v4, 16  ;;  %v3129_v29 = vsub.f32 1.5, %v3128_v7  ;;  %v7693_v52 = vmul.f32 0.5, %v3151_v2  ;;  %vm3337_vm7 = vcmp.eq.f32.partialorder %v9085_v23, %v7672_v38  ;;  %v9088_v57 = vld [vmem:[#allocation51_spill] sm:$0xff]  ;;  %v9091_v26 = vld [vmem:[#allocation78_spill] sm:$0xff] }
 0x4d8   : > { %9083 = vst [vmem:[#allocation102_spill] sm:$0xff] %v7680_v9  ;;  %vm3338_vm5 = vcmp.eq.f32.partialorder %v9086_v19, %v7672_v38  ;;  %3559 = vmin.xlane.f32.xlu2 %v7680_v9  ;;  %vm3321_vm8 = vcmp.eq.f32.partialorder %v9087_v39, %v7574_v49  ;;  %vm3322_vm3 = vcmp.eq.f32.partialorder %v9088_v57, %v7574_v49  ;;  %4453 = vrsqrt.f32 %v7675_v27  ;;  %v9090_v2 = vld [vmem:[#allocation55_spill] sm:$0xff]  ;;  %v9092_v4 = vld [vmem:[#allocation52_spill] sm:$0xff] }
 0x4d9   : > { %v7704_v6 = vcvt.s32.f32 %v3596_v46  ;;  %v3187_v7 = vmul.f32 %v7652_v24, %v3186_v10  ;;  %vm3329_vm2 = vcmp.eq.f32.partialorder %v9090_v2, %v7590_v8  ;;  %vm3330_vm6 = vcmp.eq.f32.partialorder %v9091_v26, %v7590_v8 }
 0x4da   : > { %v7713_v19 = vmax.f32 %v7691_v3, 0.0  ;;  %v7716_v39 = vmul.f32 %v7576_v13, %v3177_v18  ;;  %v3401_v23 = vsel %vm3337_vm7, %v5089_v30, 512  ;;  %v3402_v46 = vsel %vm3338_vm5, %v5092_v20, 512 }
 0x4db   : > { %9089 = vst [vmem:[#allocation104_spill] sm:$0xff] %v7704_v6  ;;  %v7720_v9 = vmul.f32 0.5, %v3163_v37  ;;  %3599 = vmin.xlane.f32.xlu1 %v7704_v6  ;;  %v7724_v10 = vmul.f32 %v7584_v31, %v3129_v29  ;;  %v3385_v26 = vsel %vm3321_vm8, %v5089_v30, 512  ;;  %vm3339_vm9 = vcmp.eq.f32.partialorder %v9092_v4, %v7672_v38  ;;  %v9093_v6 = vld [vmem:[#allocation60_spill] sm:$0xff]  ;;  %v9094_v29 = vld [vmem:[#allocation54_spill] sm:$0xff] }
 0x4dc   : > { %v3386_v13 = vsel %vm3322_vm3, %v5092_v20, 512  ;;  %v3393_v37 = vsel %vm3329_vm2, %v5089_v30, 512  ;;  %v3394_v18 = vsel %vm3330_vm6, %v5092_v20, 512  ;;  %vm3333_vm10 = vcmp.eq.f32.partialorder %v9093_v6, %v7650_v53 }
 0x4dd   : > { %v7738_v31 = vmul.f32 0.5, %v3187_v7  ;;  %4455 = vrsqrt.f32 %v7713_v19  ;;  %vm3340_vm11 = vcmp.eq.f32.partialorder %v9094_v29, %v7672_v38  ;;  %vm3689_vm12 = vcmp.lt.s32.totalorder %v3401_v23, %v3402_v46  ;;  %v9097_v7 = vld [vmem:[#allocation57_spill] sm:$0xff] }
 0x4de   : > { %v7743_v2 = vpop.eup %4453  ;;  %v3403_v4 = vsel %vm3339_vm9, %v5097_v51, 512  ;;  %v3690_v55 = vsel %vm3689_vm12, %v3401_v23, %v3402_v46  ;;  %vm3323_vm13 = vcmp.eq.f32.partialorder %v9095_v43, %v7574_v49  ;;  %vm3334_vm14 = vcmp.eq.f32.partialorder %v9096_v48, %v7650_v53 }
 0x4df   : > { %vm3691_vm15 = vcmp.lt.s32.totalorder %v3690_v55, %v3403_v4  ;;  %vm3324_vm0 = vcmp.eq.f32.partialorder %v9097_v7, %v7574_v49  ;;  %vm3609_vm1 = vcmp.lt.s32.totalorder %v3385_v26, %v3386_v13  ;;  %v3404_v38 = vsel %vm3340_vm11, %v5108_v41, 512 }
 0x4e0   : > { %v3692_v29 = vsel %vm3691_vm15, %v3690_v55, %v3403_v4  ;;  %v3387_v50 = vsel %vm3323_vm13, %v5097_v51, 512  ;;  %v3610_v57 = vsel %vm3609_vm1, %v3385_v26, %v3386_v13  ;;  %v3198_v23 = vmul.f32 %v7743_v2, %v7675_v27  ;;  %v9099_v55 = vld [vmem:[#allocation56_spill] sm:$0xff]  ;;  %v9100_v13 = vld [vmem:[#allocation59_spill] sm:$0xff] }
 0x4e1   : > { %v3397_v46 = vsel %vm3333_vm10, %v5089_v30, 512  ;;  %vm3693_vm4 = vcmp.lt.s32.totalorder %v3692_v29, %v3404_v38  ;;  %vm3611_vm7 = vcmp.lt.s32.totalorder %v3610_v57, %v3387_v50  ;;  %v3388_v49 = vsel %vm3324_vm0, %v5108_v41, 512 }
 0x4e2   : > { %v7761_v43 = vsel %vm3693_vm4, %v3692_v29, %v3404_v38  ;;  %v3612_v7 = vsel %vm3611_vm7, %v3610_v57, %v3387_v50  ;;  %vm3331_vm5 = vcmp.eq.f32.partialorder %v9099_v55, %v7590_v8  ;;  %v3398_v26 = vsel %vm3334_vm14, %v5092_v20, 512  ;;  %v9101_v38 = vld [vmem:[#allocation63_spill] sm:$0xff]  ;;  %v9102_v57 = vld [vmem:[#allocation58_spill] sm:$0xff] }
 0x4e3   : > { %9098 = vst [vmem:[#allocation105_spill] sm:$0xff] %v7761_v43  ;;  %v7766_v4 = vpop.eup %4455  ;;  %vm3341_vm8 = vcmp.eq.f32.partialorder %v9100_v13, %v7691_v3  ;;  %v3696_v6 = vshra.s32 %v7761_v43, 16  ;;  %vm3613_vm3 = vcmp.lt.s32.totalorder %v3612_v7, %v3388_v49  ;;  %vm3342_vm2 = vcmp.eq.f32.partialorder %v9101_v38, %v7691_v3 }
 0x4e4   : > { %v7777_v50 = vsel %vm3613_vm3, %v3612_v7, %v3388_v49  ;;  %vm3332_vm6 = vcmp.eq.f32.partialorder %v9102_v57, %v7590_v8  ;;  %vm3649_vm9 = vcmp.lt.s32.totalorder %v3393_v37, %v3394_v18  ;;  %v3395_v55 = vsel %vm3331_vm5, %v5097_v51, 512  ;;  %v9103_v7 = vld [vmem:[#allocation64_spill] sm:$0xff] }
 0x4e5   : > { %v7781_v29 = vcvt.s32.f32 %v3696_v6  ;;  %v3616_v48 = vshra.s32 %v7777_v50, 16  ;;  %v3650_v59 = vsel %vm3649_vm9, %v3393_v37, %v3394_v18  ;;  %v3199_v13 = vmul.f32 %v7743_v2, %v3198_v23  ;;  %v9104_v18 = vld [vmem:[#allocation79_spill] sm:$0xff] }
 0x4e6   : > { %v3222_v43 = vmul.f32 %v7766_v4, %v7713_v19  ;;  %vm3651_vm10 = vcmp.lt.s32.totalorder %v3650_v59, %v3395_v55  ;;  %vm3335_vm11 = vcmp.eq.f32.partialorder %v9103_v7, %v7650_v53  ;;  %v3405_v49 = vsel %vm3341_vm8, %v5089_v30, 512  ;;  %v9105_v30 = vld [vmem:[#allocation62_spill] sm:$0xff] }
 0x4e7   : > { %3699 = vmin.xlane.f32.xlu0 %v7781_v29  ;;  %v7792_v8 = vcvt.s32.f32 %v3616_v48  ;;  %v3396_v6 = vsel %vm3332_vm6, %v5108_v41, 512  ;;  %v3652_v57 = vsel %vm3651_vm10, %v3650_v59, %v3395_v55  ;;  %v3406_v37 = vsel %vm3342_vm2, %v5092_v20, 512 }
 0x4e8   : > { %vm3653_vm12 = vcmp.lt.s32.totalorder %v3652_v57, %v3396_v6  ;;  %vm3336_vm13 = vcmp.eq.f32.partialorder %v9104_v18, %v7650_v53  ;;  %vm3669_vm14 = vcmp.lt.s32.totalorder %v3397_v46, %v3398_v26  ;;  %v3399_v48 = vsel %vm3335_vm11, %v5097_v51, 512 }
 0x4e9   : > { %3619 = vmin.xlane.f32.xlu2 %v7792_v8  ;;  %v7802_v23 = vsel %vm3653_vm12, %v3652_v57, %v3396_v6  ;;  %v3670_v7 = vsel %vm3669_vm14, %v3397_v46, %v3398_v26  ;;  %vm3343_vm15 = vcmp.eq.f32.partialorder %v9105_v30, %v7691_v3  ;;  %v3200_v59 = vmul.f32 0.5, %v3199_v13  ;;  %v9106_v57 = vld [vmem:[#allocation66_spill] sm:$0xff] }
 0x4ea   : > { %v3223_v55 = vmul.f32 %v7766_v4, %v3222_v43  ;;  %v3656_v38 = vshra.s32 %v7802_v23, 16  ;;  %vm3671_vm0 = vcmp.lt.s32.totalorder %v3670_v7, %v3399_v48  ;;  %vm3180_vm1 = vcmp.eq.f32.partialorder %v7516_v56, inf }
 0x4eb   : > { %v3400_v53 = vsel %vm3336_vm13, %v5108_v41, 512  ;;  %v3672_v18 = vsel %vm3671_vm0, %v3670_v7, %v3399_v48  ;;  %vm3344_vm4 = vcmp.eq.f32.partialorder %v9106_v57, %v7691_v3  ;;  %vm3709_vm7 = vcmp.lt.s32.totalorder %v3405_v49, %v3406_v37 }
 0x4ec   : > { %v7813_v6 = vcvt.s32.f32 %v3656_v38  ;;  %vm3673_vm5 = vcmp.lt.s32.totalorder %v3672_v18, %v3400_v53  ;;  %v3407_v46 = vsel %vm3343_vm15, %v5097_v51, 512  ;;  %v3710_v26 = vsel %vm3709_vm7, %v3405_v49, %v3406_v37 }
 0x4ed   : > { %vm3074_vm8 = vcmp.eq.f32.partialorder %v7177_v17, 0.0  ;;  %vm3050_vm3 = vcmp.eq.f32.partialorder %v7223_v28, 0.0  ;;  %vm3110_vm2 = vcmp.eq.f32.partialorder %v7275_v15, 0.0  ;;  %v9107_v43 = vsub.f32 1.5, %v7693_v52 }
 0x4ee   : > { %v3189_v7 = vsub.f32 1.5, %v7738_v31  ;;  %v7823_v48 = vsel %vm3673_vm5, %v3672_v18, %v3400_v53  ;;  %vm3711_vm6 = vcmp.lt.s32.totalorder %v3710_v26, %v3407_v46  ;;  %v9108_v38 = vsub.f32 1.5, %v7720_v9  ;;  %3659 = vmin.xlane.f32.xlu1 %v7813_v6 }
 0x4ef   : > { %v3154_v13 = vmul.f32 %v7624_v5, %v9107_v43  ;;  %v3676_v49 = vshra.s32 %v7823_v48, 16  ;;  %v3408_v52 = vsel %vm3344_vm4, %v5108_v41, 512  ;;  %v3712_v37 = vsel %vm3711_vm6, %v3710_v26, %v3407_v46 }
 0x4f0   : > { %v3166_v30 = vmul.f32 %v7639_v44, %v9108_v38  ;;  %vm3062_vm9 = vcmp.eq.f32.partialorder %v7289_v61, 0.0  ;;  %vm3086_vm10 = vcmp.eq.f32.partialorder %v7295_v16, 0.0  ;;  %vm3132_vm11 = vcmp.eq.f32.partialorder %v7519_v32, inf }
 0x4f1   : > { %v3201_v5 = vsub.f32 1.5, %v3200_v59  ;;  %v3224_v9 = vmul.f32 0.5, %v3223_v55  ;;  %vm3713_vm12 = vcmp.lt.s32.totalorder %v3712_v37, %v3408_v52  ;;  %vm3146_vm13 = vcmp.eq.f32.partialorder %v7362_v60, 0.0 }
 0x4f2   : > { %v3179_v44 = vmul.f32 %v7716_v39, %v7516_v56  ;;  %v3131_v31 = vmul.f32 %v7724_v10, %v7519_v32  ;;  %v7842_v3 = vcvt.s32.f32 %v3676_v49  ;;  %v7844_v18 = vsel %vm3713_vm12, %v3712_v37, %v3408_v52 }
 0x4f3   : > { %vm3098_vm14 = vcmp.eq.f32.partialorder %v7389_v58, 0.0  ;;  %v3135_v53 = vand.u32 2147483648, %v7519_v32  ;;  %v3155_v59 = vmul.f32 %v3154_v13, %v7554_v25  ;;  %v3190_v55 = vmul.f32 %v7652_v24, %v3189_v7 }
 0x4f4   : > { %v3716_v46 = vshra.s32 %v7844_v18, 16  ;;  %vm3156_vm15 = vcmp.eq.f32.partialorder %v7554_v25, inf  ;;  %v3159_v39 = vand.u32 2147483648, %v7554_v25  ;;  %v3167_v10 = vmul.f32 %v3166_v30, %v7597_v34  ;;  %3679 = vmin.xlane.f32.xlu2 %v7842_v3 }
 0x4f5   : > { %v3415_v26 = vand.u32 65535, %v7183_v63  ;;  %vm3122_vm0 = vcmp.eq.f32.partialorder %v7440_v21, 0.0  ;;  %v3202_v43 = vmul.f32 %v7743_v2, %v3201_v5  ;;  %v3225_v38 = vsub.f32 1.5, %v3224_v9 }
 0x4f6   : > { %v7858_v13 = vcvt.s32.f32 %v3716_v46  ;;  %v3455_v24 = vand.u32 65535, %v7169_v40  ;;  %v3181_v7 = vsel %vm3180_vm1, %v7516_v56, %v3179_v44  ;;  %v3133_v30 = vsel %vm3132_vm11, %v7519_v32, %v3131_v31 }
 0x4f7   : > { %vm3168_vm4 = vcmp.eq.f32.partialorder %v7597_v34, inf  ;;  %v3171_v49 = vand.u32 2147483648, %v7597_v34  ;;  %vm3182_vm7 = vcmp.eq.f32.partialorder %v7516_v56, 0.0  ;;  %v3157_v2 = vsel %vm3156_vm15, %v7554_v25, %v3155_v59 }
 0x4f8   : > { %v3191_v52 = vmul.f32 %v3190_v55, %v7604_v62  ;;  %v3195_v40 = vand.u32 2147483648, %v7604_v62  ;;  %v3207_v37 = vand.u32 2147483648, %v7675_v27  ;;  %v7875_v5 = vsel %vm3168_vm4, %v7597_v34, %v3167_v10  ;;  %3719 = vmin.xlane.f32.xlu1 %v7858_v13 }
 0x4f9   : > { %v9109_v9 = vand.u32 2147483648, %v7177_v17  ;;  %v9110_v31 = vand.u32 2147483648, %v7223_v28  ;;  %v9111_v55 = vand.u32 2147483648, %v7275_v15  ;;  %vm3134_vm1 = vcmp.eq.f32.partialorder %v7519_v32, 0.0 }
 0x4fa   : > { %vm3158_vm5 = vcmp.eq.f32.partialorder %v7554_v25, 0.0  ;;  %vm3192_vm6 = vcmp.eq.f32.partialorder %v7604_v62, inf  ;;  %v3203_v17 = vmul.f32 %v3202_v43, %v7675_v27  ;;  %v3457_v10 = vcvt.s32.f32 %v3455_v24 }
 0x4fb   : > { %v3076_v44 = vsel %vm3074_vm8, %v9109_v9, %v7462_v33  ;;  %v3052_v59 = vsel %vm3050_vm3, %v9110_v31, %v7475_v0  ;;  %v3112_v46 = vsel %vm3110_vm2, %v9111_v55, %v7564_v36  ;;  %v3226_v33 = vmul.f32 %v7766_v4, %v3225_v38 }
 0x4fc   : > { %v3235_v9 = vsub.f32 2.0, %v3076_v44  ;;  %v3233_v28 = vsub.f32 2.0, %v3052_v59  ;;  %v3238_v0 = vsub.f32 2.0, %v3112_v46  ;;  %v9112_v31 = vand.u32 2147483648, %v7289_v61 }
 0x4fd   : > { %v9113_v36 = vand.u32 2147483648, %v7295_v16  ;;  %vm3170_vm8 = vcmp.eq.f32.partialorder %v7597_v34, 0.0  ;;  %vm3204_vm3 = vcmp.eq.f32.partialorder %v7675_v27, inf  ;;  %vm3228_vm2 = vcmp.eq.f32.partialorder %v7713_v19, inf }
 0x4fe   : > { %v3064_v15 = vsel %vm3062_vm9, %v9112_v31, %v7569_v11  ;;  %v3251_v4 = vmax.f32 %v3235_v9, 0.0  ;;  %v9114_v24 = vand.u32 2147483648, %v7362_v60  ;;  %v3249_v11 = vmax.f32 %v3233_v28, 0.0 }
 0x4ff   : > { %v3088_v55 = vsel %vm3086_vm10, %v9113_v36, %v7579_v12  ;;  %v3234_v43 = vsub.f32 2.0, %v3064_v15  ;;  %v3254_v44 = vmax.f32 %v3238_v0, 0.0  ;;  %v9115_v16 = vand.u32 2147483648, %v7389_v58 }
 0x500   : > { %v3236_v38 = vsub.f32 2.0, %v3088_v55  ;;  %v3148_v61 = vsel %vm3146_vm13, %v9114_v24, %v7665_v1  ;;  %vm3194_vm9 = vcmp.eq.f32.partialorder %v7604_v62, 0.0  ;;  %v7923_v46 = vadd.f32 %v3251_v4, %v7278_v54  ;;  %v7937_v54 = vpop.xlane.xlu0 %3459  ;;  %v9117_v4 = vld [vmem:[#allocation67_spill] sm:$0xff]  ;;  %v9120_v24 = vld [vmem:[#allocation70_spill] sm:$0xff] }
 0x501   : > { %v3241_v59 = vsub.f32 2.0, %v3148_v61  ;;  %v3100_v12 = vsel %vm3098_vm14, %v9115_v16, %v7670_v14  ;;  %v3250_v9 = vmax.f32 %v3234_v43, 0.0  ;;  %vm3206_vm10 = vcmp.eq.f32.partialorder %v7675_v27, 0.0  ;;  %v9118_v43 = vld [vmem:[#allocation72_spill] sm:$0xff] }
 0x502   : > { %v3252_v31 = vmax.f32 %v3236_v38, 0.0  ;;  %v3237_v15 = vsub.f32 2.0, %v3100_v12  ;;  %v7927_v60 = vadd.f32 %v3249_v11, %v7281_v22  ;;  %v7930_v1 = vadd.f32 %v3254_v44, %v7299_v47 }
 0x503   : > { %v3257_v28 = vmax.f32 %v3241_v59, 0.0  ;;  %v9116_v58 = vand.u32 2147483648, %v7440_v21  ;;  %v7940_v0 = vadd.f32 %v3250_v9, %v7318_v35  ;;  %v3227_v47 = vmul.f32 %v3226_v33, %v7713_v19  ;;  %v9121_v59 = vld [vmem:[#allocation83_spill] sm:$0xff] }
 0x504   : > { %v7943_v36 = vadd.f32 %v3252_v31, %v7328_v45  ;;  %v3253_v22 = vmax.f32 %v3237_v15, 0.0  ;;  %vm3461_vm11 = vcmp.eq.f32.partialorder %v9117_v4, %v7937_v54  ;;  %v9119_v21 = vand.u32 2147483648, %v7516_v56 }
 0x505   : > { %v3124_v14 = vsel %vm3122_vm0, %v9116_v58, %v7687_v42  ;;  %v7949_v38 = vadd.f32 %v3257_v28, %v9118_v43  ;;  %v3462_v35 = vsel %vm3461_vm11, %v3457_v10, inf  ;;  %v3193_v33 = vsel %vm3192_vm6, %v7604_v62, %v3191_v52  ;;  %v7971_v10 = vpop.xlane.xlu1 %3419  ;;  %v9124_v58 = vld [vmem:[#allocation85_spill] sm:$0xff] }
 0x506   : > { %v3239_v55 = vsub.f32 2.0, %v3124_v14  ;;  %v3184_v42 = vsel %vm3182_vm7, %v9119_v21, %v3181_v7  ;;  %v7956_v61 = vadd.f32 %v3253_v22, %v9120_v24  ;;  %v3417_v44 = vcvt.s32.f32 %v3415_v26  ;;  %3463 = vmin.xlane.f32.xlu1 %v3462_v35  ;;  %v9128_v62 = vld [vmem:[#allocation81_spill] sm:$0xff] }
 0x507   : > { %v3244_v11 = vsub.f32 2.0, %v3184_v42  ;;  %v3136_v56 = vsel %vm3134_vm1, %v3135_v53, %v3133_v30  ;;  %v3160_v7 = vsel %vm3158_vm5, %v3159_v39, %v3157_v2  ;;  %v3205_v26 = vsel %vm3204_vm3, %v7675_v27, %v3203_v17  ;;  %v9122_v53 = vld [vmem:[#allocation68_spill] sm:$0xff] }
 0x508   : > { %v3255_v45 = vmax.f32 %v3239_v55, 0.0  ;;  %v3240_v12 = vsub.f32 2.0, %v3136_v56  ;;  %v3242_v63 = vsub.f32 2.0, %v3160_v7  ;;  %v3229_v32 = vsel %vm3228_vm2, %v7713_v19, %v3227_v47  ;;  %v9123_v30 = vld [vmem:[#allocation84_spill] sm:$0xff]  ;;  %v9127_v55 = vld [vmem:[#allocation89_spill] sm:$0xff] }
 0x509   : > { %v3260_v52 = vmax.f32 %v3244_v11, 0.0  ;;  %vm3421_vm12 = vcmp.eq.f32.partialorder %v9122_v53, %v7971_v10  ;;  %v3172_v25 = vsel %vm3170_vm8, %v3171_v49, %v7875_v5  ;;  %vm3230_vm13 = vcmp.eq.f32.partialorder %v7713_v19, 0.0  ;;  %v9125_v49 = vld [vmem:[#allocation87_spill] sm:$0xff]  ;;  %v9130_v11 = vld [vmem:[#allocation69_spill] sm:$0xff] }
 0x50a   : > { %v7974_v16 = vadd.f32 %v3255_v45, %v9121_v59  ;;  %v3422_v39 = vsel %vm3421_vm12, %v3417_v44, inf  ;;  %v3256_v9 = vmax.f32 %v3240_v12, 0.0  ;;  %v3258_v31 = vmax.f32 %v3242_v63, 0.0  ;;  %v9132_v59 = vld [vmem:[#allocation12_spill] sm:$0xff]  ;;  %v9133_v12 = vld [vmem:[#allocation71_spill] sm:$0xff]  ;;  %v9134_v53 = vld [vmem:[#allocation73_spill] sm:$0xff] }
 0x50b   : > { %v7990_v2 = vadd.f32 %v3260_v52, %v9123_v30  ;;  %v3231_v17 = vand.u32 2147483648, %v7713_v19  ;;  %3423 = vmin.xlane.f32.xlu2 %v3422_v39  ;;  %v3243_v15 = vsub.f32 2.0, %v3172_v25  ;;  %v3196_v28 = vsel %vm3194_vm9, %v3195_v40, %v3193_v33  ;;  %v9126_v19 = vld [vmem:[#allocation65_spill] sm:$0xff]  ;;  %v9129_v40 = vld [vmem:[#allocation90_spill] sm:$0xff]  ;;  %v9131_v33 = vld [vmem:[#allocation91_spill] sm:$0xff] }
 0x50c   : > { %v7999_v34 = vadd.f32 %v3256_v9, %v9124_v58  ;;  %v8002_v5 = vadd.f32 %v3258_v31, %v9125_v49  ;;  %v3245_v14 = vsub.f32 2.0, %v3196_v28  ;;  %v3208_v22 = vsel %vm3206_vm10, %v3207_v37, %v3205_v26  ;;  %v9135_v39 = vld [vmem:[#allocation74_spill] sm:$0xff] }
 0x50d   : > { %v2363_v47 = vadd.f32 %v9127_v55, %v9126_v19  ;;  %v3259_v4 = vmax.f32 %v3243_v15, 0.0  ;;  %v3246_v43 = vsub.f32 2.0, %v3208_v22  ;;  %v3232_v21 = vsel %vm3230_vm13, %v3231_v17, %v3229_v32  ;;  %v9136_v17 = vld [vmem:[#allocation75_spill] sm:$0xff]  ;;  %v9137_v28 = vld [vmem:[#allocation82_spill] sm:$0xff]  ;;  %v9139_v55 = vld [vmem:[#allocation92_spill] sm:$0xff] }
 0x50e   : > { %v2365_v42 = vadd.f32 %v9129_v40, %v9128_v62  ;;  %v3261_v35 = vmax.f32 %v3245_v14, 0.0  ;;  %v3248_v24 = vsub.f32 2.0, %v3232_v21  ;;  %v2366_v44 = vadd.f32 %v9131_v33, %v9130_v11  ;;  %v9138_v22 = vld [vmem:[#allocation86_spill] sm:$0xff]  ;;  %v9140_v21 = vld [vmem:[#allocation93_spill] sm:$0xff]  ;;  %v9142_v11 = vld [vmem:[#allocation95_spill] sm:$0xff] }
 0x50f   : > { %v8012_v45 = vadd.f32 %v3259_v4, %v2363_v47  ;;  %v3262_v56 = vmax.f32 %v3246_v43, 0.0  ;;  %v3515_v63 = vand.u32 65535, %v9133_v12  ;;  %v3435_v25 = vand.u32 65535, %v9134_v53  ;;  %v9141_v62 = vld [vmem:[#allocation94_spill] sm:$0xff]  ;;  %v9143_v33 = vld [vmem:[#allocation96_spill] sm:$0xff]  ;;  %v9144_v12 = vld [vmem:[#allocation97_spill] sm:$0xff] }
 0x510   : > { %v8016_v7 = vadd.f32 %v3261_v35, %v2365_v42  ;;  %v3264_v27 = vmax.f32 %v3248_v24, 0.0  ;;  %v3475_v15 = vand.u32 65535, %v9136_v17  ;;  %v3575_v47 = vand.u32 65535, %v9139_v55  ;;  %v9147_v17 = vld [vmem:[#allocation99_spill] sm:$0xff] }
 0x511   : > { %v8018_v37 = vadd.f32 %v3262_v56, %v2366_v44  ;;  %v3517_v32 = vcvt.s32.f32 %v3515_v63  ;;  %v3437_v31 = vcvt.s32.f32 %v3435_v25  ;;  %v3495_v40 = vand.u32 65535, %v9141_v62 }
 0x512   : > { %v8021_v52 = vadd.f32 %v3264_v27, %v9132_v59  ;;  %v3477_v14 = vcvt.s32.f32 %v3475_v15  ;;  %v3577_v43 = vcvt.s32.f32 %v3575_v47  ;;  %v3535_v44 = vand.u32 65535, %v9143_v33 }
 0x513   : > { %v3497_v24 = vcvt.s32.f32 %v3495_v40  ;;  %v9151_v40 = vld [vmem:[#allocation105_spill] sm:$0xff] }
 0x514   : > { %v3537_v59 = vcvt.s32.f32 %v3535_v44 }
 0x518   : > { %v8024_v26 = vpop.xlane.xlu0 %3519 }
 0x519   : > { %vm3521_vm14 = vcmp.eq.f32.partialorder %v9135_v39, %v8024_v26 }
 0x51a   : > { %v3522_v30 = vsel %vm3521_vm14, %v3517_v32, inf  ;;  %v9145_v32 = vld [vmem:[#allocation98_spill] sm:$0xff] }
 0x51b   : > { %3523 = vmin.xlane.f32.xlu1 %v3522_v30  ;;  %v3635_v53 = vand.u32 65535, %v9145_v32  ;;  %v9146_v30 = vld [vmem:[#allocation100_spill] sm:$0xff] }
 0x51d   : > { %v8029_v9 = vpop.xlane.xlu2 %3439  ;;  %v3637_v39 = vcvt.s32.f32 %v3635_v53  ;;  %v3675_v53 = vand.u32 65535, %v7823_v48 }
 0x51e   : > { %vm3441_vm15 = vcmp.eq.f32.partialorder %v9137_v28, %v8029_v9  ;;  %v9148_v28 = vld [vmem:[#allocation103_spill] sm:$0xff] }
 0x51f   : > { %v3442_v58 = vsel %vm3441_vm15, %v3437_v31, inf  ;;  %v3555_v31 = vand.u32 65535, %v9146_v30  ;;  %v3677_v30 = vcvt.s32.f32 %v3675_v53  ;;  %v9158_v53 = vld [vmem:[#allocation14_spill] sm:$0xff] }
 0x520   : > { %3443 = vmin.xlane.f32.xlu0 %v3442_v58  ;;  %v3595_v58 = vand.u32 65535, %v9148_v28  ;;  %v3426_v28 = vcvt.f32.s32 %v7971_v10  ;;  %v9155_v10 = vld [vmem:[#allocation21_spill] sm:$0xff] }
 0x521   : > { %v8034_v49 = vpop.xlane.xlu1 %3479 }
 0x522   : > { %vm3481_vm0 = vcmp.eq.f32.partialorder %v9138_v22, %v8034_v49  ;;  %v3557_v22 = vcvt.s32.f32 %v3555_v31 }
 0x523   : > { %v3482_v19 = vsel %vm3481_vm0, %v3477_v14, inf }
 0x524   : > { %3483 = vmin.xlane.f32.xlu2 %v3482_v19  ;;  %v9149_v19 = vld [vmem:[#allocation102_spill] sm:$0xff] }
 0x52f   : > { %v8039_v4 = vpop.xlane.xlu0 %3579 }
 0x530   : > { %vm3581_vm4 = vcmp.eq.f32.partialorder %v9140_v21, %v8039_v4  ;;  %v9150_v21 = vld [vmem:[#allocation104_spill] sm:$0xff] }
 0x531   : > { %v3582_v42 = vsel %vm3581_vm4, %v3577_v43, inf  ;;  %v3597_v43 = vcvt.s32.f32 %v3595_v58 }
 0x532   : > { %3583 = vmin.xlane.f32.xlu1 %v3582_v42  ;;  %v3695_v42 = vand.u32 65535, %v9151_v40  ;;  %v9154_v40 = vld [vmem:[#allocation19_spill] sm:$0xff] }
 0x534   : > { %v3697_v33 = vcvt.s32.f32 %v3695_v42 }
 0x535   : > { %v8044_v35 = vpop.xlane.xlu2 %3499 }
 0x536   : > { %vm3501_vm7 = vcmp.eq.f32.partialorder %v9142_v11, %v8044_v35 }
 0x537   : > { %v3502_v56 = vsel %vm3501_vm7, %v3497_v24, inf  ;;  %v3615_v24 = vand.u32 65535, %v7777_v50 }
 0x538   : > { %3503 = vmin.xlane.f32.xlu0 %v3502_v56 }
 0x539   : > { %v3617_v56 = vcvt.s32.f32 %v3615_v24 }
 0x53a   : > { %v8049_v27 = vpop.xlane.xlu1 %3539 }
 0x53b   : > { %vm3541_vm1 = vcmp.eq.f32.partialorder %v9144_v12, %v8049_v27  ;;  %v3655_v12 = vand.u32 65535, %v7802_v23 }
 0x53c   : > { %v3542_v63 = vsel %vm3541_vm1, %v3537_v59, inf }
 0x53d   : > { %3543 = vmin.xlane.f32.xlu2 %v3542_v63  ;;  %v3657_v50 = vcvt.s32.f32 %v3655_v12 }
 0x546   : > { %v8054_v25 = vpop.xlane.xlu0 %3639 }
 0x547   : > { %vm3641_vm5 = vcmp.eq.f32.partialorder %v9147_v17, %v8054_v25 }
 0x548   : > { %v3642_v15 = vsel %vm3641_vm5, %v3637_v39, inf }
 0x549   : > { %3643 = vmin.xlane.f32.xlu1 %v3642_v15 }
 0x54b   : > { %v8060_v14 = vpop.xlane.xlu2 %3559 }
 0x54c   : > { %vm3561_vm6 = vcmp.eq.f32.partialorder %v9149_v19, %v8060_v14 }
 0x54d   : > { %v3562_v55 = vsel %vm3561_vm6, %v3557_v22, inf }
 0x54e   : > { %v8064_v47 = vpop.xlane.xlu1 %3599  ;;  %3563 = vmin.xlane.f32.xlu0 %v3562_v55 }
 0x54f   : > { %vm3601_vm8 = vcmp.eq.f32.partialorder %v9150_v21, %v8064_v47 }
 0x550   : > { %v3602_v62 = vsel %vm3601_vm8, %v3597_v43, inf  ;;  %v9152_v43 = vld [vmem:[#allocation18_spill] sm:$0xff] }
 0x551   : > { %3603 = vmin.xlane.f32.xlu2 %v3602_v62 }
 0x55a   : > { %v8070_v11 = vpop.xlane.xlu0 %3699 }
 0x55b   : > { %vm3701_vm3 = vcmp.eq.f32.partialorder %v7781_v29, %v8070_v11 }
 0x55c   : > { %v8074_v44 = vpop.xlane.xlu2 %3619  ;;  %v3702_v59 = vsel %vm3701_vm3, %v3697_v33, inf  ;;  %v9156_v33 = vld [vmem:[#allocation11_spill] sm:$0xff] }
 0x55d   : > { %vm3621_vm2 = vcmp.eq.f32.partialorder %v7792_v8, %v8074_v44  ;;  %3703 = vmin.xlane.f32.xlu1 %v3702_v59  ;;  %v3715_v8 = vand.u32 65535, %v7844_v18  ;;  %v9157_v59 = vld [vmem:[#allocation15_spill] sm:$0xff] }
 0x55e   : > { %v3622_v63 = vsel %vm3621_vm2, %v3617_v56, inf }
 0x55f   : > { %3623 = vmin.xlane.f32.xlu0 %v3622_v63  ;;  %v3717_v17 = vcvt.s32.f32 %v3715_v8 }
 0x561   : > { %v8079_v32 = vpop.xlane.xlu1 %3659 }
 0x562   : > { %vm3661_vm9 = vcmp.eq.f32.partialorder %v7813_v6, %v8079_v32  ;;  %v3466_v6 = vcvt.f32.s32 %v7937_v54 }
 0x563   : > { %v3662_v29 = vsel %vm3661_vm9, %v3657_v50, inf }
 0x564   : > { %3663 = vmin.xlane.f32.xlu2 %v3662_v29  ;;  %v3467_v58 = vshll.u32 %v3466_v6, 16 }
 0x567   : > { %v8084_v39 = vpop.xlane.xlu2 %3679 }
 0x568   : > { %vm3681_vm10 = vcmp.eq.f32.partialorder %v7842_v3, %v8084_v39  ;;  %v3427_v3 = vshll.u32 %v3426_v28, 16  ;;  %v3526_v28 = vcvt.f32.s32 %v8024_v26  ;;  %v9162_v26 = vld [vmem:[#allocation24_spill] sm:$0xff] }
 0x569   : > { %v3682_v23 = vsel %vm3681_vm10, %v3677_v30, inf  ;;  %v9159_v30 = vld [vmem:[#allocation13_spill] sm:$0xff] }
 0x56a   : > { %3683 = vmin.xlane.f32.xlu0 %v3682_v23 }
 0x56b   : > { %v8089_v31 = vpop.xlane.xlu1 %3719 }
 0x56c   : > { %vm3721_vm11 = vcmp.eq.f32.partialorder %v7858_v13, %v8089_v31  ;;  %v9153_v13 = vld [vmem:[#allocation20_spill] sm:$0xff] }
 0x56d   : > { %v3722_v48 = vsel %vm3721_vm11, %v3717_v17, inf }
 0x56e   : > { %3723 = vmin.xlane.f32.xlu2 %v3722_v48  ;;  %v9160_v48 = vld [vmem:[#allocation22_spill] sm:$0xff] }
 0x579   : > { %v3464_v15 = vpop.xlane.xlu1 %3463 }
 0x57a   : > { %v3465_v18 = vcvt.f32.s32 %v3464_v15 }
 0x57c   : > { %v3468_v22 = vadd.s32 %v3467_v58, %v3465_v18  ;;  %v3527_v18 = vshll.u32 %v3526_v28, 16  ;;  %v9168_v28 = vld [vmem:[#allocation27_spill] sm:$0xff] }
 0x57e   : > { %v3424_v19 = vpop.xlane.xlu2 %3423  ;;  %vm3737_vm12 = vcmp.eq.s32.totalorder %v9152_v43, %v3468_v22  ;;  %vm3738_vm13 = vcmp.eq.s32.totalorder %v5092_v20, %v3468_v22  ;;  %vm3739_vm14 = vcmp.eq.s32.totalorder %v5097_v51, %v3468_v22  ;;  %vm3740_vm7 = vcmp.eq.s32.totalorder %v5108_v41, %v3468_v22 }
 0x57f   : > { %v3425_v55 = vcvt.f32.s32 %v3424_v19  ;;  %v3801_v62 = vsel %vm3737_vm12, inf, %v9153_v13  ;;  %v3802_v54 = vsel %vm3738_vm13, inf, %v9154_v40  ;;  %v3803_v12 = vsel %vm3739_vm14, inf, %v9157_v59  ;;  %v9161_v40 = vld [vmem:[#allocation23_spill] sm:$0xff] }
 0x580   : > { %v3867_v42 = vmin.f32 %v3801_v62, %v3802_v54  ;;  %v3804_v8 = vsel %vm3740_vm7, inf, %v9159_v30  ;;  %v3446_v19 = vcvt.f32.s32 %v8029_v9 }
 0x581   : > { %v3428_v21 = vadd.s32 %v3427_v3, %v3425_v55  ;;  %v3486_v55 = vcvt.f32.s32 %v8034_v49 }
 0x582   : > { %v3868_v50 = vmin.f32 %v3867_v42, %v3803_v12  ;;  %v3447_v13 = vshll.u32 %v3446_v19, 16 }
 0x583   : > { %vm3729_vm15 = vcmp.eq.s32.totalorder %v9152_v43, %v3428_v21  ;;  %vm3730_vm0 = vcmp.eq.s32.totalorder %v5092_v20, %v3428_v21  ;;  %vm3731_vm4 = vcmp.eq.s32.totalorder %v5097_v51, %v3428_v21  ;;  %vm3732_vm1 = vcmp.eq.s32.totalorder %v5108_v41, %v3428_v21 }
 0x584   : > { %v3793_v24 = vsel %vm3729_vm15, inf, %v9155_v10  ;;  %v3794_v56 = vsel %vm3730_vm0, inf, %v9156_v33  ;;  %v3795_v29 = vsel %vm3731_vm4, inf, %v9158_v53  ;;  %v3869_v17 = vmin.f32 %v3868_v50, %v3804_v8  ;;  %v9166_v8 = vld [vmem:[#allocation5_spill] sm:$0xff] }
 0x585   : > { %v3857_v63 = vmin.f32 %v3793_v24, %v3794_v56  ;;  %v3796_v6 = vsel %vm3732_vm1, inf, %v9160_v48  ;;  %v9163_v24 = vld [vmem:[#allocation25_spill] sm:$0xff]  ;;  %v3487_v49 = vshll.u32 %v3486_v55, 16  ;;  %v9170_v55 = vld [vmem:[#allocation30_spill] sm:$0xff] }
 0x586   : > { %3870 = vmin.xlane.f32.xlu2 %v3869_v17 }
 0x587   : > { %v3858_v23 = vmin.f32 %v3857_v63, %v3795_v29  ;;  %v9164_v63 = vld [vmem:[#allocation28_spill] sm:$0xff]  ;;  %v9165_v29 = vld [vmem:[#allocation26_spill] sm:$0xff] }
 0x589   : > { %v3859_v15 = vmin.f32 %v3858_v23, %v3796_v6  ;;  %v9167_v6 = vld [vmem:[#allocation17_spill] sm:$0xff] }
 0x58b   : > { %3860 = vmin.xlane.f32.xlu0 %v3859_v15 }
 0x58e   : > { %v3524_v58 = vpop.xlane.xlu1 %3523 }
 0x58f   : > { %v3525_v22 = vcvt.f32.s32 %v3524_v58 }
 0x591   : > { %v3528_v3 = vadd.s32 %v3527_v18, %v3525_v22  ;;  %v9169_v18 = vld [vmem:[#allocation9_spill] sm:$0xff] }
 0x593   : > { %v3444_v21 = vpop.xlane.xlu0 %3443  ;;  %vm3749_vm5 = vcmp.eq.s32.totalorder %v9152_v43, %v3528_v3  ;;  %vm3750_vm6 = vcmp.eq.s32.totalorder %v5092_v20, %v3528_v3  ;;  %vm3751_vm8 = vcmp.eq.s32.totalorder %v5097_v51, %v3528_v3  ;;  %vm3752_vm3 = vcmp.eq.s32.totalorder %v5108_v41, %v3528_v3 }
 0x594   : > { %v3445_v62 = vcvt.f32.s32 %v3444_v21  ;;  %v3813_v54 = vsel %vm3749_vm5, inf, %v9161_v40  ;;  %v3814_v42 = vsel %vm3750_vm6, inf, %v9162_v26  ;;  %v3815_v33 = vsel %vm3751_vm8, inf, %v9163_v24  ;;  %v9172_v26 = vld [vmem:[#allocation29_spill] sm:$0xff] }
 0x595   : > { %v3882_v10 = vmin.f32 %v3813_v54, %v3814_v42  ;;  %v3816_v50 = vsel %vm3752_vm3, inf, %v9164_v63  ;;  %v9173_v63 = vld [vmem:[#allocation16_spill] sm:$0xff] }
 0x596   : > { %v3448_v9 = vadd.s32 %v3447_v13, %v3445_v62  ;;  %v9171_v13 = vld [vmem:[#allocation31_spill] sm:$0xff] }
 0x597   : > { %v3484_v56 = vpop.xlane.xlu2 %3483  ;;  %v3883_v59 = vmin.f32 %v3882_v10, %v3815_v33  ;;  %v3586_v10 = vcvt.f32.s32 %v8039_v4 }
 0x598   : > { %v3485_v12 = vcvt.f32.s32 %v3484_v56  ;;  %vm3733_vm2 = vcmp.eq.s32.totalorder %v9152_v43, %v3448_v9  ;;  %vm3734_vm9 = vcmp.eq.s32.totalorder %v5092_v20, %v3448_v9  ;;  %vm3735_vm10 = vcmp.eq.s32.totalorder %v5097_v51, %v3448_v9 }
 0x599   : > { %v3884_v53 = vmin.f32 %v3883_v59, %v3816_v50  ;;  %v3797_v30 = vsel %vm3733_vm2, inf, %v9165_v29  ;;  %v3798_v23 = vsel %vm3734_vm9, inf, %v9166_v8  ;;  %vm3736_vm14 = vcmp.eq.s32.totalorder %v5108_v41, %v3448_v9 }
 0x59a   : > { %v3488_v17 = vadd.s32 %v3487_v49, %v3485_v12  ;;  %v3862_v48 = vmin.f32 %v3797_v30, %v3798_v23  ;;  %v3799_v22 = vsel %vm3735_vm10, inf, %v9169_v18  ;;  %v3800_v62 = vsel %vm3736_vm14, inf, %v9171_v13 }
 0x59b   : > { %3885 = vmin.xlane.f32.xlu2 %v3884_v53  ;;  %v3587_v33 = vshll.u32 %v3586_v10, 16  ;;  %v3506_v56 = vcvt.f32.s32 %v8044_v35  ;;  %v9174_v53 = vld [vmem:[#allocation4_spill] sm:$0xff]  ;;  %v3546_v23 = vcvt.f32.s32 %v8049_v27  ;;  %v9175_v35 = vld [vmem:[#allocation10_spill] sm:$0xff] }
 0x59c   : > { %vm3741_vm11 = vcmp.eq.s32.totalorder %v9152_v43, %v3488_v17  ;;  %vm3742_vm12 = vcmp.eq.s32.totalorder %v5092_v20, %v3488_v17  ;;  %vm3743_vm13 = vcmp.eq.s32.totalorder %v5097_v51, %v3488_v17  ;;  %vm3744_vm15 = vcmp.eq.s32.totalorder %v5108_v41, %v3488_v17 }
 0x59d   : > { %v3805_v15 = vsel %vm3741_vm11, inf, %v9167_v6  ;;  %v3806_v58 = vsel %vm3742_vm12, inf, %v9168_v28  ;;  %v3863_v3 = vmin.f32 %v3862_v48, %v3799_v22  ;;  %v3807_v21 = vsel %vm3743_vm13, inf, %v9170_v55 }
 0x59e   : > { %v3872_v19 = vmin.f32 %v3805_v15, %v3806_v58  ;;  %v3808_v42 = vsel %vm3744_vm15, inf, %v9172_v26  ;;  %v3507_v29 = vshll.u32 %v3506_v56, 16  ;;  %v9176_v15 = vld [vmem:[#allocation7_spill] sm:$0xff]  ;;  %v3547_v22 = vshll.u32 %v3546_v23, 16 }
 0x59f   : > { %v3864_v54 = vmin.f32 %v3863_v3, %v3800_v62  ;;  %v9177_v3 = vld [vmem:[#allocation8_spill] sm:$0xff] }
 0x5a0   : > { %v3873_v40 = vmin.f32 %v3872_v19, %v3807_v21  ;;  %v9178_v21 = vld [vmem:[#allocation32_spill] sm:$0xff] }
 0x5a1   : > { %3865 = vmin.xlane.f32.xlu1 %v3864_v54 }
 0x5a2   : > { %v3874_v9 = vmin.f32 %v3873_v40, %v3808_v42  ;;  %v9179_v40 = vld [vmem:[#allocation35_spill] sm:$0xff]  ;;  %v9180_v42 = vld [vmem:[#allocation33_spill] sm:$0xff] }
 0x5a4   : > { %3875 = vmin.xlane.f32.xlu0 %v3874_v9  ;;  %v9181_v9 = vld [vmem:[#allocation34_spill] sm:$0xff] }
 0x5a5   : > { %v3584_v24 = vpop.xlane.xlu1 %3583 }
 0x5a6   : > { %v3585_v49 = vcvt.f32.s32 %v3584_v24 }
 0x5a8   : > { %v3588_v59 = vadd.s32 %v3587_v33, %v3585_v49  ;;  %v9182_v33 = vld [vmem:[#allocation37_spill] sm:$0xff] }
 0x5aa   : > { %vm3761_vm0 = vcmp.eq.s32.totalorder %v9152_v43, %v3588_v59  ;;  %vm3762_vm4 = vcmp.eq.s32.totalorder %v5092_v20, %v3588_v59  ;;  %vm3763_vm7 = vcmp.eq.s32.totalorder %v5097_v51, %v3588_v59  ;;  %vm3764_vm1 = vcmp.eq.s32.totalorder %v5108_v41, %v3588_v59 }
 0x5ab   : > { %v3504_v12 = vpop.xlane.xlu0 %3503  ;;  %v3825_v50 = vsel %vm3761_vm0, inf, %v9173_v63  ;;  %v3826_v4 = vsel %vm3762_vm4, inf, %v9174_v53  ;;  %v3827_v17 = vsel %vm3763_vm7, inf, %v9175_v35  ;;  %v3828_v28 = vsel %vm3764_vm1, inf, %v9176_v15 }
 0x5ac   : > { %v3505_v30 = vcvt.f32.s32 %v3504_v12  ;;  %v3897_v8 = vmin.f32 %v3825_v50, %v3826_v4  ;;  %v9183_v12 = vld [vmem:[#allocation36_spill] sm:$0xff]  ;;  %v3646_v50 = vcvt.f32.s32 %v8054_v25  ;;  %v9184_v4 = vld [vmem:[#allocation39_spill] sm:$0xff] }
 0x5ae   : > { %v3508_v48 = vadd.s32 %v3507_v29, %v3505_v30  ;;  %v3898_v6 = vmin.f32 %v3897_v8, %v3827_v17  ;;  %v3647_v23 = vshll.u32 %v3646_v50, 16  ;;  %v3566_v17 = vcvt.f32.s32 %v8060_v14  ;;  %v9193_v50 = vld [vmem:[#allocation44_spill] sm:$0xff] }
 0x5b0   : > { %v3544_v58 = vpop.xlane.xlu2 %3543  ;;  %v3899_v18 = vmin.f32 %v3898_v6, %v3828_v28  ;;  %vm3745_vm5 = vcmp.eq.s32.totalorder %v9152_v43, %v3508_v48  ;;  %vm3746_vm6 = vcmp.eq.s32.totalorder %v5092_v20, %v3508_v48  ;;  %vm3747_vm8 = vcmp.eq.s32.totalorder %v5097_v51, %v3508_v48 }
 0x5b1   : > { %v3545_v19 = vcvt.f32.s32 %v3544_v58  ;;  %v3809_v55 = vsel %vm3745_vm5, inf, %v9177_v3  ;;  %v3810_v27 = vsel %vm3746_vm6, inf, %v9178_v21  ;;  %vm3748_vm3 = vcmp.eq.s32.totalorder %v5108_v41, %v3508_v48  ;;  %v9185_v58 = vld [vmem:[#allocation40_spill] sm:$0xff]  ;;  %v9187_v21 = vld [vmem:[#allocation42_spill] sm:$0xff] }
 0x5b2   : > { %3900 = vmin.xlane.f32.xlu2 %v3899_v18  ;;  %v3877_v13 = vmin.f32 %v3809_v55, %v3810_v27  ;;  %v3811_v54 = vsel %vm3747_vm8, inf, %v9179_v40  ;;  %v3812_v49 = vsel %vm3748_vm3, inf, %v9182_v33  ;;  %v3606_v6 = vcvt.f32.s32 %v8064_v47  ;;  %v9188_v40 = vld [vmem:[#allocation76_spill] sm:$0xff] }
 0x5b3   : > { %v3548_v62 = vadd.s32 %v3547_v22, %v3545_v19  ;;  %v3567_v25 = vshll.u32 %v3566_v17, 16  ;;  %v9186_v22 = vld [vmem:[#allocation38_spill] sm:$0xff] }
 0x5b4   : > { %v3878_v26 = vmin.f32 %v3877_v13, %v3811_v54  ;;  %v3607_v27 = vshll.u32 %v3606_v6, 16  ;;  %v3706_v6 = vcvt.f32.s32 %v8070_v11  ;;  %v3686_v11 = vcvt.f32.s32 %v8084_v39  ;;  %v9201_v39 = vld [vmem:[#allocation51_spill] sm:$0xff] }
 0x5b5   : > { %vm3753_vm2 = vcmp.eq.s32.totalorder %v9152_v43, %v3548_v62  ;;  %vm3754_vm9 = vcmp.eq.s32.totalorder %v5092_v20, %v3548_v62  ;;  %vm3755_vm10 = vcmp.eq.s32.totalorder %v5097_v51, %v3548_v62  ;;  %vm3756_vm11 = vcmp.eq.s32.totalorder %v5108_v41, %v3548_v62 }
 0x5b6   : > { %v3817_v10 = vsel %vm3753_vm2, inf, %v9180_v42  ;;  %v3818_v24 = vsel %vm3754_vm9, inf, %v9181_v9  ;;  %v3879_v59 = vmin.f32 %v3878_v26, %v3812_v49  ;;  %v3819_v63 = vsel %vm3755_vm10, inf, %v9183_v12  ;;  %v9192_v12 = vld [vmem:[#allocation46_spill] sm:$0xff] }
 0x5b7   : > { %v3887_v56 = vmin.f32 %v3817_v10, %v3818_v24  ;;  %v3820_v29 = vsel %vm3756_vm11, inf, %v9184_v4  ;;  %v9189_v10 = vld [vmem:[#allocation41_spill] sm:$0xff]  ;;  %v9190_v24 = vld [vmem:[#allocation43_spill] sm:$0xff] }
 0x5b8   : > { %3880 = vmin.xlane.f32.xlu1 %v3879_v59 }
 0x5b9   : > { %v3888_v53 = vmin.f32 %v3887_v56, %v3819_v63  ;;  %v9191_v56 = vld [vmem:[#allocation45_spill] sm:$0xff] }
 0x5bb   : > { %v3889_v30 = vmin.f32 %v3888_v53, %v3820_v29 }
 0x5bc   : > { %v3644_v8 = vpop.xlane.xlu1 %3643 }
 0x5bd   : > { %v3645_v35 = vcvt.f32.s32 %v3644_v8  ;;  %3890 = vmin.xlane.f32.xlu0 %v3889_v30  ;;  %v9194_v30 = vld [vmem:[#allocation49_spill] sm:$0xff] }
 0x5bf   : > { %v3648_v48 = vadd.s32 %v3647_v23, %v3645_v35  ;;  %v9195_v23 = vld [vmem:[#allocation48_spill] sm:$0xff] }
 0x5c1   : > { %v3564_v15 = vpop.xlane.xlu0 %3563  ;;  %vm3773_vm12 = vcmp.eq.s32.totalorder %v9152_v43, %v3648_v48  ;;  %vm3774_vm13 = vcmp.eq.s32.totalorder %v5092_v20, %v3648_v48  ;;  %vm3775_vm14 = vcmp.eq.s32.totalorder %v5097_v51, %v3648_v48  ;;  %vm3776_vm15 = vcmp.eq.s32.totalorder %v5108_v41, %v3648_v48 }
 0x5c2   : > { %v3565_v28 = vcvt.f32.s32 %v3564_v15  ;;  %v3837_v18 = vsel %vm3773_vm12, inf, %v9185_v58  ;;  %v3838_v19 = vsel %vm3774_vm13, inf, %v9186_v22  ;;  %v3839_v47 = vsel %vm3775_vm14, inf, %v9187_v21  ;;  %v9196_v15 = vld [vmem:[#allocation77_spill] sm:$0xff] }
 0x5c3   : > { %v3912_v3 = vmin.f32 %v3837_v18, %v3838_v19  ;;  %v3840_v54 = vsel %vm3776_vm15, inf, %v9188_v40  ;;  %v3626_v58 = vcvt.f32.s32 %v8074_v44  ;;  %v3707_v22 = vshll.u32 %v3706_v6, 16  ;;  %v9197_v44 = vld [vmem:[#allocation47_spill] sm:$0xff]  ;;  %v9205_v6 = vld [vmem:[#allocation80_spill] sm:$0xff] }
 0x5c4   : > { %v3604_v14 = vpop.xlane.xlu2 %3603  ;;  %v3568_v55 = vadd.s32 %v3567_v25, %v3565_v28 }
 0x5c5   : > { %v3605_v13 = vcvt.f32.s32 %v3604_v14  ;;  %v3913_v62 = vmin.f32 %v3912_v3, %v3839_v47  ;;  %v3627_v14 = vshll.u32 %v3626_v58, 16  ;;  %v3666_v47 = vcvt.f32.s32 %v8079_v32 }
 0x5c6   : > { %vm3757_vm0 = vcmp.eq.s32.totalorder %v9152_v43, %v3568_v55  ;;  %vm3758_vm4 = vcmp.eq.s32.totalorder %v5092_v20, %v3568_v55  ;;  %vm3759_vm7 = vcmp.eq.s32.totalorder %v5097_v51, %v3568_v55  ;;  %vm3760_vm8 = vcmp.eq.s32.totalorder %v5108_v41, %v3568_v55 }
 0x5c7   : > { %v3608_v26 = vadd.s32 %v3607_v27, %v3605_v13  ;;  %v3914_v42 = vmin.f32 %v3913_v62, %v3840_v54  ;;  %v3821_v9 = vsel %vm3757_vm0, inf, %v9189_v10  ;;  %v3822_v33 = vsel %vm3758_vm4, inf, %v9190_v24  ;;  %v9198_v62 = vld [vmem:[#allocation50_spill] sm:$0xff]  ;;  %v9199_v10 = vld [vmem:[#allocation52_spill] sm:$0xff]  ;;  %v9200_v24 = vld [vmem:[#allocation53_spill] sm:$0xff] }
 0x5c8   : > { %v3892_v49 = vmin.f32 %v3821_v9, %v3822_v33  ;;  %v3823_v53 = vsel %vm3759_vm7, inf, %v9193_v50  ;;  %v3824_v35 = vsel %vm3760_vm8, inf, %v9195_v23  ;;  %v3667_v32 = vshll.u32 %v3666_v47, 16  ;;  %v9203_v23 = vld [vmem:[#allocation55_spill] sm:$0xff] }
 0x5c9   : > { %vm3765_vm1 = vcmp.eq.s32.totalorder %v9152_v43, %v3608_v26  ;;  %vm3766_vm5 = vcmp.eq.s32.totalorder %v5092_v20, %v3608_v26  ;;  %vm3767_vm6 = vcmp.eq.s32.totalorder %v5097_v51, %v3608_v26  ;;  %3915 = vmin.xlane.f32.xlu2 %v3914_v42  ;;  %vm3768_vm3 = vcmp.eq.s32.totalorder %v5108_v41, %v3608_v26 }
 0x5ca   : > { %v3829_v59 = vsel %vm3765_vm1, inf, %v9191_v56  ;;  %v3830_v63 = vsel %vm3766_vm5, inf, %v9192_v12  ;;  %v3893_v29 = vmin.f32 %v3892_v49, %v3823_v53  ;;  %v3831_v8 = vsel %vm3767_vm6, inf, %v9194_v30  ;;  %v9202_v12 = vld [vmem:[#allocation54_spill] sm:$0xff] }
 0x5cb   : > { %v3902_v4 = vmin.f32 %v3829_v59, %v3830_v63  ;;  %v3832_v25 = vsel %vm3768_vm3, inf, %v9196_v15  ;;  %v3687_v53 = vshll.u32 %v3686_v11, 16  ;;  %v9208_v11 = vld [vmem:[#allocation58_spill] sm:$0xff] }
 0x5cc   : > { %v3894_v48 = vmin.f32 %v3893_v29, %v3824_v35 }
 0x5cd   : > { %v3903_v17 = vmin.f32 %v3902_v4, %v3831_v8  ;;  %v3726_v4 = vcvt.f32.s32 %v8089_v31 }
 0x5ce   : > { %3895 = vmin.xlane.f32.xlu1 %v3894_v48 }
 0x5cf   : > { %v3904_v28 = vmin.f32 %v3903_v17, %v3832_v25  ;;  %v9204_v17 = vld [vmem:[#allocation78_spill] sm:$0xff]  ;;  %v3727_v58 = vshll.u32 %v3726_v4, 16 }
 0x5d0   : > { %v3704_v18 = vpop.xlane.xlu1 %3703 }
 0x5d1   : > { %3905 = vmin.xlane.f32.xlu0 %v3904_v28  ;;  %v3705_v19 = vcvt.f32.s32 %v3704_v18 }
 0x5d2   : > { %v3624_v3 = vpop.xlane.xlu0 %3623 }
 0x5d3   : > { %v3708_v55 = vadd.s32 %v3707_v22, %v3705_v19  ;;  %v3625_v21 = vcvt.f32.s32 %v3624_v3  ;;  %v9206_v22 = vld [vmem:[#allocation56_spill] sm:$0xff]  ;;  %v9207_v3 = vld [vmem:[#allocation57_spill] sm:$0xff] }
 0x5d5   : > { %v3628_v27 = vadd.s32 %v3627_v14, %v3625_v21  ;;  %vm3785_vm2 = vcmp.eq.s32.totalorder %v9152_v43, %v3708_v55  ;;  %vm3786_vm9 = vcmp.eq.s32.totalorder %v5092_v20, %v3708_v55  ;;  %vm3787_vm10 = vcmp.eq.s32.totalorder %v5097_v51, %v3708_v55 }
 0x5d6   : > { %v3849_v13 = vsel %vm3785_vm2, inf, %v9197_v44  ;;  %v3850_v40 = vsel %vm3786_vm9, inf, %v9198_v62  ;;  %vm3788_vm11 = vcmp.eq.s32.totalorder %v5108_v41, %v3708_v55  ;;  %v3851_v9 = vsel %vm3787_vm10, inf, %v9199_v10 }
 0x5d7   : > { %v3664_v54 = vpop.xlane.xlu2 %3663  ;;  %v3927_v26 = vmin.f32 %v3849_v13, %v3850_v40  ;;  %vm3769_vm12 = vcmp.eq.s32.totalorder %v9152_v43, %v3628_v27  ;;  %vm3770_vm13 = vcmp.eq.s32.totalorder %v5092_v20, %v3628_v27  ;;  %v3852_v63 = vsel %vm3788_vm11, inf, %v9202_v12  ;;  %v9209_v13 = vld [vmem:[#allocation60_spill] sm:$0xff] }
 0x5d8   : > { %v3665_v42 = vcvt.f32.s32 %v3664_v54  ;;  %v3833_v33 = vsel %vm3769_vm12, inf, %v9200_v24  ;;  %v3834_v56 = vsel %vm3770_vm13, inf, %v9201_v39  ;;  %vm3771_vm14 = vcmp.eq.s32.totalorder %v5097_v51, %v3628_v27 }
 0x5d9   : > { %v3928_v49 = vmin.f32 %v3927_v26, %v3851_v9  ;;  %v3907_v50 = vmin.f32 %v3833_v33, %v3834_v56  ;;  %vm3772_vm15 = vcmp.eq.s32.totalorder %v5108_v41, %v3628_v27  ;;  %v3835_v15 = vsel %vm3771_vm14, inf, %v9205_v6  ;;  %v9210_v26 = vld [vmem:[#allocation61_spill] sm:$0xff]  ;;  %v9212_v9 = vld [vmem:[#allocation63_spill] sm:$0xff]  ;;  %v9213_v33 = vld [vmem:[#allocation64_spill] sm:$0xff] }
 0x5da   : > { %v3668_v59 = vadd.s32 %v3667_v32, %v3665_v42  ;;  %v3836_v14 = vsel %vm3772_vm15, inf, %v9207_v3  ;;  %v9211_v42 = vld [vmem:[#allocation59_spill] sm:$0xff] }
 0x5db   : > { %v3929_v30 = vmin.f32 %v3928_v49, %v3852_v63  ;;  %v3908_v28 = vmin.f32 %v3907_v50, %v3835_v15  ;;  %v9215_v63 = vld [vmem:[#allocation79_spill] sm:$0xff] }
 0x5dc   : > { %vm3777_vm0 = vcmp.eq.s32.totalorder %v9152_v43, %v3668_v59  ;;  %vm3778_vm4 = vcmp.eq.s32.totalorder %v5092_v20, %v3668_v59  ;;  %vm3779_vm7 = vcmp.eq.s32.totalorder %v5097_v51, %v3668_v59  ;;  %vm3780_vm1 = vcmp.eq.s32.totalorder %v5108_v41, %v3668_v59  ;;  %v9214_v59 = vld [vmem:[#allocation62_spill] sm:$0xff] }
 0x5dd   : > { %v3684_v29 = vpop.xlane.xlu0 %3683  ;;  %v3841_v35 = vsel %vm3777_vm0, inf, %v9203_v23  ;;  %v3842_v48 = vsel %vm3778_vm4, inf, %v9204_v17  ;;  %3930 = vmin.xlane.f32.xlu2 %v3929_v30  ;;  %v3843_v19 = vsel %vm3779_vm7, inf, %v9206_v22  ;;  %v3909_v47 = vmin.f32 %v3908_v28, %v3836_v14 }
 0x5de   : > { %v3685_v8 = vcvt.f32.s32 %v3684_v29  ;;  %v3917_v31 = vmin.f32 %v3841_v35, %v3842_v48  ;;  %v3844_v44 = vsel %vm3780_vm1, inf, %v9208_v11  ;;  %vm4193_vm0 = vcmask 7168  }
 0x5df   : > { %3910 = vmin.xlane.f32.xlu1 %v3909_v47 }
 0x5e0   : > { %v3688_v25 = vadd.s32 %v3687_v53, %v3685_v8  ;;  %v3918_v21 = vmin.f32 %v3917_v31, %v3843_v19 }
 0x5e1   : > { %v3724_v18 = vpop.xlane.xlu2 %3723 }
 0x5e2   : > { %v3725_v55 = vcvt.f32.s32 %v3724_v18  ;;  %vm3781_vm5 = vcmp.eq.s32.totalorder %v9152_v43, %v3688_v25  ;;  %vm3782_vm6 = vcmp.eq.s32.totalorder %v5092_v20, %v3688_v25  ;;  %v3919_v54 = vmin.f32 %v3918_v21, %v3844_v44 }
 0x5e3   : > { %v3845_v62 = vsel %vm3781_vm5, inf, %v9209_v13  ;;  %vm3783_vm8 = vcmp.eq.s32.totalorder %v5097_v51, %v3688_v25  ;;  %v3846_v32 = vsel %vm3782_vm6, inf, %v9210_v26  ;;  %vm3784_vm10 = vcmp.eq.s32.totalorder %v5108_v41, %v3688_v25 }
 0x5e4   : > { %v3728_v40 = vadd.s32 %v3727_v58, %v3725_v55  ;;  %v3922_v27 = vmin.f32 %v3845_v62, %v3846_v32  ;;  %3920 = vmin.xlane.f32.xlu0 %v3919_v54  ;;  %v3847_v49 = vsel %vm3783_vm8, inf, %v9213_v33 }
 0x5e6   : > { %vm3789_vm3 = vcmp.eq.s32.totalorder %v9152_v43, %v3728_v40  ;;  %vm3790_vm2 = vcmp.eq.s32.totalorder %v5092_v20, %v3728_v40  ;;  %vm3791_vm9 = vcmp.eq.s32.totalorder %v5097_v51, %v3728_v40  ;;  %vm3792_vm11 = vcmp.eq.s32.totalorder %v5108_v41, %v3728_v40 }
 0x5e7   : > { %v3853_v10 = vsel %vm3789_vm3, inf, %v9211_v42  ;;  %v3854_v24 = vsel %vm3790_vm2, inf, %v9212_v9  ;;  %v3923_v56 = vmin.f32 %v3922_v27, %v3847_v49  ;;  %v3855_v12 = vsel %vm3791_vm9, inf, %v9214_v59 }
 0x5e8   : > { %v3932_v39 = vmin.f32 %v3853_v10, %v3854_v24  ;;  %v3848_v43 = vsel %vm3784_vm10, inf, %v9215_v63  ;;  %v3856_v51 = vsel %vm3792_vm11, inf, %v9106_v57 }
 0x5e9   : > { %v3924_v20 = vmin.f32 %v3923_v56, %v3848_v43 }
 0x5ea   : > { %v3933_v50 = vmin.f32 %v3932_v39, %v3855_v12 }
 0x5eb   : > { %3925 = vmin.xlane.f32.xlu1 %v3924_v20 }
 0x5ec   : > { %v3934_v53 = vmin.f32 %v3933_v50, %v3856_v51 }
 0x5ee   : > { %3935 = vmin.xlane.f32.xlu0 %v3934_v53 }
 0x5f9   : > { %v3871_v4 = vpop.xlane.xlu2 %3870 }
 0x5fa   : > { %v3939_v29 = vmax.f32 %v3871_v4, 0.0 }
 0x5fc   : > { %4457 = vrsqrt.f32 %v3939_v29  ;;  %vm3984_vm12 = vcmp.eq.f32.partialorder %v3939_v29, inf  ;;  %v3987_v18 = vand.u32 2147483648, %v3939_v29  ;;  %vm3986_vm13 = vcmp.eq.f32.partialorder %v3939_v29, 0.0 }
 0x5fe   : > { %v3861_v30 = vpop.xlane.xlu0 %3860 }
 0x5ff   : > { %v3937_v8 = vmax.f32 %v3861_v30, 0.0 }
 0x601   : > { %4459 = vrsqrt.f32 %v3937_v8  ;;  %vm3960_vm14 = vcmp.eq.f32.partialorder %v3937_v8, inf  ;;  %v3963_v21 = vand.u32 2147483648, %v3937_v8  ;;  %vm3962_vm15 = vcmp.eq.f32.partialorder %v3937_v8, 0.0 }
 0x602   : > { %v4458_v41 = vpop.eup %4457 }
 0x603   : > { %v3978_v23 = vmul.f32 %v4458_v41, %v3939_v29 }
 0x605   : > { %v3979_v17 = vmul.f32 %v4458_v41, %v3978_v23 }
 0x607   : > { %v4460_v35 = vpop.eup %4459  ;;  %v3980_v6 = vmul.f32 0.5, %v3979_v17 }
 0x608   : > { %v3954_v48 = vmul.f32 %v4460_v35, %v3937_v8 }
 0x609   : > { %v3981_v25 = vsub.f32 1.5, %v3980_v6 }
 0x60a   : > { %v3955_v15 = vmul.f32 %v4460_v35, %v3954_v48 }
 0x60b   : > { %v3982_v28 = vmul.f32 %v4458_v41, %v3981_v25 }
 0x60c   : > { %v3956_v31 = vmul.f32 0.5, %v3955_v15 }
 0x60d   : > { %v3983_v58 = vmul.f32 %v3982_v28, %v3939_v29 }
 0x60e   : > { %v3957_v57 = vsub.f32 1.5, %v3956_v31  ;;  %v3886_v47 = vpop.xlane.xlu2 %3885 }
 0x60f   : > { %v3985_v19 = vsel %vm3984_vm12, %v3939_v29, %v3983_v58  ;;  %v3942_v44 = vmax.f32 %v3886_v47, 0.0 }
 0x610   : > { %v3958_v22 = vmul.f32 %v4460_v35, %v3957_v57  ;;  %v3988_v3 = vsel %vm3986_vm13, %v3987_v18, %v3985_v19 }
 0x611   : > { %v4147_v55 = vsub.f32 2.0, %v3988_v3  ;;  %4461 = vrsqrt.f32 %v3942_v44  ;;  %vm4020_vm4 = vcmp.eq.f32.partialorder %v3942_v44, inf  ;;  %v4023_v20 = vand.u32 2147483648, %v3942_v44 }
 0x612   : > { %v3959_v14 = vmul.f32 %v3958_v22, %v3937_v8  ;;  %vm4022_vm7 = vcmp.eq.f32.partialorder %v3942_v44, 0.0 }
 0x613   : > { %v4163_v13 = vmax.f32 %v4147_v55, 0.0 }
 0x614   : > { %v3961_v11 = vsel %vm3960_vm14, %v3937_v8, %v3959_v14  ;;  %v3866_v27 = vpop.xlane.xlu1 %3865 }
 0x615   : > { %v3964_v62 = vsel %vm3962_vm15, %v3963_v21, %v3961_v11  ;;  %v4179_v54 = vadd.f32 %v4163_v13, %v7923_v46  ;;  %v3938_v42 = vmax.f32 %v3866_v27, 0.0  ;;  %v9216_v21 = vld [vmem:[#allocation6_spill] sm:$0xff] }
 0x616   : > { %v4145_v40 = vsub.f32 2.0, %v3964_v62  ;;  %v8251_v47 = vmax.f32 %v9216_v21, 0.0 }
 0x617   : > { %4196 = vst.msk [vmem:[%s4645_s28 + $0x10] sm:$0xff] %vm4193_vm0, %v4179_v54  ;;  %v4462_v10 = vpop.eup %4461  ;;  %v3876_v9 = vpop.xlane.xlu0 %3875  ;;  %4463 = vrsqrt.f32 %v3938_v42  ;;  %vm3972_vm1 = vcmp.eq.f32.partialorder %v3938_v42, inf  ;;  %v3975_v31 = vand.u32 2147483648, %v3938_v42  ;;  %vm3974_vm5 = vcmp.eq.f32.partialorder %v3938_v42, 0.0 }
 0x618   : > { %v4161_v26 = vmax.f32 %v4145_v40, 0.0  ;;  %v4014_v24 = vmul.f32 %v4462_v10, %v3942_v44  ;;  %v3940_v33 = vmax.f32 %v3876_v9, 0.0  ;;  %vm1392_vm15 = vcmp.eq.f32.partialorder %v8251_v47, inf }
 0x61a   : > { %v4177_v32 = vadd.f32 %v4161_v26, %v7927_v60  ;;  %v4015_v49 = vmul.f32 %v4462_v10, %v4014_v24  ;;  %4465 = vrsqrt.f32 %v3940_v33  ;;  %vm3996_vm6 = vcmp.eq.f32.partialorder %v3940_v33, inf }
 0x61b   : > { %v3999_v3 = vand.u32 2147483648, %v3940_v33  ;;  %vm3998_vm8 = vcmp.eq.f32.partialorder %v3940_v33, 0.0 }
 0x61c   : > { %4194 = vst.msk [vmem:[%s4645_s28] sm:$0xff] %vm4193_vm0, %v4177_v32  ;;  %v4016_v39 = vmul.f32 0.5, %v4015_v49  ;;  %v9218_v49 = vld [vmem:[#allocation101_spill] sm:$0xff] }
 0x61d   : > { %v4464_v56 = vpop.eup %4463 }
 0x61e   : > { %v4017_v59 = vsub.f32 1.5, %v4016_v39  ;;  %v3966_v46 = vmul.f32 %v4464_v56, %v3938_v42  ;;  %v8266_v39 = vmax.f32 %v9218_v49, 0.0 }
 0x620   : > { %v4018_v12 = vmul.f32 %v4462_v10, %v4017_v59  ;;  %v4466_v63 = vpop.eup %4465  ;;  %v3967_v43 = vmul.f32 %v4464_v56, %v3966_v46 }
 0x621   : > { %v3990_v60 = vmul.f32 %v4466_v63, %v3940_v33 }
 0x622   : > { %v4019_v50 = vmul.f32 %v4018_v12, %v3942_v44  ;;  %v3968_v51 = vmul.f32 0.5, %v3967_v43 }
 0x623   : > { %v3991_v4 = vmul.f32 %v4466_v63, %v3990_v60 }
 0x624   : > { %v4021_v53 = vsel %vm4020_vm4, %v3942_v44, %v4019_v50  ;;  %v3969_v30 = vsub.f32 1.5, %v3968_v51  ;;  %vm1394_vm4 = vcmp.eq.f32.partialorder %v8251_v47, 0.0 }
 0x625   : > { %v4024_v29 = vsel %vm4022_vm7, %v4023_v20, %v4021_v53  ;;  %v3901_v8 = vpop.xlane.xlu2 %3900  ;;  %v3992_v23 = vmul.f32 0.5, %v3991_v4 }
 0x626   : > { %v4150_v41 = vsub.f32 2.0, %v4024_v29  ;;  %v3945_v35 = vmax.f32 %v3901_v8, 0.0  ;;  %v3970_v17 = vmul.f32 %v4464_v56, %v3969_v30 }
 0x627   : > { %v3993_v6 = vsub.f32 1.5, %v3992_v23 }
 0x628   : > { %v4166_v48 = vmax.f32 %v4150_v41, 0.0  ;;  %4467 = vrsqrt.f32 %v3945_v35  ;;  %v3971_v15 = vmul.f32 %v3970_v17, %v3938_v42  ;;  %vm4056_vm3 = vcmp.eq.f32.partialorder %v3945_v35, inf }
 0x629   : > { %v3994_v28 = vmul.f32 %v4466_v63, %v3993_v6  ;;  %vm4058_vm2 = vcmp.eq.f32.partialorder %v3945_v35, 0.0 }
 0x62a   : > { %v4182_v25 = vadd.f32 %v4166_v48, %v7930_v1  ;;  %v3973_v57 = vsel %vm3972_vm1, %v3938_v42, %v3971_v15  ;;  %v9217_v42 = vld [vmem:[#allocation88_spill] sm:$0xff] }
 0x62b   : > { %v3976_v58 = vsel %vm3974_vm5, %v3975_v31, %v3973_v57  ;;  %v3995_v18 = vmul.f32 %v3994_v28, %v3940_v33  ;;  %v3881_v22 = vpop.xlane.xlu1 %3880  ;;  %v8259_v10 = vmax.f32 %v9217_v42, 0.0 }
 0x62c   : > { %4199 = vst.msk [vmem:[%s4645_s28 + $0x28] sm:$0xff] %vm4193_vm0, %v4182_v25  ;;  %v4146_v19 = vsub.f32 2.0, %v3976_v58  ;;  %v8248_v14 = vmax.f32 %v3881_v22, 0.0 }
 0x62d   : > { %v3997_v1 = vsel %vm3996_vm6, %v3940_v33, %v3995_v18  ;;  %vm2304_vm7 = vcmp.eq.f32.partialorder %v8259_v10, inf  ;;  %vm2306_vm1 = vcmp.eq.f32.partialorder %v8259_v10, 0.0 }
 0x62e   : > { %v4468_v55 = vpop.eup %4467  ;;  %v4162_v11 = vmax.f32 %v4146_v19, 0.0  ;;  %v4000_v44 = vsel %vm3998_vm8, %v3999_v3, %v3997_v1  ;;  %4469 = vrsqrt.f32 %v8248_v14  ;;  %vm4008_vm9 = vcmp.eq.f32.partialorder %v8248_v14, inf }
 0x62f   : > { %v4050_v13 = vmul.f32 %v4468_v55, %v3945_v35  ;;  %v4148_v62 = vsub.f32 2.0, %v4000_v44  ;;  %4471 = vrsqrt.f32 %v8251_v47  ;;  %v4011_v58 = vand.u32 2147483648, %v8248_v14 }
 0x630   : > { %v3891_v40 = vpop.xlane.xlu0 %3890  ;;  %v4178_v54 = vadd.f32 %v4162_v11, %v7940_v0  ;;  %vm4010_vm10 = vcmp.eq.f32.partialorder %v8248_v14, 0.0 }
 0x631   : > { %v4051_v26 = vmul.f32 %v4468_v55, %v4050_v13  ;;  %v8255_v32 = vmax.f32 %v3891_v40, 0.0  ;;  %v4164_v27 = vmax.f32 %v4148_v62, 0.0 }
 0x632   : > { %4195 = vst.msk [vmem:[%s4645_s28 + $0x8] sm:$0xff] %vm4193_vm0, %v4178_v54 }
 0x633   : > { %v4052_v9 = vmul.f32 0.5, %v4051_v26  ;;  %4473 = vrsqrt.f32 %v8255_v32  ;;  %v4180_v24 = vadd.f32 %v4164_v27, %v7943_v36  ;;  %v4059_v36 = vand.u32 2147483648, %v3945_v35 }
 0x634   : > { %v4470_v33 = vpop.eup %4469  ;;  %4475 = vrsqrt.f32 %v8259_v10  ;;  %vm4032_vm11 = vcmp.eq.f32.partialorder %v8255_v32, inf  ;;  %vm4034_vm12 = vcmp.eq.f32.partialorder %v8255_v32, 0.0 }
 0x635   : > { %v4053_v0 = vsub.f32 1.5, %v4052_v9  ;;  %4197 = vst.msk [vmem:[%s4645_s28 + $0x18] sm:$0xff] %vm4193_vm0, %v4180_v24  ;;  %v4002_v56 = vmul.f32 %v4470_v33, %v8248_v14  ;;  %v8272_v46 = vpop.eup %4471  ;;  %4477 = vrsqrt.f32 %v8266_v39 }
 0x636   : > { %v1386_v20 = vmul.f32 %v8272_v46, %v8251_v47 }
 0x637   : > { %v4054_v59 = vmul.f32 %v4468_v55, %v4053_v0  ;;  %v4003_v12 = vmul.f32 %v4470_v33, %v4002_v56 }
 0x638   : > { %v1387_v15 = vmul.f32 %v8272_v46, %v1386_v20 }
 0x639   : > { %v4474_v63 = vpop.eup %4473  ;;  %v4055_v43 = vmul.f32 %v4054_v59, %v3945_v35  ;;  %v4004_v50 = vmul.f32 0.5, %v4003_v12 }
 0x63a   : > { %v4026_v60 = vmul.f32 %v4474_v63, %v8255_v32  ;;  %v8278_v8 = vpop.eup %4475  ;;  %v1388_v3 = vmul.f32 0.5, %v1387_v15 }
 0x63b   : > { %v4057_v51 = vsel %vm4056_vm3, %v3945_v35, %v4055_v43  ;;  %v4005_v4 = vsub.f32 1.5, %v4004_v50  ;;  %v8282_v6 = vpop.eup %4477  ;;  %v2298_v35 = vmul.f32 %v8278_v8, %v8259_v10  ;;  %vm3216_vm3 = vcmp.eq.f32.partialorder %v8266_v39, inf }
 0x63c   : > { %v4060_v53 = vsel %vm4058_vm2, %v4059_v36, %v4057_v51  ;;  %v4027_v29 = vmul.f32 %v4474_v63, %v4026_v60  ;;  %v3916_v30 = vpop.xlane.xlu2 %3915  ;;  %v3210_v55 = vmul.f32 %v8282_v6, %v8266_v39  ;;  %v1389_v42 = vsub.f32 1.5, %v1388_v3 }
 0x63d   : > { %v4153_v41 = vsub.f32 2.0, %v4060_v53  ;;  %v8280_v23 = vmax.f32 %v3916_v30, 0.0  ;;  %v4006_v17 = vmul.f32 %v4470_v33, %v4005_v4 }
 0x63e   : > { %v4028_v48 = vmul.f32 0.5, %v4027_v29  ;;  %v3211_v9 = vmul.f32 %v8282_v6, %v3210_v55  ;;  %v2307_v55 = vand.u32 2147483648, %v8259_v10 }
 0x63f   : > { %v4169_v25 = vmax.f32 %v4153_v41, 0.0  ;;  %4479 = vrsqrt.f32 %v8280_v23  ;;  %v4007_v31 = vmul.f32 %v4006_v17, %v8248_v14  ;;  %vm4092_vm13 = vcmp.eq.f32.partialorder %v8280_v23, inf }
 0x640   : > { %v4029_v28 = vsub.f32 1.5, %v4028_v48  ;;  %v3212_v43 = vmul.f32 0.5, %v3211_v9  ;;  %vm4094_vm14 = vcmp.eq.f32.partialorder %v8280_v23, 0.0 }
 0x641   : > { %v4185_v57 = vadd.f32 %v4169_v25, %v7949_v38  ;;  %v4009_v18 = vsel %vm4008_vm9, %v8248_v14, %v4007_v31  ;;  %v3896_v19 = vpop.xlane.xlu1 %3895  ;;  %v2299_v38 = vmul.f32 %v8278_v8, %v2298_v35  ;;  %v4035_v14 = vand.u32 2147483648, %v8255_v32 }
 0x642   : > { %v4030_v22 = vmul.f32 %v4474_v63, %v4029_v28  ;;  %v4012_v21 = vsel %vm4010_vm10, %v4011_v58, %v4009_v18  ;;  %v8298_v1 = vmax.f32 %v3896_v19, 0.0  ;;  %v1390_v63 = vmul.f32 %v8272_v46, %v1389_v42 }
 0x643   : > { %4202 = vst.msk [vmem:[%s4645_s28 + $0x40] sm:$0xff] %vm4193_vm0, %v4185_v57  ;;  %v4149_v11 = vsub.f32 2.0, %v4012_v21  ;;  %v2300_v56 = vmul.f32 0.5, %v2299_v38  ;;  %v3213_v30 = vsub.f32 1.5, %v3212_v43  ;;  %v1395_v28 = vand.u32 2147483648, %v8251_v47 }
 0x644   : > { %v4031_v44 = vmul.f32 %v4030_v22, %v8255_v32  ;;  %v3906_v13 = vpop.xlane.xlu0 %3905  ;;  %4481 = vrsqrt.f32 %v8298_v1  ;;  %v1391_v29 = vmul.f32 %v1390_v63, %v8251_v47  ;;  %vm4044_vm5 = vcmp.eq.f32.partialorder %v8298_v1, inf }
 0x645   : > { %v4480_v62 = vpop.eup %4479  ;;  %v4165_v40 = vmax.f32 %v4149_v11, 0.0  ;;  %v8308_v27 = vmax.f32 %v3906_v13, 0.0  ;;  %v4047_v11 = vand.u32 2147483648, %v8298_v1  ;;  %vm4046_vm6 = vcmp.eq.f32.partialorder %v8298_v1, 0.0 }
 0x646   : > { %v4033_v54 = vsel %vm4032_vm11, %v8255_v32, %v4031_v44  ;;  %v4086_v26 = vmul.f32 %v4480_v62, %v8280_v23  ;;  %v1393_v19 = vsel %vm1392_vm15, %v8251_v47, %v1391_v29  ;;  %v3219_v63 = vand.u32 2147483648, %v8266_v39 }
 0x647   : > { %v4036_v24 = vsel %vm4034_vm12, %v4035_v14, %v4033_v54  ;;  %v4181_v33 = vadd.f32 %v4165_v40, %v7956_v61  ;;  %4483 = vrsqrt.f32 %v8308_v27  ;;  %v2301_v61 = vsub.f32 1.5, %v2300_v56 }
 0x648   : > { %v4151_v49 = vsub.f32 2.0, %v4036_v24  ;;  %v4087_v0 = vmul.f32 %v4480_v62, %v4086_v26  ;;  %vm4068_vm8 = vcmp.eq.f32.partialorder %v8308_v27, inf  ;;  %vm4070_vm2 = vcmp.eq.f32.partialorder %v8308_v27, 0.0 }
 0x649   : > { %4198 = vst.msk [vmem:[%s4645_s28 + $0x20] sm:$0xff] %vm4193_vm0, %v4181_v33  ;;  %v2302_v17 = vmul.f32 %v8278_v8, %v2301_v61  ;;  %v3214_v8 = vmul.f32 %v8282_v6, %v3213_v30  ;;  %vm3218_vm9 = vcmp.eq.f32.partialorder %v8266_v39, 0.0 }
 0x64a   : > { %v4167_v59 = vmax.f32 %v4151_v49, 0.0  ;;  %v4088_v32 = vmul.f32 0.5, %v4087_v0  ;;  %v4482_v12 = vpop.eup %4481 }
 0x64b   : > { %v4038_v60 = vmul.f32 %v4482_v12, %v8298_v1 }
 0x64c   : > { %v4183_v36 = vadd.f32 %v4167_v59, %v7974_v16  ;;  %v4089_v50 = vsub.f32 1.5, %v4088_v32  ;;  %v4095_v16 = vand.u32 2147483648, %v8280_v23 }
 0x64d   : > { %v4484_v20 = vpop.eup %4483  ;;  %v4039_v53 = vmul.f32 %v4482_v12, %v4038_v60 }
 0x64e   : > { %4200 = vst.msk [vmem:[%s4645_s28 + $0x30] sm:$0xff] %vm4193_vm0, %v4183_v36  ;;  %v4090_v51 = vmul.f32 %v4480_v62, %v4089_v50  ;;  %v4062_v4 = vmul.f32 %v4484_v20, %v8308_v27  ;;  %v3215_v62 = vmul.f32 %v3214_v8, %v8266_v39  ;;  %v1396_v50 = vsel %vm1394_vm4, %v1395_v28, %v1393_v19 }
 0x64f   : > { %v4040_v46 = vmul.f32 0.5, %v4039_v53  ;;  %v1423_v47 = vsub.f32 2.0, %v1396_v50 }
 0x650   : > { %v4091_v41 = vmul.f32 %v4090_v51, %v8280_v23  ;;  %v4063_v48 = vmul.f32 %v4484_v20, %v4062_v4  ;;  %v3931_v15 = vpop.xlane.xlu2 %3930  ;;  %v3217_v56 = vsel %vm3216_vm3, %v8266_v39, %v3215_v62 }
 0x651   : > { %v4041_v35 = vsub.f32 1.5, %v4040_v46  ;;  %v8328_v31 = vmax.f32 %v3931_v15, 0.0  ;;  %v3220_v51 = vsel %vm3218_vm9, %v3219_v63, %v3217_v56  ;;  %v1439_v28 = vmax.f32 %v1423_v47, 0.0 }
 0x652   : > { %v4093_v25 = vsel %vm4092_vm13, %v8280_v23, %v4091_v41  ;;  %v4064_v58 = vmul.f32 0.5, %v4063_v48  ;;  %v2303_v23 = vmul.f32 %v2302_v17, %v8259_v10  ;;  %v3911_v38 = vpop.xlane.xlu1 %3910  ;;  %v3247_v46 = vsub.f32 2.0, %v3220_v51 }
 0x653   : > { %v4096_v57 = vsel %vm4094_vm14, %v4095_v16, %v4093_v25  ;;  %v4042_v22 = vmul.f32 %v4482_v12, %v4041_v35  ;;  %4485 = vrsqrt.f32 %v8328_v31  ;;  %v8343_v13 = vmax.f32 %v3911_v38, 0.0 }
 0x654   : > { %v4156_v18 = vsub.f32 2.0, %v4096_v57  ;;  %v4065_v3 = vsub.f32 1.5, %v4064_v58  ;;  %v2305_v26 = vsel %vm2304_vm7, %v8259_v10, %v2303_v23  ;;  %v3263_v58 = vmax.f32 %v3247_v46, 0.0 }
 0x655   : > { %v4043_v6 = vmul.f32 %v4042_v22, %v8298_v1  ;;  %4487 = vrsqrt.f32 %v8343_v13  ;;  %v2308_v12 = vsel %vm2306_vm1, %v2307_v55, %v2305_v26  ;;  %vm4128_vm10 = vcmp.eq.f32.partialorder %v8328_v31, inf }
 0x656   : > { %v4172_v21 = vmax.f32 %v4156_v18, 0.0  ;;  %v4066_v44 = vmul.f32 %v4484_v20, %v4065_v3  ;;  %v2335_v10 = vsub.f32 2.0, %v2308_v12  ;;  %v4131_v8 = vand.u32 2147483648, %v8328_v31 }
 0x657   : > { %v4045_v40 = vsel %vm4044_vm5, %v8298_v1, %v4043_v6  ;;  %v3921_v54 = vpop.xlane.xlu0 %3920  ;;  %vm4130_vm11 = vcmp.eq.f32.partialorder %v8328_v31, 0.0  ;;  %vm4080_vm12 = vcmp.eq.f32.partialorder %v8343_v13, inf  ;;  %v4083_v26 = vand.u32 2147483648, %v8343_v13 }
 0x658   : > { %v4188_v14 = vadd.f32 %v4172_v21, %v7990_v2  ;;  %v4048_v42 = vsel %vm4046_vm6, %v4047_v11, %v4045_v40  ;;  %v4067_v9 = vmul.f32 %v4066_v44, %v8308_v27  ;;  %v4071_v2 = vand.u32 2147483648, %v8308_v27 }
 0x659   : > { %v4486_v24 = vpop.eup %4485  ;;  %v4152_v33 = vsub.f32 2.0, %v4048_v42  ;;  %v8358_v49 = vmax.f32 %v3921_v54, 0.0  ;;  %v2351_v25 = vmax.f32 %v2335_v10, 0.0  ;;  %vm4082_vm13 = vcmp.eq.f32.partialorder %v8343_v13, 0.0 }
 0x65a   : > { %4205 = vst.msk [vmem:[%s4645_s28 + $0x58] sm:$0xff] %vm4193_vm0, %v4188_v14  ;;  %v4069_v1 = vsel %vm4068_vm8, %v8308_v27, %v4067_v9  ;;  %v4122_v0 = vmul.f32 %v4486_v24, %v8328_v31 }
 0x65b   : > { %v4168_v59 = vmax.f32 %v4152_v33, 0.0  ;;  %v4072_v32 = vsel %vm4070_vm2, %v4071_v2, %v4069_v1  ;;  %4489 = vrsqrt.f32 %v8358_v49  ;;  %v4488_v61 = vpop.eup %4487  ;;  %v2367_v3 = vadd.f32 %v2351_v25, %v1439_v28 }
 0x65c   : > { %v4154_v43 = vsub.f32 2.0, %v4072_v32  ;;  %v4123_v36 = vmul.f32 %v4486_v24, %v4122_v0  ;;  %v4074_v29 = vmul.f32 %v4488_v61, %v8343_v13  ;;  %vm4104_vm14 = vcmp.eq.f32.partialorder %v8358_v49, inf }
 0x65d   : > { %v4184_v27 = vadd.f32 %v4168_v59, %v7999_v34  ;;  %v3279_v62 = vadd.f32 %v3263_v58, %v2367_v3  ;;  %v4107_v59 = vand.u32 2147483648, %v8358_v49  ;;  %vm4106_vm15 = vcmp.eq.f32.partialorder %v8358_v49, 0.0 }
 0x65e   : > { %v3926_v60 = vpop.xlane.xlu1 %3925  ;;  %v4170_v20 = vmax.f32 %v4154_v43, 0.0  ;;  %v4124_v53 = vmul.f32 0.5, %v4123_v36  ;;  %v4075_v17 = vmul.f32 %v4488_v61, %v4074_v29 }
 0x65f   : > { %v8373_v4 = vmax.f32 %v3926_v60, 0.0  ;;  %4201 = vst.msk [vmem:[%s4645_s28 + $0x38] sm:$0xff] %vm4193_vm0, %v4184_v27 }
 0x660   : > { %v4186_v41 = vadd.f32 %v4170_v20, %v8002_v5  ;;  %v4125_v39 = vsub.f32 1.5, %v4124_v53  ;;  %v4076_v35 = vmul.f32 0.5, %v4075_v17 }
 0x661   : > { %v3936_v30 = vpop.xlane.xlu0 %3935  ;;  %4491 = vrsqrt.f32 %v8373_v4  ;;  %v4490_v34 = vpop.eup %4489  ;;  %vm4116_vm4 = vcmp.eq.f32.partialorder %v8373_v4, inf  ;;  %v4119_v51 = vand.u32 2147483648, %v8373_v4  ;;  %vm4118_vm7 = vcmp.eq.f32.partialorder %v8373_v4, 0.0 }
 0x662   : > { %v8380_v16 = vmax.f32 %v3936_v30, 0.0  ;;  %4203 = vst.msk [vmem:[%s4645_s28 + $0x48] sm:$0xff] %vm4193_vm0, %v4186_v41  ;;  %v4126_v48 = vmul.f32 %v4486_v24, %v4125_v39  ;;  %v4098_v15 = vmul.f32 %v4490_v34, %v8358_v49  ;;  %v4077_v18 = vsub.f32 1.5, %v4076_v35 }
 0x664   : > { %4493 = vrsqrt.f32 %v8380_v16  ;;  %v4127_v5 = vmul.f32 %v4126_v48, %v8328_v31  ;;  %v4099_v57 = vmul.f32 %v4490_v34, %v4098_v15  ;;  %v4078_v21 = vmul.f32 %v4488_v61, %v4077_v18 }
 0x665   : > { %vm4140_vm1 = vcmp.eq.f32.partialorder %v8380_v16, inf  ;;  %v4143_v47 = vand.u32 2147483648, %v8380_v16  ;;  %vm4142_vm5 = vcmp.eq.f32.partialorder %v8380_v16, 0.0 }
 0x666   : > { %v4129_v19 = vsel %vm4128_vm10, %v8328_v31, %v4127_v5  ;;  %v4100_v23 = vmul.f32 0.5, %v4099_v57  ;;  %v4079_v14 = vmul.f32 %v4078_v21, %v8343_v13 }
 0x667   : > { %v4492_v22 = vpop.eup %4491  ;;  %v4132_v55 = vsel %vm4130_vm11, %v4131_v8, %v4129_v19 }
 0x668   : > { %v4110_v6 = vmul.f32 %v4492_v22, %v8373_v4  ;;  %v4159_v38 = vsub.f32 2.0, %v4132_v55  ;;  %v4101_v11 = vsub.f32 1.5, %v4100_v23  ;;  %v4081_v9 = vsel %vm4080_vm12, %v8343_v13, %v4079_v14 }
 0x669   : > { %v4084_v2 = vsel %vm4082_vm13, %v4083_v26, %v4081_v9 }
 0x66a   : > { %v4494_v44 = vpop.eup %4493  ;;  %v4111_v40 = vmul.f32 %v4492_v22, %v4110_v6  ;;  %v4175_v54 = vmax.f32 %v4159_v38, 0.0  ;;  %v4102_v31 = vmul.f32 %v4490_v34, %v4101_v11  ;;  %v4155_v56 = vsub.f32 2.0, %v4084_v2 }
 0x66b   : > { %v4134_v42 = vmul.f32 %v4494_v44, %v8380_v16 }
 0x66c   : > { %v4112_v24 = vmul.f32 0.5, %v4111_v40  ;;  %v4191_v33 = vadd.f32 %v4175_v54, %v3279_v62  ;;  %v4103_v1 = vmul.f32 %v4102_v31, %v8358_v49  ;;  %v4171_v63 = vmax.f32 %v4155_v56, 0.0 }
 0x66d   : > { %v4135_v0 = vmul.f32 %v4494_v44, %v4134_v42 }
 0x66e   : > { %v4113_v32 = vsub.f32 1.5, %v4112_v24  ;;  %4208 = vst.msk [vmem:[%s4645_s28 + $0x70] sm:$0xff] %vm4193_vm0, %v4191_v33  ;;  %v4105_v12 = vsel %vm4104_vm14, %v8358_v49, %v4103_v1  ;;  %v4187_v60 = vadd.f32 %v4171_v63, %v8012_v45 }
 0x66f   : > { %v4136_v13 = vmul.f32 0.5, %v4135_v0  ;;  %v4108_v43 = vsel %vm4106_vm15, %v4107_v59, %v4105_v12 }
 0x670   : > { %v4114_v36 = vmul.f32 %v4492_v22, %v4113_v32  ;;  %v4157_v50 = vsub.f32 2.0, %v4108_v43  ;;  %4204 = vst.msk [vmem:[%s4645_s28 + $0x50] sm:$0xff] %vm4193_vm0, %v4187_v60 }
 0x671   : > { %v4137_v27 = vsub.f32 1.5, %v4136_v13 }
 0x672   : > { %v4115_v61 = vmul.f32 %v4114_v36, %v8373_v4  ;;  %v4173_v20 = vmax.f32 %v4157_v50, 0.0 }
 0x673   : > { %v4138_v53 = vmul.f32 %v4494_v44, %v4137_v27 }
 0x674   : > { %v4117_v49 = vsel %vm4116_vm4, %v8373_v4, %v4115_v61  ;;  %v4189_v10 = vadd.f32 %v4173_v20, %v8016_v7 }
 0x675   : > { %v4120_v29 = vsel %vm4118_vm7, %v4119_v51, %v4117_v49  ;;  %v4139_v45 = vmul.f32 %v4138_v53, %v8380_v16 }
 0x676   : > { %v4158_v30 = vsub.f32 2.0, %v4120_v29  ;;  %4206 = vst.msk [vmem:[%s4645_s28 + $0x60] sm:$0xff] %vm4193_vm0, %v4189_v10 }
 0x677   : > { %v4141_v41 = vsel %vm4140_vm1, %v8380_v16, %v4139_v45 }
 0x678   : > { %v4174_v39 = vmax.f32 %v4158_v30, 0.0  ;;  %v4144_v34 = vsel %vm4142_vm5, %v4143_v47, %v4141_v41 }
 0x679   : > { %v4160_v4 = vsub.f32 2.0, %v4144_v34 }
 0x67a   : > { %v4190_v7 = vadd.f32 %v4174_v39, %v8018_v37 }
 0x67b   : > { %v4176_v46 = vmax.f32 %v4160_v4, 0.0 }
 0x67c   : > { %4207 = vst.msk [vmem:[%s4645_s28 + $0x68] sm:$0xff] %vm4193_vm0, %v4190_v7 }
 0x67d   : > { %v4192_v17 = vadd.f32 %v4176_v46, %v8021_v52 }
 0x67f   : > { %4209 = vst.msk [vmem:[%s4645_s28 + $0x78] sm:$0xff] %vm4193_vm0, %v4192_v17 }
 0x680 PF: > { %s12_s11 = sadd.s32 1, %s4581_s11   ;;  %s9219_s9 = smov %s4577_s10 }
 0x681   : > { %p9_p8 = scmp.ge.s32.totalorder %s12_s11, 4   ;;  %s9220_s10 = smov %s9222_s12 }
 0x683   :  { %11 = sbr.rel (!%p9_p8) target bundleno = 2 (0x2), region = 73 }

</bundles_post_ra>
